<compile_context>
chip_gen: v5e
topology: v5e:2x2
jax: 0.10.0
libtpu: 0.0.40
codegen_flags: <defaults>
</compile_context>

<pallas_src>
import functools

import jax
import jax.numpy as jnp
from jax.experimental import pallas as pl
from jax.experimental.pallas import tpu as pltpu


# ----------------------------------------------------------------------------
# Tiling constants.  128/256-aligned tiles map onto both the 128x128 (v5e) and
# 256x256 (v6e/v7x) MXU geometries; the 48 MiB VMEM cap leaves headroom on
# v7x's 64 MiB per-TensorCore VMEM while still allowing large tiles.
# ----------------------------------------------------------------------------
TM = 512
TN = 256
TK = 512
HEAD_TARGET_ROWS = 512            # target output pixels per head grid step
VMEM_LIMIT = 48 * 1024 * 1024

OUT_CHANNEL = 1024
HEAD_MID = 256
BN_EPS = 1e-5


def _round_up(x, m):
    return (x + m - 1) // m * m


def _pad2(x, rows, cols):
    r, c = x.shape
    if r == rows and c == cols:
        return x
    return jnp.pad(x, ((0, rows - r), (0, cols - c)))


# ----------------------------------------------------------------------------
# Pallas kernel 1: tiled GEMM + per-output-channel affine (BN) + optional ReLU
# (used by the stand-in backbone conv)
# ----------------------------------------------------------------------------
def _matmul_affine_kernel(a_ref, w_ref, scale_ref, shift_ref, o_ref, acc_ref,
                          *, apply_relu):
    @pl.when(pl.program_id(2) == 0)
    def _init():
        acc_ref[...] = jnp.zeros_like(acc_ref)

    acc_ref[...] += jnp.dot(a_ref[...], w_ref[...],
                            preferred_element_type=jnp.float32)

    @pl.when(pl.program_id(2) == pl.num_programs(2) - 1)
    def _finish():
        acc = acc_ref[...] * scale_ref[...] + shift_ref[...]
        if apply_relu:
            acc = jnp.maximum(acc, 0.0)
        o_ref[...] = acc.astype(o_ref.dtype)


def matmul_affine(a, w, scale, shift, *, relu, out_dtype=jnp.float32,
                  compute_dtype=jnp.bfloat16):
    """(M,K) @ (K,N) * scale + shift [, relu] -> (M,N), tiled Pallas GEMM."""
    m, k = a.shape
    k2, n = w.shape
    assert k == k2

    tm = TM if m >= TM else _round_up(m, 16)
    tn = TN if n >= TN else _round_up(n, 128)     # lane-dense output stores
    tk = TK if k >= TK else _round_up(k, 128)
    mp, np_, kp = _round_up(m, tm), _round_up(n, tn), _round_up(k, tk)

    a_p = _pad2(a.astype(compute_dtype), mp, kp)
    w_p = _pad2(w.astype(compute_dtype), kp, np_)
    scale_p = _pad2(scale.reshape(1, n).astype(jnp.float32), 1, np_)
    shift_p = _pad2(shift.reshape(1, n).astype(jnp.float32), 1, np_)

    grid = (mp // tm, np_ // tn, kp // tk)
    isz = jnp.dtype(compute_dtype).itemsize
    cost = pl.CostEstimate(
        flops=2 * mp * np_ * kp,
        transcendentals=0,
        bytes_accessed=(a_p.size * isz * grid[1]
                        + w_p.size * isz * grid[0]
                        + mp * np_ * jnp.dtype(out_dtype).itemsize))

    out = pl.pallas_call(
        functools.partial(_matmul_affine_kernel, apply_relu=relu),
        out_shape=jax.ShapeDtypeStruct((mp, np_), out_dtype),
        grid=grid,
        in_specs=[
            pl.BlockSpec((tm, tk), lambda i, j, kk: (i, kk)),
            pl.BlockSpec((tk, tn), lambda i, j, kk: (kk, j)),
            pl.BlockSpec((1, tn), lambda i, j, kk: (0, j)),
            pl.BlockSpec((1, tn), lambda i, j, kk: (0, j)),
        ],
        out_specs=pl.BlockSpec((tm, tn), lambda i, j, kk: (i, j)),
        scratch_shapes=[pltpu.VMEM((tm, tn), jnp.float32)],
        compiler_params=pltpu.CompilerParams(
            dimension_semantics=("parallel", "parallel", "arbitrary"),
            vmem_limit_bytes=VMEM_LIMIT,
        ),
        cost_estimate=cost,
    )(a_p, w_p, scale_p, shift_p)
    return out[:m, :n]


# ----------------------------------------------------------------------------
# Pallas kernel 2: fused, tap-folded head
#   relu(BN(conv3x3(x4))) @ w2   — the 3x3 conv's 9 taps are folded in-kernel
# by reading 9 statically-offset row slices of a flattened halo'd spatial
# tile, so the im2col matrix never exists in HBM and the 256-channel hidden
# activation never leaves VMEM.
# ----------------------------------------------------------------------------
def _head_tapfold_kernel(x_ref, w1_ref, scale_ref, shift_ref, w2_ref, o_ref,
                         acc_ref, *, wsp, m_acc):
    """x_ref:   (flat_pad, C) bf16  flattened (rows-major) halo'd spatial tile,
                spatially zero-padded; wsp = padded row width (Ws + 2)
       w1_ref:  (9, C, MID)  bf16   conv3x3 weights, one (C, MID) slab per tap
       scale_ref/shift_ref: (1, MID) f32   folded BatchNorm (eval mode)
       w2_ref:  (MID, NCP)   bf16   1x1-conv weights, classes padded to 128
       o_ref:   (m_acc, NCP)        logits (m_acc = tile_rows * wsp, the
                                    per-row junk columns are sliced off outside)
       acc_ref: (m_acc, MID) f32    accumulator scratch
    Output row m = i*wsp + j; tap (dh, dw) reads x_ref[dh*wsp + dw + m]."""
    for tap in range(9):
        dh, dw = divmod(tap, 3)
        off = dh * wsp + dw
        a = x_ref[off:off + m_acc, :]
        contrib = jnp.dot(a, w1_ref[tap], preferred_element_type=jnp.float32)
        if tap == 0:
            acc_ref[...] = contrib
        else:
            acc_ref[...] += contrib
    h = jnp.maximum(acc_ref[...] * scale_ref[...] + shift_ref[...], 0.0)
    o_ref[...] = jnp.dot(h.astype(w2_ref.dtype), w2_ref[...],
                         preferred_element_type=jnp.float32).astype(o_ref.dtype)


def head_conv_bn_relu_conv(x4_nhwc, w1_taps, bn_scale, bn_shift, w2, *,
                           compute_dtype=jnp.bfloat16,
                           out_dtype=jnp.bfloat16):
    """x4:(N,Hs,Ws,C), w1_taps:(9,C,MID), w2:(MID,NC) -> logits (N,Hs,Ws,NC)."""
    n, hs, ws, c = x4_nhwc.shape
    taps, c2, mid = w1_taps.shape
    mid2, nc = w2.shape
    assert taps == 9 and c == c2 and mid == mid2

    # Row tiling: ~HEAD_TARGET_ROWS output pixels per grid step; guarantee at
    # least 2 grid steps (when possible) so v7x's two TensorCores both get work.
    tr = max(1, min(hs, pl.cdiv(HEAD_TARGET_ROWS, ws)))
    if n * pl.cdiv(hs, tr) < 2 and hs >= 2:
        tr = pl.cdiv(hs, 2)
    n_rt = pl.cdiv(hs, tr)
    hs_pad = n_rt * tr
    wsp = ws + 2                      # padded row width (conv padding = 1)
    m_acc = tr * wsp                  # GEMM rows per tile (incl. junk columns)
    flat_len = (tr + 2) * wsp
    flat_pad = _round_up(flat_len + 2, 8)   # +2 so tap (2,2) junk rows stay in-bounds
    ncp = _round_up(nc, 128)          # lane-dense class dim

    # Zero-pad spatially (conv pad=1 + row-tile remainder) and build halo'd,
    # non-overlapping row tiles: ~2/tr duplicated rows instead of 9x im2col.
    x4p = jnp.pad(x4_nhwc.astype(compute_dtype),
                  ((0, 0), (1, 1 + hs_pad - hs), (1, 1), (0, 0)))
    tiles = jnp.stack([x4p[:, r * tr: r * tr + tr + 2] for r in range(n_rt)],
                      axis=1)                     # (n, n_rt, tr+2, wsp, c)
    x4_flat = tiles.reshape(n * n_rt, flat_len, c)
    x4_flat = jnp.pad(x4_flat, ((0, 0), (0, flat_pad - flat_len), (0, 0)))

    w1_p = w1_taps.astype(compute_dtype)          # (9,c,mid) ~4.5 MiB, resident
    w2_p = _pad2(w2.astype(compute_dtype), mid, ncp)
    scale_p = bn_scale.reshape(1, mid).astype(jnp.float32)
    shift_p = bn_shift.reshape(1, mid).astype(jnp.float32)

    n_tiles = n * n_rt
    isz = jnp.dtype(compute_dtype).itemsize
    cost = pl.CostEstimate(
        flops=2 * n_tiles * m_acc * (9 * c) * mid
              + 2 * n_tiles * m_acc * mid * ncp,
        transcendentals=0,
        bytes_accessed=(x4_flat.size * isz + w1_p.size * isz + w2_p.size * isz
                        + n_tiles * m_acc * ncp * jnp.dtype(out_dtype).itemsize))

    out = pl.pallas_call(
        functools.partial(_head_tapfold_kernel, wsp=wsp, m_acc=m_acc),
        out_shape=jax.ShapeDtypeStruct((n_tiles, m_acc, ncp), out_dtype),
        grid=(n_tiles,),
        in_specs=[
            pl.BlockSpec((None, flat_pad, c), lambda t: (t, 0, 0)),
            pl.BlockSpec((9, c, mid), lambda t: (0, 0, 0)),    # VMEM-resident
            pl.BlockSpec((1, mid), lambda t: (0, 0)),          # VMEM-resident
            pl.BlockSpec((1, mid), lambda t: (0, 0)),          # VMEM-resident
            pl.BlockSpec((mid, ncp), lambda t: (0, 0)),        # VMEM-resident
        ],
        out_specs=pl.BlockSpec((None, m_acc, ncp), lambda t: (t, 0, 0)),
        scratch_shapes=[pltpu.VMEM((m_acc, mid), jnp.float32)],
        compiler_params=pltpu.CompilerParams(
            dimension_semantics=("parallel",),
            vmem_limit_bytes=VMEM_LIMIT,
        ),
        cost_estimate=cost,
    )(x4_flat, w1_p, scale_p, shift_p, w2_p)

    # Drop per-row junk columns (j >= ws) and padded rows / classes.
    out = out.reshape(n, n_rt, tr, wsp, ncp)[:, :, :, :ws, :nc]
    out = out.reshape(n, hs_pad, ws, nc)[:, :hs]
    return out                                     # (n, hs, ws, nc)


# ----------------------------------------------------------------------------
# Glue: im2col for the stand-in backbone's 3x3 conv (padding=1), NHWC
# ----------------------------------------------------------------------------
def im2col_3x3(x_nhwc, stride):
    n, h, w, c = x_nhwc.shape
    xp = jnp.pad(x_nhwc, ((0, 0), (1, 1), (1, 1), (0, 0)))
    ho = (h + 2 - 3) // stride + 1
    wo = (w + 2 - 3) // stride + 1
    cols = []
    for dh in range(3):
        for dw in range(3):
            sl = xp[:,
                    dh: dh + (ho - 1) * stride + 1: stride,
                    dw: dw + (wo - 1) * stride + 1: stride,
                    :]
            cols.append(sl)
    patches = jnp.stack(cols, axis=3)              # (N, Ho, Wo, 9, C)
    return patches.reshape(n * ho * wo, 9 * c), ho, wo


def conv3x3_weight_to_gemm(w_oihw):
    """(Cout, Cin, 3, 3) torch layout -> (9*Cin, Cout) matching im2col order."""
    cout, cin, _, _ = w_oihw.shape
    return jnp.transpose(w_oihw, (2, 3, 1, 0)).reshape(9 * cin, cout)


# ----------------------------------------------------------------------------
# Bilinear upsample (align_corners=True), plain XLA gather + f32 lerps.
# Tiny tensors (num_classes channels) — not worth a Pallas kernel.
# ----------------------------------------------------------------------------
def _axis_lerp_coords(out_size, in_size):
    if out_size == 1 or in_size == 1:
        src = jnp.zeros((out_size,), jnp.float32)
    else:
        src = jnp.arange(out_size, dtype=jnp.float32) * (
            (in_size - 1) / (out_size - 1))
    lo = jnp.clip(jnp.floor(src).astype(jnp.int32), 0, in_size - 1)
    hi = jnp.minimum(lo + 1, in_size - 1)
    frac = src - lo.astype(jnp.float32)
    return lo, hi, frac


def bilinear_upsample_nhwc_to_nchw(x_nhwc, h_out, w_out):
    x = x_nhwc.astype(jnp.float32)
    j0, j1, fw = _axis_lerp_coords(w_out, x.shape[2])
    xw = (jnp.take(x, j0, axis=2) * (1.0 - fw)[None, None, :, None]
          + jnp.take(x, j1, axis=2) * fw[None, None, :, None])
    i0, i1, fh = _axis_lerp_coords(h_out, x.shape[1])
    xh = (jnp.take(xw, i0, axis=1) * (1.0 - fh)[None, :, None, None]
          + jnp.take(xw, i1, axis=1) * fh[None, :, None, None])
    return jnp.transpose(xh, (0, 3, 1, 2))          # NCHW


# ----------------------------------------------------------------------------
# Parameters (deterministic init, shapes from MyNet.__init__)
# ----------------------------------------------------------------------------
def init_params(key, in_ch, num_classes):
    k0, k1, k2 = jax.random.split(key, 3)
    # Stand-in backbone conv: 3x3, in_ch -> 1024, stride=down_rate, no bias
    std_bb = (2.0 / (in_ch * 9)) ** 0.5
    w_bb = jax.random.normal(k0, (OUT_CHANNEL, in_ch, 3, 3), jnp.float32) * std_bb
    # final_seg[0]: Conv2d(1024, 256, k=3, pad=1, bias=False), kaiming_normal (relu)
    std1 = (2.0 / (OUT_CHANNEL * 9)) ** 0.5
    w1 = jax.random.normal(k1, (HEAD_MID, OUT_CHANNEL, 3, 3), jnp.float32) * std1
    # final_seg[1]: BatchNorm2d(256): gamma=1, beta=1e-4, running stats (0, 1)
    gamma = jnp.ones((HEAD_MID,), jnp.float32)
    beta = jnp.full((HEAD_MID,), 1e-4, jnp.float32)
    run_mean = jnp.zeros((HEAD_MID,), jnp.float32)
    run_var = jnp.ones((HEAD_MID,), jnp.float32)
    # final_seg[3]: Conv2d(256, num_classes, k=1, bias=False), kaiming_normal
    std2 = (2.0 / HEAD_MID) ** 0.5
    w2 = jax.random.normal(k2, (num_classes, HEAD_MID, 1, 1), jnp.float32) * std2
    return dict(w_bb=w_bb, w1=w1, gamma=gamma, beta=beta,
                run_mean=run_mean, run_var=run_var, w2=w2)


# ----------------------------------------------------------------------------
# Forward pass (aux_branch=False path)
# ----------------------------------------------------------------------------
def mynet_forward(x_nchw, params, *, num_classes, down_rate):
    n, cin, h, w = x_nchw.shape
    x_nhwc = jnp.transpose(x_nchw, (0, 2, 3, 1)).astype(jnp.bfloat16)

    # --- stand-in backbone: strided 3x3 conv -> ReLU producing x4 (bf16) ---
    p_bb, hs, ws = im2col_3x3(x_nhwc, stride=down_rate)
    w_bb = conv3x3_weight_to_gemm(params["w_bb"])
    x4 = matmul_affine(p_bb, w_bb,
                       jnp.ones((OUT_CHANNEL,), jnp.float32),
                       jnp.zeros((OUT_CHANNEL,), jnp.float32),
                       relu=True, out_dtype=jnp.bfloat16)    # (N*Hs*Ws, 1024)
    x4_nhwc = x4.reshape(n, hs, ws, OUT_CHANNEL)

    # --- final_seg: conv3x3(no bias) + BN(eval) + ReLU + conv1x1, fully fused
    #     tap-folded kernel (no 9x im2col; w1/w2/BN resident in VMEM) ---
    inv_std = 1.0 / jnp.sqrt(params["run_var"] + BN_EPS)
    bn_scale = params["gamma"] * inv_std
    bn_shift = params["beta"] - params["run_mean"] * bn_scale
    w1_taps = jnp.transpose(params["w1"], (2, 3, 1, 0)).reshape(
        9, OUT_CHANNEL, HEAD_MID)                            # (9, Cin, Cout)
    w2 = params["w2"].reshape(num_classes, HEAD_MID).T       # (256, nc)
    logits_nhwc = head_conv_bn_relu_conv(x4_nhwc, w1_taps, bn_scale, bn_shift,
                                         w2)                 # (n, hs, ws, nc)

    # --- bilinear upsample (align_corners=True) to input size ---
    return bilinear_upsample_nhwc_to_nchw(logits_nhwc, h, w)  # NCHW, f32


# ----------------------------------------------------------------------------
if __name__ == "__main__":
    num_classes = 4
    down_rate = 8
    n, cin, h, w = 2, 3, 16, 16   # input NCHW

    key = jax.random.PRNGKey(0)
    k_par, k_x = jax.random.split(key)
    params = init_params(k_par, cin, num_classes)
    x = jax.random.normal(k_x, (n, cin, h, w), jnp.float32)

    fwd = jax.jit(functools.partial(mynet_forward,
                                    num_classes=num_classes,
                                    down_rate=down_rate))
    out = jax.block_until_ready(fwd(x, params))

    assert out.shape == (n, num_classes, h, w), out.shape
    assert bool(jnp.all(jnp.isfinite(out)))
    print("KERNEL_OK")
</pallas_src>

<mosaic_0001>
module attributes {stable_mosaic.version = 11 : i64} {
  func.func @_matmul_affine_kernel(%arg0: i32, %arg1: i32, %arg2: i32, %arg3: memref<16x128xbf16, #tpu.memory_space<vmem>>, %arg4: memref<128x256xbf16, #tpu.memory_space<vmem>>, %arg5: memref<1x256xf32, #tpu.memory_space<vmem>>, %arg6: memref<1x256xf32, #tpu.memory_space<vmem>>, %arg7: memref<16x256xbf16, #tpu.memory_space<vmem>>, %arg8: memref<16x256xf32, #tpu.memory_space<vmem>>) attributes {dimension_semantics = [#tpu.dimension_semantics<parallel>, #tpu.dimension_semantics<parallel>, #tpu.dimension_semantics<arbitrary>], iteration_bounds = array<i64: 1, 4, 1>, scalar_prefetch = 0 : i64, scratch_operands = 1 : i64, tpu.core_type = #tpu.core_type<tc>, window_params = [{transform_indices = @transform_0, window_bounds = array<i64: 16, 128>}, {transform_indices = @transform_1, window_bounds = array<i64: 128, 256>}, {transform_indices = @transform_2, window_bounds = array<i64: 1, 256>}, {transform_indices = @transform_3, window_bounds = array<i64: 1, 256>}, {transform_indices = @transform_4, window_bounds = array<i64: 16, 256>}]} {
    %c0_i32 = arith.constant 0 : i32
    %0 = arith.cmpi eq, %arg2, %c0_i32 : i32
    %1 = arith.extui %0 : i1 to i32
    %c0_i32_0 = arith.constant 0 : i32
    %2 = arith.cmpi ne, %1, %c0_i32_0 : i32
    scf.if %2 {
      %cst_10 = arith.constant 0.000000e+00 : f32
      %12 = vector.broadcast %cst_10 : f32 to vector<16x256xf32>
      %c0_11 = arith.constant 0 : index
      %c0_12 = arith.constant 0 : index
      %13 = vector.load %arg8[%c0_11, %c0_12] : memref<16x256xf32, #tpu.memory_space<vmem>>, vector<16x256xf32>
      tpu.vector_store %arg8[%c0_11, %c0_12], %12 {strides = array<i32>} : memref<16x256xf32, #tpu.memory_space<vmem>>, vector<16x256xf32>,
    } else {
    }
    %c0 = arith.constant 0 : index
    %c0_1 = arith.constant 0 : index
    %3 = vector.load %arg8[%c0, %c0_1] : memref<16x256xf32, #tpu.memory_space<vmem>>, vector<16x256xf32>
    %c0_2 = arith.constant 0 : index
    %c0_3 = arith.constant 0 : index
    %4 = vector.load %arg3[%c0_2, %c0_3] : memref<16x128xbf16, #tpu.memory_space<vmem>>, vector<16x128xbf16>
    %c0_4 = arith.constant 0 : index
    %c0_5 = arith.constant 0 : index
    %5 = vector.load %arg4[%c0_4, %c0_5] : memref<128x256xbf16, #tpu.memory_space<vmem>>, vector<128x256xbf16>
    %cst = arith.constant dense<0.000000e+00> : vector<16x256xf32>
    %6 = tpu.matmul %4, %5, %cst {dimension_numbers = #tpu.dot_dimension_numbers<[1], [0], [0], [1], [0, 0, 1, 1], [], []>} : vector<16x128xbf16>, vector<128x256xbf16>, vector<16x256xf32> -> vector<16x256xf32>
    %7 = arith.addf %3, %6 : vector<16x256xf32>
    %c0_6 = arith.constant 0 : index
    %c0_7 = arith.constant 0 : index
    %8 = vector.load %arg8[%c0_6, %c0_7] : memref<16x256xf32, #tpu.memory_space<vmem>>, vector<16x256xf32>
    tpu.vector_store %arg8[%c0_6, %c0_7], %7 {strides = array<i32>} : memref<16x256xf32, #tpu.memory_space<vmem>>, vector<16x256xf32>,
    %c0_i32_8 = arith.constant 0 : i32
    %9 = arith.cmpi eq, %arg2, %c0_i32_8 : i32
    %10 = arith.extui %9 : i1 to i32
    %c0_i32_9 = arith.constant 0 : i32
    %11 = arith.cmpi ne, %10, %c0_i32_9 : i32
    scf.if %11 {
      %c0_10 = arith.constant 0 : index
      %c0_11 = arith.constant 0 : index
      %12 = vector.load %arg8[%c0_10, %c0_11] : memref<16x256xf32, #tpu.memory_space<vmem>>, vector<16x256xf32>
      %c0_12 = arith.constant 0 : index
      %c0_13 = arith.constant 0 : index
      %13 = vector.load %arg5[%c0_12, %c0_13] : memref<1x256xf32, #tpu.memory_space<vmem>>, vector<1x256xf32>
      %14 = vector.broadcast %13 : vector<1x256xf32> to vector<16x256xf32>
      %15 = arith.mulf %12, %14 : vector<16x256xf32>
      %c0_14 = arith.constant 0 : index
      %c0_15 = arith.constant 0 : index
      %16 = vector.load %arg6[%c0_14, %c0_15] : memref<1x256xf32, #tpu.memory_space<vmem>>, vector<1x256xf32>
      %17 = vector.broadcast %16 : vector<1x256xf32> to vector<16x256xf32>
      %18 = arith.addf %15, %17 : vector<16x256xf32>
      %cst_16 = arith.constant 0.000000e+00 : f32
      %19 = vector.broadcast %cst_16 : f32 to vector<16x256xf32>
      %20 = arith.maximumf %18, %19 : vector<16x256xf32>
      %21 = arith.truncf %20 : vector<16x256xf32> to vector<16x256xbf16>
      %c0_17 = arith.constant 0 : index
      %c0_18 = arith.constant 0 : index
      %22 = vector.load %arg7[%c0_17, %c0_18] : memref<16x256xbf16, #tpu.memory_space<vmem>>, vector<16x256xbf16>
      tpu.vector_store %arg7[%c0_17, %c0_18], %21 {strides = array<i32>} : memref<16x256xbf16, #tpu.memory_space<vmem>>, vector<16x256xbf16>,
    } else {
    }
    return
  }
  func.func @transform_0(%arg0: i32, %arg1: i32, %arg2: i32) -> (i32, i32) {
    %c0_i32 = arith.constant 0 : i32
    return %arg0, %arg2 : i32, i32
  }
  func.func @transform_1(%arg0: i32, %arg1: i32, %arg2: i32) -> (i32, i32) {
    %c0_i32 = arith.constant 0 : i32
    return %arg2, %arg1 : i32, i32
  }
  func.func @transform_2(%arg0: i32, %arg1: i32, %arg2: i32) -> (i32, i32) {
    %c0_i32 = arith.constant 0 : i32
    %c0_i32_0 = arith.constant 0 : i32
    return %c0_i32, %arg1 : i32, i32
  }
  func.func @transform_3(%arg0: i32, %arg1: i32, %arg2: i32) -> (i32, i32) {
    %c0_i32 = arith.constant 0 : i32
    %c0_i32_0 = arith.constant 0 : i32
    return %c0_i32, %arg1 : i32, i32
  }
  func.func @transform_4(%arg0: i32, %arg1: i32, %arg2: i32) -> (i32, i32) {
    %c0_i32 = arith.constant 0 : i32
    return %arg0, %arg1 : i32, i32
  }
}

module attributes {stable_mosaic.version = 11 : i64} {
  func.func @_head_tapfold_kernel(%arg0: i32, %arg1: memref<1x24x1024xbf16, #tpu.memory_space<vmem>>, %arg2: memref<9x1024x256xbf16, #tpu.memory_space<vmem>>, %arg3: memref<1x256xf32, #tpu.memory_space<vmem>>, %arg4: memref<1x256xf32, #tpu.memory_space<vmem>>, %arg5: memref<256x128xbf16, #tpu.memory_space<vmem>>, %arg6: memref<1x8x128xbf16, #tpu.memory_space<vmem>>, %arg7: memref<8x256xf32, #tpu.memory_space<vmem>>) attributes {dimension_semantics = [#tpu.dimension_semantics<parallel>], iteration_bounds = array<i64: 2>, scalar_prefetch = 0 : i64, scratch_operands = 1 : i64, tpu.core_type = #tpu.core_type<tc>, window_params = [{transform_indices = @transform_0, window_bounds = array<i64: 1, 24, 1024>}, {pipeline_mode = #tpu.pipeline_mode<synchronous>, transform_indices = @transform_1, window_bounds = array<i64: 9, 1024, 256>}, {pipeline_mode = #tpu.pipeline_mode<synchronous>, transform_indices = @transform_2, window_bounds = array<i64: 1, 256>}, {pipeline_mode = #tpu.pipeline_mode<synchronous>, transform_indices = @transform_3, window_bounds = array<i64: 1, 256>}, {pipeline_mode = #tpu.pipeline_mode<synchronous>, transform_indices = @transform_4, window_bounds = array<i64: 256, 128>}, {transform_indices = @transform_5, window_bounds = array<i64: 1, 8, 128>}]} {
    %c0 = arith.constant 0 : index
    %c0_0 = arith.constant 0 : index
    %c0_1 = arith.constant 0 : index
    %0 = vector.load %arg1[%c0, %c0_0, %c0_1] : memref<1x24x1024xbf16, #tpu.memory_space<vmem>>, vector<1x8x1024xbf16>
    %1 = vector.shape_cast %0 : vector<1x8x1024xbf16> to vector<8x1024xbf16>
    %c0_2 = arith.constant 0 : index
    %c0_3 = arith.constant 0 : index
    %c0_4 = arith.constant 0 : index
    %2 = vector.load %arg2[%c0_2, %c0_3, %c0_4] : memref<9x1024x256xbf16, #tpu.memory_space<vmem>>, vector<1x1024x256xbf16>
    %3 = vector.shape_cast %2 : vector<1x1024x256xbf16> to vector<1024x256xbf16>
    %cst = arith.constant dense<0.000000e+00> : vector<8x256xf32>
    %4 = tpu.matmul %1, %3, %cst {dimension_numbers = #tpu.dot_dimension_numbers<[1], [0], [0], [1], [0, 0, 1, 1], [], []>} : vector<8x1024xbf16>, vector<1024x256xbf16>, vector<8x256xf32> -> vector<8x256xf32>
    %c0_5 = arith.constant 0 : index
    %c0_6 = arith.constant 0 : index
    %5 = vector.load %arg7[%c0_5, %c0_6] : memref<8x256xf32, #tpu.memory_space<vmem>>, vector<8x256xf32>
    tpu.vector_store %arg7[%c0_5, %c0_6], %4 {strides = array<i32>} : memref<8x256xf32, #tpu.memory_space<vmem>>, vector<8x256xf32>,
    %c0_7 = arith.constant 0 : index
    %c1 = arith.constant 1 : index
    %c0_8 = arith.constant 0 : index
    %6 = vector.load %arg1[%c0_7, %c1, %c0_8] : memref<1x24x1024xbf16, #tpu.memory_space<vmem>>, vector<1x8x1024xbf16>
    %7 = vector.shape_cast %6 : vector<1x8x1024xbf16> to vector<8x1024xbf16>
    %c1_9 = arith.constant 1 : index
    %c0_10 = arith.constant 0 : index
    %c0_11 = arith.constant 0 : index
    %8 = vector.load %arg2[%c1_9, %c0_10, %c0_11] : memref<9x1024x256xbf16, #tpu.memory_space<vmem>>, vector<1x1024x256xbf16>
    %9 = vector.shape_cast %8 : vector<1x1024x256xbf16> to vector<1024x256xbf16>
    %cst_12 = arith.constant dense<0.000000e+00> : vector<8x256xf32>
    %10 = tpu.matmul %7, %9, %cst_12 {dimension_numbers = #tpu.dot_dimension_numbers<[1], [0], [0], [1], [0, 0, 1, 1], [], []>} : vector<8x1024xbf16>, vector<1024x256xbf16>, vector<8x256xf32> -> vector<8x256xf32>
    %c0_13 = arith.constant 0 : index
    %c0_14 = arith.constant 0 : index
    %11 = vector.load %arg7[%c0_13, %c0_14] : memref<8x256xf32, #tpu.memory_space<vmem>>, vector<8x256xf32>
    %12 = arith.addf %11, %10 : vector<8x256xf32>
    %c0_15 = arith.constant 0 : index
    %c0_16 = arith.constant 0 : index
    %13 = vector.load %arg7[%c0_15, %c0_16] : memref<8x256xf32, #tpu.memory_space<vmem>>, vector<8x256xf32>
    tpu.vector_store %arg7[%c0_15, %c0_16], %12 {strides = array<i32>} : memref<8x256xf32, #tpu.memory_space<vmem>>, vector<8x256xf32>,
    %c0_17 = arith.constant 0 : index
    %c2 = arith.constant 2 : index
    %c0_18 = arith.constant 0 : index
    %14 = vector.load %arg1[%c0_17, %c2, %c0_18] : memref<1x24x1024xbf16, #tpu.memory_space<vmem>>, vector<1x8x1024xbf16>
    %15 = vector.shape_cast %14 : vector<1x8x1024xbf16> to vector<8x1024xbf16>
    %c2_19 = arith.constant 2 : index
    %c0_20 = arith.constant 0 : index
    %c0_21 = arith.constant 0 : index
    %16 = vector.load %arg2[%c2_19, %c0_20, %c0_21] : memref<9x1024x256xbf16, #tpu.memory_space<vmem>>, vector<1x1024x256xbf16>
    %17 = vector.shape_cast %16 : vector<1x1024x256xbf16> to vector<1024x256xbf16>
    %cst_22 = arith.constant dense<0.000000e+00> : vector<8x256xf32>
    %18 = tpu.matmul %15, %17, %cst_22 {dimension_numbers = #tpu.dot_dimension_numbers<[1], [0], [0], [1], [0, 0, 1, 1], [], []>} : vector<8x1024xbf16>, vector<1024x256xbf16>, vector<8x256xf32> -> vector<8x256xf32>
    %c0_23 = arith.constant 0 : index
    %c0_24 = arith.constant 0 : index
    %19 = vector.load %arg7[%c0_23, %c0_24] : memref<8x256xf32, #tpu.memory_space<vmem>>, vector<8x256xf32>
    %20 = arith.addf %19, %18 : vector<8x256xf32>
    %c0_25 = arith.constant 0 : index
    %c0_26 = arith.constant 0 : index
    %21 = vector.load %arg7[%c0_25, %c0_26] : memref<8x256xf32, #tpu.memory_space<vmem>>, vector<8x256xf32>
    tpu.vector_store %arg7[%c0_25, %c0_26], %20 {strides = array<i32>} : memref<8x256xf32, #tpu.memory_space<vmem>>, vector<8x256xf32>,
    %c0_27 = arith.constant 0 : index
    %c4 = arith.constant 4 : index
    %c0_28 = arith.constant 0 : index
    %22 = vector.load %arg1[%c0_27, %c4, %c0_28] : memref<1x24x1024xbf16, #tpu.memory_space<vmem>>, vector<1x8x1024xbf16>
    %23 = vector.shape_cast %22 : vector<1x8x1024xbf16> to vector<8x1024xbf16>
    %c3 = arith.constant 3 : index
    %c0_29 = arith.constant 0 : index
    %c0_30 = arith.constant 0 : index
    %24 = vector.load %arg2[%c3, %c0_29, %c0_30] : memref<9x1024x256xbf16, #tpu.memory_space<vmem>>, vector<1x1024x256xbf16>
    %25 = vector.shape_cast %24 : vector<1x1024x256xbf16> to vector<1024x256xbf16>
    %cst_31 = arith.constant dense<0.000000e+00> : vector<8x256xf32>
    %26 = tpu.matmul %23, %25, %cst_31 {dimension_numbers = #tpu.dot_dimension_numbers<[1], [0], [0], [1], [0, 0, 1, 1], [], []>} : vector<8x1024xbf16>, vector<1024x256xbf16>, vector<8x256xf32> -> vector<8x256xf32>
    %c0_32 = arith.constant 0 : index
    %c0_33 = arith.constant 0 : index
    %27 = vector.load %arg7[%c0_32, %c0_33] : memref<8x256xf32, #tpu.memory_space<vmem>>, vector<8x256xf32>
    %28 = arith.addf %27, %26 : vector<8x256xf32>
    %c0_34 = arith.constant 0 : index
    %c0_35 = arith.constant 0 : index
    %29 = vector.load %arg7[%c0_34, %c0_35] : memref<8x256xf32, #tpu.memory_space<vmem>>, vector<8x256xf32>
    tpu.vector_store %arg7[%c0_34, %c0_35], %28 {strides = array<i32>} : memref<8x256xf32, #tpu.memory_space<vmem>>, vector<8x256xf32>,
    %c0_36 = arith.constant 0 : index
    %c5 = arith.constant 5 : index
    %c0_37 = arith.constant 0 : index
    %30 = vector.load %arg1[%c0_36, %c5, %c0_37] : memref<1x24x1024xbf16, #tpu.memory_space<vmem>>, vector<1x8x1024xbf16>
    %31 = vector.shape_cast %30 : vector<1x8x1024xbf16> to vector<8x1024xbf16>
    %c4_38 = arith.constant 4 : index
    %c0_39 = arith.constant 0 : index
    %c0_40 = arith.constant 0 : index
    %32 = vector.load %arg2[%c4_38, %c0_39, %c0_40] : memref<9x1024x256xbf16, #tpu.memory_space<vmem>>, vector<1x1024x256xbf16>
    %33 = vector.shape_cast %32 : vector<1x1024x256xbf16> to vector<1024x256xbf16>
    %cst_41 = arith.constant dense<0.000000e+00> : vector<8x256xf32>
    %34 = tpu.matmul %31, %33, %cst_41 {dimension_numbers = #tpu.dot_dimension_numbers<[1], [0], [0], [1], [0, 0, 1, 1], [], []>} : vector<8x1024xbf16>, vector<1024x256xbf16>, vector<8x256xf32> -> vector<8x256xf32>
    %c0_42 = arith.constant 0 : index
    %c0_43 = arith.constant 0 : index
    %35 = vector.load %arg7[%c0_42, %c0_43] : memref<8x256xf32, #tpu.memory_space<vmem>>, vector<8x256xf32>
    %36 = arith.addf %35, %34 : vector<8x256xf32>
    %c0_44 = arith.constant 0 : index
    %c0_45 = arith.constant 0 : index
    %37 = vector.load %arg7[%c0_44, %c0_45] : memref<8x256xf32, #tpu.memory_space<vmem>>, vector<8x256xf32>
    tpu.vector_store %arg7[%c0_44, %c0_45], %36 {strides = array<i32>} : memref<8x256xf32, #tpu.memory_space<vmem>>, vector<8x256xf32>,
    %c0_46 = arith.constant 0 : index
    %c6 = arith.constant 6 : index
    %c0_47 = arith.constant 0 : index
    %38 = vector.load %arg1[%c0_46, %c6, %c0_47] : memref<1x24x1024xbf16, #tpu.memory_space<vmem>>, vector<1x8x1024xbf16>
    %39 = vector.shape_cast %38 : vector<1x8x1024xbf16> to vector<8x1024xbf16>
    %c5_48 = arith.constant 5 : index
    %c0_49 = arith.constant 0 : index
    %c0_50 = arith.constant 0 : index
    %40 = vector.load %arg2[%c5_48, %c0_49, %c0_50] : memref<9x1024x256xbf16, #tpu.memory_space<vmem>>, vector<1x1024x256xbf16>
    %41 = vector.shape_cast %40 : vector<1x1024x256xbf16> to vector<1024x256xbf16>
    %cst_51 = arith.constant dense<0.000000e+00> : vector<8x256xf32>
    %42 = tpu.matmul %39, %41, %cst_51 {dimension_numbers = #tpu.dot_dimension_numbers<[1], [0], [0], [1], [0, 0, 1, 1], [], []>} : vector<8x1024xbf16>, vector<1024x256xbf16>, vector<8x256xf32> -> vector<8x256xf32>
    %c0_52 = arith.constant 0 : index
    %c0_53 = arith.constant 0 : index
    %43 = vector.load %arg7[%c0_52, %c0_53] : memref<8x256xf32, #tpu.memory_space<vmem>>, vector<8x256xf32>
    %44 = arith.addf %43, %42 : vector<8x256xf32>
    %c0_54 = arith.constant 0 : index
    %c0_55 = arith.constant 0 : index
    %45 = vector.load %arg7[%c0_54, %c0_55] : memref<8x256xf32, #tpu.memory_space<vmem>>, vector<8x256xf32>
    tpu.vector_store %arg7[%c0_54, %c0_55], %44 {strides = array<i32>} : memref<8x256xf32, #tpu.memory_space<vmem>>, vector<8x256xf32>,
    %c0_56 = arith.constant 0 : index
    %c8 = arith.constant 8 : index
    %c0_57 = arith.constant 0 : index
    %46 = vector.load %arg1[%c0_56, %c8, %c0_57] : memref<1x24x1024xbf16, #tpu.memory_space<vmem>>, vector<1x8x1024xbf16>
    %47 = vector.shape_cast %46 : vector<1x8x1024xbf16> to vector<8x1024xbf16>
    %c6_58 = arith.constant 6 : index
    %c0_59 = arith.constant 0 : index
    %c0_60 = arith.constant 0 : index
    %48 = vector.load %arg2[%c6_58, %c0_59, %c0_60] : memref<9x1024x256xbf16, #tpu.memory_space<vmem>>, vector<1x1024x256xbf16>
    %49 = vector.shape_cast %48 : vector<1x1024x256xbf16> to vector<1024x256xbf16>
    %cst_61 = arith.constant dense<0.000000e+00> : vector<8x256xf32>
    %50 = tpu.matmul %47, %49, %cst_61 {dimension_numbers = #tpu.dot_dimension_numbers<[1], [0], [0], [1], [0, 0, 1, 1], [], []>} : vector<8x1024xbf16>, vector<1024x256xbf16>, vector<8x256xf32> -> vector<8x256xf32>
    %c0_62 = arith.constant 0 : index
    %c0_63 = arith.constant 0 : index
    %51 = vector.load %arg7[%c0_62, %c0_63] : memref<8x256xf32, #tpu.memory_space<vmem>>, vector<8x256xf32>
    %52 = arith.addf %51, %50 : vector<8x256xf32>
    %c0_64 = arith.constant 0 : index
    %c0_65 = arith.constant 0 : index
    %53 = vector.load %arg7[%c0_64, %c0_65] : memref<8x256xf32, #tpu.memory_space<vmem>>, vector<8x256xf32>
    tpu.vector_store %arg7[%c0_64, %c0_65], %52 {strides = array<i32>} : memref<8x256xf32, #tpu.memory_space<vmem>>, vector<8x256xf32>,
    %c0_66 = arith.constant 0 : index
    %c9 = arith.constant 9 : index
    %c0_67 = arith.constant 0 : index
    %54 = vector.load %arg1[%c0_66, %c9, %c0_67] : memref<1x24x1024xbf16, #tpu.memory_space<vmem>>, vector<1x8x1024xbf16>
    %55 = vector.shape_cast %54 : vector<1x8x1024xbf16> to vector<8x1024xbf16>
    %c7 = arith.constant 7 : index
    %c0_68 = arith.constant 0 : index
    %c0_69 = arith.constant 0 : index
    %56 = vector.load %arg2[%c7, %c0_68, %c0_69] : memref<9x1024x256xbf16, #tpu.memory_space<vmem>>, vector<1x1024x256xbf16>
    %57 = vector.shape_cast %56 : vector<1x1024x256xbf16> to vector<1024x256xbf16>
    %cst_70 = arith.constant dense<0.000000e+00> : vector<8x256xf32>
    %58 = tpu.matmul %55, %57, %cst_70 {dimension_numbers = #tpu.dot_dimension_numbers<[1], [0], [0], [1], [0, 0, 1, 1], [], []>} : vector<8x1024xbf16>, vector<1024x256xbf16>, vector<8x256xf32> -> vector<8x256xf32>
    %c0_71 = arith.constant 0 : index
    %c0_72 = arith.constant 0 : index
    %59 = vector.load %arg7[%c0_71, %c0_72] : memref<8x256xf32, #tpu.memory_space<vmem>>, vector<8x256xf32>
    %60 = arith.addf %59, %58 : vector<8x256xf32>
    %c0_73 = arith.constant 0 : index
    %c0_74 = arith.constant 0 : index
    %61 = vector.load %arg7[%c0_73, %c0_74] : memref<8x256xf32, #tpu.memory_space<vmem>>, vector<8x256xf32>
    tpu.vector_store %arg7[%c0_73, %c0_74], %60 {strides = array<i32>} : memref<8x256xf32, #tpu.memory_space<vmem>>, vector<8x256xf32>,
    %c0_75 = arith.constant 0 : index
    %c10 = arith.constant 10 : index
    %c0_76 = arith.constant 0 : index
    %62 = vector.load %arg1[%c0_75, %c10, %c0_76] : memref<1x24x1024xbf16, #tpu.memory_space<vmem>>, vector<1x8x1024xbf16>
    %63 = vector.shape_cast %62 : vector<1x8x1024xbf16> to vector<8x1024xbf16>
    %c8_77 = arith.constant 8 : index
    %c0_78 = arith.constant 0 : index
    %c0_79 = arith.constant 0 : index
    %64 = vector.load %arg2[%c8_77, %c0_78, %c0_79] : memref<9x1024x256xbf16, #tpu.memory_space<vmem>>, vector<1x1024x256xbf16>
    %65 = vector.shape_cast %64 : vector<1x1024x256xbf16> to vector<1024x256xbf16>
    %cst_80 = arith.constant dense<0.000000e+00> : vector<8x256xf32>
    %66 = tpu.matmul %63, %65, %cst_80 {dimension_numbers = #tpu.dot_dimension_numbers<[1], [0], [0], [1], [0, 0, 1, 1], [], []>} : vector<8x1024xbf16>, vector<1024x256xbf16>, vector<8x256xf32> -> vector<8x256xf32>
    %c0_81 = arith.constant 0 : index
    %c0_82 = arith.constant 0 : index
    %67 = vector.load %arg7[%c0_81, %c0_82] : memref<8x256xf32, #tpu.memory_space<vmem>>, vector<8x256xf32>
    %68 = arith.addf %67, %66 : vector<8x256xf32>
    %c0_83 = arith.constant 0 : index
    %c0_84 = arith.constant 0 : index
    %69 = vector.load %arg7[%c0_83, %c0_84] : memref<8x256xf32, #tpu.memory_space<vmem>>, vector<8x256xf32>
    tpu.vector_store %arg7[%c0_83, %c0_84], %68 {strides = array<i32>} : memref<8x256xf32, #tpu.memory_space<vmem>>, vector<8x256xf32>,
    %c0_85 = arith.constant 0 : index
    %c0_86 = arith.constant 0 : index
    %70 = vector.load %arg7[%c0_85, %c0_86] : memref<8x256xf32, #tpu.memory_space<vmem>>, vector<8x256xf32>
    %c0_87 = arith.constant 0 : index
    %c0_88 = arith.constant 0 : index
    %71 = vector.load %arg3[%c0_87, %c0_88] : memref<1x256xf32, #tpu.memory_space<vmem>>, vector<1x256xf32>
    %72 = vector.broadcast %71 : vector<1x256xf32> to vector<8x256xf32>
    %73 = arith.mulf %70, %72 : vector<8x256xf32>
    %c0_89 = arith.constant 0 : index
    %c0_90 = arith.constant 0 : index
    %74 = vector.load %arg4[%c0_89, %c0_90] : memref<1x256xf32, #tpu.memory_space<vmem>>, vector<1x256xf32>
    %75 = vector.broadcast %74 : vector<1x256xf32> to vector<8x256xf32>
    %76 = arith.addf %73, %75 : vector<8x256xf32>
    %cst_91 = arith.constant 0.000000e+00 : f32
    %77 = vector.broadcast %cst_91 : f32 to vector<8x256xf32>
    %78 = arith.maximumf %76, %77 : vector<8x256xf32>
    %79 = arith.truncf %78 : vector<8x256xf32> to vector<8x256xbf16>
    %c0_92 = arith.constant 0 : index
    %c0_93 = arith.constant 0 : index
    %80 = vector.load %arg5[%c0_92, %c0_93] : memref<256x128xbf16, #tpu.memory_space<vmem>>, vector<256x128xbf16>
    %cst_94 = arith.constant dense<0.000000e+00> : vector<8x128xf32>
    %81 = tpu.matmul %79, %80, %cst_94 {dimension_numbers = #tpu.dot_dimension_numbers<[1], [0], [0], [1], [0, 0, 1, 1], [], []>} : vector<8x256xbf16>, vector<256x128xbf16>, vector<8x128xf32> -> vector<8x128xf32>
    %82 = arith.truncf %81 : vector<8x128xf32> to vector<8x128xbf16>
    %c0_95 = arith.constant 0 : index
    %c0_96 = arith.constant 0 : index
    %c0_97 = arith.constant 0 : index
    %83 = vector.load %arg6[%c0_95, %c0_96, %c0_97] : memref<1x8x128xbf16, #tpu.memory_space<vmem>>, vector<1x8x128xbf16>
    %84 = vector.shape_cast %83 : vector<1x8x128xbf16> to vector<8x128xbf16>
    %85 = vector.shape_cast %82 : vector<8x128xbf16> to vector<1x8x128xbf16>
    tpu.vector_store %arg6[%c0_95, %c0_96, %c0_97], %85 {strides = array<i32>} : memref<1x8x128xbf16, #tpu.memory_space<vmem>>, vector<1x8x128xbf16>,
    return
  }
  func.func @transform_0(%arg0: i32) -> (i32, i32, i32) {
    %c0_i32 = arith.constant 0 : i32
    %c0_i32_0 = arith.constant 0 : i32
    %c0_i32_1 = arith.constant 0 : i32
    return %arg0, %c0_i32, %c0_i32_0 : i32, i32, i32
  }
  func.func @transform_1(%arg0: i32) -> (i32, i32, i32) {
    %c0_i32 = arith.constant 0 : i32
    %c0_i32_0 = arith.constant 0 : i32
    %c0_i32_1 = arith.constant 0 : i32
    %c0_i32_2 = arith.constant 0 : i32
    return %c0_i32, %c0_i32_0, %c0_i32_1 : i32, i32, i32
  }
  func.func @transform_2(%arg0: i32) -> (i32, i32) {
    %c0_i32 = arith.constant 0 : i32
    %c0_i32_0 = arith.constant 0 : i32
    %c0_i32_1 = arith.constant 0 : i32
    return %c0_i32, %c0_i32_0 : i32, i32
  }
  func.func @transform_3(%arg0: i32) -> (i32, i32) {
    %c0_i32 = arith.constant 0 : i32
    %c0_i32_0 = arith.constant 0 : i32
    %c0_i32_1 = arith.constant 0 : i32
    return %c0_i32, %c0_i32_0 : i32, i32
  }
  func.func @transform_4(%arg0: i32) -> (i32, i32) {
    %c0_i32 = arith.constant 0 : i32
    %c0_i32_0 = arith.constant 0 : i32
    %c0_i32_1 = arith.constant 0 : i32
    return %c0_i32, %c0_i32_0 : i32, i32
  }
  func.func @transform_5(%arg0: i32) -> (i32, i32, i32) {
    %c0_i32 = arith.constant 0 : i32
    %c0_i32_0 = arith.constant 0 : i32
    %c0_i32_1 = arith.constant 0 : i32
    return %arg0, %c0_i32, %c0_i32_0 : i32, i32, i32
  }
}

</mosaic_0001>

<bundles_post_ra>
// kernel: mynet_forward.2
= control target key start
LH: loop header
LB: loop body
LE: loop exit
PB: predicated region body
PF: predicated region fallthrough
CT: control target
= control target key end

     0   :  { %s946_s15 = smov 0   ;;  %s948_s16 = smov 0   ;;  %s1084_s0 = inlined_call_operand.vmem [shape: bf16[16,128], index: 0, kind: input, shape index: {}]   ;;  %s1085_s1 = inlined_call_operand.vmem [shape: bf16[128,1024], index: 1, kind: input, shape index: {}]   ;;  %s1086_s2 = inlined_call_operand.vmem [shape: f32[1,1024], index: 2, kind: input, shape index: {}]   ;;  %s1087_s3 = inlined_call_operand.vmem [shape: f32[1,1024], index: 3, kind: input, shape index: {}]   ;;  %s1088_s4 = inlined_call_operand.vmem [shape: bf16[16,1024], index: 4, kind: output, shape index: {}]  }
   0x1   :  { %s950_s17 = smov 0   ;;  %s952_s18 = smov 0  }
   0x2   :  { %s954_s19 = smov 0  }
   0x3 LB: > { %s29_s20 = sadd.s32 1, %s915_s18  ;;  %s736_s21 = sadd.s32 4294967295, %s919_s19   ;;  %s919_s19 = sphi %s954_s19, %s14_s19   ;;  %s915_s18 = sphi %s952_s18, %s1093_s18   ;;  %s911_s17 = sphi %s950_s17, %s1092_s17   ;;  %s907_s16 = sphi %s948_s16, %s1091_s16   ;;  %s903_s15 = sphi %s946_s15, %s1090_s15  }
   0x4   : > { %p31_p0 = scmp.ge.s32.totalorder %s29_s20, 4  ;;  %p77_p1 = scmp.ne.s32.totalorder %s907_s16, %s903_s15 }
   0x5   : > { %p78_p2 = scmp.eq.s32.totalorder %s919_s19, 0  ;;  %p161_p4 = scmp.eq.s32.totalorder %s736_s21, 3 }
   0x6   : > { %s1095_s20 = smov (%p31_p0, %s29_s20), 0  ;;  %s70_s23 = sadd.s32 1, %s907_s16 }
   0x7   : > { %p79_p3 = por %p78_p2, %p77_p1  ;;  %s66_s22 = ssub.s32 %s915_s18, %s1095_s20 }
   0x8   : > { %p68_p5 = scmp.eq.s32.totalorder %s66_s22, 0  ;;  %p981_p6 = por %p161_p4, %p77_p1 }
   0x9   : > { %p740_p7 = scmp.ge.s32.totalorder %s919_s19, 4 }
   0xa   : > { %s986_s25 = scalar_select %p68_p5, %s907_s16, %s70_s23  }
   0xb   : > { %195 = sbr.rel (%p740_p7) target bundleno = 36 (0x24), region = 20 }
  0x10   : > { %198 = sbr.rel (!%p79_p3) target bundleno = 36 (0x24), region = 24  ;;  %s200_s26 = sand.u32 (%p79_p3), 1, %s907_s16  }
  0x11   : > { %s822_s27 = sshll.u32 (%p79_p3), %s915_s18, 3  ;;  %s741_s28 = sshll.u32 (%p79_p3), %s200_s26, 7 }
  0x12   : > { %s994_s5 = scalar_lea.vmem (%p79_p3), %s1085_s1, %s822_s27  ;;  %s202_s6 = scalar_lea.vmem (%p79_p3), [#allocation3], %s741_s28 }
  0x13   : > { %v267_v0 = vld [vmem:[%s994_s5] sm:$0xff] (%p79_p3) }
  0x14   : > { %v269_v1 = vld [vmem:[%s994_s5 + $0x20] sm:$0xff] (%p79_p3)  ;;  %268 = vst [vmem:[%s202_s6] sm:$0xff] (%p79_p3), %v267_v0 }
  0x15   : > { %v271_v2 = vld [vmem:[%s994_s5 + $0x40] sm:$0xff]  ;;  %270 = vst [vmem:[%s202_s6 + $0x8] sm:$0xff] %v269_v1 }
  0x16   : > { %v273_v3 = vld [vmem:[%s994_s5 + $0x60] sm:$0xff]  ;;  %272 = vst [vmem:[%s202_s6 + $0x10] sm:$0xff] %v271_v2 }
  0x17   : > { %v275_v4 = vld [vmem:[%s994_s5 + $0x80] sm:$0xff]  ;;  %274 = vst [vmem:[%s202_s6 + $0x18] sm:$0xff] %v273_v3 }
  0x18   : > { %v277_v5 = vld [vmem:[%s994_s5 + $0xa0] sm:$0xff]  ;;  %276 = vst [vmem:[%s202_s6 + $0x20] sm:$0xff] %v275_v4 }
  0x19   : > { %v279_v6 = vld [vmem:[%s994_s5 + $0xc0] sm:$0xff]  ;;  %278 = vst [vmem:[%s202_s6 + $0x28] sm:$0xff] %v277_v5 }
  0x1a   : > { %v281_v7 = vld [vmem:[%s994_s5 + $0xe0] sm:$0xff]  ;;  %280 = vst [vmem:[%s202_s6 + $0x30] sm:$0xff] %v279_v6 }
  0x1b   : > { %v283_v8 = vld [vmem:[%s994_s5 + $0x100] sm:$0xff]  ;;  %282 = vst [vmem:[%s202_s6 + $0x38] sm:$0xff] %v281_v7 }
  0x1c   : > { %v285_v9 = vld [vmem:[%s994_s5 + $0x120] sm:$0xff]  ;;  %284 = vst [vmem:[%s202_s6 + $0x40] sm:$0xff] %v283_v8 }
  0x1d   : > { %v287_v10 = vld [vmem:[%s994_s5 + $0x140] sm:$0xff]  ;;  %286 = vst [vmem:[%s202_s6 + $0x48] sm:$0xff] %v285_v9 }
  0x1e   : > { %v289_v11 = vld [vmem:[%s994_s5 + $0x160] sm:$0xff]  ;;  %288 = vst [vmem:[%s202_s6 + $0x50] sm:$0xff] %v287_v10 }
  0x1f   : > { %v291_v12 = vld [vmem:[%s994_s5 + $0x180] sm:$0xff]  ;;  %290 = vst [vmem:[%s202_s6 + $0x58] sm:$0xff] %v289_v11 }
  0x20   : > { %v293_v13 = vld [vmem:[%s994_s5 + $0x1a0] sm:$0xff]  ;;  %292 = vst [vmem:[%s202_s6 + $0x60] sm:$0xff] %v291_v12 }
  0x21   : > { %v295_v14 = vld [vmem:[%s994_s5 + $0x1c0] sm:$0xff]  ;;  %294 = vst [vmem:[%s202_s6 + $0x68] sm:$0xff] %v293_v13 }
  0x22   : > { %v297_v15 = vld [vmem:[%s994_s5 + $0x1e0] sm:$0xff]  ;;  %296 = vst [vmem:[%s202_s6 + $0x70] sm:$0xff] %v295_v14 }
  0x23   : > { %298 = vst [vmem:[%s202_s6 + $0x78] sm:$0xff] %v297_v15 }
  0x24 PF: > { %p744_p8 = scmp.ge.s32.totalorder %s919_s19, 1  ;;  %p319_p9 = scmp.lt.s32.totalorder %s919_s19, 5 }
  0x26   : > { %p320_p10 = pnand %p744_p8, %p319_p9 }
  0x27   : > { %s326_s7 = sand.u32 (!%p320_p10), 1, %s903_s15   ;;  %s747_s12 = sshll.u32 (!%p320_p10), %s911_s17, 1 }
  0x28   : > { %323 = sbr.rel (%p320_p10) target bundleno = 231 (0xe7), region = 70  ;;  %s745_s8 = sshll.u32 (!%p320_p10), %s326_s7, 7 }
  0x29   : > { %s1017_s9 = scalar_lea.vmem (!%p320_p10), [#allocation3], %s745_s8  ;;  %p378_p11 = scmp.lt.s32.totalorder (!%p320_p10), %s747_s12, 7 }
  0x2a   : > { %s746_s27 = sshll.u32 (!%p320_p10), %s326_s7, 4 }
  0x2b   : > { %s365_s28 = scalar_lea.vmem (!%p320_p10), [#allocation4], %s746_s27 }
  0x2d   : > { %v811_v16 = vld [vmem:[%s1017_s9 + $0x70] sm:$0xf]  ;;  %v839_v17 = vld [vmem:[%s1017_s9 + $0x74] sm:$0xf0]  ;;  %v838_v18 = vld [vmem:[%s1017_s9 + $0x74] sm:$0xf] }
  0x2e   : > { %v812_v19 = vor.u32 %v839_v17, %v811_v16  ;;  %v813_v20 = vld [vmem:[%s1017_s9 + $0x78] sm:$0xf0]  ;;  %v803_v21 = vld [vmem:[%s1017_s9 + $0x60] sm:$0xf]  ;;  %v837_v22 = vld [vmem:[%s1017_s9 + $0x64] sm:$0xf0] }
  0x2f   : > { %v816_v23 = vor.u32 %v838_v18, %v813_v20  ;;  %v836_v24 = vld [vmem:[%s1017_s9 + $0x64] sm:$0xf]  ;;  %v805_v25 = vld [vmem:[%s1017_s9 + $0x68] sm:$0xf0]  ;;  %v804_v26 = vor.u32 %v837_v22, %v803_v21  ;;  %v795_v28 = vld [vmem:[%s1017_s9 + $0x50] sm:$0xf] }
  0x30   : > { %505 = vmatpush.bf16.msra.mxu0 %v812_v19  ;;  %v808_v27 = vor.u32 %v836_v24, %v805_v25  ;;  %v835_v29 = vld [vmem:[%s1017_s9 + $0x54] sm:$0xf0]  ;;  %v834_v30 = vld [vmem:[%s1017_s9 + $0x54] sm:$0xf]  ;;  %v797_v31 = vld [vmem:[%s1017_s9 + $0x58] sm:$0xf0] }
  0x31   : > { %519 = vmatpush.bf16.msra.mxu1 %v816_v23  ;;  %v796_v32 = vor.u32 %v835_v29, %v795_v28  ;;  %v800_v33 = vor.u32 %v834_v30, %v797_v31  ;;  %v787_v34 = vld [vmem:[%s1017_s9 + $0x40] sm:$0xf]  ;;  %v833_v35 = vld [vmem:[%s1017_s9 + $0x44] sm:$0xf0]  ;;  %v832_v36 = vld [vmem:[%s1017_s9 + $0x44] sm:$0xf] }
  0x32   : > { %v789_v37 = vld [vmem:[%s1017_s9 + $0x48] sm:$0xf0]  ;;  %v788_v38 = vor.u32 %v833_v35, %v787_v34  ;;  %v779_v40 = vld [vmem:[%s1017_s9 + $0x30] sm:$0xf]  ;;  %v831_v41 = vld [vmem:[%s1017_s9 + $0x34] sm:$0xf0] }
  0x33   : > { %v792_v39 = vor.u32 %v832_v36, %v789_v37  ;;  %v830_v42 = vld [vmem:[%s1017_s9 + $0x34] sm:$0xf]  ;;  %v781_v43 = vld [vmem:[%s1017_s9 + $0x38] sm:$0xf0]  ;;  %v780_v44 = vor.u32 %v831_v41, %v779_v40  ;;  %v771_v46 = vld [vmem:[%s1017_s9 + $0x20] sm:$0xf] }
  0x34   : > { %506 = vmatpush.bf16.msra.mxu0 %v804_v26  ;;  %v784_v45 = vor.u32 %v830_v42, %v781_v43  ;;  %v829_v47 = vld [vmem:[%s1017_s9 + $0x24] sm:$0xf0]  ;;  %v828_v48 = vld [vmem:[%s1017_s9 + $0x24] sm:$0xf]  ;;  %v773_v49 = vld [vmem:[%s1017_s9 + $0x28] sm:$0xf0] }
  0x35   : > { %520 = vmatpush.bf16.msra.mxu1 %v808_v27  ;;  %v772_v50 = vor.u32 %v829_v47, %v771_v46  ;;  %v776_v51 = vor.u32 %v828_v48, %v773_v49  ;;  %v763_v52 = vld [vmem:[%s1017_s9 + $0x10] sm:$0xf]  ;;  %v827_v53 = vld [vmem:[%s1017_s9 + $0x14] sm:$0xf0]  ;;  %v826_v54 = vld [vmem:[%s1017_s9 + $0x14] sm:$0xf] }
  0x36   : > { %v765_v55 = vld [vmem:[%s1017_s9 + $0x18] sm:$0xf0]  ;;  %v764_v56 = vor.u32 %v827_v53, %v763_v52  ;;  %v755_v58 = vld [vmem:[%s1017_s9] sm:$0xf]  ;;  %v825_v59 = vld [vmem:[%s1017_s9 + $0x4] sm:$0xf0] }
  0x37   : > { %v768_v57 = vor.u32 %v826_v54, %v765_v55  ;;  %v824_v60 = vld [vmem:[%s1017_s9 + $0x4] sm:$0xf]  ;;  %v757_v61 = vld [vmem:[%s1017_s9 + $0x8] sm:$0xf0]  ;;  %v756_v62 = vor.u32 %v825_v59, %v755_v58  ;;  %s1097_s12 = smov (!%p378_p11, %s747_s12), 7  ;;  %s840_s15 = sshll.u32 (%p981_p6), %s911_s17, 3 }
  0x38   : > { %507 = vmatpush.bf16.msra.mxu0 %v796_v32  ;;  %v760_v63 = vor.u32 %v824_v60, %v757_v61  ;;  %v823_v0 = vld [vmem:[%s1084_s0] sm:$0xff]  ;;  %s380_s21 = scalar_lea.vmem %s1086_s2, %s1097_s12  ;;  %s385_s26 = scalar_lea.vmem %s1087_s3, %s1097_s12 }
  0x39   : > { %521 = vmatpush.bf16.msra.mxu1 %v800_v33  ;;  %v548_v1 = vld [vmem:[%s380_s21] sm:$0x3]  ;;  %s588_s5 = scalar_lea.vmem (%p981_p6), %s1088_s4, %s840_s15 }
  0x3a   : > { %v558_v2 = vld [vmem:[%s385_s26] sm:$0x3]  ;;  %v550_v3 = vperm.slane %v548_v1, 0  ;;  %v551_v4 = vperm.slane %v548_v1, 1 }
  0x3b   : > { %v560_v5 = vperm.slane %v558_v2, 0  ;;  %v561_v7 = vperm.slane %v558_v2, 1 }
  0x3c   : > { %508 = vmatpush.bf16.msra.mxu0 %v788_v38 }
  0x3d   : > { %522 = vmatpush.bf16.msra.mxu1 %v792_v39 }
  0x40   : > { %509 = vmatpush.bf16.msra.mxu0 %v780_v44 }
  0x41   : > { %523 = vmatpush.bf16.msra.mxu1 %v784_v45 }
  0x44   : > { %510 = vmatpush.bf16.msra.mxu0 %v772_v50 }
  0x45   : > { %524 = vmatpush.bf16.msra.mxu1 %v776_v51 }
  0x48   : > { %511 = vmatpush.bf16.msra.mxu0 %v764_v56 }
  0x49   : > { %525 = vmatpush.bf16.msra.mxu1 %v768_v57 }
  0x4c   : > { %512 = vmatpush.bf16.msra.mxu0 %v756_v62 }
  0x4d   : > { %526 = vmatpush.bf16.msra.mxu1 %v760_v63 }
  0x4f   : > { %513 = vmatmul.bf16.vlgmr.msra.gmra.mxu0 %v823_v0 }
  0x50   : > { %527 = vmatmul.bf16.vlgmr.msra.gmra.mxu1 %v823_v0 }
  0xcc   : > { %v514_v6 = vpop.f32.mrf.mxu0 }
  0xcd   : > { %v554_v8 = vmul.f32 %v550_v3, %v514_v6  ;;  %v528_v9 = vpop.f32.mrf.mxu1 }
  0xce   : > { %v555_v10 = vmul.f32 %v551_v4, %v528_v9 }
  0xcf   : > { %v564_v11 = vadd.f32 %v560_v5, %v554_v8 }
  0xd0   : > { %v565_v12 = vadd.f32 %v561_v7, %v555_v10 }
  0xd1   : > { %v568_v13 = vmax.f32 %v564_v11, 0.0 }
  0xd2   : > { %v569_v14 = vmax.f32 %v565_v12, 0.0 }
  0xd4   : > { %v572_v15 = vpack.c.bf16 %v569_v14, %v568_v13  ;;  %v516_v16 = vpop.f32.mrf.mxu0 }
  0xd5   : > { %v556_v17 = vmul.f32 %v550_v3, %v516_v16  ;;  %v530_v18 = vpop.f32.mrf.mxu1 }
  0xd6   : > { %574 = vst [vmem:[%s365_s28] sm:$0xff] %v572_v15  ;;  %v557_v19 = vmul.f32 %v551_v4, %v530_v18 }
  0xd7   : > { %v566_v20 = vadd.f32 %v560_v5, %v556_v17 }
  0xd8   : > { %v567_v21 = vadd.f32 %v561_v7, %v557_v19 }
  0xd9   : > { %v570_v22 = vmax.f32 %v566_v20, 0.0 }
  0xda   : > { %v571_v23 = vmax.f32 %v567_v21, 0.0  ;;  %582 = sbr.rel (!%p981_p6) target bundleno = 231 (0xe7), region = 86 }
  0xdc   : > { %v573_v24 = vpack.c.bf16 %v571_v23, %v570_v22 }
  0xdd   : > { %v619_v25 = vld [vmem:[%s365_s28] sm:$0xff] (%p981_p6) }
  0xde   : > { %575 = vst [vmem:[%s365_s28 + $0x8] sm:$0xff] %v573_v24 }
  0xdf   : > { %620 = vst [vmem:[%s588_s5] sm:$0xff] %v619_v25 }
  0xe5   : > { %v621_v26 = vld [vmem:[%s365_s28 + $0x8] sm:$0xff] }
  0xe6   : > { %622 = vst [vmem:[%s588_s5 + $0x20] sm:$0xff] %v621_v26 }
  0xe7 PF: > { %s14_s19 = sadd.s32 1, %s919_s19   ;;  %s1090_s15 = smov %s907_s16 }
  0xe8   : > { %p11_p12 = scmp.ge.s32.totalorder %s14_s19, 6   ;;  %s1091_s16 = smov %s986_s25 }
  0xe9   : > { %s1092_s17 = smov %s915_s18  ;;  %s1093_s18 = smov %s1095_s20 }
  0xea   :  { %13 = sbr.rel (!%p11_p12) target bundleno = 3 (0x3), region = 164 }

// kernel: mynet_forward.3
= control target key start
LH: loop header
LB: loop body
LE: loop exit
PB: predicated region body
PF: predicated region fallthrough
CT: control target
= control target key end

     0   :  { %s17104_s18 = smov 0   ;;  %s24662_s0 = inlined_call_operand.vmem [shape: bf16[2,24,1024], index: 0, kind: input, shape index: {}]   ;;  %s24663_s1 = inlined_call_operand.vmem [shape: bf16[9,1024,256], index: 1, kind: input, shape index: {}]   ;;  %s24664_s2 = inlined_call_operand.vmem [shape: f32[1,256], index: 2, kind: input, shape index: {}]   ;;  %s24665_s3 = inlined_call_operand.vmem [shape: f32[1,256], index: 3, kind: input, shape index: {}]   ;;  %s24666_s4 = inlined_call_operand.vmem [shape: bf16[256,128], index: 4, kind: input, shape index: {}]   ;;  %s24667_s5 = inlined_call_operand.vmem [shape: bf16[2,8,128], index: 5, kind: output, shape index: {}]  }
   0x1 LB: > { %s9904_s19 = sadd.s32 4294967295, %s17072_s18   ;;  %p9908_p0 = scmp.ge.s32.totalorder %s17072_s18, 1  ;;  %s17072_s18 = sphi %s17104_s18, %s15_s18  }
   0x2   : > { %p187_p1 = scmp.lt.s32.totalorder %s17072_s18, 3 }
   0x4   : > { %p188_p2 = pnand %p9908_p0, %p187_p1 }
   0x5   : > { %p214_p3 = scmp.lt.s32.totalorder (!%p188_p2), %s9904_s19, 1 }
   0x6   : > { %191 = sbr.rel (%p188_p2) target bundleno = 1447 (0x5a7), region = 40 }
   0xb   : > { %v9969_v0 = vld [vmem:[%s24663_s1 + $0x70] sm:$0xf]  ;;  %v15848_v1 = vld [vmem:[%s24663_s1 + $0x74] sm:$0xf0]  ;;  %v9961_v11 = vld [vmem:[%s24663_s1 + $0x60] sm:$0xf] }
   0xc   : > { %v10033_v2 = vld [vmem:[%s24663_s1 + $0xf0] sm:$0xf]  ;;  %v9970_v3 = vor.u32 %v15848_v1, %v9969_v0  ;;  %v15864_v4 = vld [vmem:[%s24663_s1 + $0xf4] sm:$0xf0]  ;;  %v15846_v13 = vld [vmem:[%s24663_s1 + $0x64] sm:$0xf0] }
   0xd   : > { %v10097_v5 = vld [vmem:[%s24663_s1 + $0x170] sm:$0xf]  ;;  %v15880_v6 = vld [vmem:[%s24663_s1 + $0x174] sm:$0xf0]  ;;  %v10034_v7 = vor.u32 %v15864_v4, %v10033_v2  ;;  %v10025_v14 = vld [vmem:[%s24663_s1 + $0xe0] sm:$0xf]  ;;  %v9962_v16 = vor.u32 %v15846_v13, %v9961_v11 }
   0xe   : > { %v10098_v8 = vor.u32 %v15880_v6, %v10097_v5  ;;  %v10161_v9 = vld [vmem:[%s24663_s1 + $0x1f0] sm:$0xf]  ;;  %v15896_v10 = vld [vmem:[%s24663_s1 + $0x1f4] sm:$0xf0]  ;;  %1023 = vmatpush.bf16.msra.mxu0 %v9970_v3  ;;  %v15862_v15 = vld [vmem:[%s24663_s1 + $0xe4] sm:$0xf0] }
   0xf   : > { %v10162_v12 = vor.u32 %v15896_v10, %v10161_v9  ;;  %1036 = vmatpush.bf16.msra.mxu1 %v10034_v7  ;;  %v10026_v17 = vor.u32 %v15862_v15, %v10025_v14  ;;  %v10089_v18 = vld [vmem:[%s24663_s1 + $0x160] sm:$0xf]  ;;  %v15878_v19 = vld [vmem:[%s24663_s1 + $0x164] sm:$0xf0]  ;;  %v9953_v23 = vld [vmem:[%s24663_s1 + $0x50] sm:$0xf] }
  0x10   : > { %1049 = vmatpush.bf16.msra.mxu2 %v10098_v8  ;;  %v10153_v20 = vld [vmem:[%s24663_s1 + $0x1e0] sm:$0xf]  ;;  %v10090_v21 = vor.u32 %v15878_v19, %v10089_v18  ;;  %v15894_v22 = vld [vmem:[%s24663_s1 + $0x1e4] sm:$0xf0]  ;;  %v15844_v24 = vld [vmem:[%s24663_s1 + $0x54] sm:$0xf0] }
  0x11   : > { %1062 = vmatpush.bf16.msra.mxu3 %v10162_v12  ;;  %v10154_v25 = vor.u32 %v15894_v22, %v10153_v20  ;;  %v10017_v26 = vld [vmem:[%s24663_s1 + $0xd0] sm:$0xf]  ;;  %v15860_v27 = vld [vmem:[%s24663_s1 + $0xd4] sm:$0xf0]  ;;  %v9954_v29 = vor.u32 %v15844_v24, %v9953_v23  ;;  %v9945_v35 = vld [vmem:[%s24663_s1 + $0x40] sm:$0xf] }
  0x12   : > { %v10081_v28 = vld [vmem:[%s24663_s1 + $0x150] sm:$0xf]  ;;  %1024 = vmatpush.bf16.msra.mxu0 %v9962_v16  ;;  %v15876_v30 = vld [vmem:[%s24663_s1 + $0x154] sm:$0xf0]  ;;  %v10018_v33 = vor.u32 %v15860_v27, %v10017_v26  ;;  %v15842_v36 = vld [vmem:[%s24663_s1 + $0x44] sm:$0xf0] }
  0x13   : > { %v10145_v31 = vld [vmem:[%s24663_s1 + $0x1d0] sm:$0xf]  ;;  %v15892_v32 = vld [vmem:[%s24663_s1 + $0x1d4] sm:$0xf0]  ;;  %1037 = vmatpush.bf16.msra.mxu1 %v10026_v17  ;;  %v10082_v34 = vor.u32 %v15876_v30, %v10081_v28  ;;  %v10009_v37 = vld [vmem:[%s24663_s1 + $0xc0] sm:$0xf]  ;;  %v9946_v44 = vor.u32 %v15842_v36, %v9945_v35 }
  0x14   : > { %1050 = vmatpush.bf16.msra.mxu2 %v10090_v21  ;;  %v10146_v38 = vor.u32 %v15892_v32, %v10145_v31  ;;  %v15858_v39 = vld [vmem:[%s24663_s1 + $0xc4] sm:$0xf0]  ;;  %v10073_v40 = vld [vmem:[%s24663_s1 + $0x140] sm:$0xf]  ;;  %v9937_v47 = vld [vmem:[%s24663_s1 + $0x30] sm:$0xf] }
  0x15   : > { %1063 = vmatpush.bf16.msra.mxu3 %v10154_v25  ;;  %v15874_v41 = vld [vmem:[%s24663_s1 + $0x144] sm:$0xf0]  ;;  %v10137_v42 = vld [vmem:[%s24663_s1 + $0x1c0] sm:$0xf]  ;;  %v10010_v45 = vor.u32 %v15858_v39, %v10009_v37  ;;  %v15840_v48 = vld [vmem:[%s24663_s1 + $0x34] sm:$0xf0] }
  0x16   : > { %v15890_v43 = vld [vmem:[%s24663_s1 + $0x1c4] sm:$0xf0]  ;;  %1025 = vmatpush.bf16.msra.mxu0 %v9954_v29  ;;  %v10074_v46 = vor.u32 %v15874_v41, %v10073_v40  ;;  %v10001_v49 = vld [vmem:[%s24663_s1 + $0xb0] sm:$0xf]  ;;  %v15856_v51 = vld [vmem:[%s24663_s1 + $0xb4] sm:$0xf0]  ;;  %v9938_v56 = vor.u32 %v15840_v48, %v9937_v47 }
  0x17   : > { %1038 = vmatpush.bf16.msra.mxu1 %v10018_v33  ;;  %v10138_v50 = vor.u32 %v15890_v43, %v10137_v42  ;;  %v10065_v52 = vld [vmem:[%s24663_s1 + $0x130] sm:$0xf]  ;;  %v15872_v53 = vld [vmem:[%s24663_s1 + $0x134] sm:$0xf0]  ;;  %v10002_v57 = vor.u32 %v15856_v51, %v10001_v49  ;;  %v9929_v59 = vld [vmem:[%s24663_s1 + $0x20] sm:$0xf] }
  0x18   : > { %1051 = vmatpush.bf16.msra.mxu2 %v10082_v34  ;;  %v10129_v54 = vld [vmem:[%s24663_s1 + $0x1b0] sm:$0xf]  ;;  %v15888_v55 = vld [vmem:[%s24663_s1 + $0x1b4] sm:$0xf0]  ;;  %v10066_v58 = vor.u32 %v15872_v53, %v10065_v52  ;;  %v15838_v60 = vld [vmem:[%s24663_s1 + $0x24] sm:$0xf0] }
  0x19   : > { %1064 = vmatpush.bf16.msra.mxu3 %v10146_v38  ;;  %v9993_v61 = vld [vmem:[%s24663_s1 + $0xa0] sm:$0xf]  ;;  %v10130_v62 = vor.u32 %v15888_v55, %v10129_v54  ;;  %v15854_v63 = vld [vmem:[%s24663_s1 + $0xa4] sm:$0xf0]  ;;  %v9930_v4 = vor.u32 %v15838_v60, %v9929_v59  ;;  %v9921_v7 = vld [vmem:[%s24663_s1 + $0x10] sm:$0xf] }
  0x1a   : > { %1026 = vmatpush.bf16.msra.mxu0 %v9946_v44  ;;  %v10057_v0 = vld [vmem:[%s24663_s1 + $0x120] sm:$0xf]  ;;  %v15870_v1 = vld [vmem:[%s24663_s1 + $0x124] sm:$0xf0]  ;;  %v9994_v5 = vor.u32 %v15854_v63, %v9993_v61  ;;  %v15836_v8 = vld [vmem:[%s24663_s1 + $0x14] sm:$0xf0] }
  0x1b   : > { %1039 = vmatpush.bf16.msra.mxu1 %v10010_v45  ;;  %v10121_v2 = vld [vmem:[%s24663_s1 + $0x1a0] sm:$0xf]  ;;  %v15886_v3 = vld [vmem:[%s24663_s1 + $0x1a4] sm:$0xf0]  ;;  %v10058_v6 = vor.u32 %v15870_v1, %v10057_v0  ;;  %v9985_v9 = vld [vmem:[%s24663_s1 + $0x90] sm:$0xf]  ;;  %v9922_v16 = vor.u32 %v15836_v8, %v9921_v7 }
  0x1c   : > { %1052 = vmatpush.bf16.msra.mxu2 %v10074_v46  ;;  %v10122_v10 = vor.u32 %v15886_v3, %v10121_v2  ;;  %v15852_v11 = vld [vmem:[%s24663_s1 + $0x94] sm:$0xf0]  ;;  %v10049_v12 = vld [vmem:[%s24663_s1 + $0x110] sm:$0xf]  ;;  %v9913_v17 = vld [vmem:[%s24663_s1] sm:$0xf] }
  0x1d   : > { %1065 = vmatpush.bf16.msra.mxu3 %v10138_v50  ;;  %v15868_v13 = vld [vmem:[%s24663_s1 + $0x114] sm:$0xf0]  ;;  %v10113_v14 = vld [vmem:[%s24663_s1 + $0x190] sm:$0xf]  ;;  %v15834_v18 = vld [vmem:[%s24663_s1 + $0x4] sm:$0xf0]  ;;  %v9986_v19 = vor.u32 %v15852_v11, %v9985_v9 }
  0x1e   : > { %1027 = vmatpush.bf16.msra.mxu0 %v9938_v56  ;;  %v15884_v15 = vld [vmem:[%s24663_s1 + $0x194] sm:$0xf0]  ;;  %v10050_v20 = vor.u32 %v15868_v13, %v10049_v12  ;;  %v9977_v21 = vld [vmem:[%s24663_s1 + $0x80] sm:$0xf]  ;;  %v15850_v22 = vld [vmem:[%s24663_s1 + $0x84] sm:$0xf0]  ;;  %v9914_v31 = vor.u32 %v15834_v18, %v9913_v17 }
  0x1f   : > { %1040 = vmatpush.bf16.msra.mxu1 %v10002_v57  ;;  %v10041_v23 = vld [vmem:[%s24663_s1 + $0x100] sm:$0xf]  ;;  %v10114_v24 = vor.u32 %v15884_v15, %v10113_v14  ;;  %v15866_v25 = vld [vmem:[%s24663_s1 + $0x104] sm:$0xf0]  ;;  %v10225_v28 = vld [vmem:[%s24663_s1 + $0x270] sm:$0xf]  ;;  %v9978_v35 = vor.u32 %v15850_v22, %v9977_v21 }
  0x20   : > { %1053 = vmatpush.bf16.msra.mxu2 %v10066_v58  ;;  %v10105_v26 = vld [vmem:[%s24663_s1 + $0x180] sm:$0xf]  ;;  %v15882_v27 = vld [vmem:[%s24663_s1 + $0x184] sm:$0xf0]  ;;  %v15912_v29 = vld [vmem:[%s24663_s1 + $0x274] sm:$0xf0]  ;;  %v10042_v36 = vor.u32 %v15866_v25, %v10041_v23 }
  0x21   : > { %1066 = vmatpush.bf16.msra.mxu3 %v10130_v62  ;;  %v10289_v30 = vld [vmem:[%s24663_s1 + $0x2f0] sm:$0xf]  ;;  %v15928_v32 = vld [vmem:[%s24663_s1 + $0x2f4] sm:$0xf0]  ;;  %v10106_v39 = vor.u32 %v15882_v27, %v10105_v26  ;;  %v10226_v40 = vor.u32 %v15912_v29, %v10225_v28  ;;  %v10217_v43 = vld [vmem:[%s24663_s1 + $0x260] sm:$0xf] }
  0x22   : > { %1028 = vmatpush.bf16.msra.mxu0 %v9930_v4  ;;  %v10353_v33 = vld [vmem:[%s24663_s1 + $0x370] sm:$0xf]  ;;  %v15944_v34 = vld [vmem:[%s24663_s1 + $0x374] sm:$0xf0]  ;;  %v10290_v41 = vor.u32 %v15928_v32, %v10289_v30  ;;  %v15910_v44 = vld [vmem:[%s24663_s1 + $0x264] sm:$0xf0] }
  0x23   : > { %1041 = vmatpush.bf16.msra.mxu1 %v9994_v5  ;;  %v10417_v37 = vld [vmem:[%s24663_s1 + $0x3f0] sm:$0xf]  ;;  %v15960_v38 = vld [vmem:[%s24663_s1 + $0x3f4] sm:$0xf0]  ;;  %v10354_v42 = vor.u32 %v15944_v34, %v10353_v33  ;;  %v10281_v45 = vld [vmem:[%s24663_s1 + $0x2e0] sm:$0xf]  ;;  %v10218_v52 = vor.u32 %v15910_v44, %v10217_v43 }
  0x24   : > { %1054 = vmatpush.bf16.msra.mxu2 %v10058_v6  ;;  %v10418_v46 = vor.u32 %v15960_v38, %v10417_v37  ;;  %v15926_v47 = vld [vmem:[%s24663_s1 + $0x2e4] sm:$0xf0]  ;;  %v10345_v48 = vld [vmem:[%s24663_s1 + $0x360] sm:$0xf]  ;;  %v10209_v53 = vld [vmem:[%s24663_s1 + $0x250] sm:$0xf] }
  0x25   : > { %1067 = vmatpush.bf16.msra.mxu3 %v10122_v10  ;;  %v15942_v49 = vld [vmem:[%s24663_s1 + $0x364] sm:$0xf0]  ;;  %v10409_v50 = vld [vmem:[%s24663_s1 + $0x3e0] sm:$0xf]  ;;  %v15908_v54 = vld [vmem:[%s24663_s1 + $0x254] sm:$0xf0]  ;;  %v10282_v55 = vor.u32 %v15926_v47, %v10281_v45 }
  0x26   : > { %1029 = vmatpush.bf16.msra.mxu0 %v9922_v16  ;;  %v15958_v51 = vld [vmem:[%s24663_s1 + $0x3e4] sm:$0xf0]  ;;  %v10346_v56 = vor.u32 %v15942_v49, %v10345_v48  ;;  %v10273_v57 = vld [vmem:[%s24663_s1 + $0x2d0] sm:$0xf]  ;;  %v15924_v58 = vld [vmem:[%s24663_s1 + $0x2d4] sm:$0xf0]  ;;  %v10210_v1 = vor.u32 %v15908_v54, %v10209_v53 }
  0x27   : > { %1042 = vmatpush.bf16.msra.mxu1 %v9986_v19  ;;  %v10410_v59 = vor.u32 %v15958_v51, %v10409_v50  ;;  %v10337_v60 = vld [vmem:[%s24663_s1 + $0x350] sm:$0xf]  ;;  %v15940_v61 = vld [vmem:[%s24663_s1 + $0x354] sm:$0xf0]  ;;  %v10201_v0 = vld [vmem:[%s24663_s1 + $0x240] sm:$0xf]  ;;  %v10274_v5 = vor.u32 %v15924_v58, %v10273_v57 }
  0x28   : > { %1055 = vmatpush.bf16.msra.mxu2 %v10050_v20  ;;  %v10401_v62 = vld [vmem:[%s24663_s1 + $0x3d0] sm:$0xf]  ;;  %v15956_v63 = vld [vmem:[%s24663_s1 + $0x3d4] sm:$0xf0]  ;;  %s24669_s19 = smov (!%p214_p3, %s9904_s19), 1  ;;  %v10338_v6 = vor.u32 %v15940_v61, %v10337_v60 }
  0x29   : > { %1068 = vmatpush.bf16.msra.mxu3 %v10114_v24  ;;  %v15906_v2 = vld [vmem:[%s24663_s1 + $0x244] sm:$0xf0]  ;;  %v10265_v3 = vld [vmem:[%s24663_s1 + $0x2c0] sm:$0xf]  ;;  %s17057_s24 = smul.u32 96, %s24669_s19  ;;  %v10402_v9 = vor.u32 %v15956_v63, %v10401_v62  ;;  %s9910_s26 = sshll.u32 %s24669_s19, 2 }
  0x2a   : > { %1030 = vmatpush.bf16.msra.mxu0 %v9914_v31  ;;  %v15922_v4 = vld [vmem:[%s24663_s1 + $0x2c4] sm:$0xf0]  ;;  %v10329_v7 = vld [vmem:[%s24663_s1 + $0x340] sm:$0xf]  ;;  %v10202_v12 = vor.u32 %v15906_v2, %v10201_v0  ;;  %v10193_v17 = vld [vmem:[%s24663_s1 + $0x230] sm:$0xf]  ;;  %s222_s29 = scalar_lea.vmem %s24667_s5, %s9910_s26 }
  0x2b   : > { %1043 = vmatpush.bf16.msra.mxu1 %v9978_v35  ;;  %v15938_v8 = vld [vmem:[%s24663_s1 + $0x344] sm:$0xf0]  ;;  %v10393_v10 = vld [vmem:[%s24663_s1 + $0x3c0] sm:$0xf]  ;;  %s17410_s6 = scalar_lea.vmem %s24662_s0, %s17057_s24  ;;  %v10266_v13 = vor.u32 %v15922_v4, %v10265_v3  ;;  %v15904_v18 = vld [vmem:[%s24663_s1 + $0x234] sm:$0xf0] }
  0x2c   : > { %1056 = vmatpush.bf16.msra.mxu2 %v10042_v36  ;;  %v15954_v11 = vld [vmem:[%s24663_s1 + $0x3c4] sm:$0xf0]  ;;  %v10330_v14 = vor.u32 %v15938_v8, %v10329_v7  ;;  %v223_v16 = vld [vmem:[%s17410_s6] sm:$0xff]  ;;  %v10257_v19 = vld [vmem:[%s24663_s1 + $0x2b0] sm:$0xf]  ;;  %v10194_v33 = vor.u32 %v15904_v18, %v10193_v17 }
  0x2d   : > { %1069 = vmatpush.bf16.msra.mxu3 %v10106_v39  ;;  %v224_v15 = vld [vmem:[%s17410_s6 + $0x8] sm:$0xff]  ;;  %v359_v21 = vunpack.c.l.b16 %v223_v16  ;;  %v360_v23 = vunpack.c.h.b16 %v223_v16  ;;  %v10394_v24 = vor.u32 %v15954_v11, %v10393_v10  ;;  %v15920_v25 = vld [vmem:[%s24663_s1 + $0x2b4] sm:$0xf0]  ;;  %v10321_v26 = vld [vmem:[%s24663_s1 + $0x330] sm:$0xf] }
  0x2e   : > { %1075 = vmatpush.bf16.msrb.mxu0 %v10226_v40  ;;  %v361_v20 = vunpack.c.l.b16 %v224_v15  ;;  %v362_v22 = vunpack.c.h.b16 %v224_v15  ;;  %v15936_v27 = vld [vmem:[%s24663_s1 + $0x334] sm:$0xf0]  ;;  %v10385_v28 = vld [vmem:[%s24663_s1 + $0x3b0] sm:$0xf]  ;;  %v10258_v35 = vor.u32 %v15920_v25, %v10257_v19  ;;  %v10185_v37 = vld [vmem:[%s24663_s1 + $0x220] sm:$0xf] }
  0x2f   : > { %1088 = vmatpush.bf16.msrb.mxu1 %v10290_v41  ;;  %v15952_v29 = vld [vmem:[%s24663_s1 + $0x3b4] sm:$0xf0]  ;;  %v17440_v31 = vpack.c.b16 %v359_v21, %v359_v21  ;;  %v17444_v34 = vpack.c.b16 %v360_v23, %v360_v23  ;;  %v10322_v36 = vor.u32 %v15936_v27, %v10321_v26  ;;  %v15902_v38 = vld [vmem:[%s24663_s1 + $0x224] sm:$0xf0]  ;;  %v10249_v39 = vld [vmem:[%s24663_s1 + $0x2a0] sm:$0xf] }
  0x30   : > { %1101 = vmatpush.bf16.msrb.mxu2 %v10354_v42  ;;  %v17438_v30 = vpack.c.b16 %v361_v20, %v361_v20  ;;  %v17442_v32 = vpack.c.b16 %v362_v22, %v362_v22  ;;  %v10386_v40 = vor.u32 %v15952_v29, %v10385_v28  ;;  %v15918_v41 = vld [vmem:[%s24663_s1 + $0x2a4] sm:$0xf0]  ;;  %v10313_v42 = vld [vmem:[%s24663_s1 + $0x320] sm:$0xf]  ;;  %v10177_v49 = vld [vmem:[%s24663_s1 + $0x210] sm:$0xf] }
  0x31   : > { %1114 = vmatpush.bf16.msrb.mxu3 %v10418_v46  ;;  %v15934_v43 = vld [vmem:[%s24663_s1 + $0x324] sm:$0xf0]  ;;  %v10377_v44 = vld [vmem:[%s24663_s1 + $0x3a0] sm:$0xf]  ;;  %1031 = vmatmul.bf16.vlgmr.msra.gmra.mxu0 %v17440_v31  ;;  %v10186_v46 = vor.u32 %v15902_v38, %v10185_v37  ;;  %v10250_v47 = vor.u32 %v15918_v41, %v10249_v39  ;;  %v15900_v50 = vld [vmem:[%s24663_s1 + $0x214] sm:$0xf0] }
  0x32   : > { %1076 = vmatpush.bf16.msrb.mxu0 %v10218_v52  ;;  %1057 = vmatmul.bf16.vlgmr.msra.gmra.mxu2 %v17438_v30  ;;  %v15950_v45 = vld [vmem:[%s24663_s1 + $0x3a4] sm:$0xf0]  ;;  %v10314_v48 = vor.u32 %v15934_v43, %v10313_v42  ;;  %v10241_v51 = vld [vmem:[%s24663_s1 + $0x290] sm:$0xf]  ;;  %v15916_v53 = vld [vmem:[%s24663_s1 + $0x294] sm:$0xf0] }
  0x33   : > { %1089 = vmatpush.bf16.msrb.mxu1 %v10282_v55  ;;  %1070 = vmatmul.bf16.vlgmr.msra.gmra.mxu3 %v17442_v32  ;;  %v10378_v52 = vor.u32 %v15950_v45, %v10377_v44  ;;  %v10305_v54 = vld [vmem:[%s24663_s1 + $0x310] sm:$0xf]  ;;  %v15932_v55 = vld [vmem:[%s24663_s1 + $0x314] sm:$0xf0]  ;;  %v10169_v58 = vld [vmem:[%s24663_s1 + $0x200] sm:$0xf]  ;;  %v10242_v63 = vor.u32 %v15916_v53, %v10241_v51 }
  0x34   : > { %1102 = vmatpush.bf16.msrb.mxu2 %v10346_v56  ;;  %1044 = vmatmul.bf16.vlgmr.msra.gmra.mxu1 %v17444_v34  ;;  %v10369_v56 = vld [vmem:[%s24663_s1 + $0x390] sm:$0xf]  ;;  %v15948_v57 = vld [vmem:[%s24663_s1 + $0x394] sm:$0xf0]  ;;  %v15898_v60 = vld [vmem:[%s24663_s1 + $0x204] sm:$0xf0]  ;;  %v10306_v0 = vor.u32 %v15932_v55, %v10305_v54 }
  0x35   : > { %1115 = vmatpush.bf16.msrb.mxu3 %v10410_v59  ;;  %v10178_v59 = vor.u32 %v15900_v50, %v10177_v49  ;;  %v10233_v61 = vld [vmem:[%s24663_s1 + $0x280] sm:$0xf]  ;;  %v15914_v62 = vld [vmem:[%s24663_s1 + $0x284] sm:$0xf0]  ;;  %v226_v3 = vld [vmem:[%s17410_s6 + $0x18] sm:$0xff]  ;;  %v10370_v4 = vor.u32 %v15948_v57, %v10369_v56  ;;  %v10170_v11 = vor.u32 %v15898_v60, %v10169_v58 }
  0x36   : > { %1077 = vmatpush.bf16.msrb.mxu0 %v10210_v1  ;;  %v10297_v1 = vld [vmem:[%s24663_s1 + $0x300] sm:$0xf]  ;;  %v15930_v2 = vld [vmem:[%s24663_s1 + $0x304] sm:$0xf0]  ;;  %v225_v7 = vld [vmem:[%s17410_s6 + $0x10] sm:$0xff]  ;;  %v365_v15 = vunpack.c.l.b16 %v226_v3  ;;  %v10234_v16 = vor.u32 %v15914_v62, %v10233_v61  ;;  %v366_v21 = vunpack.c.h.b16 %v226_v3 }
  0x37   : > { %1090 = vmatpush.bf16.msrb.mxu1 %v10274_v5  ;;  %v10361_v5 = vld [vmem:[%s24663_s1 + $0x380] sm:$0xf]  ;;  %v15847_v8 = vld [vmem:[%s24663_s1 + $0x74] sm:$0xf]  ;;  %v10298_v17 = vor.u32 %v15930_v2, %v10297_v1  ;;  %v10163_v19 = vld [vmem:[%s24663_s1 + $0x1f8] sm:$0xf0]  ;;  %v363_v20 = vunpack.c.l.b16 %v225_v7 }
  0x38   : > { %1103 = vmatpush.bf16.msrb.mxu2 %v10338_v6  ;;  %v15946_v6 = vld [vmem:[%s24663_s1 + $0x384] sm:$0xf0]  ;;  %v15863_v10 = vld [vmem:[%s24663_s1 + $0xf4] sm:$0xf]  ;;  %v15845_v27 = vld [vmem:[%s24663_s1 + $0x64] sm:$0xf]  ;;  %v17566_v38 = vpack.c.b16 %v365_v15, %v365_v15  ;;  %v17576_v42 = vpack.c.b16 %v366_v21, %v366_v21 }
  0x39   : > { %1116 = vmatpush.bf16.msrb.mxu3 %v10402_v9  ;;  %v9971_v9 = vld [vmem:[%s24663_s1 + $0x78] sm:$0xf0]  ;;  %v15895_v18 = vld [vmem:[%s24663_s1 + $0x1f4] sm:$0xf]  ;;  %v10362_v22 = vor.u32 %v15946_v6, %v10361_v5  ;;  %v9963_v28 = vld [vmem:[%s24663_s1 + $0x68] sm:$0xf0]  ;;  %v17574_v41 = vpack.c.b16 %v363_v20, %v363_v20 }
  0x3a   : > { %1078 = vmatpush.bf16.msrb.mxu0 %v10202_v12  ;;  %v10035_v12 = vld [vmem:[%s24663_s1 + $0xf8] sm:$0xf0]  ;;  %v9974_v23 = vor.u32 %v15847_v8, %v9971_v9  ;;  %v15861_v29 = vld [vmem:[%s24663_s1 + $0xe4] sm:$0xf]  ;;  %v10091_v37 = vld [vmem:[%s24663_s1 + $0x168] sm:$0xf0]  ;;  %v9966_v43 = vor.u32 %v15845_v27, %v9963_v28 }
  0x3b   : > { %1091 = vmatpush.bf16.msrb.mxu1 %v10266_v13  ;;  %v15879_v13 = vld [vmem:[%s24663_s1 + $0x174] sm:$0xf]  ;;  %v10038_v25 = vor.u32 %v15863_v10, %v10035_v12  ;;  %v15893_v39 = vld [vmem:[%s24663_s1 + $0x1e4] sm:$0xf]  ;;  %v10019_v51 = vld [vmem:[%s24663_s1 + $0xd8] sm:$0xf0] }
  0x3c   : > { %1104 = vmatpush.bf16.msrb.mxu2 %v10330_v14  ;;  %v10099_v14 = vld [vmem:[%s24663_s1 + $0x178] sm:$0xf0]  ;;  %v15859_v49 = vld [vmem:[%s24663_s1 + $0xd4] sm:$0xf]  ;;  %v9947_v60 = vld [vmem:[%s24663_s1 + $0x48] sm:$0xf0] }
  0x3d   : > { %1117 = vmatpush.bf16.msrb.mxu3 %v10394_v24  ;;  %v364_v24 = vunpack.c.h.b16 %v225_v7  ;;  %v10102_v26 = vor.u32 %v15879_v13, %v10099_v14  ;;  %v10083_v53 = vld [vmem:[%s24663_s1 + $0x158] sm:$0xf0]  ;;  %v15891_v54 = vld [vmem:[%s24663_s1 + $0x1d4] sm:$0xf]  ;;  %v10022_v57 = vor.u32 %v15859_v49, %v10019_v51  ;;  %v15857_v61 = vld [vmem:[%s24663_s1 + $0xc4] sm:$0xf] }
  0x3e   : > { %1079 = vmatpush.bf16.msrb.mxu0 %v10194_v33  ;;  %v10166_v33 = vor.u32 %v15895_v18, %v10163_v19  ;;  %v10147_v55 = vld [vmem:[%s24663_s1 + $0x1d8] sm:$0xf0]  ;;  %v10075_v1 = vld [vmem:[%s24663_s1 + $0x148] sm:$0xf0]  ;;  %v15889_v2 = vld [vmem:[%s24663_s1 + $0x1c4] sm:$0xf] }
  0x3f   : > { %1092 = vmatpush.bf16.msrb.mxu1 %v10258_v35  ;;  %v10027_v35 = vld [vmem:[%s24663_s1 + $0xe8] sm:$0xf0]  ;;  %v17578_v44 = vpack.c.b16 %v364_v24, %v364_v24  ;;  %v10150_v62 = vor.u32 %v15891_v54, %v10147_v55  ;;  %v15839_v7 = vld [vmem:[%s24663_s1 + $0x34] sm:$0xf]  ;;  %v9939_v8 = vld [vmem:[%s24663_s1 + $0x38] sm:$0xf0] }
  0x40   : > { %1105 = vmatpush.bf16.msrb.mxu2 %v10322_v36  ;;  %v15877_v36 = vld [vmem:[%s24663_s1 + $0x164] sm:$0xf]  ;;  %v10030_v45 = vor.u32 %v15861_v29, %v10027_v35  ;;  %v10139_v3 = vld [vmem:[%s24663_s1 + $0x1c8] sm:$0xf0]  ;;  %v15855_v9 = vld [vmem:[%s24663_s1 + $0xb4] sm:$0xf] }
  0x41   : > { %1118 = vmatpush.bf16.msrb.mxu3 %v10386_v40  ;;  %v10155_v40 = vld [vmem:[%s24663_s1 + $0x1e8] sm:$0xf0]  ;;  %v10142_v10 = vor.u32 %v15889_v2, %v10139_v3  ;;  %v15871_v12 = vld [vmem:[%s24663_s1 + $0x134] sm:$0xf]  ;;  %v10067_v13 = vld [vmem:[%s24663_s1 + $0x138] sm:$0xf0] }
  0x42   : > { %1080 = vmatpush.bf16.msrb.mxu0 %v10186_v46  ;;  %v10094_v46 = vor.u32 %v15877_v36, %v10091_v37  ;;  %v10158_v50 = vor.u32 %v15893_v39, %v10155_v40  ;;  %v15887_v14 = vld [vmem:[%s24663_s1 + $0x1b4] sm:$0xf]  ;;  %v10131_v15 = vld [vmem:[%s24663_s1 + $0x1b8] sm:$0xf0]  ;;  %v10070_v18 = vor.u32 %v15871_v12, %v10067_v13  ;;  %v15837_v19 = vld [vmem:[%s24663_s1 + $0x24] sm:$0xf] }
  0x43   : > { %1093 = vmatpush.bf16.msrb.mxu1 %v10250_v47  ;;  %v15843_v47 = vld [vmem:[%s24663_s1 + $0x54] sm:$0xf]  ;;  %v9931_v20 = vld [vmem:[%s24663_s1 + $0x28] sm:$0xf0]  ;;  %v15853_v21 = vld [vmem:[%s24663_s1 + $0xa4] sm:$0xf] }
  0x44   : > { %1106 = vmatpush.bf16.msrb.mxu2 %v10314_v48  ;;  %v9955_v48 = vld [vmem:[%s24663_s1 + $0x58] sm:$0xf0]  ;;  %v15869_v24 = vld [vmem:[%s24663_s1 + $0x124] sm:$0xf]  ;;  %v10123_v27 = vld [vmem:[%s24663_s1 + $0x1a8] sm:$0xf0]  ;;  %v9934_v28 = vor.u32 %v15837_v19, %v9931_v20 }
  0x45   : > { %1119 = vmatpush.bf16.msrb.mxu3 %v10378_v52  ;;  %v15875_v52 = vld [vmem:[%s24663_s1 + $0x154] sm:$0xf]  ;;  %v9958_v56 = vor.u32 %v15843_v47, %v9955_v48  ;;  %v9923_v36 = vld [vmem:[%s24663_s1 + $0x18] sm:$0xf0]  ;;  %v15833_v49 = vld [vmem:[%s24663_s1 + $0x4] sm:$0xf] }
  0x46   : > { %1081 = vmatpush.bf16.msrb.mxu0 %v10178_v59  ;;  %v10086_v58 = vor.u32 %v15875_v52, %v10083_v53  ;;  %v15841_v59 = vld [vmem:[%s24663_s1 + $0x44] sm:$0xf]  ;;  %v15835_v35 = vld [vmem:[%s24663_s1 + $0x14] sm:$0xf]  ;;  %v9987_v40 = vld [vmem:[%s24663_s1 + $0x98] sm:$0xf0] }
  0x47   : > { %1094 = vmatpush.bf16.msrb.mxu1 %v10242_v63  ;;  %v10011_v63 = vld [vmem:[%s24663_s1 + $0xc8] sm:$0xf0]  ;;  %v15851_v37 = vld [vmem:[%s24663_s1 + $0x94] sm:$0xf]  ;;  %v10115_v47 = vld [vmem:[%s24663_s1 + $0x198] sm:$0xf0]  ;;  %v9926_v48 = vor.u32 %v15835_v35, %v9923_v36 }
  0x48   : > { %1107 = vmatpush.bf16.msrb.mxu2 %v10306_v0  ;;  %v15873_v0 = vld [vmem:[%s24663_s1 + $0x144] sm:$0xf]  ;;  %v10014_v5 = vor.u32 %v15857_v61, %v10011_v63  ;;  %v9990_v51 = vor.u32 %v15851_v37, %v9987_v40  ;;  %v9979_v54 = vld [vmem:[%s24663_s1 + $0x88] sm:$0xf0]  ;;  %v10227_v61 = vld [vmem:[%s24663_s1 + $0x278] sm:$0xf0] }
  0x49   : > { %1120 = vmatpush.bf16.msrb.mxu3 %v10370_v4  ;;  %v9950_v4 = vor.u32 %v15841_v59, %v9947_v60  ;;  %v10078_v6 = vor.u32 %v15873_v0, %v10075_v1  ;;  %v15849_v53 = vld [vmem:[%s24663_s1 + $0x84] sm:$0xf]  ;;  %v10107_v59 = vld [vmem:[%s24663_s1 + $0x188] sm:$0xf0]  ;;  %v15911_v60 = vld [vmem:[%s24663_s1 + $0x274] sm:$0xf] }
  0x4a   : > { %1082 = vmatpush.bf16.msrb.mxu0 %v10170_v11  ;;  %v10003_v11 = vld [vmem:[%s24663_s1 + $0xb8] sm:$0xf0]  ;;  %v15865_v55 = vld [vmem:[%s24663_s1 + $0x104] sm:$0xf]  ;;  %v15943_v1 = vld [vmem:[%s24663_s1 + $0x374] sm:$0xf]  ;;  %v9982_v3 = vor.u32 %v15849_v53, %v9979_v54 }
  0x4b   : > { %1095 = vmatpush.bf16.msrb.mxu1 %v10234_v16  ;;  %v9942_v16 = vor.u32 %v15839_v7, %v9939_v8  ;;  %v10291_v0 = vld [vmem:[%s24663_s1 + $0x2f8] sm:$0xf0]  ;;  %v10230_v8 = vor.u32 %v15911_v60, %v10227_v61  ;;  %v10219_v12 = vld [vmem:[%s24663_s1 + $0x268] sm:$0xf0]  ;;  %v15925_v13 = vld [vmem:[%s24663_s1 + $0x2e4] sm:$0xf] }
  0x4c   : > { %1108 = vmatpush.bf16.msrb.mxu2 %v10298_v17  ;;  %v10006_v17 = vor.u32 %v15855_v9, %v10003_v11  ;;  %v10355_v2 = vld [vmem:[%s24663_s1 + $0x378] sm:$0xf0]  ;;  %v15909_v11 = vld [vmem:[%s24663_s1 + $0x264] sm:$0xf]  ;;  %v10411_v19 = vld [vmem:[%s24663_s1 + $0x3e8] sm:$0xf0] }
  0x4d   : > { %1121 = vmatpush.bf16.msrb.mxu3 %v10362_v22  ;;  %1083 = vmatmul.bf16.vlgmr.msrb.gmra.mxu0 %v17574_v41  ;;  %v10134_v22 = vor.u32 %v15887_v14, %v10131_v15  ;;  %v10283_v15 = vld [vmem:[%s24663_s1 + $0x2e8] sm:$0xf0]  ;;  %v10222_v20 = vor.u32 %v15909_v11, %v10219_v12  ;;  %v10403_v35 = vld [vmem:[%s24663_s1 + $0x3d8] sm:$0xf0]  ;;  %v15919_v53 = vld [vmem:[%s24663_s1 + $0x2b4] sm:$0xf] }
  0x4e   : > { %1127 = vmatpush.bf16.msra.mxu0 %v9974_v23  ;;  %1096 = vmatmul.bf16.vlgmr.msrb.gmra.mxu1 %v17578_v44  ;;  %v9995_v23 = vld [vmem:[%s24663_s1 + $0xa8] sm:$0xf0]  ;;  %v15899_v11 = vld [vmem:[%s24663_s1 + $0x214] sm:$0xf]  ;;  %v10179_v12 = vld [vmem:[%s24663_s1 + $0x218] sm:$0xf0] }
  0x4f   : > { %1140 = vmatpush.bf16.msra.mxu1 %v10038_v25  ;;  %1109 = vmatmul.bf16.vlgmr.msrb.gmra.mxu2 %v17566_v38  ;;  %v10059_v25 = vld [vmem:[%s24663_s1 + $0x128] sm:$0xf0]  ;;  %v9998_v29 = vor.u32 %v15853_v21, %v9995_v23  ;;  %v10286_v21 = vor.u32 %v15925_v13, %v10283_v15  ;;  %v15907_v23 = vld [vmem:[%s24663_s1 + $0x254] sm:$0xf]  ;;  %v10243_v15 = vld [vmem:[%s24663_s1 + $0x298] sm:$0xf0] }
  0x50   : > { %1153 = vmatpush.bf16.msra.mxu2 %v10102_v26  ;;  %1122 = vmatmul.bf16.vlgmr.msrb.gmra.mxu3 %v17576_v42  ;;  %v15885_v26 = vld [vmem:[%s24663_s1 + $0x1a4] sm:$0xf]  ;;  %v10203_v40 = vld [vmem:[%s24663_s1 + $0x248] sm:$0xf0]  ;;  %v15915_v13 = vld [vmem:[%s24663_s1 + $0x294] sm:$0xf] }
  0x51   : > { %1166 = vmatpush.bf16.msra.mxu3 %v10166_v33  ;;  %v10062_v33 = vor.u32 %v15869_v24, %v10059_v25  ;;  %v10126_v39 = vor.u32 %v15885_v26, %v10123_v27  ;;  %v10211_v24 = vld [vmem:[%s24663_s1 + $0x258] sm:$0xf0]  ;;  %v15923_v25 = vld [vmem:[%s24663_s1 + $0x2d4] sm:$0xf] }
  0x52   : > { %1128 = vmatpush.bf16.msra.mxu0 %v9966_v43  ;;  %v15867_v43 = vld [vmem:[%s24663_s1 + $0x114] sm:$0xf]  ;;  %v10275_v27 = vld [vmem:[%s24663_s1 + $0x2d8] sm:$0xf0]  ;;  %v10214_v36 = vor.u32 %v15907_v23, %v10211_v24  ;;  %v10246_v23 = vor.u32 %v15915_v13, %v10243_v15  ;;  %v16010_v13 = vld [vmem:[%s24663_s1 + $0x544] sm:$0xf0] }
  0x53   : > { %1141 = vmatpush.bf16.msra.mxu1 %v10030_v45  ;;  %v10051_v45 = vld [vmem:[%s24663_s1 + $0x118] sm:$0xf0]  ;;  %v10278_v37 = vor.u32 %v15923_v25, %v10275_v27  ;;  %v15913_v25 = vld [vmem:[%s24663_s1 + $0x284] sm:$0xf]  ;;  %v16026_v15 = vld [vmem:[%s24663_s1 + $0x5c4] sm:$0xf0] }
  0x54   : > { %1154 = vmatpush.bf16.msra.mxu2 %v10094_v46  ;;  %v15883_v46 = vld [vmem:[%s24663_s1 + $0x194] sm:$0xf]  ;;  %v10054_v52 = vor.u32 %v15867_v43, %v10051_v45  ;;  %v15937_v43 = vld [vmem:[%s24663_s1 + $0x344] sm:$0xf]  ;;  %v10331_v45 = vld [vmem:[%s24663_s1 + $0x348] sm:$0xf0] }
  0x55   : > { %1167 = vmatpush.bf16.msra.mxu3 %v10158_v50  ;;  %v9915_v50 = vld [vmem:[%s24663_s1 + $0x8] sm:$0xf0]  ;;  %v15929_v27 = vld [vmem:[%s24663_s1 + $0x304] sm:$0xf] }
  0x56   : > { %1129 = vmatpush.bf16.msra.mxu0 %v9958_v56  ;;  %v10118_v56 = vor.u32 %v15883_v46, %v10115_v47  ;;  %v9918_v63 = vor.u32 %v15833_v49, %v9915_v50  ;;  %v15953_v46 = vld [vmem:[%s24663_s1 + $0x3c4] sm:$0xf]  ;;  %v10395_v47 = vld [vmem:[%s24663_s1 + $0x3c8] sm:$0xf0]  ;;  %v10334_v50 = vor.u32 %v15937_v43, %v10331_v45  ;;  %v10833_v45 = vld [vmem:[%s24663_s1 + $0x5f0] sm:$0xf] }
  0x57   : > { %1142 = vmatpush.bf16.msra.mxu1 %v10022_v57  ;;  %v10043_v57 = vld [vmem:[%s24663_s1 + $0x108] sm:$0xf0]  ;;  %v10398_v54 = vor.u32 %v15953_v46, %v10395_v47  ;;  %v16032_v46 = vld [vmem:[%s24663_s1 + $0x5f4] sm:$0xf0] }
  0x58   : > { %1155 = vmatpush.bf16.msra.mxu2 %v10086_v58  ;;  %v15881_v58 = vld [vmem:[%s24663_s1 + $0x184] sm:$0xf] }
  0x59   : > { %1168 = vmatpush.bf16.msra.mxu3 %v10150_v62  ;;  %v15927_v62 = vld [vmem:[%s24663_s1 + $0x2f4] sm:$0xf]  ;;  %v10110_v7 = vor.u32 %v15881_v58, %v10107_v59  ;;  %v10387_v59 = vld [vmem:[%s24663_s1 + $0x3b8] sm:$0xf0] }
  0x5a   : > { %1130 = vmatpush.bf16.msra.mxu0 %v9950_v4  ;;  %v10046_v4 = vor.u32 %v15865_v55, %v10043_v57  ;;  %v10294_v9 = vor.u32 %v15927_v62, %v10291_v0  ;;  %v10259_v55 = vld [vmem:[%s24663_s1 + $0x2b8] sm:$0xf0]  ;;  %v15951_v58 = vld [vmem:[%s24663_s1 + $0x3b4] sm:$0xf]  ;;  %v10187_v0 = vld [vmem:[%s24663_s1 + $0x228] sm:$0xf0] }
  0x5b   : > { %1143 = vmatpush.bf16.msra.mxu1 %v10014_v5  ;;  %v15959_v5 = vld [vmem:[%s24663_s1 + $0x3f4] sm:$0xf]  ;;  %v10323_v57 = vld [vmem:[%s24663_s1 + $0x338] sm:$0xf0]  ;;  %v10262_v61 = vor.u32 %v15919_v53, %v10259_v55  ;;  %v10697_v53 = vld [vmem:[%s24663_s1 + $0x4e0] sm:$0xf] }
  0x5c   : > { %1156 = vmatpush.bf16.msra.mxu2 %v10078_v6  ;;  %v10419_v6 = vld [vmem:[%s24663_s1 + $0x3f8] sm:$0xf0]  ;;  %v15998_v55 = vld [vmem:[%s24663_s1 + $0x4e4] sm:$0xf0] }
  0x5d   : > { %1169 = vmatpush.bf16.msra.mxu3 %v10142_v10  ;;  %v10358_v10 = vor.u32 %v15943_v1, %v10355_v2  ;;  %v10422_v14 = vor.u32 %v15959_v5, %v10419_v6  ;;  %v15917_v1 = vld [vmem:[%s24663_s1 + $0x2a4] sm:$0xf]  ;;  %v10390_v2 = vor.u32 %v15951_v58, %v10387_v59  ;;  %v10315_v5 = vld [vmem:[%s24663_s1 + $0x328] sm:$0xf0]  ;;  %v10825_v58 = vld [vmem:[%s24663_s1 + $0x5e0] sm:$0xf] }
  0x5e   : > { %1131 = vmatpush.bf16.msra.mxu0 %v9942_v16  ;;  %v15941_v16 = vld [vmem:[%s24663_s1 + $0x364] sm:$0xf]  ;;  %v16030_v59 = vld [vmem:[%s24663_s1 + $0x5e4] sm:$0xf0] }
  0x5f   : > { %1144 = vmatpush.bf16.msra.mxu1 %v10006_v17  ;;  %v10347_v17 = vld [vmem:[%s24663_s1 + $0x368] sm:$0xf0]  ;;  %v15949_v6 = vld [vmem:[%s24663_s1 + $0x3a4] sm:$0xf] }
  0x60   : > { %1157 = vmatpush.bf16.msra.mxu2 %v10070_v18  ;;  %v15957_v18 = vld [vmem:[%s24663_s1 + $0x3e4] sm:$0xf] }
  0x61   : > { %1170 = vmatpush.bf16.msra.mxu3 %v10134_v22  ;;  %v10350_v22 = vor.u32 %v15941_v16, %v10347_v17  ;;  %v10414_v26 = vor.u32 %v15957_v18, %v10411_v19  ;;  %v15931_v16 = vld [vmem:[%s24663_s1 + $0x314] sm:$0xf]  ;;  %v10307_v17 = vld [vmem:[%s24663_s1 + $0x318] sm:$0xf0] }
  0x62   : > { %1132 = vmatpush.bf16.msra.mxu0 %v9934_v28  ;;  %v15939_v28 = vld [vmem:[%s24663_s1 + $0x354] sm:$0xf]  ;;  %v10371_v19 = vld [vmem:[%s24663_s1 + $0x398] sm:$0xf0]  ;;  %v10310_v24 = vor.u32 %v15931_v16, %v10307_v17  ;;  %v10609_v17 = vld [vmem:[%s24663_s1 + $0x430] sm:$0xf] }
  0x63   : > { %1145 = vmatpush.bf16.msra.mxu1 %v9998_v29  ;;  %v10339_v29 = vld [vmem:[%s24663_s1 + $0x358] sm:$0xf0]  ;;  %v15947_v18 = vld [vmem:[%s24663_s1 + $0x394] sm:$0xf] }
  0x64   : > { %1158 = vmatpush.bf16.msra.mxu2 %v10062_v33  ;;  %v15955_v33 = vld [vmem:[%s24663_s1 + $0x3d4] sm:$0xf] }
  0x65   : > { %1171 = vmatpush.bf16.msra.mxu3 %v10126_v39  ;;  %v15905_v39 = vld [vmem:[%s24663_s1 + $0x244] sm:$0xf] }
  0x66   : > { %1133 = vmatpush.bf16.msra.mxu0 %v9926_v48  ;;  %v10206_v48 = vor.u32 %v15905_v39, %v10203_v40  ;;  %v16000_v40 = vld [vmem:[%s24663_s1 + $0x4f4] sm:$0xf0] }
  0x67   : > { %1146 = vmatpush.bf16.msra.mxu1 %v9990_v51  ;;  %v15903_v51 = vld [vmem:[%s24663_s1 + $0x234] sm:$0xf] }
  0x68   : > { %1159 = vmatpush.bf16.msra.mxu2 %v10054_v52  ;;  %v10195_v52 = vld [vmem:[%s24663_s1 + $0x238] sm:$0xf0] }
  0x69   : > { %1172 = vmatpush.bf16.msra.mxu3 %v10118_v56  ;;  %v15935_v56 = vld [vmem:[%s24663_s1 + $0x334] sm:$0xf]  ;;  %v10198_v60 = vor.u32 %v15903_v51, %v10195_v52  ;;  %v10633_v51 = vld [vmem:[%s24663_s1 + $0x460] sm:$0xf]  ;;  %v15982_v52 = vld [vmem:[%s24663_s1 + $0x464] sm:$0xf0] }
  0x6a   : > { %1134 = vmatpush.bf16.msra.mxu0 %v9918_v63  ;;  %v10326_v62 = vor.u32 %v15935_v56, %v10323_v57  ;;  %v15901_v63 = vld [vmem:[%s24663_s1 + $0x224] sm:$0xf]  ;;  %v10761_v56 = vld [vmem:[%s24663_s1 + $0x560] sm:$0xf]  ;;  %v16014_v57 = vld [vmem:[%s24663_s1 + $0x564] sm:$0xf0] }
  0x6b   : > { %1147 = vmatpush.bf16.msra.mxu1 %v9982_v3  ;;  %v10251_v3 = vld [vmem:[%s24663_s1 + $0x2a8] sm:$0xf0] }
  0x6c   : > { %1160 = vmatpush.bf16.msra.mxu2 %v10046_v4  ;;  %v15933_v4 = vld [vmem:[%s24663_s1 + $0x324] sm:$0xf] }
  0x6d   : > { %1173 = vmatpush.bf16.msra.mxu3 %v10110_v7  ;;  %1135 = vmatmul.bf16.vlgmr.msra.gmra.mxu0 %v17440_v31  ;;  %v15921_v31 = vld [vmem:[%s24663_s1 + $0x2c4] sm:$0xf]  ;;  %v10379_v7 = vld [vmem:[%s24663_s1 + $0x3a8] sm:$0xf0] }
  0x6e   : > { %1179 = vmatpush.bf16.msrb.mxu0 %v10230_v8  ;;  %1148 = vmatmul.bf16.vlgmr.msra.gmra.mxu1 %v17444_v34  ;;  %v10267_v34 = vld [vmem:[%s24663_s1 + $0x2c8] sm:$0xf0]  ;;  %v10190_v8 = vor.u32 %v15901_v63, %v10187_v0  ;;  %v10625_v63 = vld [vmem:[%s24663_s1 + $0x450] sm:$0xf]  ;;  %v15980_v0 = vld [vmem:[%s24663_s1 + $0x454] sm:$0xf0] }
  0x6f   : > { %1192 = vmatpush.bf16.msrb.mxu1 %v10294_v9  ;;  %1161 = vmatmul.bf16.vlgmr.msra.gmra.mxu2 %v17438_v30  ;;  %v10342_v30 = vor.u32 %v15939_v28, %v10339_v29  ;;  %v10270_v49 = vor.u32 %v15921_v31, %v10267_v34  ;;  %v10254_v9 = vor.u32 %v15917_v1, %v10251_v3  ;;  %v10299_v29 = vld [vmem:[%s24663_s1 + $0x308] sm:$0xf0]  ;;  %v10769_v31 = vld [vmem:[%s24663_s1 + $0x570] sm:$0xf]  ;;  %v15996_v3 = vld [vmem:[%s24663_s1 + $0x4d4] sm:$0xf0] }
  0x70   : > { %1205 = vmatpush.bf16.msrb.mxu2 %v10358_v10  ;;  %1174 = vmatmul.bf16.vlgmr.msra.gmra.mxu3 %v17442_v32  ;;  %v10406_v32 = vor.u32 %v15955_v33, %v10403_v35  ;;  %v10318_v10 = vor.u32 %v15933_v4, %v10315_v5  ;;  %v10374_v28 = vor.u32 %v15947_v18, %v10371_v19  ;;  %v15945_v33 = vld [vmem:[%s24663_s1 + $0x384] sm:$0xf]  ;;  %v10363_v35 = vld [vmem:[%s24663_s1 + $0x388] sm:$0xf0]  ;;  %v10689_v1 = vld [vmem:[%s24663_s1 + $0x4d0] sm:$0xf] }
  0x71   : > { %1218 = vmatpush.bf16.msrb.mxu3 %v10422_v14  ;;  %v10382_v14 = vor.u32 %v15949_v6, %v10379_v7  ;;  %v10302_v43 = vor.u32 %v15929_v27, %v10299_v29  ;;  %v10366_v47 = vor.u32 %v15945_v33, %v10363_v35  ;;  %v10753_v4 = vld [vmem:[%s24663_s1 + $0x550] sm:$0xf]  ;;  %v16012_v5 = vld [vmem:[%s24663_s1 + $0x554] sm:$0xf0]  ;;  %v10626_v7 = vor.u32 %v15980_v0, %v10625_v63  ;;  %v15974_v29 = vld [vmem:[%s24663_s1 + $0x424] sm:$0xf0] }
  0x72   : > { %1180 = vmatpush.bf16.msrb.mxu0 %v10222_v20  ;;  %v10182_v20 = vor.u32 %v15899_v11, %v10179_v12  ;;  %v16028_v6 = vld [vmem:[%s24663_s1 + $0x5d4] sm:$0xf0]  ;;  %v10745_v12 = vld [vmem:[%s24663_s1 + $0x540] sm:$0xf] }
  0x73   : > { %1193 = vmatpush.bf16.msrb.mxu1 %v10286_v21  ;;  %v15897_v21 = vld [vmem:[%s24663_s1 + $0x204] sm:$0xf]  ;;  %v15976_v18 = vld [vmem:[%s24663_s1 + $0x434] sm:$0xf0]  ;;  %v10665_v33 = vld [vmem:[%s24663_s1 + $0x4a0] sm:$0xf] }
  0x74   : > { %1206 = vmatpush.bf16.msrb.mxu2 %v10350_v22  ;;  %v10171_v22 = vld [vmem:[%s24663_s1 + $0x208] sm:$0xf0]  ;;  %v16024_v27 = vld [vmem:[%s24663_s1 + $0x5b4] sm:$0xf0]  ;;  %v10610_v35 = vor.u32 %v15976_v18, %v10609_v17 }
  0x75   : > { %1219 = vmatpush.bf16.msrb.mxu3 %v10414_v26  ;;  %v10235_v26 = vld [vmem:[%s24663_s1 + $0x288] sm:$0xf0]  ;;  %v10174_v39 = vor.u32 %v15897_v21, %v10171_v22  ;;  %v10673_v21 = vld [vmem:[%s24663_s1 + $0x4b0] sm:$0xf]  ;;  %v15992_v22 = vld [vmem:[%s24663_s1 + $0x4b4] sm:$0xf0] }
  0x76   : > { %1181 = vmatpush.bf16.msrb.mxu0 %v10214_v36  ;;  %v10641_v36 = vld [vmem:[%s24663_s1 + $0x470] sm:$0xf]  ;;  %v10238_v34 = vor.u32 %v15913_v25, %v10235_v26  ;;  %v16008_v25 = vld [vmem:[%s24663_s1 + $0x534] sm:$0xf0] }
  0x77   : > { %1194 = vmatpush.bf16.msrb.mxu1 %v10278_v37  ;;  %v15984_v37 = vld [vmem:[%s24663_s1 + $0x474] sm:$0xf0]  ;;  %v10801_v26 = vld [vmem:[%s24663_s1 + $0x5b0] sm:$0xf] }
  0x78   : > { %1207 = vmatpush.bf16.msrb.mxu2 %v10342_v30  ;;  %v10705_v30 = vld [vmem:[%s24663_s1 + $0x4f0] sm:$0xf] }
  0x79   : > { %1220 = vmatpush.bf16.msrb.mxu3 %v10406_v32  ;;  %v16016_v32 = vld [vmem:[%s24663_s1 + $0x574] sm:$0xf0] }
  0x7a   : > { %1182 = vmatpush.bf16.msrb.mxu0 %v10206_v48  ;;  %v10642_v48 = vor.u32 %v15984_v37, %v10641_v36  ;;  %v15990_v36 = vld [vmem:[%s24663_s1 + $0x4a4] sm:$0xf0]  ;;  %v10729_v37 = vld [vmem:[%s24663_s1 + $0x520] sm:$0xf] }
  0x7b   : > { %1195 = vmatpush.bf16.msrb.mxu1 %v10270_v49  ;;  %v10706_v49 = vor.u32 %v16000_v40, %v10705_v30  ;;  %v16006_v30 = vld [vmem:[%s24663_s1 + $0x524] sm:$0xf0] }
  0x7c   : > { %1208 = vmatpush.bf16.msrb.mxu2 %v10334_v50  ;;  %v10770_v50 = vor.u32 %v16016_v32, %v10769_v31  ;;  %v10793_v31 = vld [vmem:[%s24663_s1 + $0x5a0] sm:$0xf]  ;;  %v10561_v32 = vld [vmem:[%s17410_s6 + $0x8] sm:$0xf] }
  0x7d   : > { %1221 = vmatpush.bf16.msrb.mxu3 %v10398_v54  ;;  %v10834_v54 = vor.u32 %v16032_v46, %v10833_v45  ;;  %v10802_v45 = vor.u32 %v16024_v27, %v10801_v26  ;;  %v15965_v46 = vld [vmem:[%s17410_s6 + $0x1c] sm:$0x10] }
  0x7e   : > { %1183 = vmatpush.bf16.msrb.mxu0 %v10198_v60  ;;  %v10634_v60 = vor.u32 %v15982_v52, %v10633_v51  ;;  %v15961_v51 = vld [vmem:[%s17410_s6 + $0x4] sm:$0xf] }
  0x7f   : > { %1196 = vmatpush.bf16.msrb.mxu1 %v10262_v61  ;;  %v10698_v61 = vor.u32 %v15998_v55, %v10697_v53  ;;  %v10666_v53 = vor.u32 %v15990_v36, %v10665_v33  ;;  %v10657_v55 = vld [vmem:[%s24663_s1 + $0x490] sm:$0xf] }
  0x80   : > { %1209 = vmatpush.bf16.msrb.mxu2 %v10326_v62  ;;  %v10762_v62 = vor.u32 %v16014_v57, %v10761_v56  ;;  %v10555_v57 = vld [vmem:[%s17410_s6 + $0x20] sm:$0x10] }
  0x81   : > { %1222 = vmatpush.bf16.msrb.mxu3 %v10390_v2  ;;  %v10826_v2 = vor.u32 %v16030_v59, %v10825_v58  ;;  %v10730_v58 = vor.u32 %v16006_v30, %v10729_v37  ;;  %v15988_v59 = vld [vmem:[%s24663_s1 + $0x494] sm:$0xf0] }
  0x82   : > { %1184 = vmatpush.bf16.msrb.mxu0 %v10190_v8  ;;  %v10690_v8 = vor.u32 %v15996_v3, %v10689_v1  ;;  %v10785_v1 = vld [vmem:[%s24663_s1 + $0x590] sm:$0xf]  ;;  %v10585_v3 = vld [vmem:[%s24663_s1 + $0x400] sm:$0xf] }
  0x83   : > { %1197 = vmatpush.bf16.msrb.mxu1 %v10254_v9  ;;  %v10754_v9 = vor.u32 %v16012_v5, %v10753_v4  ;;  %v18113_v4 = vor.u32 %v15961_v51, %v10555_v57  ;;  %v15970_v5 = vld [vmem:[%s24663_s1 + $0x404] sm:$0xf0]  ;;  %v11081_v51 = vld [vmem:[%s24663_s1 + $0x7e0] sm:$0xf] }
  0x84   : > { %1210 = vmatpush.bf16.msrb.mxu2 %v10318_v10  ;;  %v10681_v10 = vld [vmem:[%s24663_s1 + $0x4c0] sm:$0xf]  ;;  %v10586_v18 = vor.u32 %v15970_v5, %v10585_v3  ;;  %v16092_v3 = vld [vmem:[%s24663_s1 + $0x7d4] sm:$0xf0] }
  0x85   : > { %1223 = vmatpush.bf16.msrb.mxu3 %v10382_v14  ;;  %v10809_v14 = vld [vmem:[%s24663_s1 + $0x5c0] sm:$0xf]  ;;  %v1412_v17 = vshll.u32 %v18113_v4, 16 }
  0x86   : > { %1185 = vmatpush.bf16.msrb.mxu0 %v10182_v20  ;;  %v10746_v20 = vor.u32 %v16010_v13, %v10745_v12 }
  0x87   : > { %1198 = vmatpush.bf16.msrb.mxu1 %v10246_v23  ;;  %v10737_v23 = vld [vmem:[%s24663_s1 + $0x530] sm:$0xf] }
  0x88   : > { %1211 = vmatpush.bf16.msrb.mxu2 %v10310_v24  ;;  %v10810_v24 = vor.u32 %v16026_v15, %v10809_v14  ;;  %v10738_v40 = vor.u32 %v16008_v25, %v10737_v23  ;;  %v10897_v15 = vld [vmem:[%s24663_s1 + $0x670] sm:$0xf] }
  0x89   : > { %1224 = vmatpush.bf16.msrb.mxu3 %v10374_v28  ;;  %v10601_v28 = vld [vmem:[%s24663_s1 + $0x420] sm:$0xf]  ;;  %v11089_v25 = vld [vmem:[%s24663_s1 + $0x7f0] sm:$0xf] }
  0x8a   : > { %1186 = vmatpush.bf16.msrb.mxu0 %v10174_v39  ;;  %v10674_v39 = vor.u32 %v15992_v22, %v10673_v21  ;;  %v10602_v52 = vor.u32 %v15974_v29, %v10601_v28  ;;  %v11025_v21 = vld [vmem:[%s24663_s1 + $0x770] sm:$0xf]  ;;  %v16096_v28 = vld [vmem:[%s24663_s1 + $0x7f4] sm:$0xf0] }
  0x8b   : > { %1199 = vmatpush.bf16.msrb.mxu1 %v10238_v34  ;;  %v15966_v34 = vld [vmem:[%s17410_s6 + $0x24] sm:$0x10] }
  0x8c   : > { %1212 = vmatpush.bf16.msrb.mxu2 %v10302_v43  ;;  %v10553_v43 = vld [vmem:[%s17410_s6] sm:$0xf]  ;;  %v18088_v56 = vor.u32 %v15966_v34, %v10561_v32 }
  0x8d   : > { %1225 = vmatpush.bf16.msrb.mxu3 %v10366_v47  ;;  %1187 = vmatmul.bf16.vlgmr.msrb.gmra.mxu0 %v17574_v41  ;;  %v10617_v41 = vld [vmem:[%s24663_s1 + $0x440] sm:$0xf]  ;;  %v15962_v47 = vld [vmem:[%s17410_s6 + $0xc] sm:$0xf] }
  0x8e   : > { %2106 = vmatpush.bf16.msra.mxu0 %v10642_v48  ;;  %1200 = vmatmul.bf16.vlgmr.msrb.gmra.mxu1 %v17578_v44  ;;  %v15994_v44 = vld [vmem:[%s24663_s1 + $0x4c4] sm:$0xf0]  ;;  %v10563_v48 = vld [vmem:[%s17410_s6 + $0x28] sm:$0x10]  ;;  %v1417_v26 = vshrl.u32 %v18088_v56, 16 }
  0x8f   : > { %2119 = vmatpush.bf16.msra.mxu1 %v10706_v49  ;;  %1213 = vmatmul.bf16.vlgmr.msrb.gmra.mxu2 %v17566_v38  ;;  %v10817_v38 = vld [vmem:[%s24663_s1 + $0x5d0] sm:$0xf]  ;;  %v10682_v19 = vor.u32 %v15994_v44, %v10681_v10  ;;  %v16022_v49 = vld [vmem:[%s24663_s1 + $0x5a4] sm:$0xf0]  ;;  %v18102_v63 = vor.u32 %v15962_v47, %v10563_v48  ;;  %v10889_v34 = vld [vmem:[%s24663_s1 + $0x660] sm:$0xf] }
  0x90   : > { %2132 = vmatpush.bf16.msra.mxu2 %v10770_v50  ;;  %1226 = vmatmul.bf16.vlgmr.msrb.gmra.mxu3 %v17576_v42  ;;  %v15978_v42 = vld [vmem:[%s24663_s1 + $0x444] sm:$0xf0]  ;;  %v10818_v11 = vor.u32 %v16028_v6, %v10817_v38  ;;  %v10593_v50 = vld [vmem:[%s24663_s1 + $0x410] sm:$0xf]  ;;  %v10794_v0 = vor.u32 %v16022_v49, %v10793_v31  ;;  %v10649_v38 = vld [vmem:[%s24663_s1 + $0x480] sm:$0xf] }
  0x91   : > { %2145 = vmatpush.bf16.msra.mxu3 %v10834_v54  ;;  %v10618_v16 = vor.u32 %v15978_v42, %v10617_v41  ;;  %v15972_v54 = vld [vmem:[%s24663_s1 + $0x414] sm:$0xf0]  ;;  %v15986_v6 = vld [vmem:[%s24663_s1 + $0x484] sm:$0xf0]  ;;  %v1419_v41 = vshll.u32 %v18088_v56, 16  ;;  %v10658_v42 = vor.u32 %v15988_v59, %v10657_v55  ;;  %v1426_v13 = vshll.u32 %v18102_v63, 16 }
  0x92   : > { %2107 = vmatpush.bf16.msra.mxu0 %v10634_v60  ;;  %v10721_v60 = vld [vmem:[%s24663_s1 + $0x510] sm:$0xf]  ;;  %v16018_v44 = vld [vmem:[%s24663_s1 + $0x584] sm:$0xf0]  ;;  %v10650_v22 = vor.u32 %v15986_v6, %v10649_v38  ;;  %v11017_v48 = vld [vmem:[%s24663_s1 + $0x760] sm:$0xf] }
  0x93   : > { %2120 = vmatpush.bf16.msra.mxu1 %v10698_v61  ;;  %v16004_v61 = vld [vmem:[%s24663_s1 + $0x514] sm:$0xf0]  ;;  %v1421_v27 = vrot.slane %v1419_v41, 1  ;;  %v1428_v36 = vrot.slane %v1426_v13, 1  ;;  %v16062_v47 = vld [vmem:[%s24663_s1 + $0x6e4] sm:$0xf0] }
  0x94   : > { %2133 = vmatpush.bf16.msra.mxu2 %v10762_v62  ;;  %v18100_v62 = vor.u32 %v15965_v46, %v10553_v43  ;;  %v10722_v10 = vor.u32 %v16004_v61, %v10721_v60  ;;  %v16046_v43 = vld [vmem:[%s24663_s1 + $0x664] sm:$0xf0]  ;;  %v11090_v46 = vor.u32 %v16096_v28, %v11089_v25  ;;  %v10881_v59 = vld [vmem:[%s24663_s1 + $0x650] sm:$0xf]  ;;  %v16044_v60 = vld [vmem:[%s24663_s1 + $0x654] sm:$0xf0] }
  0x95   : > { %2146 = vmatpush.bf16.msra.mxu3 %v10826_v2  ;;  %v16020_v2 = vld [vmem:[%s24663_s1 + $0x594] sm:$0xf0]  ;;  %v16078_v49 = vld [vmem:[%s24663_s1 + $0x764] sm:$0xf0]  ;;  %v10890_v55 = vor.u32 %v16046_v43, %v10889_v34  ;;  %v10945_v61 = vld [vmem:[%s24663_s1 + $0x6d0] sm:$0xf] }
  0x96   : > { %2108 = vmatpush.bf16.msra.mxu0 %v10626_v7  ;;  %v10594_v7 = vor.u32 %v15972_v54, %v10593_v50  ;;  %v1405_v12 = vshll.u32 %v18100_v62, 16  ;;  %v10786_v14 = vor.u32 %v16020_v2, %v10785_v1  ;;  %v1403_v29 = vshrl.u32 %v18100_v62, 16  ;;  %v16076_v1 = vld [vmem:[%s24663_s1 + $0x754] sm:$0xf0]  ;;  %v11073_v2 = vld [vmem:[%s24663_s1 + $0x7d0] sm:$0xf] }
  0x97   : > { %2121 = vmatpush.bf16.msra.mxu1 %v10690_v8  ;;  %v10713_v8 = vld [vmem:[%s24663_s1 + $0x500] sm:$0xf]  ;;  %v18186_v50 = vor.u32 %v1421_v27, %v1417_v26  ;;  %v16058_v41 = vld [vmem:[%s24663_s1 + $0x6c4] sm:$0xf0]  ;;  %v10865_v13 = vld [vmem:[%s24663_s1 + $0x630] sm:$0xf] }
  0x98   : > { %2134 = vmatpush.bf16.msra.mxu2 %v10754_v9  ;;  %v16002_v9 = vld [vmem:[%s24663_s1 + $0x504] sm:$0xf0]  ;;  %v1407_v33 = vrot.slane %v1405_v12, 1  ;;  %v10873_v6 = vld [vmem:[%s24663_s1 + $0x640] sm:$0xf] }
  0x99   : > { %2147 = vmatpush.bf16.msra.mxu3 %v10818_v11  ;;  %v10777_v11 = vld [vmem:[%s24663_s1 + $0x580] sm:$0xf]  ;;  %v10714_v23 = vor.u32 %v16002_v9, %v10713_v8  ;;  %v11074_v9 = vor.u32 %v16092_v3, %v11073_v2  ;;  %v16038_v25 = vld [vmem:[%s24663_s1 + $0x624] sm:$0xf0]  ;;  %v15964_v34 = vld [vmem:[%s17410_s6 + $0x1c] sm:$0xf] }
  0x9a   : > { %2109 = vmatpush.bf16.msra.mxu0 %v10618_v16  ;;  %v16048_v16 = vld [vmem:[%s24663_s1 + $0x674] sm:$0xf0]  ;;  %v10778_v37 = vor.u32 %v16018_v44, %v10777_v11  ;;  %v10937_v8 = vld [vmem:[%s24663_s1 + $0x6c0] sm:$0xf]  ;;  %v16090_v44 = vld [vmem:[%s24663_s1 + $0x7c4] sm:$0xf0] }
  0x9b   : > { %2122 = vmatpush.bf16.msra.mxu1 %v10682_v19  ;;  %v10961_v19 = vld [vmem:[%s24663_s1 + $0x6f0] sm:$0xf]  ;;  %v10898_v30 = vor.u32 %v16048_v16, %v10897_v15  ;;  %v11065_v11 = vld [vmem:[%s24663_s1 + $0x7c0] sm:$0xf]  ;;  %v10938_v15 = vor.u32 %v16058_v41, %v10937_v8  ;;  %v16054_v28 = vld [vmem:[%s24663_s1 + $0x6a4] sm:$0xf0] }
  0x9c   : > { %2135 = vmatpush.bf16.msra.mxu2 %v10746_v20  ;;  %v16064_v20 = vld [vmem:[%s24663_s1 + $0x6f4] sm:$0xf0]  ;;  %v10921_v26 = vld [vmem:[%s24663_s1 + $0x6a0] sm:$0xf]  ;;  %v10579_v43 = vld [vmem:[%s17410_s6 + $0x38] sm:$0x10] }
  0x9d   : > { %2148 = vmatpush.bf16.msra.mxu3 %v10810_v24  ;;  %v16080_v24 = vld [vmem:[%s24663_s1 + $0x774] sm:$0xf0]  ;;  %v10962_v31 = vor.u32 %v16064_v20, %v10961_v19  ;;  %v10993_v19 = vld [vmem:[%s24663_s1 + $0x730] sm:$0xf]  ;;  %v11066_v20 = vor.u32 %v16090_v44, %v11065_v11  ;;  %v10841_v3 = vld [vmem:[%s24663_s1 + $0x600] sm:$0xf] }
  0x9e   : > { %2110 = vmatpush.bf16.msra.mxu0 %v10610_v35  ;;  %v1424_v35 = vshrl.u32 %v18102_v63, 16  ;;  %v11026_v32 = vor.u32 %v16080_v24, %v11025_v21  ;;  %v16060_v63 = vld [vmem:[%s24663_s1 + $0x6d4] sm:$0xf0]  ;;  %v10857_v24 = vld [vmem:[%s24663_s1 + $0x620] sm:$0xf] }
  0x9f   : > { %2123 = vmatpush.bf16.msra.mxu1 %v10674_v39  ;;  %v1410_v39 = vshrl.u32 %v18113_v4, 16  ;;  %v10882_v4 = vor.u32 %v16044_v60, %v10881_v59  ;;  %v10946_v5 = vor.u32 %v16060_v63, %v10945_v61  ;;  %v16072_v21 = vld [vmem:[%s24663_s1 + $0x734] sm:$0xf0]  ;;  %v10977_v60 = vld [vmem:[%s24663_s1 + $0x710] sm:$0xf]  ;;  %v18330_v63 = vor.u32 %v15964_v34, %v10579_v43 }
  0xa0   : > { %2136 = vmatpush.bf16.msra.mxu2 %v10738_v40  ;;  %v1414_v40 = vrot.slane %v1412_v17, 1  ;;  %v18196_v54 = vor.u32 %v1428_v36, %v1424_v35  ;;  %v10929_v17 = vld [vmem:[%s24663_s1 + $0x6b0] sm:$0xf]  ;;  %v10994_v36 = vor.u32 %v16072_v21, %v10993_v19  ;;  %v16052_v59 = vld [vmem:[%s24663_s1 + $0x694] sm:$0xf0] }
  0xa1   : > { %2149 = vmatpush.bf16.msra.mxu3 %v10802_v45  ;;  %v10953_v45 = vld [vmem:[%s24663_s1 + $0x6e0] sm:$0xf]  ;;  %v16068_v61 = vld [vmem:[%s24663_s1 + $0x714] sm:$0xf0] }
  0xa2   : > { %2111 = vmatpush.bf16.msra.mxu0 %v10602_v52  ;;  %v16094_v52 = vld [vmem:[%s24663_s1 + $0x7e4] sm:$0xf0]  ;;  %v18198_v56 = vor.u32 %v1414_v40, %v1410_v39  ;;  %v10954_v57 = vor.u32 %v16062_v47, %v10953_v45  ;;  %v15968_v39 = vld [vmem:[%s17410_s6 + $0x34] sm:$0x10]  ;;  %v10569_v40 = vld [vmem:[%s17410_s6 + $0x10] sm:$0xf]  ;;  %v10978_v11 = vor.u32 %v16068_v61, %v10977_v60 }
  0xa3   : > { %2124 = vmatpush.bf16.msra.mxu1 %v10666_v53  ;;  %v18194_v53 = vor.u32 %v1407_v33, %v1403_v29  ;;  %v11082_v62 = vor.u32 %v16094_v52, %v11081_v51  ;;  %v10985_v29 = vld [vmem:[%s24663_s1 + $0x720] sm:$0xf]  ;;  %v16070_v33 = vld [vmem:[%s24663_s1 + $0x724] sm:$0xf0]  ;;  %v10571_v47 = vld [vmem:[%s17410_s6 + $0x30] sm:$0x10] }
  0xa4   : > { %2137 = vmatpush.bf16.msra.mxu2 %v10730_v58  ;;  %v11018_v58 = vor.u32 %v16078_v49, %v11017_v48  ;;  %v16086_v45 = vld [vmem:[%s24663_s1 + $0x7a4] sm:$0xf0]  ;;  %v10858_v48 = vor.u32 %v16038_v25, %v10857_v24  ;;  %v10922_v49 = vor.u32 %v16054_v28, %v10921_v26  ;;  %v10849_v51 = vld [vmem:[%s24663_s1 + $0x610] sm:$0xf]  ;;  %v16036_v52 = vld [vmem:[%s24663_s1 + $0x614] sm:$0xf0] }
  0xa5   : > { %2150 = vmatpush.bf16.msra.mxu3 %v10794_v0  ;;  %v11009_v0 = vld [vmem:[%s24663_s1 + $0x750] sm:$0xf]  ;;  %v16084_v2 = vld [vmem:[%s24663_s1 + $0x794] sm:$0xf0]  ;;  %v10969_v8 = vld [vmem:[%s24663_s1 + $0x700] sm:$0xf] }
  0xa6   : > { %2112 = vmatpush.bf16.msra.mxu0 %v10594_v7  ;;  %v11010_v38 = vor.u32 %v16076_v1, %v11009_v0  ;;  %v16042_v7 = vld [vmem:[%s24663_s1 + $0x644] sm:$0xf0]  ;;  %v11041_v1 = vld [vmem:[%s24663_s1 + $0x790] sm:$0xf]  ;;  %v11033_v44 = vld [vmem:[%s24663_s1 + $0x780] sm:$0xf] }
  0xa7   : > { %2125 = vmatpush.bf16.msra.mxu1 %v10658_v42  ;;  %v11001_v42 = vld [vmem:[%s24663_s1 + $0x740] sm:$0xf]  ;;  %v10874_v12 = vor.u32 %v16042_v7, %v10873_v6  ;;  %v16050_v6 = vld [vmem:[%s24663_s1 + $0x684] sm:$0xf0]  ;;  %v10850_v7 = vor.u32 %v16036_v52, %v10849_v51  ;;  %v10707_v24 = vld [vmem:[%s24663_s1 + $0x4f8] sm:$0xf0] }
  0xa8   : > { %2138 = vmatpush.bf16.msra.mxu2 %v10722_v10  ;;  %v16074_v10 = vld [vmem:[%s24663_s1 + $0x744] sm:$0xf0]  ;;  %v16015_v25 = vld [vmem:[%s24663_s1 + $0x574] sm:$0xf]  ;;  %v10771_v28 = vld [vmem:[%s24663_s1 + $0x578] sm:$0xf0] }
  0xa9   : > { %2151 = vmatpush.bf16.msra.mxu3 %v10786_v14  ;;  %v16040_v14 = vld [vmem:[%s24663_s1 + $0x634] sm:$0xf0]  ;;  %v11002_v16 = vor.u32 %v16074_v10, %v11001_v42  ;;  %v10635_v51 = vld [vmem:[%s24663_s1 + $0x468] sm:$0xf0]  ;;  %v15997_v52 = vld [vmem:[%s24663_s1 + $0x4e4] sm:$0xf] }
  0xaa   : > { %2113 = vmatpush.bf16.msra.mxu0 %v10586_v18  ;;  %v16056_v18 = vld [vmem:[%s24663_s1 + $0x6b4] sm:$0xf0]  ;;  %v10866_v27 = vor.u32 %v16040_v14, %v10865_v13  ;;  %v10763_v60 = vld [vmem:[%s24663_s1 + $0x568] sm:$0xf0] }
  0xab   : > { %2126 = vmatpush.bf16.msra.mxu1 %v10650_v22  ;;  %v11057_v22 = vld [vmem:[%s24663_s1 + $0x7b0] sm:$0xf]  ;;  %v10930_v35 = vor.u32 %v16056_v18, %v10929_v17  ;;  %v15983_v17 = vld [vmem:[%s24663_s1 + $0x474] sm:$0xf]  ;;  %v10643_v18 = vld [vmem:[%s24663_s1 + $0x478] sm:$0xf0] }
  0xac   : > { %2139 = vmatpush.bf16.msra.mxu2 %v10714_v23  ;;  %v16088_v23 = vld [vmem:[%s24663_s1 + $0x7b4] sm:$0xf0] }
  0xad   : > { %2152 = vmatpush.bf16.msra.mxu3 %v10778_v37  ;;  %2114 = vmatmul.bf16.vlgmr.msra.gmra.mxu0 %v18194_v53  ;;  %v11049_v37 = vld [vmem:[%s24663_s1 + $0x7a0] sm:$0xf] }
  0xae   : > { %2158 = vmatpush.bf16.msrb.mxu0 %v10898_v30  ;;  %2127 = vmatmul.bf16.vlgmr.msra.gmra.mxu1 %v18198_v56  ;;  %v10577_v30 = vld [vmem:[%s17410_s6 + $0x18] sm:$0xf]  ;;  %v11050_v0 = vor.u32 %v16086_v45, %v11049_v37  ;;  %v1032_v41 = vpop.f32.mrf.mxu0 }
  0xaf   : > { %2171 = vmatpush.bf16.msrb.mxu1 %v10962_v31  ;;  %2140 = vmatmul.bf16.vlgmr.msra.gmra.mxu2 %v18186_v50  ;;  %v11058_v31 = vor.u32 %v16088_v23, %v11057_v22  ;;  %v15999_v23 = vld [vmem:[%s24663_s1 + $0x4f4] sm:$0xf] }
  0xb0   : > { %2184 = vmatpush.bf16.msrb.mxu2 %v11026_v32  ;;  %2153 = vmatmul.bf16.vlgmr.msra.gmra.mxu3 %v18196_v54  ;;  %v15967_v32 = vld [vmem:[%s17410_s6 + $0x2c] sm:$0x10] }
  0xb1   : > { %2197 = vmatpush.bf16.msrb.mxu3 %v11090_v46  ;;  %v15963_v46 = vld [vmem:[%s17410_s6 + $0x14] sm:$0xf]  ;;  %v1045_v13 = vpop.f32.mrf.mxu1 }
  0xb2   : > { %2159 = vmatpush.bf16.msrb.mxu0 %v10890_v55  ;;  %v10913_v55 = vld [vmem:[%s24663_s1 + $0x690] sm:$0xf]  ;;  %v1046_v19 = vadd.f32 %v1045_v13, %v1032_v41 }
  0xb3   : > { %2172 = vmatpush.bf16.msrb.mxu1 %v10954_v57  ;;  %v18317_v57 = vor.u32 %v15968_v39, %v10577_v30  ;;  %v10914_v10 = vor.u32 %v16052_v59, %v10913_v55  ;;  %v1452_v39 = vshrl.u32 %v18330_v63, 16  ;;  %v16013_v59 = vld [vmem:[%s24663_s1 + $0x564] sm:$0xf] }
  0xb4   : > { %2185 = vmatpush.bf16.msrb.mxu2 %v11018_v58  ;;  %v10986_v58 = vor.u32 %v16070_v33, %v10985_v29  ;;  %v16031_v29 = vld [vmem:[%s24663_s1 + $0x5f4] sm:$0xf] }
  0xb5   : > { %2198 = vmatpush.bf16.msrb.mxu3 %v11082_v62  ;;  %v18328_v62 = vor.u32 %v15967_v32, %v10569_v40  ;;  %v1447_v42 = vshll.u32 %v18317_v57, 16  ;;  %v1445_v33 = vshrl.u32 %v18317_v57, 16  ;;  %v10646_v32 = vor.u32 %v15983_v17, %v10643_v18  ;;  %v15977_v18 = vld [vmem:[%s24663_s1 + $0x444] sm:$0xf] }
  0xb6   : > { %2160 = vmatpush.bf16.msrb.mxu0 %v10882_v4  ;;  %v18341_v4 = vor.u32 %v15963_v46, %v10571_v47  ;;  %v1071_v46 = vpop.f32.mrf.mxu3  ;;  %v10710_v47 = vor.u32 %v15999_v23, %v10707_v24  ;;  %v16009_v23 = vld [vmem:[%s24663_s1 + $0x544] sm:$0xf]  ;;  %v10747_v24 = vld [vmem:[%s24663_s1 + $0x548] sm:$0xf0] }
  0xb7   : > { %2173 = vmatpush.bf16.msrb.mxu1 %v10946_v5  ;;  %v16034_v5 = vld [vmem:[%s24663_s1 + $0x604] sm:$0xf0]  ;;  %v1433_v14 = vshll.u32 %v18328_v62, 16  ;;  %v1431_v37 = vshrl.u32 %v18328_v62, 16  ;;  %v1034_v62 = vpop.f32.mrf.mxu0 }
  0xb8   : > { %2186 = vmatpush.bf16.msrb.mxu2 %v11010_v38  ;;  %v10905_v38 = vld [vmem:[%s24663_s1 + $0x680] sm:$0xf]  ;;  %v10842_v21 = vor.u32 %v16034_v5, %v10841_v3  ;;  %v1438_v43 = vshrl.u32 %v18341_v4, 16  ;;  %v10731_v62 = vld [vmem:[%s24663_s1 + $0x528] sm:$0xf0] }
  0xb9   : > { %2199 = vmatpush.bf16.msrb.mxu3 %v11074_v9  ;;  %v16066_v9 = vld [vmem:[%s24663_s1 + $0x704] sm:$0xf0]  ;;  %v10906_v22 = vor.u32 %v16050_v6, %v10905_v38  ;;  %v1435_v30 = vrot.slane %v1433_v14, 1  ;;  %v1047_v3 = vpop.f32.mrf.mxu1  ;;  %v10766_v6 = vor.u32 %v16013_v59, %v10763_v60  ;;  %v10667_v60 = vld [vmem:[%s24663_s1 + $0x4a8] sm:$0xf0] }
  0xba   : > { %2161 = vmatpush.bf16.msrb.mxu0 %v10874_v12  ;;  %v16082_v12 = vld [vmem:[%s24663_s1 + $0x784] sm:$0xf0]  ;;  %v10970_v26 = vor.u32 %v16066_v9, %v10969_v8  ;;  %v10627_v8 = vld [vmem:[%s24663_s1 + $0x458] sm:$0xf0]  ;;  %v15995_v9 = vld [vmem:[%s24663_s1 + $0x4d4] sm:$0xf] }
  0xbb   : > { %2174 = vmatpush.bf16.msrb.mxu1 %v10938_v15  ;;  %v1454_v15 = vshll.u32 %v18330_v63, 16  ;;  %v18416_v63 = vor.u32 %v1435_v30, %v1431_v37  ;;  %v15991_v37 = vld [vmem:[%s24663_s1 + $0x4b4] sm:$0xf]  ;;  %v16021_v3 = vld [vmem:[%s24663_s1 + $0x5a4] sm:$0xf] }
  0xbc   : > { %2187 = vmatpush.bf16.msrb.mxu2 %v11002_v16  ;;  %v11042_v16 = vor.u32 %v16084_v2, %v11041_v1  ;;  %v16029_v1 = vld [vmem:[%s24663_s1 + $0x5e4] sm:$0xf]  ;;  %v10827_v2 = vld [vmem:[%s24663_s1 + $0x5e8] sm:$0xf0] }
  0xbd   : > { %2200 = vmatpush.bf16.msrb.mxu3 %v11066_v20  ;;  %v1440_v20 = vshll.u32 %v18341_v4, 16  ;;  %v1456_v40 = vrot.slane %v1454_v15, 1  ;;  %v10830_v41 = vor.u32 %v16029_v1, %v10827_v2 }
  0xbe   : > { %2162 = vmatpush.bf16.msrb.mxu0 %v10866_v27  ;;  %v11034_v27 = vor.u32 %v16082_v12, %v11033_v44  ;;  %v16027_v44 = vld [vmem:[%s24663_s1 + $0x5d4] sm:$0xf]  ;;  %v10819_v12 = vld [vmem:[%s24663_s1 + $0x5d8] sm:$0xf0]  ;;  %v1073_v15 = vpop.f32.mrf.mxu3 }
  0xbf   : > { %2175 = vmatpush.bf16.msrb.mxu1 %v10930_v35  ;;  %v1449_v35 = vrot.slane %v1447_v42, 1  ;;  %v1442_v45 = vrot.slane %v1440_v20, 1  ;;  %v10691_v42 = vld [vmem:[%s24663_s1 + $0x4d8] sm:$0xf0]  ;;  %v15993_v20 = vld [vmem:[%s24663_s1 + $0x4c4] sm:$0xf] }
  0xc0   : > { %2188 = vmatpush.bf16.msrb.mxu2 %v10994_v36  ;;  %v10835_v36 = vld [vmem:[%s24663_s1 + $0x5f8] sm:$0xf0]  ;;  %v16019_v15 = vld [vmem:[%s24663_s1 + $0x594] sm:$0xf] }
  0xc1   : > { %2201 = vmatpush.bf16.msrb.mxu3 %v11058_v31  ;;  %v1058_v31 = vpop.f32.mrf.mxu2  ;;  %v10838_v55 = vor.u32 %v16031_v29, %v10835_v36  ;;  %v18405_v57 = vor.u32 %v1449_v35, %v1445_v33  ;;  %v18426_v5 = vor.u32 %v1442_v45, %v1438_v43  ;;  %v10750_v33 = vor.u32 %v16009_v23, %v10747_v24  ;;  %v15975_v35 = vld [vmem:[%s24663_s1 + $0x434] sm:$0xf]  ;;  %v10611_v36 = vld [vmem:[%s24663_s1 + $0x438] sm:$0xf0]  ;;  %v10651_v23 = vld [vmem:[%s24663_s1 + $0x488] sm:$0xf0] }
  0xc2   : > { %2163 = vmatpush.bf16.msrb.mxu0 %v10858_v48  ;;  %v1059_v34 = vadd.f32 %v1058_v31, %v1046_v19  ;;  %v10774_v48 = vor.u32 %v16015_v25, %v10771_v28  ;;  %v10619_v19 = vld [vmem:[%s24663_s1 + $0x448] sm:$0xf0]  ;;  %v16025_v25 = vld [vmem:[%s24663_s1 + $0x5c4] sm:$0xf]  ;;  %v10675_v31 = vld [vmem:[%s24663_s1 + $0x4b8] sm:$0xf0] }
  0xc3   : > { %2176 = vmatpush.bf16.msrb.mxu1 %v10922_v49  ;;  %v15981_v49 = vld [vmem:[%s24663_s1 + $0x464] sm:$0xf]  ;;  %v16023_v43 = vld [vmem:[%s24663_s1 + $0x5b4] sm:$0xf]  ;;  %v10803_v45 = vld [vmem:[%s24663_s1 + $0x5b8] sm:$0xf0] }
  0xc4   : > { %2189 = vmatpush.bf16.msrb.mxu2 %v10986_v58  ;;  %v10699_v58 = vld [vmem:[%s24663_s1 + $0x4e8] sm:$0xf0]  ;;  %v1072_v61 = vadd.f32 %v1071_v46, %v1059_v34  ;;  %v10638_v4 = vor.u32 %v15981_v49, %v10635_v51  ;;  %v10739_v34 = vld [vmem:[%s24663_s1 + $0x538] sm:$0xf0]  ;;  %v15973_v51 = vld [vmem:[%s24663_s1 + $0x424] sm:$0xf]  ;;  %v10806_v59 = vor.u32 %v16023_v43, %v10803_v45 }
  0xc5   : > { %2202 = vmatpush.bf16.msrb.mxu3 %v11050_v0  ;;  %v18418_v0 = vor.u32 %v1456_v40, %v1452_v39  ;;  %v10702_v38 = vor.u32 %v15997_v52, %v10699_v58  ;;  %v10603_v52 = vld [vmem:[%s24663_s1 + $0x428] sm:$0xf0]  ;;  %v16001_v24 = vld [vmem:[%s24663_s1 + $0x504] sm:$0xf]  ;;  %v16095_v43 = vld [vmem:[%s24663_s1 + $0x7f4] sm:$0xf] }
  0xc6   : > { %2164 = vmatpush.bf16.msrb.mxu0 %v10850_v7  ;;  %v15979_v7 = vld [vmem:[%s24663_s1 + $0x454] sm:$0xf]  ;;  %v11091_v45 = vld [vmem:[%s24663_s1 + $0x7f8] sm:$0xf0] }
  0xc7   : > { %2177 = vmatpush.bf16.msrb.mxu1 %v10914_v10  ;;  %v16011_v10 = vld [vmem:[%s24663_s1 + $0x554] sm:$0xf]  ;;  %v10630_v14 = vor.u32 %v15979_v7, %v10627_v8 }
  0xc8   : > { %2190 = vmatpush.bf16.msrb.mxu2 %v10978_v11  ;;  %v10755_v11 = vld [vmem:[%s24663_s1 + $0x558] sm:$0xf0] }
  0xc9   : > { %2203 = vmatpush.bf16.msrb.mxu3 %v11042_v16  ;;  %v1060_v13 = vpop.f32.mrf.mxu2  ;;  %v10694_v16 = vor.u32 %v15995_v9, %v10691_v42  ;;  %v10758_v17 = vor.u32 %v16011_v10, %v10755_v11  ;;  %v10595_v42 = vld [vmem:[%s24663_s1 + $0x418] sm:$0xf0]  ;;  %v15987_v10 = vld [vmem:[%s24663_s1 + $0x494] sm:$0xf] }
  0xca   : > { %2165 = vmatpush.bf16.msrb.mxu0 %v10842_v21  ;;  %v10822_v21 = vor.u32 %v16027_v44, %v10819_v12  ;;  %v1084_v28 = vpop.f32.mrf.mxu0  ;;  %v10659_v12 = vld [vmem:[%s24663_s1 + $0x498] sm:$0xf0]  ;;  %v16003_v13 = vld [vmem:[%s24663_s1 + $0x514] sm:$0xf] }
  0xcb   : > { %2178 = vmatpush.bf16.msrb.mxu1 %v10906_v22  ;;  %v10683_v22 = vld [vmem:[%s24663_s1 + $0x4c8] sm:$0xf0]  ;;  %v1085_v30 = vadd.f32 %v1084_v28, %v1072_v61  ;;  %v1097_v39 = vpop.f32.mrf.mxu1  ;;  %v16005_v61 = vld [vmem:[%s24663_s1 + $0x524] sm:$0xf] }
  0xcc   : > { %2191 = vmatpush.bf16.msrb.mxu2 %v10970_v26  ;;  %v10811_v26 = vld [vmem:[%s24663_s1 + $0x5c8] sm:$0xf0]  ;;  %v10686_v29 = vor.u32 %v15993_v20, %v10683_v22  ;;  %v10734_v9 = vor.u32 %v16005_v61, %v10731_v62  ;;  %v10662_v20 = vor.u32 %v15987_v10, %v10659_v12  ;;  %v15985_v22 = vld [vmem:[%s24663_s1 + $0x484] sm:$0xf]  ;;  %v11011_v10 = vld [vmem:[%s24663_s1 + $0x758] sm:$0xf0] }
  0xcd   : > { %2204 = vmatpush.bf16.msrb.mxu3 %v11034_v27  ;;  %2166 = vmatmul.bf16.vlgmr.msrb.gmra.mxu0 %v18416_v63  ;;  %v10622_v27 = vor.u32 %v15977_v18, %v10619_v19  ;;  %v10814_v40 = vor.u32 %v16025_v25, %v10811_v26  ;;  %v1098_v46 = vadd.f32 %v1097_v39, %v1085_v30  ;;  %v15969_v18 = vld [vmem:[%s24663_s1 + $0x404] sm:$0xf]  ;;  %v10587_v19 = vld [vmem:[%s24663_s1 + $0x408] sm:$0xf0]  ;;  %v10963_v39 = vld [vmem:[%s24663_s1 + $0x6f8] sm:$0xf0] }
  0xce   : > { %2210 = vmatpush.bf16.msra.mxu0 %v10646_v32  ;;  %2179 = vmatmul.bf16.vlgmr.msrb.gmra.mxu1 %v18426_v5  ;;  %v16007_v32 = vld [vmem:[%s24663_s1 + $0x534] sm:$0xf]  ;;  %v16017_v28 = vld [vmem:[%s24663_s1 + $0x584] sm:$0xf]  ;;  %v10590_v30 = vor.u32 %v15969_v18, %v10587_v19  ;;  %v11019_v61 = vld [vmem:[%s24663_s1 + $0x768] sm:$0xf0] }
  0xcf   : > { %2223 = vmatpush.bf16.msra.mxu1 %v10710_v47  ;;  %2192 = vmatmul.bf16.vlgmr.msrb.gmra.mxu2 %v18405_v57  ;;  %v10614_v47 = vor.u32 %v15975_v35, %v10611_v36  ;;  %v10742_v49 = vor.u32 %v16007_v32, %v10739_v34  ;;  %v16047_v35 = vld [vmem:[%s24663_s1 + $0x674] sm:$0xf]  ;;  %v10899_v36 = vld [vmem:[%s24663_s1 + $0x678] sm:$0xf0]  ;;  %v10654_v32 = vor.u32 %v15985_v22, %v10651_v23  ;;  %v16093_v62 = vld [vmem:[%s24663_s1 + $0x7e4] sm:$0xf] }
  0xd0   : > { %2236 = vmatpush.bf16.msra.mxu2 %v10774_v48  ;;  %2205 = vmatmul.bf16.vlgmr.msrb.gmra.mxu3 %v18418_v0  ;;  %v10678_v48 = vor.u32 %v15991_v37, %v10675_v31  ;;  %v16063_v37 = vld [vmem:[%s24663_s1 + $0x6f4] sm:$0xf]  ;;  %v11027_v31 = vld [vmem:[%s24663_s1 + $0x778] sm:$0xf0]  ;;  %v16089_v18 = vld [vmem:[%s24663_s1 + $0x7c4] sm:$0xf] }
  0xd1   : > { %2249 = vmatpush.bf16.msra.mxu3 %v10838_v55  ;;  %v15989_v55 = vld [vmem:[%s24663_s1 + $0x4a4] sm:$0xf]  ;;  %v11067_v19 = vld [vmem:[%s24663_s1 + $0x7c8] sm:$0xf0] }
  0xd2   : > { %2211 = vmatpush.bf16.msra.mxu0 %v10638_v4  ;;  %v1110_v58 = vpop.f32.mrf.mxu2  ;;  %v10795_v4 = vld [vmem:[%s24663_s1 + $0x5a8] sm:$0xf0]  ;;  %v1086_v7 = vpop.f32.mrf.mxu0  ;;  %v10670_v8 = vor.u32 %v15989_v55, %v10667_v60  ;;  %v16061_v55 = vld [vmem:[%s24663_s1 + $0x6e4] sm:$0xf] }
  0xd3   : > { %2224 = vmatpush.bf16.msra.mxu1 %v10702_v38  ;;  %v1111_v1 = vadd.f32 %v1110_v58, %v1098_v46  ;;  %v1123_v2 = vpop.f32.mrf.mxu3  ;;  %v10606_v38 = vor.u32 %v15973_v51, %v10603_v52  ;;  %v1099_v11 = vpop.f32.mrf.mxu1  ;;  %v10798_v44 = vor.u32 %v16021_v3, %v10795_v4  ;;  %v16045_v51 = vld [vmem:[%s24663_s1 + $0x664] sm:$0xf]  ;;  %v10891_v52 = vld [vmem:[%s24663_s1 + $0x668] sm:$0xf0]  ;;  %v11094_v58 = vor.u32 %v16095_v43, %v11091_v45  ;;  %v10883_v7 = vld [vmem:[%s24663_s1 + $0x658] sm:$0xf0] }
  0xd4   : > { %2237 = vmatpush.bf16.msra.mxu2 %v10766_v6  ;;  %v16077_v60 = vld [vmem:[%s24663_s1 + $0x764] sm:$0xf]  ;;  %v16091_v11 = vld [vmem:[%s24663_s1 + $0x7d4] sm:$0xf] }
  0xd5   : > { %2250 = vmatpush.bf16.msra.mxu3 %v10830_v41  ;;  %v18528_v6 = vadd.f32 %v1123_v2, %v1111_v1  ;;  %v15971_v41 = vld [vmem:[%s24663_s1 + $0x414] sm:$0xf]  ;;  %v11083_v1 = vld [vmem:[%s24663_s1 + $0x7e8] sm:$0xf0]  ;;  %v10894_v2 = vor.u32 %v16045_v51, %v10891_v52  ;;  %v11022_v4 = vor.u32 %v16077_v60, %v11019_v61  ;;  %v16053_v43 = vld [vmem:[%s24663_s1 + $0x6a4] sm:$0xf] }
  0xd6   : > { %2212 = vmatpush.bf16.msra.mxu0 %v10630_v14  ;;  %v10723_v14 = vld [vmem:[%s24663_s1 + $0x518] sm:$0xf0] }
  0xd7   : > { %2225 = vmatpush.bf16.msra.mxu1 %v10694_v16  ;;  %v10787_v16 = vld [vmem:[%s24663_s1 + $0x598] sm:$0xf0] }
  0xd8   : > { %2238 = vmatpush.bf16.msra.mxu2 %v10758_v17  ;;  %v10598_v17 = vor.u32 %v15971_v41, %v10595_v42  ;;  %v10790_v26 = vor.u32 %v16019_v15, %v10787_v16  ;;  %v10947_v41 = vld [vmem:[%s24663_s1 + $0x6d8] sm:$0xf0]  ;;  %v16075_v42 = vld [vmem:[%s24663_s1 + $0x754] sm:$0xf]  ;;  %v10875_v15 = vld [vmem:[%s24663_s1 + $0x648] sm:$0xf0] }
  0xd9   : > { %2251 = vmatpush.bf16.msra.mxu3 %v10822_v21  ;;  %v10726_v21 = vor.u32 %v16003_v13, %v10723_v14  ;;  %v16041_v14 = vld [vmem:[%s24663_s1 + $0x644] sm:$0xf] }
  0xda   : > { %2213 = vmatpush.bf16.msra.mxu0 %v10622_v27  ;;  %v1112_v25 = vpop.f32.mrf.mxu2  ;;  %v10715_v27 = vld [vmem:[%s24663_s1 + $0x508] sm:$0xf0]  ;;  %v16073_v16 = vld [vmem:[%s24663_s1 + $0x744] sm:$0xf] }
  0xdb   : > { %2226 = vmatpush.bf16.msra.mxu1 %v10686_v29  ;;  %v10779_v29 = vld [vmem:[%s24663_s1 + $0x588] sm:$0xf0]  ;;  %v10718_v34 = vor.u32 %v16001_v24, %v10715_v27  ;;  %v16039_v24 = vld [vmem:[%s24663_s1 + $0x634] sm:$0xf]  ;;  %v10867_v25 = vld [vmem:[%s24663_s1 + $0x638] sm:$0xf0] }
  0xdc   : > { %2239 = vmatpush.bf16.msra.mxu2 %v10750_v33  ;;  %v1125_v33 = vpop.f32.mrf.mxu3  ;;  %v10782_v46 = vor.u32 %v16017_v28, %v10779_v29  ;;  %v11070_v28 = vor.u32 %v16089_v18, %v11067_v19  ;;  %v10931_v29 = vld [vmem:[%s24663_s1 + $0x6b8] sm:$0xf0]  ;;  %v11035_v18 = vld [vmem:[%s24663_s1 + $0x788] sm:$0xf0] }
  0xdd   : > { %2252 = vmatpush.bf16.msra.mxu3 %v10814_v40  ;;  %v16079_v40 = vld [vmem:[%s24663_s1 + $0x774] sm:$0xf] }
  0xde   : > { %2214 = vmatpush.bf16.msra.mxu0 %v10614_v47  ;;  %v10902_v47 = vor.u32 %v16047_v35, %v10899_v36  ;;  %v16071_v33 = vld [vmem:[%s24663_s1 + $0x734] sm:$0xf]  ;;  %v10995_v35 = vld [vmem:[%s24663_s1 + $0x738] sm:$0xf0] }
  0xdf   : > { %2227 = vmatpush.bf16.msra.mxu1 %v10678_v48  ;;  %v10966_v48 = vor.u32 %v16063_v37, %v10963_v39  ;;  %v16087_v37 = vld [vmem:[%s24663_s1 + $0x7b4] sm:$0xf]  ;;  %v10870_v39 = vor.u32 %v16039_v24, %v10867_v25  ;;  %v16136_v24 = vld [vmem:[%s24663_s1 + $0x8f4] sm:$0xf0]  ;;  %v11441_v25 = vld [vmem:[%s24663_s1 + $0x970] sm:$0xf] }
  0xe0   : > { %2240 = vmatpush.bf16.msra.mxu2 %v10742_v49  ;;  %v11030_v49 = vor.u32 %v16079_v40, %v11027_v31  ;;  %v10998_v31 = vor.u32 %v16071_v33, %v10995_v35  ;;  %v16168_v33 = vld [vmem:[%s24663_s1 + $0x9f4] sm:$0xf0] }
  0xe1   : > { %2253 = vmatpush.bf16.msra.mxu3 %v10806_v59  ;;  %v10955_v59 = vld [vmem:[%s24663_s1 + $0x6e8] sm:$0xf0] }
  0xe2   : > { %2215 = vmatpush.bf16.msra.mxu0 %v10606_v38  ;;  %v10958_v3 = vor.u32 %v16061_v55, %v10955_v59  ;;  %v16043_v38 = vld [vmem:[%s24663_s1 + $0x654] sm:$0xf]  ;;  %v16085_v55 = vld [vmem:[%s24663_s1 + $0x7a4] sm:$0xf] }
  0xe3   : > { %2228 = vmatpush.bf16.msra.mxu1 %v10670_v8  ;;  %v16059_v8 = vld [vmem:[%s24663_s1 + $0x6d4] sm:$0xf]  ;;  %v10886_v12 = vor.u32 %v16043_v38, %v10883_v7 }
  0xe4   : > { %2241 = vmatpush.bf16.msra.mxu2 %v10734_v9  ;;  %v11086_v9 = vor.u32 %v16093_v62, %v11083_v1  ;;  %v10950_v13 = vor.u32 %v16059_v8, %v10947_v41  ;;  %v10915_v8 = vld [vmem:[%s24663_s1 + $0x698] sm:$0xf0] }
  0xe5   : > { %2254 = vmatpush.bf16.msra.mxu3 %v10798_v44  ;;  %v11075_v44 = vld [vmem:[%s24663_s1 + $0x7d8] sm:$0xf0] }
  0xe6   : > { %2216 = vmatpush.bf16.msra.mxu0 %v10598_v17  ;;  %v11003_v17 = vld [vmem:[%s24663_s1 + $0x748] sm:$0xf0]  ;;  %v10979_v41 = vld [vmem:[%s24663_s1 + $0x718] sm:$0xf0] }
  0xe7   : > { %2229 = vmatpush.bf16.msra.mxu1 %v10662_v20  ;;  %v10878_v20 = vor.u32 %v16041_v14, %v10875_v15  ;;  %v11006_v23 = vor.u32 %v16073_v16, %v11003_v17  ;;  %v16049_v14 = vld [vmem:[%s24663_s1 + $0x684] sm:$0xf]  ;;  %v10907_v15 = vld [vmem:[%s24663_s1 + $0x688] sm:$0xf0] }
  0xe8   : > { %2242 = vmatpush.bf16.msra.mxu2 %v10726_v21  ;;  %v10971_v16 = vld [vmem:[%s24663_s1 + $0x708] sm:$0xf0]  ;;  %v16081_v17 = vld [vmem:[%s24663_s1 + $0x784] sm:$0xf] }
  0xe9   : > { %2255 = vmatpush.bf16.msra.mxu3 %v10790_v26  ;;  %v16055_v26 = vld [vmem:[%s24663_s1 + $0x6b4] sm:$0xf]  ;;  %v11038_v35 = vor.u32 %v16081_v17, %v11035_v18  ;;  %v11409_v17 = vld [vmem:[%s24663_s1 + $0x930] sm:$0xf]  ;;  %v16144_v18 = vld [vmem:[%s24663_s1 + $0x934] sm:$0xf0] }
  0xea   : > { %2217 = vmatpush.bf16.msra.mxu0 %v10590_v30  ;;  %v1136_v21 = vpop.f32.mrf.mxu0  ;;  %v11059_v30 = vld [vmem:[%s24663_s1 + $0x7b8] sm:$0xf0]  ;;  %v10934_v40 = vor.u32 %v16055_v26, %v10931_v29  ;;  %v16152_v26 = vld [vmem:[%s24663_s1 + $0x974] sm:$0xf0]  ;;  %v11505_v29 = vld [vmem:[%s24663_s1 + $0x9f0] sm:$0xf] }
  0xeb   : > { %2230 = vmatpush.bf16.msra.mxu1 %v10654_v32  ;;  %v1149_v27 = vpop.f32.mrf.mxu1  ;;  %v16037_v32 = vld [vmem:[%s24663_s1 + $0x624] sm:$0xf] }
  0xec   : > { %2243 = vmatpush.bf16.msra.mxu2 %v10718_v34  ;;  %v1150_v36 = vadd.f32 %v1149_v27, %v1136_v21  ;;  %v10859_v34 = vld [vmem:[%s24663_s1 + $0x628] sm:$0xf0]  ;;  %v16120_v21 = vld [vmem:[%s24663_s1 + $0x874] sm:$0xf0]  ;;  %v10910_v27 = vor.u32 %v16049_v14, %v10907_v15  ;;  %v11345_v15 = vld [vmem:[%s24663_s1 + $0x8b0] sm:$0xf] }
  0xed   : > { %2256 = vmatpush.bf16.msra.mxu3 %v10782_v46  ;;  %2218 = vmatmul.bf16.vlgmr.msra.gmra.mxu0 %v18194_v53  ;;  %v16057_v53 = vld [vmem:[%s24663_s1 + $0x6c4] sm:$0xf]  ;;  %v11062_v46 = vor.u32 %v16087_v37, %v11059_v30  ;;  %v10862_v59 = vor.u32 %v16037_v32, %v10859_v34  ;;  %v11442_v30 = vor.u32 %v16152_v26, %v11441_v25  ;;  %v16134_v34 = vld [vmem:[%s24663_s1 + $0x8e4] sm:$0xf0]  ;;  %v16112_v14 = vld [vmem:[%s24663_s1 + $0x834] sm:$0xf0] }
  0xee   : > { %2262 = vmatpush.bf16.msrb.mxu0 %v10902_v47  ;;  %2231 = vmatmul.bf16.vlgmr.msra.gmra.mxu1 %v18198_v56  ;;  %v10939_v56 = vld [vmem:[%s24663_s1 + $0x6c8] sm:$0xf0]  ;;  %v11506_v32 = vor.u32 %v16168_v33, %v11505_v29  ;;  %v16110_v25 = vld [vmem:[%s24663_s1 + $0x824] sm:$0xf0]  ;;  %v11337_v26 = vld [vmem:[%s24663_s1 + $0x8a0] sm:$0xf] }
  0xef   : > { %2275 = vmatpush.bf16.msrb.mxu1 %v10966_v48  ;;  %2244 = vmatmul.bf16.vlgmr.msra.gmra.mxu2 %v18186_v50  ;;  %v11014_v50 = vor.u32 %v16075_v42, %v11011_v10  ;;  %v10942_v22 = vor.u32 %v16057_v53, %v10939_v56  ;;  %v10923_v47 = vld [vmem:[%s24663_s1 + $0x6a8] sm:$0xf0]  ;;  %v16069_v48 = vld [vmem:[%s24663_s1 + $0x724] sm:$0xf]  ;;  %v16083_v42 = vld [vmem:[%s24663_s1 + $0x794] sm:$0xf] }
  0xf0   : > { %2288 = vmatpush.bf16.msrb.mxu2 %v11030_v49  ;;  %2257 = vmatmul.bf16.vlgmr.msra.gmra.mxu3 %v18196_v54  ;;  %v11078_v54 = vor.u32 %v16091_v11, %v11075_v44  ;;  %v10987_v49 = vld [vmem:[%s24663_s1 + $0x728] sm:$0xf0]  ;;  %v10926_v62 = vor.u32 %v16053_v43, %v10923_v47  ;;  %v11043_v10 = vld [vmem:[%s24663_s1 + $0x798] sm:$0xf0]  ;;  %v16033_v44 = vld [vmem:[%s24663_s1 + $0x604] sm:$0xf] }
  0xf1   : > { %2301 = vmatpush.bf16.msrb.mxu3 %v11094_v58  ;;  %v11051_v58 = vld [vmem:[%s24663_s1 + $0x7a8] sm:$0xf0]  ;;  %v10990_v1 = vor.u32 %v16069_v48, %v10987_v49  ;;  %v16065_v53 = vld [vmem:[%s24663_s1 + $0x704] sm:$0xf]  ;;  %v11046_v56 = vor.u32 %v16083_v42, %v11043_v10  ;;  %v11433_v43 = vld [vmem:[%s24663_s1 + $0x960] sm:$0xf] }
  0xf2   : > { %2263 = vmatpush.bf16.msrb.mxu0 %v10894_v2  ;;  %v1162_v45 = vpop.f32.mrf.mxu2  ;;  %v1138_v61 = vpop.f32.mrf.mxu0  ;;  %v16035_v2 = vld [vmem:[%s24663_s1 + $0x614] sm:$0xf]  ;;  %v11054_v7 = vor.u32 %v16085_v55, %v11051_v58  ;;  %v16166_v47 = vld [vmem:[%s24663_s1 + $0x9e4] sm:$0xf0]  ;;  %v16116_v55 = vld [vmem:[%s24663_s1 + $0x854] sm:$0xf0] }
  0xf3   : > { %2276 = vmatpush.bf16.msrb.mxu1 %v10958_v3  ;;  %v1163_v51 = vadd.f32 %v1162_v45, %v1150_v36  ;;  %v1175_v52 = vpop.f32.mrf.mxu3  ;;  %v10851_v3 = vld [vmem:[%s24663_s1 + $0x618] sm:$0xf0]  ;;  %v1151_v38 = vpop.f32.mrf.mxu1  ;;  %v16150_v45 = vld [vmem:[%s24663_s1 + $0x964] sm:$0xf0]  ;;  %v11361_v58 = vld [vmem:[%s24663_s1 + $0x8d0] sm:$0xf] }
  0xf4   : > { %2289 = vmatpush.bf16.msrb.mxu2 %v11022_v4  ;;  %v16051_v4 = vld [vmem:[%s24663_s1 + $0x694] sm:$0xf]  ;;  %v10854_v11 = vor.u32 %v16035_v2, %v10851_v3  ;;  %v16132_v61 = vld [vmem:[%s24663_s1 + $0x8d4] sm:$0xf0]  ;;  %v11481_v42 = vld [vmem:[%s24663_s1 + $0x9c0] sm:$0xf] }
  0xf5   : > { %2302 = vmatpush.bf16.msrb.mxu3 %v11086_v9  ;;  %v18726_v60 = vadd.f32 %v1175_v52, %v1163_v51  ;;  %v16067_v9 = vld [vmem:[%s24663_s1 + $0x714] sm:$0xf]  ;;  %v11434_v51 = vor.u32 %v16150_v45, %v11433_v43  ;;  %v11297_v52 = vld [vmem:[%s24663_s1 + $0x850] sm:$0xf]  ;;  %v16164_v2 = vld [vmem:[%s24663_s1 + $0x9d4] sm:$0xf0] }
  0xf6   : > { %2264 = vmatpush.bf16.msrb.mxu0 %v10886_v12  ;;  %v10843_v12 = vld [vmem:[%s24663_s1 + $0x608] sm:$0xf0]  ;;  %v11298_v3 = vor.u32 %v16116_v55, %v11297_v52  ;;  %v16162_v10 = vld [vmem:[%s24663_s1 + $0x9c4] sm:$0xf0]  ;;  %v11401_v33 = vld [vmem:[%s24663_s1 + $0x920] sm:$0xf] }
  0xf7   : > { %2277 = vmatpush.bf16.msrb.mxu1 %v10950_v13  ;;  %v10918_v13 = vor.u32 %v16051_v4, %v10915_v8  ;;  %v11362_v4 = vor.u32 %v16132_v61, %v11361_v58  ;;  %v16126_v29 = vld [vmem:[%s24663_s1 + $0x8a4] sm:$0xf0]  ;;  %v16140_v55 = vld [vmem:[%s24663_s1 + $0x914] sm:$0xf0]  ;;  %v11457_v58 = vld [vmem:[%s24663_s1 + $0x990] sm:$0xf] }
  0xf8   : > { %2290 = vmatpush.bf16.msrb.mxu2 %v11014_v50  ;;  %v10982_v50 = vor.u32 %v16067_v9, %v10979_v41  ;;  %v11417_v9 = vld [vmem:[%s24663_s1 + $0x940] sm:$0xf]  ;;  %v16146_v41 = vld [vmem:[%s24663_s1 + $0x944] sm:$0xf0]  ;;  %v11338_v45 = vor.u32 %v16126_v29, %v11337_v26 }
  0xf9   : > { %2303 = vmatpush.bf16.msrb.mxu3 %v11078_v54  ;;  %v11257_v61 = vld [vmem:[%s24663_s1 + $0x800] sm:$0xf] }
  0xfa   : > { %2265 = vmatpush.bf16.msrb.mxu0 %v10878_v20  ;;  %v1164_v54 = vpop.f32.mrf.mxu2  ;;  %v11313_v20 = vld [vmem:[%s24663_s1 + $0x870] sm:$0xf]  ;;  %v11561_v26 = vld [vmem:[%s24663_s1 + $0xa60] sm:$0xf] }
  0xfb   : > { %2278 = vmatpush.bf16.msrb.mxu1 %v10942_v22  ;;  %v1177_v19 = vpop.f32.mrf.mxu3  ;;  %v11377_v22 = vld [vmem:[%s24663_s1 + $0x8f0] sm:$0xf]  ;;  %v11314_v36 = vor.u32 %v16120_v21, %v11313_v20 }
  0xfc   : > { %2291 = vmatpush.bf16.msrb.mxu2 %v11006_v23  ;;  %v10846_v23 = vor.u32 %v16033_v44, %v10843_v12  ;;  %v11378_v37 = vor.u32 %v16136_v24, %v11377_v22  ;;  %v11473_v19 = vld [vmem:[%s24663_s1 + $0x9b0] sm:$0xf]  ;;  %v11273_v24 = vld [vmem:[%s24663_s1 + $0x820] sm:$0xf] }
  0xfd   : > { %2304 = vmatpush.bf16.msrb.mxu3 %v11070_v28  ;;  %v10974_v28 = vor.u32 %v16065_v53, %v10971_v16  ;;  %v16128_v16 = vld [vmem:[%s24663_s1 + $0x8b4] sm:$0xf0] }
  0xfe   : > { %2266 = vmatpush.bf16.msrb.mxu0 %v10870_v39  ;;  %v11305_v39 = vld [vmem:[%s24663_s1 + $0x860] sm:$0xf]  ;;  %v11346_v22 = vor.u32 %v16128_v16, %v11345_v15  ;;  %v16097_v15 = vld [vmem:[%s17410_s6 + $0x4] sm:$0xe]  ;;  %v16200_v16 = vld [vmem:[%s24663_s1 + $0xaf4] sm:$0xf0] }
  0xff   : > { %2279 = vmatpush.bf16.msrb.mxu1 %v10934_v40  ;;  %v16118_v40 = vld [vmem:[%s24663_s1 + $0x864] sm:$0xf0] }
 0x100   : > { %2292 = vmatpush.bf16.msrb.mxu2 %v10998_v31  ;;  %v11369_v31 = vld [vmem:[%s24663_s1 + $0x8e0] sm:$0xf]  ;;  %v11306_v48 = vor.u32 %v16118_v40, %v11305_v39  ;;  %v16158_v39 = vld [vmem:[%s24663_s1 + $0x9a4] sm:$0xf0]  ;;  %v11274_v40 = vor.u32 %v16110_v25, %v11273_v24 }
 0x101   : > { %2305 = vmatpush.bf16.msrb.mxu3 %v11062_v46  ;;  %v11497_v46 = vld [vmem:[%s24663_s1 + $0x9e0] sm:$0xf]  ;;  %v11370_v49 = vor.u32 %v16134_v34, %v11369_v31  ;;  %v16108_v34 = vld [vmem:[%s24663_s1 + $0x814] sm:$0xf0] }
 0x102   : > { %2267 = vmatpush.bf16.msrb.mxu0 %v10862_v59  ;;  %v11498_v59 = vor.u32 %v16166_v47, %v11497_v46  ;;  %v11329_v47 = vld [vmem:[%s24663_s1 + $0x890] sm:$0xf] }
 0x103   : > { %2280 = vmatpush.bf16.msrb.mxu1 %v10926_v62  ;;  %v11425_v62 = vld [vmem:[%s24663_s1 + $0x950] sm:$0xf] }
 0x104   : > { %2293 = vmatpush.bf16.msrb.mxu2 %v10990_v1  ;;  %v16148_v1 = vld [vmem:[%s24663_s1 + $0x954] sm:$0xf0] }
 0x105   : > { %2306 = vmatpush.bf16.msrb.mxu3 %v11054_v7  ;;  %v11426_v38 = vor.u32 %v16148_v1, %v11425_v62  ;;  %v11353_v7 = vld [vmem:[%s24663_s1 + $0x8c0] sm:$0xf]  ;;  %v16106_v62 = vld [vmem:[%s24663_s1 + $0x804] sm:$0xf0] }
 0x106   : > { %2268 = vmatpush.bf16.msrb.mxu0 %v10854_v11  ;;  %v11321_v1 = vld [vmem:[%s24663_s1 + $0x880] sm:$0xf] }
 0x107   : > { %2281 = vmatpush.bf16.msrb.mxu1 %v10918_v13  ;;  %v11418_v13 = vor.u32 %v16146_v41, %v11417_v9  ;;  %v11233_v41 = vld [vmem:[%s17410_s6 + $0x8] sm:$0xe] }
 0x108   : > { %2294 = vmatpush.bf16.msrb.mxu2 %v10982_v50  ;;  %v11281_v50 = vld [vmem:[%s24663_s1 + $0x830] sm:$0xf] }
 0x109   : > { %2307 = vmatpush.bf16.msrb.mxu3 %v11046_v56  ;;  %v11482_v56 = vor.u32 %v16162_v10, %v11481_v42  ;;  %v11282_v21 = vor.u32 %v16112_v14, %v11281_v50  ;;  %v16102_v42 = vld [vmem:[%s17410_s6 + $0x24] sm:$0x10]  ;;  %v11225_v10 = vld [vmem:[%s17410_s6] sm:$0xe]  ;;  %v11235_v50 = vld [vmem:[%s17410_s6 + $0x28] sm:$0x10] }
 0x10a   : > { %2269 = vmatpush.bf16.msrb.mxu0 %v10846_v23  ;;  %v1188_v44 = vpop.f32.mrf.mxu0  ;;  %v11410_v23 = vor.u32 %v16144_v18, %v11409_v17  ;;  %v11633_v14 = vld [vmem:[%s24663_s1 + $0xaf0] sm:$0xf]  ;;  %v16216_v18 = vld [vmem:[%s24663_s1 + $0xb74] sm:$0xf0] }
 0x10b   : > { %2282 = vmatpush.bf16.msrb.mxu1 %v10910_v27  ;;  %v1189_v53 = vadd.f32 %v1188_v44, %v18726_v60  ;;  %v1201_v54 = vpop.f32.mrf.mxu1  ;;  %v16160_v60 = vld [vmem:[%s24663_s1 + $0x9b4] sm:$0xf0]  ;;  %v11697_v17 = vld [vmem:[%s24663_s1 + $0xb70] sm:$0xf] }
 0x10c   : > { %2295 = vmatpush.bf16.msrb.mxu2 %v10974_v28  ;;  %v11474_v28 = vor.u32 %v16160_v60, %v11473_v19  ;;  %v11234_v19 = vor.u32 %v16102_v42, %v11233_v41  ;;  %v11698_v29 = vor.u32 %v16216_v18, %v11697_v17  ;;  %v11737_v41 = vld [vmem:[%s24663_s1 + $0xbc0] sm:$0xf]  ;;  %v16226_v42 = vld [vmem:[%s24663_s1 + $0xbc4] sm:$0xf0]  ;;  %v11729_v18 = vld [vmem:[%s24663_s1 + $0xbb0] sm:$0xf] }
 0x10d   : > { %2308 = vmatpush.bf16.msrb.mxu3 %v11038_v35  ;;  %2270 = vmatmul.bf16.vlgmr.msrb.gmra.mxu0 %v18416_v63  ;;  %v11289_v63 = vld [vmem:[%s24663_s1 + $0x840] sm:$0xf]  ;;  %v1202_v20 = vadd.f32 %v1201_v54, %v1189_v53  ;;  %v16142_v35 = vld [vmem:[%s24663_s1 + $0x924] sm:$0xf0]  ;;  %v11227_v53 = vld [vmem:[%s17410_s6 + $0x20] sm:$0x10]  ;;  %v11258_v54 = vor.u32 %v16106_v62, %v11257_v61 }
 0x10e   : > { %3145 = vmatpush.bf16.msra.mxu0 %v11314_v36  ;;  %2283 = vmatmul.bf16.vlgmr.msrb.gmra.mxu1 %v18426_v5  ;;  %v16130_v5 = vld [vmem:[%s24663_s1 + $0x8c4] sm:$0xf0]  ;;  %v11402_v46 = vor.u32 %v16142_v35, %v11401_v33  ;;  %v11625_v35 = vld [vmem:[%s24663_s1 + $0xae0] sm:$0xf]  ;;  %v11681_v61 = vld [vmem:[%s24663_s1 + $0xb50] sm:$0xf] }
 0x10f   : > { %3158 = vmatpush.bf16.msra.mxu1 %v11378_v37  ;;  %2296 = vmatmul.bf16.vlgmr.msrb.gmra.mxu2 %v18405_v57  ;;  %v11489_v57 = vld [vmem:[%s24663_s1 + $0x9d0] sm:$0xf]  ;;  %v11354_v12 = vor.u32 %v16130_v5, %v11353_v7  ;;  %v16154_v7 = vld [vmem:[%s24663_s1 + $0x984] sm:$0xf0]  ;;  %v16184_v5 = vld [vmem:[%s24663_s1 + $0xa74] sm:$0xf0] }
 0x110   : > { %3171 = vmatpush.bf16.msra.mxu2 %v11442_v30  ;;  %2309 = vmatmul.bf16.vlgmr.msrb.gmra.mxu3 %v18418_v0  ;;  %v16114_v0 = vld [vmem:[%s24663_s1 + $0x844] sm:$0xf0]  ;;  %v11490_v8 = vor.u32 %v16164_v2, %v11489_v57  ;;  %v11465_v30 = vld [vmem:[%s24663_s1 + $0x9a0] sm:$0xf]  ;;  %v16212_v62 = vld [vmem:[%s24663_s1 + $0xb54] sm:$0xf0] }
 0x111   : > { %3184 = vmatpush.bf16.msra.mxu3 %v11506_v32  ;;  %v11290_v11 = vor.u32 %v16114_v0, %v11289_v63  ;;  %v11265_v32 = vld [vmem:[%s24663_s1 + $0x810] sm:$0xf]  ;;  %v11466_v52 = vor.u32 %v16158_v39, %v11465_v30  ;;  %v16122_v2 = vld [vmem:[%s24663_s1 + $0x884] sm:$0xf0]  ;;  %v11449_v0 = vld [vmem:[%s24663_s1 + $0x980] sm:$0xf] }
 0x112   : > { %3146 = vmatpush.bf16.msra.mxu0 %v11306_v48  ;;  %v1214_v27 = vpop.f32.mrf.mxu2  ;;  %v1190_v43 = vpop.f32.mrf.mxu0  ;;  %v16124_v48 = vld [vmem:[%s24663_s1 + $0x894] sm:$0xf0]  ;;  %v11266_v57 = vor.u32 %v16108_v34, %v11265_v32  ;;  %v11450_v24 = vor.u32 %v16154_v7, %v11449_v0  ;;  %v16182_v33 = vld [vmem:[%s24663_s1 + $0xa64] sm:$0xf0]  ;;  %v11689_v30 = vld [vmem:[%s24663_s1 + $0xb60] sm:$0xf] }
 0x113   : > { %3159 = vmatpush.bf16.msra.mxu1 %v11370_v49  ;;  %v1215_v36 = vadd.f32 %v1214_v27, %v1202_v20  ;;  %v1227_v37 = vpop.f32.mrf.mxu3  ;;  %v11393_v49 = vld [vmem:[%s24663_s1 + $0x910] sm:$0xf]  ;;  %v11230_v27 = vor.u32 %v16097_v15, %v11227_v53  ;;  %v16214_v39 = vld [vmem:[%s24663_s1 + $0xb64] sm:$0xf0]  ;;  %v11753_v32 = vld [vmem:[%s24663_s1 + $0xbe0] sm:$0xf]  ;;  %v11738_v53 = vor.u32 %v16226_v42, %v11737_v41 }
 0x114   : > { %3172 = vmatpush.bf16.msra.mxu2 %v11434_v51  ;;  %v1203_v51 = vpop.f32.mrf.mxu1  ;;  %v11394_v63 = vor.u32 %v16140_v55, %v11393_v49  ;;  %v11761_v20 = vld [vmem:[%s24663_s1 + $0xbf0] sm:$0xf]  ;;  %v16230_v34 = vld [vmem:[%s24663_s1 + $0xbe4] sm:$0xf0]  ;;  %v11690_v49 = vor.u32 %v16214_v39, %v11689_v30  ;;  %v11609_v0 = vld [vmem:[%s24663_s1 + $0xac0] sm:$0xf] }
 0x115   : > { %3185 = vmatpush.bf16.msra.mxu3 %v11498_v59  ;;  %v18925_v31 = vadd.f32 %v1227_v37, %v1215_v36  ;;  %v16156_v59 = vld [vmem:[%s24663_s1 + $0x994] sm:$0xf0]  ;;  %v16198_v36 = vld [vmem:[%s24663_s1 + $0xae4] sm:$0xf0]  ;;  %v11553_v51 = vld [vmem:[%s24663_s1 + $0xa50] sm:$0xf] }
 0x116   : > { %3147 = vmatpush.bf16.msra.mxu0 %v11298_v3  ;;  %v11385_v3 = vld [vmem:[%s24663_s1 + $0x900] sm:$0xf]  ;;  %v11617_v55 = vld [vmem:[%s24663_s1 + $0xad0] sm:$0xf]  ;;  %v16119_v41 = vld [vmem:[%s24663_s1 + $0x874] sm:$0xf] }
 0x117   : > { %3160 = vmatpush.bf16.msra.mxu1 %v11362_v4  ;;  %v16138_v4 = vld [vmem:[%s24663_s1 + $0x904] sm:$0xf0]  ;;  %v11521_v39 = vld [vmem:[%s24663_s1 + $0xa10] sm:$0xf]  ;;  %v11315_v42 = vld [vmem:[%s24663_s1 + $0x878] sm:$0xf0] }
 0x118   : > { %3173 = vmatpush.bf16.msra.mxu2 %v11426_v38  ;;  %v11330_v38 = vor.u32 %v16124_v48, %v11329_v47  ;;  %v11386_v60 = vor.u32 %v16138_v4, %v11385_v3  ;;  %v19037_v47 = vrot.slane %v11230_v27, 1  ;;  %v11626_v48 = vor.u32 %v16198_v36, %v11625_v35  ;;  %v16190_v27 = vld [vmem:[%s24663_s1 + $0xaa4] sm:$0xf0]  ;;  %v11721_v36 = vld [vmem:[%s24663_s1 + $0xba0] sm:$0xf] }
 0x119   : > { %3186 = vmatpush.bf16.msra.mxu3 %v11490_v8  ;;  %v11569_v8 = vld [vmem:[%s24663_s1 + $0xa70] sm:$0xf]  ;;  %v11682_v4 = vor.u32 %v16212_v62, %v11681_v61  ;;  %v16204_v61 = vld [vmem:[%s24663_s1 + $0xb14] sm:$0xf0] }
 0x11a   : > { %3148 = vmatpush.bf16.msra.mxu0 %v11290_v11  ;;  %v1216_v9 = vpop.f32.mrf.mxu2  ;;  %v11458_v11 = vor.u32 %v16156_v59, %v11457_v58  ;;  %v11570_v25 = vor.u32 %v16184_v5, %v11569_v8  ;;  %v11754_v58 = vor.u32 %v16230_v34, %v11753_v32  ;;  %v16196_v59 = vld [vmem:[%s24663_s1 + $0xad4] sm:$0xf0]  ;;  %v16194_v8 = vld [vmem:[%s24663_s1 + $0xac4] sm:$0xf0]  ;;  %v11673_v5 = vld [vmem:[%s24663_s1 + $0xb40] sm:$0xf] }
 0x11b   : > { %3161 = vmatpush.bf16.msra.mxu1 %v11354_v12  ;;  %v1229_v44 = vpop.f32.mrf.mxu3  ;;  %v16101_v12 = vld [vmem:[%s17410_s6 + $0x1c] sm:$0x10]  ;;  %v11618_v3 = vor.u32 %v16196_v59, %v11617_v55  ;;  %v16210_v9 = vld [vmem:[%s24663_s1 + $0xb44] sm:$0xf0]  ;;  %v16172_v32 = vld [vmem:[%s24663_s1 + $0xa14] sm:$0xf0] }
 0x11c   : > { %3174 = vmatpush.bf16.msra.mxu2 %v11418_v13  ;;  %v16098_v13 = vld [vmem:[%s17410_s6 + $0xc] sm:$0xe]  ;;  %v11610_v44 = vor.u32 %v16194_v8, %v11609_v0  ;;  %v11649_v55 = vld [vmem:[%s24663_s1 + $0xb10] sm:$0xf]  ;;  %v16202_v0 = vld [vmem:[%s24663_s1 + $0xb04] sm:$0xf0] }
 0x11d   : > { %3187 = vmatpush.bf16.msra.mxu3 %v11482_v56  ;;  %v11322_v56 = vor.u32 %v16122_v2, %v11321_v1  ;;  %v11745_v1 = vld [vmem:[%s24663_s1 + $0xbd0] sm:$0xf]  ;;  %v11650_v8 = vor.u32 %v16204_v61, %v11649_v55  ;;  %v16165_v55 = vld [vmem:[%s24663_s1 + $0x9e4] sm:$0xf] }
 0x11e   : > { %3149 = vmatpush.bf16.msra.mxu0 %v11282_v21  ;;  %v16232_v21 = vld [vmem:[%s24663_s1 + $0xbf4] sm:$0xf0]  ;;  %v11713_v62 = vld [vmem:[%s24663_s1 + $0xb90] sm:$0xf] }
 0x11f   : > { %3162 = vmatpush.bf16.msra.mxu1 %v11346_v22  ;;  %v11226_v22 = vor.u32 %v16101_v12, %v11225_v10  ;;  %v11762_v37 = vor.u32 %v16232_v21, %v11761_v20  ;;  %v11674_v12 = vor.u32 %v16210_v9, %v11673_v5  ;;  %v11705_v5 = vld [vmem:[%s24663_s1 + $0xb80] sm:$0xf]  ;;  %v16218_v9 = vld [vmem:[%s24663_s1 + $0xb84] sm:$0xf0] }
 0x120   : > { %3175 = vmatpush.bf16.msra.mxu2 %v11410_v23  ;;  %v11238_v23 = vor.u32 %v16098_v13, %v11235_v50  ;;  %v11537_v13 = vld [vmem:[%s24663_s1 + $0xa30] sm:$0xf]  ;;  %v16176_v50 = vld [vmem:[%s24663_s1 + $0xa34] sm:$0xf0] }
 0x121   : > { %3188 = vmatpush.bf16.msra.mxu3 %v11474_v28  ;;  %v11634_v28 = vor.u32 %v16200_v16, %v11633_v14  ;;  %v19033_v43 = vrot.slane %v11226_v22, 1  ;;  %v11601_v14 = vld [vmem:[%s24663_s1 + $0xab0] sm:$0xf]  ;;  %v16208_v16 = vld [vmem:[%s24663_s1 + $0xb34] sm:$0xf0] }
 0x122   : > { %3150 = vmatpush.bf16.msra.mxu0 %v11274_v40  ;;  %v19025_v40 = vrot.slane %v11234_v19, 1  ;;  %v16224_v19 = vld [vmem:[%s24663_s1 + $0xbb4] sm:$0xf0]  ;;  %v11529_v22 = vld [vmem:[%s24663_s1 + $0xa20] sm:$0xf] }
 0x123   : > { %3163 = vmatpush.bf16.msra.mxu1 %v11338_v45  ;;  %v19035_v45 = vrot.slane %v11238_v23, 1  ;;  %v16174_v23 = vld [vmem:[%s24663_s1 + $0xa24] sm:$0xf0] }
 0x124   : > { %3176 = vmatpush.bf16.msra.mxu2 %v11402_v46  ;;  %v11562_v46 = vor.u32 %v16182_v33, %v11561_v26  ;;  %v11730_v26 = vor.u32 %v16224_v19, %v11729_v18  ;;  %v11530_v30 = vor.u32 %v16174_v23, %v11529_v22  ;;  %v11379_v19 = vld [vmem:[%s24663_s1 + $0x8f8] sm:$0xf0]  ;;  %v16167_v23 = vld [vmem:[%s24663_s1 + $0x9f4] sm:$0xf] }
 0x125   : > { %3189 = vmatpush.bf16.msra.mxu3 %v11466_v52  ;;  %v16180_v52 = vld [vmem:[%s24663_s1 + $0xa54] sm:$0xf0] }
 0x126   : > { %3151 = vmatpush.bf16.msra.mxu0 %v11266_v57  ;;  %v16228_v57 = vld [vmem:[%s24663_s1 + $0xbd4] sm:$0xf0]  ;;  %v11554_v2 = vor.u32 %v16180_v52, %v11553_v51  ;;  %v11585_v51 = vld [vmem:[%s24663_s1 + $0xa90] sm:$0xf] }
 0x127   : > { %3164 = vmatpush.bf16.msra.mxu1 %v11330_v38  ;;  %v11545_v38 = vld [vmem:[%s24663_s1 + $0xa40] sm:$0xf]  ;;  %v11746_v7 = vor.u32 %v16228_v57, %v11745_v1  ;;  %v16188_v52 = vld [vmem:[%s24663_s1 + $0xa94] sm:$0xf0] }
 0x128   : > { %3177 = vmatpush.bf16.msra.mxu2 %v11394_v63  ;;  %v16178_v63 = vld [vmem:[%s24663_s1 + $0xa44] sm:$0xf0]  ;;  %v16220_v1 = vld [vmem:[%s24663_s1 + $0xb94] sm:$0xf0]  ;;  %v11513_v57 = vld [vmem:[%s24663_s1 + $0xa00] sm:$0xf] }
 0x129   : > { %3190 = vmatpush.bf16.msra.mxu3 %v11458_v11  ;;  %v11546_v10 = vor.u32 %v16178_v63, %v11545_v38  ;;  %v16186_v38 = vld [vmem:[%s24663_s1 + $0xa84] sm:$0xf0]  ;;  %v11641_v63 = vld [vmem:[%s24663_s1 + $0xb00] sm:$0xf] }
 0x12a   : > { %3152 = vmatpush.bf16.msra.mxu0 %v11258_v54  ;;  %v2115_v11 = vpop.f32.mrf.mxu0  ;;  %v16192_v54 = vld [vmem:[%s24663_s1 + $0xab4] sm:$0xf0]  ;;  %v11642_v22 = vor.u32 %v16202_v0, %v11641_v63  ;;  %v16147_v63 = vld [vmem:[%s24663_s1 + $0x954] sm:$0xf]  ;;  %v11427_v0 = vld [vmem:[%s24663_s1 + $0x958] sm:$0xf0] }
 0x12b   : > { %3165 = vmatpush.bf16.msra.mxu1 %v11322_v56  ;;  %v2128_v15 = vpop.f32.mrf.mxu1  ;;  %v11665_v56 = vld [vmem:[%s24663_s1 + $0xb30] sm:$0xf]  ;;  %v11602_v20 = vor.u32 %v16192_v54, %v11601_v14  ;;  %v16100_v14 = vld [vmem:[%s17410_s6 + $0x1c] sm:$0xe]  ;;  %v16135_v54 = vld [vmem:[%s24663_s1 + $0x8f4] sm:$0xf] }
 0x12c   : > { %3178 = vmatpush.bf16.msra.mxu2 %v11386_v60  ;;  %v2129_v17 = vadd.f32 %v2128_v15, %v2115_v11  ;;  %v11538_v60 = vor.u32 %v16176_v50, %v11537_v13  ;;  %v11666_v21 = vor.u32 %v16208_v16, %v11665_v56  ;;  %v16104_v11 = vld [vmem:[%s17410_s6 + $0x34] sm:$0x10]  ;;  %v11714_v13 = vor.u32 %v16220_v1, %v11713_v62  ;;  %v16103_v50 = vld [vmem:[%s17410_s6 + $0x2c] sm:$0x10]  ;;  %v11251_v15 = vld [vmem:[%s17410_s6 + $0x38] sm:$0x10] }
 0x12d   : > { %3191 = vmatpush.bf16.msra.mxu3 %v11450_v24  ;;  %3153 = vmatmul.bf16.vlgmr.msra.gmra.mxu0 %v19033_v43  ;;  %v11593_v24 = vld [vmem:[%s24663_s1 + $0xaa0] sm:$0xf]  ;;  %v16099_v56 = vld [vmem:[%s17410_s6 + $0x14] sm:$0xe]  ;;  %v11243_v16 = vld [vmem:[%s17410_s6 + $0x30] sm:$0x10] }
 0x12e   : > { %3197 = vmatpush.bf16.msrb.mxu0 %v11570_v25  ;;  %3166 = vmatmul.bf16.vlgmr.msra.gmra.mxu1 %v19037_v47 }
 0x12f   : > { %3210 = vmatpush.bf16.msrb.mxu1 %v11634_v28  ;;  %3179 = vmatmul.bf16.vlgmr.msra.gmra.mxu2 %v19025_v40  ;;  %v11657_v28 = vld [vmem:[%s24663_s1 + $0xb20] sm:$0xf] }
 0x130   : > { %3223 = vmatpush.bf16.msrb.mxu2 %v11698_v29  ;;  %3192 = vmatmul.bf16.vlgmr.msra.gmra.mxu3 %v19035_v45  ;;  %v16206_v29 = vld [vmem:[%s24663_s1 + $0xb24] sm:$0xf0] }
 0x131   : > { %3236 = vmatpush.bf16.msrb.mxu3 %v11762_v37  ;;  %v16222_v37 = vld [vmem:[%s24663_s1 + $0xba4] sm:$0xf0] }
 0x132   : > { %3198 = vmatpush.bf16.msrb.mxu0 %v11562_v46  ;;  %v2141_v25 = vpop.f32.mrf.mxu2  ;;  %v2117_v46 = vpop.f32.mrf.mxu0  ;;  %v11722_v59 = vor.u32 %v16222_v37, %v11721_v36  ;;  %v11307_v37 = vld [vmem:[%s24663_s1 + $0x868] sm:$0xf0] }
 0x133   : > { %3211 = vmatpush.bf16.msrb.mxu1 %v11626_v48  ;;  %v2142_v33 = vadd.f32 %v2141_v25, %v2129_v17  ;;  %v2154_v35 = vpop.f32.mrf.mxu3  ;;  %v11594_v48 = vor.u32 %v16190_v27, %v11593_v24  ;;  %v11507_v24 = vld [vmem:[%s24663_s1 + $0x9f8] sm:$0xf0]  ;;  %v11706_v27 = vor.u32 %v16218_v9, %v11705_v5 }
 0x134   : > { %3224 = vmatpush.bf16.msrb.mxu2 %v11690_v49  ;;  %v11658_v49 = vor.u32 %v16206_v29, %v11657_v28  ;;  %v11318_v28 = vor.u32 %v16119_v41, %v11315_v42  ;;  %v16117_v29 = vld [vmem:[%s24663_s1 + $0x864] sm:$0xf]  ;;  %v11430_v41 = vor.u32 %v16147_v63, %v11427_v0  ;;  %v16123_v63 = vld [vmem:[%s24663_s1 + $0x894] sm:$0xf] }
 0x135   : > { %3237 = vmatpush.bf16.msrb.mxu3 %v11754_v58  ;;  %v19145_v34 = vadd.f32 %v2154_v35, %v2142_v33  ;;  %v2130_v58 = vpop.f32.mrf.mxu1  ;;  %v11246_v33 = vor.u32 %v16099_v56, %v11243_v16  ;;  %v11382_v35 = vor.u32 %v16135_v54, %v11379_v19  ;;  %v16113_v42 = vld [vmem:[%s24663_s1 + $0x844] sm:$0xf]  ;;  %v16111_v19 = vld [vmem:[%s24663_s1 + $0x834] sm:$0xf] }
 0x136   : > { %3199 = vmatpush.bf16.msrb.mxu0 %v11554_v2  ;;  %v16170_v2 = vld [vmem:[%s24663_s1 + $0xa04] sm:$0xf0]  ;;  %v11499_v58 = vld [vmem:[%s24663_s1 + $0x9e8] sm:$0xf0] }
 0x137   : > { %3212 = vmatpush.bf16.msrb.mxu1 %v11618_v3  ;;  %v11577_v3 = vld [vmem:[%s24663_s1 + $0xa80] sm:$0xf]  ;;  %v11514_v17 = vor.u32 %v16170_v2, %v11513_v57  ;;  %v19251_v61 = vrot.slane %v11246_v33, 1  ;;  %v16115_v57 = vld [vmem:[%s24663_s1 + $0x854] sm:$0xf] }
 0x138   : > { %3225 = vmatpush.bf16.msrb.mxu2 %v11682_v4  ;;  %v11522_v4 = vor.u32 %v16172_v32, %v11521_v39  ;;  %v11578_v18 = vor.u32 %v16186_v38, %v11577_v3  ;;  %v11371_v39 = vld [vmem:[%s24663_s1 + $0x8e8] sm:$0xf0]  ;;  %v11510_v32 = vor.u32 %v16167_v23, %v11507_v24  ;;  %v11299_v2 = vld [vmem:[%s24663_s1 + $0x858] sm:$0xf0]  ;;  %v16131_v3 = vld [vmem:[%s24663_s1 + $0x8d4] sm:$0xf] }
 0x139   : > { %3238 = vmatpush.bf16.msrb.mxu3 %v11746_v7  ;;  %v11586_v7 = vor.u32 %v16188_v52, %v11585_v51  ;;  %v11363_v38 = vld [vmem:[%s24663_s1 + $0x8d8] sm:$0xf0]  ;;  %v11302_v5 = vor.u32 %v16115_v57, %v11299_v2 }
 0x13a   : > { %3200 = vmatpush.bf16.msrb.mxu0 %v11546_v10  ;;  %v11249_v10 = vld [vmem:[%s17410_s6 + $0x18] sm:$0xe]  ;;  %v11366_v9 = vor.u32 %v16131_v3, %v11363_v38  ;;  %v11411_v23 = vld [vmem:[%s24663_s1 + $0x938] sm:$0xf0] }
 0x13b   : > { %3213 = vmatpush.bf16.msrb.mxu1 %v11610_v44  ;;  %v11241_v44 = vld [vmem:[%s17410_s6 + $0x10] sm:$0xe]  ;;  %v11267_v38 = vld [vmem:[%s24663_s1 + $0x818] sm:$0xf0] }
 0x13c   : > { %3226 = vmatpush.bf16.msrb.mxu2 %v11674_v12  ;;  %v2143_v12 = vpop.f32.mrf.mxu2  ;;  %v11242_v25 = vor.u32 %v16103_v50, %v11241_v44  ;;  %v11419_v50 = vld [vmem:[%s24663_s1 + $0x948] sm:$0xf0] }
 0x13d   : > { %3239 = vmatpush.bf16.msrb.mxu3 %v11738_v53  ;;  %v2156_v53 = vpop.f32.mrf.mxu3  ;;  %v11355_v12 = vld [vmem:[%s24663_s1 + $0x8c8] sm:$0xf0] }
 0x13e   : > { %3201 = vmatpush.bf16.msrb.mxu0 %v11538_v60  ;;  %v16151_v60 = vld [vmem:[%s24663_s1 + $0x974] sm:$0xf]  ;;  %v19241_v51 = vrot.slane %v11242_v25, 1 }
 0x13f   : > { %3214 = vmatpush.bf16.msrb.mxu1 %v11602_v20  ;;  %v11443_v20 = vld [vmem:[%s24663_s1 + $0x978] sm:$0xf0]  ;;  %v16159_v25 = vld [vmem:[%s24663_s1 + $0x9b4] sm:$0xf] }
 0x140   : > { %3227 = vmatpush.bf16.msrb.mxu2 %v11666_v21  ;;  %v11250_v21 = vor.u32 %v16104_v11, %v11249_v10  ;;  %v11446_v36 = vor.u32 %v16151_v60, %v11443_v20  ;;  %v11291_v10 = vld [vmem:[%s24663_s1 + $0x848] sm:$0xf0]  ;;  %v16129_v11 = vld [vmem:[%s24663_s1 + $0x8c4] sm:$0xf]  ;;  %v11283_v60 = vld [vmem:[%s24663_s1 + $0x838] sm:$0xf0] }
 0x141   : > { %3240 = vmatpush.bf16.msrb.mxu3 %v11730_v26  ;;  %v11254_v26 = vor.u32 %v16100_v14, %v11251_v15  ;;  %v16161_v14 = vld [vmem:[%s24663_s1 + $0x9c4] sm:$0xf]  ;;  %v11483_v15 = vld [vmem:[%s24663_s1 + $0x9c8] sm:$0xf0]  ;;  %v11294_v53 = vor.u32 %v16113_v42, %v11291_v10  ;;  %v11358_v56 = vor.u32 %v16129_v11, %v11355_v12  ;;  %v16127_v20 = vld [vmem:[%s24663_s1 + $0x8b4] sm:$0xf] }
 0x142   : > { %3202 = vmatpush.bf16.msrb.mxu0 %v11530_v30  ;;  %v16133_v30 = vld [vmem:[%s24663_s1 + $0x8e4] sm:$0xf]  ;;  %v19233_v46 = vrot.slane %v11250_v21, 1  ;;  %v11486_v21 = vor.u32 %v16161_v14, %v11483_v15  ;;  %v16155_v42 = vld [vmem:[%s24663_s1 + $0x994] sm:$0xf] }
 0x143   : > { %3215 = vmatpush.bf16.msrb.mxu1 %v11594_v48  ;;  %v16149_v48 = vld [vmem:[%s24663_s1 + $0x964] sm:$0xf]  ;;  %v19243_v52 = vrot.slane %v11254_v26, 1  ;;  %v11374_v62 = vor.u32 %v16133_v30, %v11371_v39  ;;  %v11475_v26 = vld [vmem:[%s24663_s1 + $0x9b8] sm:$0xf0] }
 0x144   : > { %3228 = vmatpush.bf16.msrb.mxu2 %v11658_v49  ;;  %v11435_v49 = vld [vmem:[%s24663_s1 + $0x968] sm:$0xf0]  ;;  %v11478_v30 = vor.u32 %v16159_v25, %v11475_v26  ;;  %v16105_v11 = vld [vmem:[%s24663_s1 + $0x804] sm:$0xf]  ;;  %v16231_v26 = vld [vmem:[%s24663_s1 + $0xbf4] sm:$0xf] }
 0x145   : > { %3241 = vmatpush.bf16.msrb.mxu3 %v11722_v59  ;;  %v11310_v59 = vor.u32 %v16117_v29, %v11307_v37  ;;  %v11438_v1 = vor.u32 %v16149_v48, %v11435_v49  ;;  %v16125_v37 = vld [vmem:[%s24663_s1 + $0x8a4] sm:$0xf]  ;;  %v11339_v48 = vld [vmem:[%s24663_s1 + $0x8a8] sm:$0xf0] }
 0x146   : > { %3203 = vmatpush.bf16.msrb.mxu0 %v11522_v4  ;;  %v11502_v4 = vor.u32 %v16165_v55, %v11499_v58  ;;  %v16141_v49 = vld [vmem:[%s24663_s1 + $0x924] sm:$0xf]  ;;  %v11403_v55 = vld [vmem:[%s24663_s1 + $0x928] sm:$0xf0]  ;;  %v11342_v2 = vor.u32 %v16125_v37, %v11339_v48 }
 0x147   : > { %3216 = vmatpush.bf16.msrb.mxu1 %v11586_v7  ;;  %v16163_v7 = vld [vmem:[%s24663_s1 + $0x9d4] sm:$0xf]  ;;  %v16157_v58 = vld [vmem:[%s24663_s1 + $0x9a4] sm:$0xf]  ;;  %v11406_v3 = vor.u32 %v16141_v49, %v11403_v55  ;;  %v11323_v14 = vld [vmem:[%s24663_s1 + $0x888] sm:$0xf0] }
 0x148   : > { %3229 = vmatpush.bf16.msrb.mxu2 %v11650_v8  ;;  %v11491_v8 = vld [vmem:[%s24663_s1 + $0x9d8] sm:$0xf0]  ;;  %v16137_v15 = vld [vmem:[%s24663_s1 + $0x904] sm:$0xf]  ;;  %v11563_v37 = vld [vmem:[%s24663_s1 + $0xa68] sm:$0xf0] }
 0x149   : > { %3242 = vmatpush.bf16.msrb.mxu3 %v11714_v13  ;;  %v11494_v44 = vor.u32 %v16163_v7, %v11491_v8  ;;  %v16145_v13 = vld [vmem:[%s24663_s1 + $0x944] sm:$0xf]  ;;  %v11691_v49 = vld [vmem:[%s24663_s1 + $0xb68] sm:$0xf0] }
 0x14a   : > { %3204 = vmatpush.bf16.msrb.mxu0 %v11514_v17  ;;  %v2167_v54 = vpop.f32.mrf.mxu0  ;;  %v11422_v16 = vor.u32 %v16145_v13, %v11419_v50  ;;  %v16121_v50 = vld [vmem:[%s24663_s1 + $0x884] sm:$0xf] }
 0x14b   : > { %3217 = vmatpush.bf16.msrb.mxu1 %v11578_v18  ;;  %v2168_v17 = vadd.f32 %v2167_v54, %v19145_v34  ;;  %v2180_v18 = vpop.f32.mrf.mxu1  ;;  %v16143_v34 = vld [vmem:[%s24663_s1 + $0x934] sm:$0xf]  ;;  %v16213_v48 = vld [vmem:[%s24663_s1 + $0xb64] sm:$0xf] }
 0x14c   : > { %3230 = vmatpush.bf16.msrb.mxu2 %v11642_v22  ;;  %v11347_v22 = vld [vmem:[%s24663_s1 + $0x8b8] sm:$0xf0]  ;;  %v11414_v29 = vor.u32 %v16143_v34, %v11411_v23  ;;  %v16215_v34 = vld [vmem:[%s24663_s1 + $0xb74] sm:$0xf]  ;;  %v16229_v55 = vld [vmem:[%s24663_s1 + $0xbe4] sm:$0xf] }
 0x14d   : > { %3243 = vmatpush.bf16.msrb.mxu3 %v11706_v27  ;;  %3205 = vmatmul.bf16.vlgmr.msrb.gmra.mxu0 %v19241_v51  ;;  %v2181_v24 = vadd.f32 %v2180_v18, %v2168_v17  ;;  %v11286_v27 = vor.u32 %v16111_v19, %v11283_v60  ;;  %v11451_v17 = vld [vmem:[%s24663_s1 + $0x988] sm:$0xf0]  ;;  %v16183_v19 = vld [vmem:[%s24663_s1 + $0xa74] sm:$0xf]  ;;  %v11571_v60 = vld [vmem:[%s24663_s1 + $0xa78] sm:$0xf0] }
 0x14e   : > { %3249 = vmatpush.bf16.msra.mxu0 %v11318_v28  ;;  %3218 = vmatmul.bf16.vlgmr.msrb.gmra.mxu1 %v19251_v61  ;;  %v11350_v28 = vor.u32 %v16127_v20, %v11347_v22  ;;  %v16199_v20 = vld [vmem:[%s24663_s1 + $0xaf4] sm:$0xf]  ;;  %v11635_v22 = vld [vmem:[%s24663_s1 + $0xaf8] sm:$0xf0] }
 0x14f   : > { %3262 = vmatpush.bf16.msra.mxu1 %v11382_v35  ;;  %3231 = vmatmul.bf16.vlgmr.msrb.gmra.mxu2 %v19233_v46  ;;  %v16109_v35 = vld [vmem:[%s24663_s1 + $0x824] sm:$0xf]  ;;  %v11699_v23 = vld [vmem:[%s24663_s1 + $0xb78] sm:$0xf0] }
 0x150   : > { %3275 = vmatpush.bf16.msra.mxu2 %v11446_v36  ;;  %3244 = vmatmul.bf16.vlgmr.msrb.gmra.mxu3 %v19243_v52  ;;  %v11275_v36 = vld [vmem:[%s24663_s1 + $0x828] sm:$0xf0] }
 0x151   : > { %3288 = vmatpush.bf16.msra.mxu3 %v11510_v32 }
 0x152   : > { %3250 = vmatpush.bf16.msra.mxu0 %v11310_v59  ;;  %v2193_v33 = vpop.f32.mrf.mxu2  ;;  %v11467_v59 = vld [vmem:[%s24663_s1 + $0x9a8] sm:$0xf0]  ;;  %v2169_v57 = vpop.f32.mrf.mxu0 }
 0x153   : > { %3263 = vmatpush.bf16.msra.mxu1 %v11374_v62  ;;  %v2194_v39 = vadd.f32 %v2193_v33, %v2181_v24  ;;  %v2206_v32 = vpop.f32.mrf.mxu3  ;;  %v2182_v0 = vpop.f32.mrf.mxu1  ;;  %v11470_v8 = vor.u32 %v16157_v58, %v11467_v59  ;;  %v11326_v24 = vor.u32 %v16121_v50, %v11323_v14  ;;  %v11638_v33 = vor.u32 %v16199_v20, %v11635_v22  ;;  %v11755_v58 = vld [vmem:[%s24663_s1 + $0xbe8] sm:$0xf0]  ;;  %v16179_v57 = vld [vmem:[%s24663_s1 + $0xa54] sm:$0xf]  ;;  %v11731_v22 = vld [vmem:[%s24663_s1 + $0xbb8] sm:$0xf0] }
 0x154   : > { %3276 = vmatpush.bf16.msra.mxu2 %v11438_v1  ;;  %v11278_v1 = vor.u32 %v16109_v35, %v11275_v36  ;;  %v11702_v35 = vor.u32 %v16215_v34, %v11699_v23  ;;  %v16181_v36 = vld [vmem:[%s24663_s1 + $0xa64] sm:$0xf]  ;;  %v11683_v0 = vld [vmem:[%s24663_s1 + $0xb58] sm:$0xf0] }
 0x155   : > { %3289 = vmatpush.bf16.msra.mxu3 %v11502_v4  ;;  %v2207_v62 = vadd.f32 %v2206_v32, %v2194_v39  ;;  %v16107_v4 = vld [vmem:[%s24663_s1 + $0x814] sm:$0xf]  ;;  %v11627_v32 = vld [vmem:[%s24663_s1 + $0xae8] sm:$0xf0]  ;;  %v11566_v59 = vor.u32 %v16181_v36, %v11563_v37 }
 0x156   : > { %3251 = vmatpush.bf16.msra.mxu0 %v11302_v5  ;;  %v11331_v5 = vld [vmem:[%s24663_s1 + $0x898] sm:$0xf0]  ;;  %v11270_v10 = vor.u32 %v16107_v4, %v11267_v38  ;;  %v11758_v4 = vor.u32 %v16229_v55, %v11755_v58  ;;  %v11659_v36 = vld [vmem:[%s24663_s1 + $0xb28] sm:$0xf0] }
 0x157   : > { %3264 = vmatpush.bf16.msra.mxu1 %v11366_v9  ;;  %v19364_v7 = vadd.f32 %v2207_v62, %v18528_v6  ;;  %v16139_v9 = vld [vmem:[%s24663_s1 + $0x914] sm:$0xf]  ;;  %v11459_v6 = vld [vmem:[%s24663_s1 + $0x998] sm:$0xf0]  ;;  %v11334_v12 = vor.u32 %v16123_v63, %v11331_v5 }
 0x158   : > { %3277 = vmatpush.bf16.msra.mxu2 %v11430_v41  ;;  %v11395_v41 = vld [vmem:[%s24663_s1 + $0x918] sm:$0xf0]  ;;  %v11462_v54 = vor.u32 %v16155_v42, %v11459_v6  ;;  %v16211_v63 = vld [vmem:[%s24663_s1 + $0xb54] sm:$0xf]  ;;  %v16177_v42 = vld [vmem:[%s24663_s1 + $0xa44] sm:$0xf] }
 0x159   : > { %3290 = vmatpush.bf16.msra.mxu3 %v11494_v44  ;;  %v11259_v44 = vld [vmem:[%s24663_s1 + $0x808] sm:$0xf0]  ;;  %v11398_v13 = vor.u32 %v16139_v9, %v11395_v41  ;;  %v11619_v38 = vld [vmem:[%s24663_s1 + $0xad8] sm:$0xf0] }
 0x15a   : > { %3252 = vmatpush.bf16.msra.mxu0 %v11294_v53  ;;  %v2195_v53 = vpop.f32.mrf.mxu2  ;;  %v11747_v5 = vld [vmem:[%s24663_s1 + $0xbd8] sm:$0xf0]  ;;  %v11547_v6 = vld [vmem:[%s24663_s1 + $0xa48] sm:$0xf0] }
 0x15b   : > { %3265 = vmatpush.bf16.msra.mxu1 %v11358_v56  ;;  %v11387_v56 = vld [vmem:[%s24663_s1 + $0x908] sm:$0xf0]  ;;  %v2208_v18 = vpop.f32.mrf.mxu3  ;;  %v16175_v53 = vld [vmem:[%s24663_s1 + $0xa34] sm:$0xf] }
 0x15c   : > { %3278 = vmatpush.bf16.msra.mxu2 %v11422_v16  ;;  %v16153_v16 = vld [vmem:[%s24663_s1 + $0x984] sm:$0xf]  ;;  %v11390_v25 = vor.u32 %v16137_v15, %v11387_v56  ;;  %v16191_v56 = vld [vmem:[%s24663_s1 + $0xab4] sm:$0xf]  ;;  %v11603_v18 = vld [vmem:[%s24663_s1 + $0xab8] sm:$0xf0] }
 0x15d   : > { %3291 = vmatpush.bf16.msra.mxu3 %v11486_v21  ;;  %v11262_v21 = vor.u32 %v16105_v11, %v11259_v44  ;;  %v11675_v11 = vld [vmem:[%s24663_s1 + $0xb48] sm:$0xf0]  ;;  %v16225_v44 = vld [vmem:[%s24663_s1 + $0xbc4] sm:$0xf]  ;;  %v11606_v23 = vor.u32 %v16191_v56, %v11603_v18  ;;  %v12113_v56 = vld [vmem:[%s24663_s1 + $0xd70] sm:$0xf] }
 0x15e   : > { %3253 = vmatpush.bf16.msra.mxu0 %v11286_v27  ;;  %v11763_v27 = vld [vmem:[%s24663_s1 + $0xbf8] sm:$0xf0] }
 0x15f   : > { %3266 = vmatpush.bf16.msra.mxu1 %v11350_v28  ;;  %v11454_v28 = vor.u32 %v16153_v16, %v11451_v17  ;;  %v11766_v39 = vor.u32 %v16231_v26, %v11763_v27  ;;  %v11531_v26 = vld [vmem:[%s24663_s1 + $0xa28] sm:$0xf0]  ;;  %v16189_v27 = vld [vmem:[%s24663_s1 + $0xaa4] sm:$0xf] }
 0x160   : > { %3279 = vmatpush.bf16.msra.mxu2 %v11414_v29  ;;  %v11574_v29 = vor.u32 %v16183_v19, %v11571_v60  ;;  %v16207_v19 = vld [vmem:[%s24663_s1 + $0xb34] sm:$0xf]  ;;  %v11667_v60 = vld [vmem:[%s24663_s1 + $0xb38] sm:$0xf0] }
 0x161   : > { %3292 = vmatpush.bf16.msra.mxu3 %v11478_v30  ;;  %v16197_v30 = vld [vmem:[%s24663_s1 + $0xae4] sm:$0xf] }
 0x162   : > { %3254 = vmatpush.bf16.msra.mxu0 %v11278_v1  ;;  %v11630_v62 = vor.u32 %v16197_v30, %v11627_v32  ;;  %v11694_v1 = vor.u32 %v16213_v48, %v11691_v49  ;;  %v11723_v32 = vld [vmem:[%s24663_s1 + $0xba8] sm:$0xf0] }
 0x163   : > { %3267 = vmatpush.bf16.msra.mxu1 %v11342_v2  ;;  %v11555_v2 = vld [vmem:[%s24663_s1 + $0xa58] sm:$0xf0] }
 0x164   : > { %3280 = vmatpush.bf16.msra.mxu2 %v11406_v3  ;;  %v16195_v3 = vld [vmem:[%s24663_s1 + $0xad4] sm:$0xf]  ;;  %v11558_v9 = vor.u32 %v16179_v57, %v11555_v2 }
 0x165   : > { %3293 = vmatpush.bf16.msra.mxu3 %v11470_v8  ;;  %v16227_v8 = vld [vmem:[%s24663_s1 + $0xbd4] sm:$0xf]  ;;  %v11622_v41 = vor.u32 %v16195_v3, %v11619_v38 }
 0x166   : > { %3255 = vmatpush.bf16.msra.mxu0 %v11270_v10  ;;  %v16209_v10 = vld [vmem:[%s24663_s1 + $0xb44] sm:$0xf]  ;;  %v16187_v57 = vld [vmem:[%s24663_s1 + $0xa94] sm:$0xf] }
 0x167   : > { %3268 = vmatpush.bf16.msra.mxu1 %v11334_v12  ;;  %v11739_v12 = vld [vmem:[%s24663_s1 + $0xbc8] sm:$0xf0]  ;;  %v11678_v15 = vor.u32 %v16209_v10, %v11675_v11  ;;  %v16203_v38 = vld [vmem:[%s24663_s1 + $0xb14] sm:$0xf] }
 0x168   : > { %3281 = vmatpush.bf16.msra.mxu2 %v11398_v13  ;;  %v11550_v13 = vor.u32 %v16177_v42, %v11547_v6  ;;  %v11742_v17 = vor.u32 %v16225_v44, %v11739_v12  ;;  %v16185_v6 = vld [vmem:[%s24663_s1 + $0xa84] sm:$0xf]  ;;  %v11643_v11 = vld [vmem:[%s24663_s1 + $0xb08] sm:$0xf0] }
 0x169   : > { %3294 = vmatpush.bf16.msra.mxu3 %v11462_v54  ;;  %v11539_v54 = vld [vmem:[%s24663_s1 + $0xa38] sm:$0xf0]  ;;  %v16217_v44 = vld [vmem:[%s24663_s1 + $0xb84] sm:$0xf]  ;;  %v11707_v12 = vld [vmem:[%s24663_s1 + $0xb88] sm:$0xf0] }
 0x16a   : > { %3256 = vmatpush.bf16.msra.mxu0 %v11262_v21  ;;  %v2219_v50 = vpop.f32.mrf.mxu0  ;;  %v16223_v21 = vld [vmem:[%s24663_s1 + $0xbb4] sm:$0xf]  ;;  %v11542_v34 = vor.u32 %v16175_v53, %v11539_v54  ;;  %v16272_v54 = vld [vmem:[%s24663_s1 + $0xcf4] sm:$0xf0] }
 0x16b   : > { %3269 = vmatpush.bf16.msra.mxu1 %v11326_v24  ;;  %v2232_v16 = vpop.f32.mrf.mxu1  ;;  %v11670_v24 = vor.u32 %v16207_v19, %v11667_v60  ;;  %v12177_v19 = vld [vmem:[%s24663_s1 + $0xdf0] sm:$0xf]  ;;  %v16304_v60 = vld [vmem:[%s24663_s1 + $0xdf4] sm:$0xf0] }
 0x16c   : > { %3282 = vmatpush.bf16.msra.mxu2 %v11390_v25  ;;  %v2233_v20 = vadd.f32 %v2232_v16, %v2219_v50  ;;  %v16173_v25 = vld [vmem:[%s24663_s1 + $0xa24] sm:$0xf]  ;;  %v11985_v50 = vld [vmem:[%s24663_s1 + $0xc70] sm:$0xf]  ;;  %v16288_v16 = vld [vmem:[%s24663_s1 + $0xd74] sm:$0xf0] }
 0x16d   : > { %3295 = vmatpush.bf16.msra.mxu3 %v11454_v28  ;;  %3257 = vmatmul.bf16.vlgmr.msra.gmra.mxu0 %v19033_v43  ;;  %v16193_v43 = vld [vmem:[%s24663_s1 + $0xac4] sm:$0xf]  ;;  %v11534_v48 = vor.u32 %v16173_v25, %v11531_v26  ;;  %v12041_v25 = vld [vmem:[%s24663_s1 + $0xce0] sm:$0xf]  ;;  %v12178_v26 = vor.u32 %v16304_v60, %v12177_v19 }
 0x16e   : > { %3301 = vmatpush.bf16.msrb.mxu0 %v11574_v29  ;;  %3270 = vmatmul.bf16.vlgmr.msra.gmra.mxu1 %v19037_v47  ;;  %v11611_v47 = vld [vmem:[%s24663_s1 + $0xac8] sm:$0xf0]  ;;  %v11734_v29 = vor.u32 %v16223_v21, %v11731_v22 }
 0x16f   : > { %3314 = vmatpush.bf16.msrb.mxu1 %v11638_v33  ;;  %3283 = vmatmul.bf16.vlgmr.msra.gmra.mxu2 %v19025_v40  ;;  %v11686_v40 = vor.u32 %v16211_v63, %v11683_v0  ;;  %v11614_v14 = vor.u32 %v16193_v43, %v11611_v47  ;;  %v11595_v33 = vld [vmem:[%s24663_s1 + $0xaa8] sm:$0xf0]  ;;  %v11651_v63 = vld [vmem:[%s24663_s1 + $0xb18] sm:$0xf0]  ;;  %v16219_v0 = vld [vmem:[%s24663_s1 + $0xb94] sm:$0xf] }
 0x170   : > { %3327 = vmatpush.bf16.msrb.mxu2 %v11702_v35  ;;  %3296 = vmatmul.bf16.vlgmr.msra.gmra.mxu3 %v19035_v45  ;;  %v11750_v45 = vor.u32 %v16227_v8, %v11747_v5  ;;  %v16205_v35 = vld [vmem:[%s24663_s1 + $0xb24] sm:$0xf]  ;;  %v11598_v58 = vor.u32 %v16189_v27, %v11595_v33  ;;  %v11715_v8 = vld [vmem:[%s24663_s1 + $0xb98] sm:$0xf0]  ;;  %v11654_v42 = vor.u32 %v16203_v38, %v11651_v63  ;;  %v11579_v43 = vld [vmem:[%s24663_s1 + $0xa88] sm:$0xf0] }
 0x171   : > { %3340 = vmatpush.bf16.msrb.mxu3 %v11766_v39  ;;  %v16221_v39 = vld [vmem:[%s24663_s1 + $0xba4] sm:$0xf]  ;;  %v11718_v10 = vor.u32 %v16219_v0, %v11715_v8  ;;  %v16270_v27 = vld [vmem:[%s24663_s1 + $0xce4] sm:$0xf0]  ;;  %v12169_v33 = vld [vmem:[%s24663_s1 + $0xde0] sm:$0xf] }
 0x172   : > { %3302 = vmatpush.bf16.msrb.mxu0 %v11566_v59  ;;  %v2245_v28 = vpop.f32.mrf.mxu2  ;;  %v2221_v55 = vpop.f32.mrf.mxu0  ;;  %v11662_v59 = vor.u32 %v16205_v35, %v11659_v36  ;;  %v11726_v3 = vor.u32 %v16221_v39, %v11723_v32  ;;  %v16302_v35 = vld [vmem:[%s24663_s1 + $0xde4] sm:$0xf0]  ;;  %v11969_v39 = vld [vmem:[%s24663_s1 + $0xc50] sm:$0xf]  ;;  %v16252_v32 = vld [vmem:[%s24663_s1 + $0xc54] sm:$0xf0] }
 0x173   : > { %3315 = vmatpush.bf16.msrb.mxu1 %v11630_v62  ;;  %v2246_v37 = vadd.f32 %v2245_v28, %v2233_v20  ;;  %v2258_v30 = vpop.f32.mrf.mxu3  ;;  %v16171_v62 = vld [vmem:[%s24663_s1 + $0xa14] sm:$0xf]  ;;  %v2234_v2 = vpop.f32.mrf.mxu1  ;;  %v11710_v20 = vor.u32 %v16217_v44, %v11707_v12  ;;  %v12105_v28 = vld [vmem:[%s24663_s1 + $0xd60] sm:$0xf]  ;;  %v12170_v55 = vor.u32 %v16302_v35, %v12169_v33  ;;  %v16282_v0 = vld [vmem:[%s24663_s1 + $0xd44] sm:$0xf0] }
 0x174   : > { %3328 = vmatpush.bf16.msrb.mxu2 %v11694_v1  ;;  %v11523_v1 = vld [vmem:[%s24663_s1 + $0xa18] sm:$0xf0]  ;;  %v12089_v63 = vld [vmem:[%s24663_s1 + $0xd40] sm:$0xf]  ;;  %v16264_v44 = vld [vmem:[%s24663_s1 + $0xcb4] sm:$0xf0] }
 0x175   : > { %3341 = vmatpush.bf16.msrb.mxu3 %v11758_v4  ;;  %v19553_v49 = vadd.f32 %v2258_v30, %v2246_v37  ;;  %v11587_v4 = vld [vmem:[%s24663_s1 + $0xa98] sm:$0xf0]  ;;  %v11526_v5 = vor.u32 %v16171_v62, %v11523_v1  ;;  %v12042_v37 = vor.u32 %v16270_v27, %v12041_v25  ;;  %v16284_v62 = vld [vmem:[%s24663_s1 + $0xd54] sm:$0xf0]  ;;  %v12153_v8 = vld [vmem:[%s24663_s1 + $0xdc0] sm:$0xf] }
 0x176   : > { %3303 = vmatpush.bf16.msrb.mxu0 %v11558_v9  ;;  %v16169_v9 = vld [vmem:[%s24663_s1 + $0xa04] sm:$0xf]  ;;  %v16300_v1 = vld [vmem:[%s24663_s1 + $0xdd4] sm:$0xf0]  ;;  %v11937_v27 = vld [vmem:[%s24663_s1 + $0xc10] sm:$0xf] }
 0x177   : > { %3316 = vmatpush.bf16.msrb.mxu1 %v11622_v41  ;;  %v11515_v41 = vld [vmem:[%s24663_s1 + $0xa08] sm:$0xf0]  ;;  %v16280_v12 = vld [vmem:[%s24663_s1 + $0xd34] sm:$0xf0] }
 0x178   : > { %3329 = vmatpush.bf16.msrb.mxu2 %v11686_v40  ;;  %v11590_v40 = vor.u32 %v16187_v57, %v11587_v4  ;;  %v11518_v53 = vor.u32 %v16169_v9, %v11515_v41  ;;  %v11970_v57 = vor.u32 %v16252_v32, %v11969_v39  ;;  %v12025_v4 = vld [vmem:[%s24663_s1 + $0xcc0] sm:$0xf] }
 0x179   : > { %3342 = vmatpush.bf16.msrb.mxu3 %v11750_v45  ;;  %v16201_v45 = vld [vmem:[%s24663_s1 + $0xb04] sm:$0xf] }
 0x17a   : > { %3304 = vmatpush.bf16.msrb.mxu0 %v11550_v13  ;;  %v2247_v47 = vpop.f32.mrf.mxu2  ;;  %v11646_v18 = vor.u32 %v16201_v45, %v11643_v11  ;;  %v11953_v45 = vld [vmem:[%s24663_s1 + $0xc30] sm:$0xf] }
 0x17b   : > { %3317 = vmatpush.bf16.msrb.mxu1 %v11614_v14  ;;  %v2260_v13 = vpop.f32.mrf.mxu3  ;;  %v16256_v14 = vld [vmem:[%s24663_s1 + $0xc74] sm:$0xf0] }
 0x17c   : > { %3330 = vmatpush.bf16.msrb.mxu2 %v11678_v15  ;;  %v12049_v15 = vld [vmem:[%s24663_s1 + $0xcf0] sm:$0xf]  ;;  %v11986_v21 = vor.u32 %v16256_v14, %v11985_v50  ;;  %v16248_v47 = vld [vmem:[%s24663_s1 + $0xc34] sm:$0xf0] }
 0x17d   : > { %3343 = vmatpush.bf16.msrb.mxu3 %v11742_v17  ;;  %v11582_v17 = vor.u32 %v16185_v6, %v11579_v43  ;;  %v12050_v22 = vor.u32 %v16272_v54, %v12049_v15  ;;  %v12145_v50 = vld [vmem:[%s24663_s1 + $0xdb0] sm:$0xf]  ;;  %v16296_v14 = vld [vmem:[%s24663_s1 + $0xdb4] sm:$0xf0]  ;;  %v11954_v15 = vor.u32 %v16248_v47, %v11953_v45  ;;  %v16233_v47 = vld [vmem:[%s17410_s6 + $0x4] sm:$0xc] }
 0x17e   : > { %3305 = vmatpush.bf16.msrb.mxu0 %v11542_v34  ;;  %v12114_v34 = vor.u32 %v16288_v16, %v12113_v56  ;;  %v11945_v16 = vld [vmem:[%s24663_s1 + $0xc20] sm:$0xf]  ;;  %v12146_v19 = vor.u32 %v16296_v14, %v12145_v50  ;;  %v12305_v45 = vld [vmem:[%s24663_s1 + $0xef0] sm:$0xf] }
 0x17f   : > { %3318 = vmatpush.bf16.msrb.mxu1 %v11606_v23  ;;  %v11977_v23 = vld [vmem:[%s24663_s1 + $0xc60] sm:$0xf] }
 0x180   : > { %3331 = vmatpush.bf16.msrb.mxu2 %v11670_v24  ;;  %v16254_v24 = vld [vmem:[%s24663_s1 + $0xc64] sm:$0xf0] }
 0x181   : > { %3344 = vmatpush.bf16.msrb.mxu3 %v11734_v29  ;;  %v16286_v29 = vld [vmem:[%s24663_s1 + $0xd64] sm:$0xf0]  ;;  %v11978_v36 = vor.u32 %v16254_v24, %v11977_v23  ;;  %v12137_v23 = vld [vmem:[%s24663_s1 + $0xda0] sm:$0xf] }
 0x182   : > { %3306 = vmatpush.bf16.msrb.mxu0 %v11534_v48  ;;  %v12106_v30 = vor.u32 %v16286_v29, %v12105_v28  ;;  %v12033_v48 = vld [vmem:[%s24663_s1 + $0xcd0] sm:$0xf]  ;;  %v16294_v24 = vld [vmem:[%s24663_s1 + $0xda4] sm:$0xf0]  ;;  %v16244_v28 = vld [vmem:[%s24663_s1 + $0xc14] sm:$0xf0] }
 0x183   : > { %3319 = vmatpush.bf16.msrb.mxu1 %v11598_v58  ;;  %v16268_v58 = vld [vmem:[%s24663_s1 + $0xcd4] sm:$0xf0] }
 0x184   : > { %3332 = vmatpush.bf16.msrb.mxu2 %v11662_v59  ;;  %v12097_v59 = vld [vmem:[%s24663_s1 + $0xd50] sm:$0xf]  ;;  %v12034_v2 = vor.u32 %v16268_v58, %v12033_v48  ;;  %v12138_v48 = vor.u32 %v16294_v24, %v12137_v23  ;;  %v12361_v24 = vld [vmem:[%s24663_s1 + $0xf60] sm:$0xf] }
 0x185   : > { %3345 = vmatpush.bf16.msrb.mxu3 %v11726_v3  ;;  %v12098_v3 = vor.u32 %v16284_v62, %v12097_v59  ;;  %v12129_v58 = vld [vmem:[%s24663_s1 + $0xd90] sm:$0xf]  ;;  %v16292_v59 = vld [vmem:[%s24663_s1 + $0xd94] sm:$0xf0]  ;;  %v11929_v62 = vld [vmem:[%s24663_s1 + $0xc00] sm:$0xf] }
 0x186   : > { %3307 = vmatpush.bf16.msrb.mxu0 %v11526_v5  ;;  %v16298_v5 = vld [vmem:[%s24663_s1 + $0xdc4] sm:$0xf0] }
 0x187   : > { %3320 = vmatpush.bf16.msrb.mxu1 %v11590_v40  ;;  %v12154_v11 = vor.u32 %v16298_v5, %v12153_v8  ;;  %v11905_v8 = vld [vmem:[%s17410_s6 + $0x8] sm:$0xc]  ;;  %v16238_v5 = vld [vmem:[%s17410_s6 + $0x24] sm:$0x30] }
 0x188   : > { %3333 = vmatpush.bf16.msrb.mxu2 %v11654_v42  ;;  %v12090_v42 = vor.u32 %v16282_v0, %v12089_v63  ;;  %v16320_v63 = vld [vmem:[%s24663_s1 + $0xe74] sm:$0xf0]  ;;  %v11906_v50 = vor.u32 %v16238_v5, %v11905_v8  ;;  %v12409_v8 = vld [vmem:[%s24663_s1 + $0xfc0] sm:$0xf]  ;;  %v16362_v5 = vld [vmem:[%s24663_s1 + $0xfc4] sm:$0xf0] }
 0x189   : > { %3346 = vmatpush.bf16.msrb.mxu3 %v11718_v10  ;;  %v12017_v10 = vld [vmem:[%s24663_s1 + $0xcb0] sm:$0xf] }
 0x18a   : > { %3308 = vmatpush.bf16.msrb.mxu0 %v11518_v53  ;;  %v2271_v41 = vpop.f32.mrf.mxu0  ;;  %v12018_v53 = vor.u32 %v16264_v44, %v12017_v10  ;;  %v11899_v10 = vld [vmem:[%s17410_s6 + $0x20] sm:$0x30] }
 0x18b   : > { %3321 = vmatpush.bf16.msrb.mxu1 %v11582_v17  ;;  %v2272_v6 = vadd.f32 %v2271_v41, %v19553_v49  ;;  %v2284_v43 = vpop.f32.mrf.mxu1  ;;  %v12081_v49 = vld [vmem:[%s24663_s1 + $0xd30] sm:$0xf]  ;;  %v16246_v17 = vld [vmem:[%s24663_s1 + $0xc24] sm:$0xf0]  ;;  %v12130_v41 = vor.u32 %v16292_v59, %v12129_v58  ;;  %v16332_v59 = vld [vmem:[%s24663_s1 + $0xed4] sm:$0xf0] }
 0x18c   : > { %3334 = vmatpush.bf16.msrb.mxu2 %v11646_v18  ;;  %v12082_v54 = vor.u32 %v16280_v12, %v12081_v49  ;;  %v12009_v18 = vld [vmem:[%s24663_s1 + $0xca0] sm:$0xf]  ;;  %v16336_v49 = vld [vmem:[%s24663_s1 + $0xef4] sm:$0xf0]  ;;  %v12369_v12 = vld [vmem:[%s24663_s1 + $0xf70] sm:$0xf] }
 0x18d   : > { %3347 = vmatpush.bf16.msrb.mxu3 %v11710_v20  ;;  %3309 = vmatmul.bf16.vlgmr.msrb.gmra.mxu0 %v19241_v51  ;;  %v11961_v51 = vld [vmem:[%s24663_s1 + $0xc40] sm:$0xf]  ;;  %v2285_v13 = vadd.f32 %v2284_v43, %v2272_v6  ;;  %v16234_v6 = vld [vmem:[%s17410_s6 + $0xc] sm:$0xc]  ;;  %v11907_v43 = vld [vmem:[%s17410_s6 + $0x28] sm:$0x30] }
 0x18e   : > { %4184 = vmatpush.bf16.msra.mxu0 %v11986_v21  ;;  %3322 = vmatmul.bf16.vlgmr.msrb.gmra.mxu1 %v19251_v61  ;;  %v16266_v61 = vld [vmem:[%s24663_s1 + $0xcc4] sm:$0xf0] }
 0x18f   : > { %4197 = vmatpush.bf16.msra.mxu1 %v12050_v22  ;;  %3335 = vmatmul.bf16.vlgmr.msrb.gmra.mxu2 %v19233_v46  ;;  %v12161_v46 = vld [vmem:[%s24663_s1 + $0xdd0] sm:$0xf]  ;;  %v12026_v40 = vor.u32 %v16266_v61, %v12025_v4  ;;  %v16262_v21 = vld [vmem:[%s24663_s1 + $0xca4] sm:$0xf0]  ;;  %v12073_v22 = vld [vmem:[%s24663_s1 + $0xd20] sm:$0xf] }
 0x190   : > { %4210 = vmatpush.bf16.msra.mxu2 %v12114_v34  ;;  %3348 = vmatmul.bf16.vlgmr.msrb.gmra.mxu3 %v19243_v52  ;;  %v16250_v52 = vld [vmem:[%s24663_s1 + $0xc44] sm:$0xf0]  ;;  %v12162_v38 = vor.u32 %v16300_v1, %v12161_v46  ;;  %v12010_v33 = vor.u32 %v16262_v21, %v12009_v18  ;;  %v11993_v46 = vld [vmem:[%s24663_s1 + $0xc80] sm:$0xf]  ;;  %v11938_v1 = vor.u32 %v16244_v28, %v11937_v27  ;;  %v12241_v61 = vld [vmem:[%s24663_s1 + $0xe70] sm:$0xf] }
 0x191   : > { %4223 = vmatpush.bf16.msra.mxu3 %v12178_v26  ;;  %v11962_v9 = vor.u32 %v16250_v52, %v11961_v51  ;;  %v16278_v34 = vld [vmem:[%s24663_s1 + $0xd24] sm:$0xf0]  ;;  %v11946_v26 = vor.u32 %v16246_v17, %v11945_v16  ;;  %v12121_v4 = vld [vmem:[%s24663_s1 + $0xd80] sm:$0xf]  ;;  %v12242_v17 = vor.u32 %v16320_v63, %v12241_v61 }
 0x192   : > { %4185 = vmatpush.bf16.msra.mxu0 %v11978_v36  ;;  %v2297_v56 = vpop.f32.mrf.mxu2  ;;  %v2273_v29 = vpop.f32.mrf.mxu0  ;;  %v12074_v35 = vor.u32 %v16278_v34, %v12073_v22  ;;  %v12001_v36 = vld [vmem:[%s24663_s1 + $0xc90] sm:$0xf]  ;;  %v12233_v18 = vld [vmem:[%s24663_s1 + $0xe60] sm:$0xf]  ;;  %v16318_v21 = vld [vmem:[%s24663_s1 + $0xe64] sm:$0xf0] }
 0x193   : > { %4198 = vmatpush.bf16.msra.mxu1 %v12042_v37  ;;  %v2298_v60 = vadd.f32 %v2297_v56, %v2285_v13  ;;  %v2310_v20 = vpop.f32.mrf.mxu3  ;;  %v16260_v37 = vld [vmem:[%s24663_s1 + $0xc94] sm:$0xf0]  ;;  %v2286_v39 = vpop.f32.mrf.mxu1  ;;  %v11910_v56 = vor.u32 %v16234_v6, %v11907_v43  ;;  %v12297_v22 = vld [vmem:[%s24663_s1 + $0xee0] sm:$0xf]  ;;  %v16334_v34 = vld [vmem:[%s24663_s1 + $0xee4] sm:$0xf0] }
 0x194   : > { %4211 = vmatpush.bf16.msra.mxu2 %v12106_v30  ;;  %v12065_v30 = vld [vmem:[%s24663_s1 + $0xd10] sm:$0xf]  ;;  %v12002_v51 = vor.u32 %v16260_v37, %v12001_v36  ;;  %v16352_v13 = vld [vmem:[%s24663_s1 + $0xf74] sm:$0xf0]  ;;  %v12425_v27 = vld [vmem:[%s24663_s1 + $0xfe0] sm:$0xf]  ;;  %v12298_v37 = vor.u32 %v16334_v34, %v12297_v22 }
 0x195   : > { %4224 = vmatpush.bf16.msra.mxu3 %v12170_v55  ;;  %v2311_v25 = vadd.f32 %v2310_v20, %v2298_v60  ;;  %v16276_v55 = vld [vmem:[%s24663_s1 + $0xd14] sm:$0xf0]  ;;  %v12306_v60 = vor.u32 %v16336_v49, %v12305_v45  ;;  %v12370_v20 = vor.u32 %v16352_v13, %v12369_v12  ;;  %v16366_v28 = vld [vmem:[%s24663_s1 + $0xfe4] sm:$0xf0]  ;;  %v12225_v39 = vld [vmem:[%s24663_s1 + $0xe50] sm:$0xf] }
 0x196   : > { %4186 = vmatpush.bf16.msra.mxu0 %v11970_v57  ;;  %v16258_v57 = vld [vmem:[%s24663_s1 + $0xc84] sm:$0xf0]  ;;  %v12066_v52 = vor.u32 %v16276_v55, %v12065_v30  ;;  %v12289_v55 = vld [vmem:[%s24663_s1 + $0xed0] sm:$0xf]  ;;  %v12426_v58 = vor.u32 %v16366_v28, %v12425_v27  ;;  %v12345_v63 = vld [vmem:[%s24663_s1 + $0xf40] sm:$0xf] }
 0x197   : > { %4199 = vmatpush.bf16.msra.mxu1 %v12034_v2  ;;  %v19768_v32 = vadd.f32 %v2311_v25, %v18925_v31  ;;  %v16242_v31 = vld [vmem:[%s24663_s1 + $0xc04] sm:$0xf0]  ;;  %v12057_v2 = vld [vmem:[%s24663_s1 + $0xd00] sm:$0xf]  ;;  %v11994_v44 = vor.u32 %v16258_v57, %v11993_v46  ;;  %v12417_v46 = vld [vmem:[%s24663_s1 + $0xfd0] sm:$0xf] }
 0x198   : > { %4212 = vmatpush.bf16.msra.mxu2 %v12098_v3  ;;  %v16274_v3 = vld [vmem:[%s24663_s1 + $0xd04] sm:$0xf0]  ;;  %v12209_v6 = vld [vmem:[%s24663_s1 + $0xe30] sm:$0xf]  ;;  %v16312_v43 = vld [vmem:[%s24663_s1 + $0xe34] sm:$0xf0] }
 0x199   : > { %4225 = vmatpush.bf16.msra.mxu3 %v12162_v38  ;;  %v16290_v38 = vld [vmem:[%s24663_s1 + $0xd84] sm:$0xf0]  ;;  %v12058_v14 = vor.u32 %v16274_v3, %v12057_v2  ;;  %v12290_v2 = vor.u32 %v16332_v59, %v12289_v55  ;;  %v12273_v45 = vld [vmem:[%s24663_s1 + $0xeb0] sm:$0xf]  ;;  %v16344_v49 = vld [vmem:[%s24663_s1 + $0xf34] sm:$0xf0] }
 0x19a   : > { %4187 = vmatpush.bf16.msra.mxu0 %v11962_v9  ;;  %v2299_v0 = vpop.f32.mrf.mxu2  ;;  %v11897_v9 = vld [vmem:[%s17410_s6] sm:$0xc]  ;;  %v12122_v16 = vor.u32 %v16290_v38, %v12121_v4  ;;  %v16350_v25 = vld [vmem:[%s24663_s1 + $0xf64] sm:$0xf0]  ;;  %v12401_v13 = vld [vmem:[%s24663_s1 + $0xfb0] sm:$0xf] }
 0x19b   : > { %4200 = vmatpush.bf16.msra.mxu1 %v12026_v40  ;;  %v2312_v40 = vpop.f32.mrf.mxu3  ;;  %v12362_v30 = vor.u32 %v16350_v25, %v12361_v24  ;;  %v12281_v4 = vld [vmem:[%s24663_s1 + $0xec0] sm:$0xf]  ;;  %v16330_v61 = vld [vmem:[%s24663_s1 + $0xec4] sm:$0xf0]  ;;  %v12193_v25 = vld [vmem:[%s24663_s1 + $0xe10] sm:$0xf] }
 0x19c   : > { %4213 = vmatpush.bf16.msra.mxu2 %v12090_v42  ;;  %v16237_v42 = vld [vmem:[%s17410_s6 + $0x1c] sm:$0x30]  ;;  %v16346_v0 = vld [vmem:[%s24663_s1 + $0xf44] sm:$0xf0]  ;;  %v12282_v40 = vor.u32 %v16330_v61, %v12281_v4  ;;  %v16308_v27 = vld [vmem:[%s24663_s1 + $0xe14] sm:$0xf0] }
 0x19d   : > { %4226 = vmatpush.bf16.msra.mxu3 %v12154_v11  ;;  %v11930_v11 = vor.u32 %v16242_v31, %v11929_v62  ;;  %v12353_v62 = vld [vmem:[%s24663_s1 + $0xf50] sm:$0xf]  ;;  %v16348_v31 = vld [vmem:[%s24663_s1 + $0xf54] sm:$0xf0]  ;;  %v12393_v34 = vld [vmem:[%s24663_s1 + $0xfa0] sm:$0xf] }
 0x19e   : > { %4188 = vmatpush.bf16.msra.mxu0 %v11954_v15  ;;  %v12433_v15 = vld [vmem:[%s24663_s1 + $0xff0] sm:$0xf]  ;;  %v12354_v3 = vor.u32 %v16348_v31, %v12353_v62  ;;  %v16340_v62 = vld [vmem:[%s24663_s1 + $0xf14] sm:$0xf0]  ;;  %v16338_v4 = vld [vmem:[%s24663_s1 + $0xf04] sm:$0xf0] }
 0x19f   : > { %4201 = vmatpush.bf16.msra.mxu1 %v12018_v53  ;;  %v16368_v53 = vld [vmem:[%s24663_s1 + $0xff4] sm:$0xf0]  ;;  %v12321_v55 = vld [vmem:[%s24663_s1 + $0xf10] sm:$0xf] }
 0x1a0   : > { %4214 = vmatpush.bf16.msra.mxu2 %v12082_v54  ;;  %v11898_v54 = vor.u32 %v16237_v42, %v11897_v9  ;;  %v12434_v23 = vor.u32 %v16368_v53, %v12433_v15  ;;  %v12346_v42 = vor.u32 %v16346_v0, %v12345_v63  ;;  %v12385_v31 = vld [vmem:[%s24663_s1 + $0xf90] sm:$0xf]  ;;  %v12322_v61 = vor.u32 %v16340_v62, %v12321_v55  ;;  %v12377_v63 = vld [vmem:[%s24663_s1 + $0xf80] sm:$0xf]  ;;  %v16354_v0 = vld [vmem:[%s24663_s1 + $0xf84] sm:$0xf0] }
 0x1a1   : > { %4227 = vmatpush.bf16.msra.mxu3 %v12146_v19  ;;  %v11902_v19 = vor.u32 %v16233_v47, %v11899_v10  ;;  %v12410_v10 = vor.u32 %v16362_v5, %v12409_v8  ;;  %v16255_v8 = vld [vmem:[%s24663_s1 + $0xc74] sm:$0xf]  ;;  %v11987_v5 = vld [vmem:[%s24663_s1 + $0xc78] sm:$0xf0]  ;;  %v16301_v55 = vld [vmem:[%s24663_s1 + $0xde4] sm:$0xf] }
 0x1a2   : > { %4189 = vmatpush.bf16.msra.mxu0 %v11946_v26  ;;  %v19853_v26 = vrot.slane %v11906_v50, 2  ;;  %v19861_v29 = vrot.slane %v11898_v54, 2  ;;  %v16360_v50 = vld [vmem:[%s24663_s1 + $0xfb4] sm:$0xf0]  ;;  %v12201_v54 = vld [vmem:[%s24663_s1 + $0xe20] sm:$0xf] }
 0x1a3   : > { %4202 = vmatpush.bf16.msra.mxu1 %v12010_v33  ;;  %v19863_v33 = vrot.slane %v11910_v56, 2  ;;  %v19865_v36 = vrot.slane %v11902_v19, 2  ;;  %v16310_v56 = vld [vmem:[%s24663_s1 + $0xe24] sm:$0xf0] }
 0x1a4   : > { %4215 = vmatpush.bf16.msra.mxu2 %v12074_v35  ;;  %v12234_v35 = vor.u32 %v16318_v21, %v12233_v18  ;;  %v12402_v18 = vor.u32 %v16360_v50, %v12401_v13  ;;  %v16326_v19 = vld [vmem:[%s24663_s1 + $0xea4] sm:$0xf0]  ;;  %v12202_v24 = vor.u32 %v16310_v56, %v12201_v54  ;;  %v12051_v50 = vld [vmem:[%s24663_s1 + $0xcf8] sm:$0xf0]  ;;  %v16303_v56 = vld [vmem:[%s24663_s1 + $0xdf4] sm:$0xf] }
 0x1a5   : > { %4228 = vmatpush.bf16.msra.mxu3 %v12138_v48  ;;  %v16316_v48 = vld [vmem:[%s24663_s1 + $0xe54] sm:$0xf0] }
 0x1a6   : > { %4190 = vmatpush.bf16.msra.mxu0 %v11938_v1  ;;  %v16364_v1 = vld [vmem:[%s24663_s1 + $0xfd4] sm:$0xf0]  ;;  %v12226_v57 = vor.u32 %v16316_v48, %v12225_v39  ;;  %v12257_v39 = vld [vmem:[%s24663_s1 + $0xe90] sm:$0xf] }
 0x1a7   : > { %4203 = vmatpush.bf16.msra.mxu1 %v12002_v51  ;;  %v12217_v51 = vld [vmem:[%s24663_s1 + $0xe40] sm:$0xf]  ;;  %v12418_v38 = vor.u32 %v16364_v1, %v12417_v46  ;;  %v16324_v48 = vld [vmem:[%s24663_s1 + $0xe94] sm:$0xf0] }
 0x1a8   : > { %4216 = vmatpush.bf16.msra.mxu2 %v12066_v52  ;;  %v16314_v52 = vld [vmem:[%s24663_s1 + $0xe44] sm:$0xf0]  ;;  %v16356_v46 = vld [vmem:[%s24663_s1 + $0xf94] sm:$0xf0]  ;;  %v12185_v1 = vld [vmem:[%s24663_s1 + $0xe00] sm:$0xf] }
 0x1a9   : > { %4229 = vmatpush.bf16.msra.mxu3 %v12130_v41  ;;  %v12218_v9 = vor.u32 %v16314_v52, %v12217_v51  ;;  %v16322_v51 = vld [vmem:[%s24663_s1 + $0xe84] sm:$0xf0]  ;;  %v12313_v52 = vld [vmem:[%s24663_s1 + $0xf00] sm:$0xf] }
 0x1aa   : > { %4191 = vmatpush.bf16.msra.mxu0 %v11930_v11  ;;  %v3154_v41 = vpop.f32.mrf.mxu0  ;;  %v16328_v11 = vld [vmem:[%s24663_s1 + $0xeb4] sm:$0xf0]  ;;  %v12314_v54 = vor.u32 %v16338_v4, %v12313_v52  ;;  %v16283_v52 = vld [vmem:[%s24663_s1 + $0xd54] sm:$0xf]  ;;  %v12099_v4 = vld [vmem:[%s24663_s1 + $0xd58] sm:$0xf0] }
 0x1ab   : > { %4204 = vmatpush.bf16.msra.mxu1 %v11994_v44  ;;  %v3167_v47 = vpop.f32.mrf.mxu1  ;;  %v12337_v44 = vld [vmem:[%s24663_s1 + $0xf30] sm:$0xf]  ;;  %v12274_v15 = vor.u32 %v16328_v11, %v12273_v45  ;;  %v16236_v45 = vld [vmem:[%s17410_s6 + $0x1c] sm:$0xc]  ;;  %v16271_v11 = vld [vmem:[%s24663_s1 + $0xcf4] sm:$0xf] }
 0x1ac   : > { %4217 = vmatpush.bf16.msra.mxu2 %v12058_v14  ;;  %v3168_v12 = vadd.f32 %v3167_v47, %v3154_v41  ;;  %v12210_v14 = vor.u32 %v16312_v43, %v12209_v6  ;;  %v12338_v53 = vor.u32 %v16344_v49, %v12337_v44  ;;  %v16240_v41 = vld [vmem:[%s17410_s6 + $0x34] sm:$0x30]  ;;  %v12386_v6 = vor.u32 %v16356_v46, %v12385_v31  ;;  %v16239_v43 = vld [vmem:[%s17410_s6 + $0x2c] sm:$0x30]  ;;  %v11923_v47 = vld [vmem:[%s17410_s6 + $0x38] sm:$0x30] }
 0x1ad   : > { %4230 = vmatpush.bf16.msra.mxu3 %v12122_v16  ;;  %4192 = vmatmul.bf16.vlgmr.msra.gmra.mxu0 %v19861_v29  ;;  %v12265_v16 = vld [vmem:[%s24663_s1 + $0xea0] sm:$0xf]  ;;  %v16235_v44 = vld [vmem:[%s17410_s6 + $0x14] sm:$0xc]  ;;  %v11915_v49 = vld [vmem:[%s17410_s6 + $0x30] sm:$0x30] }
 0x1ae   : > { %4236 = vmatpush.bf16.msrb.mxu0 %v12242_v17  ;;  %4205 = vmatmul.bf16.vlgmr.msra.gmra.mxu1 %v19865_v36 }
 0x1af   : > { %4249 = vmatpush.bf16.msrb.mxu1 %v12306_v60  ;;  %4218 = vmatmul.bf16.vlgmr.msra.gmra.mxu2 %v19853_v26  ;;  %v12329_v60 = vld [vmem:[%s24663_s1 + $0xf20] sm:$0xf] }
 0x1b0   : > { %4262 = vmatpush.bf16.msrb.mxu2 %v12370_v20  ;;  %4231 = vmatmul.bf16.vlgmr.msra.gmra.mxu3 %v19863_v33  ;;  %v16342_v20 = vld [vmem:[%s24663_s1 + $0xf24] sm:$0xf0] }
 0x1b1   : > { %4275 = vmatpush.bf16.msrb.mxu3 %v12434_v23  ;;  %v16358_v23 = vld [vmem:[%s24663_s1 + $0xfa4] sm:$0xf0] }
 0x1b2   : > { %4237 = vmatpush.bf16.msrb.mxu0 %v12234_v35  ;;  %v3180_v17 = vpop.f32.mrf.mxu2  ;;  %v3156_v35 = vpop.f32.mrf.mxu0  ;;  %v12394_v59 = vor.u32 %v16358_v23, %v12393_v34  ;;  %v11979_v23 = vld [vmem:[%s24663_s1 + $0xc68] sm:$0xf0] }
 0x1b3   : > { %4250 = vmatpush.bf16.msrb.mxu1 %v12298_v37  ;;  %v3181_v21 = vadd.f32 %v3180_v17, %v3168_v12  ;;  %v3193_v22 = vpop.f32.mrf.mxu3  ;;  %v12266_v37 = vor.u32 %v16326_v19, %v12265_v16  ;;  %v12179_v16 = vld [vmem:[%s24663_s1 + $0xdf8] sm:$0xf0]  ;;  %v12378_v19 = vor.u32 %v16354_v0, %v12377_v63 }
 0x1b4   : > { %4263 = vmatpush.bf16.msrb.mxu2 %v12362_v30  ;;  %v12330_v30 = vor.u32 %v16342_v20, %v12329_v60  ;;  %v11990_v60 = vor.u32 %v16255_v8, %v11987_v5  ;;  %v16253_v20 = vld [vmem:[%s24663_s1 + $0xc64] sm:$0xf]  ;;  %v12102_v8 = vor.u32 %v16283_v52, %v12099_v4  ;;  %v16259_v52 = vld [vmem:[%s24663_s1 + $0xc94] sm:$0xf] }
 0x1b5   : > { %4276 = vmatpush.bf16.msrb.mxu3 %v12426_v58  ;;  %v19973_v28 = vadd.f32 %v3193_v22, %v3181_v21  ;;  %v3169_v58 = vpop.f32.mrf.mxu1  ;;  %v11918_v21 = vor.u32 %v16235_v44, %v11915_v49  ;;  %v12054_v22 = vor.u32 %v16271_v11, %v12051_v50  ;;  %v16249_v5 = vld [vmem:[%s24663_s1 + $0xc44] sm:$0xf]  ;;  %v16247_v50 = vld [vmem:[%s24663_s1 + $0xc34] sm:$0xf] }
 0x1b6   : > { %4238 = vmatpush.bf16.msrb.mxu0 %v12226_v57  ;;  %v16306_v57 = vld [vmem:[%s24663_s1 + $0xe04] sm:$0xf0]  ;;  %v12171_v58 = vld [vmem:[%s24663_s1 + $0xde8] sm:$0xf0] }
 0x1b7   : > { %4251 = vmatpush.bf16.msrb.mxu1 %v12290_v2  ;;  %v12249_v2 = vld [vmem:[%s24663_s1 + $0xe80] sm:$0xf]  ;;  %v12186_v12 = vor.u32 %v16306_v57, %v12185_v1  ;;  %v20079_v62 = vrot.slane %v11918_v21, 2  ;;  %v16251_v1 = vld [vmem:[%s24663_s1 + $0xc54] sm:$0xf] }
 0x1b8   : > { %4264 = vmatpush.bf16.msrb.mxu2 %v12354_v3  ;;  %v12194_v3 = vor.u32 %v16308_v27, %v12193_v25  ;;  %v12250_v13 = vor.u32 %v16322_v51, %v12249_v2  ;;  %v12043_v25 = vld [vmem:[%s24663_s1 + $0xce8] sm:$0xf0]  ;;  %v12182_v27 = vor.u32 %v16303_v56, %v12179_v16  ;;  %v11971_v57 = vld [vmem:[%s24663_s1 + $0xc58] sm:$0xf0]  ;;  %v16267_v2 = vld [vmem:[%s24663_s1 + $0xcd4] sm:$0xf] }
 0x1b9   : > { %4277 = vmatpush.bf16.msrb.mxu3 %v12418_v38  ;;  %v12258_v38 = vor.u32 %v16324_v48, %v12257_v39  ;;  %v12035_v51 = vld [vmem:[%s24663_s1 + $0xcd8] sm:$0xf0]  ;;  %v11974_v63 = vor.u32 %v16251_v1, %v11971_v57 }
 0x1ba   : > { %4239 = vmatpush.bf16.msrb.mxu0 %v12218_v9  ;;  %v11921_v9 = vld [vmem:[%s17410_s6 + $0x18] sm:$0xc]  ;;  %v12038_v0 = vor.u32 %v16267_v2, %v12035_v51  ;;  %v12083_v56 = vld [vmem:[%s24663_s1 + $0xd38] sm:$0xf0] }
 0x1bb   : > { %4252 = vmatpush.bf16.msrb.mxu1 %v12282_v40  ;;  %v11913_v40 = vld [vmem:[%s17410_s6 + $0x10] sm:$0xc]  ;;  %v11939_v51 = vld [vmem:[%s24663_s1 + $0xc18] sm:$0xf0] }
 0x1bc   : > { %4265 = vmatpush.bf16.msrb.mxu2 %v12346_v42  ;;  %v3182_v42 = vpop.f32.mrf.mxu2  ;;  %v11914_v17 = vor.u32 %v16239_v43, %v11913_v40  ;;  %v12091_v43 = vld [vmem:[%s24663_s1 + $0xd48] sm:$0xf0] }
 0x1bd   : > { %4278 = vmatpush.bf16.msrb.mxu3 %v12410_v10  ;;  %v3195_v10 = vpop.f32.mrf.mxu3  ;;  %v12027_v42 = vld [vmem:[%s24663_s1 + $0xcc8] sm:$0xf0] }
 0x1be   : > { %4240 = vmatpush.bf16.msrb.mxu0 %v12210_v14  ;;  %v16287_v14 = vld [vmem:[%s24663_s1 + $0xd74] sm:$0xf]  ;;  %v20069_v39 = vrot.slane %v11914_v17, 2 }
 0x1bf   : > { %4253 = vmatpush.bf16.msrb.mxu1 %v12274_v15  ;;  %v12115_v15 = vld [vmem:[%s24663_s1 + $0xd78] sm:$0xf0]  ;;  %v16295_v17 = vld [vmem:[%s24663_s1 + $0xdb4] sm:$0xf] }
 0x1c0   : > { %4266 = vmatpush.bf16.msrb.mxu2 %v12338_v53  ;;  %v11922_v53 = vor.u32 %v16240_v41, %v11921_v9  ;;  %v12118_v34 = vor.u32 %v16287_v14, %v12115_v15  ;;  %v11963_v9 = vld [vmem:[%s24663_s1 + $0xc48] sm:$0xf0]  ;;  %v16265_v41 = vld [vmem:[%s24663_s1 + $0xcc4] sm:$0xf]  ;;  %v11955_v14 = vld [vmem:[%s24663_s1 + $0xc38] sm:$0xf0] }
 0x1c1   : > { %4279 = vmatpush.bf16.msrb.mxu3 %v12402_v18  ;;  %v11926_v18 = vor.u32 %v16236_v45, %v11923_v47  ;;  %v16297_v45 = vld [vmem:[%s24663_s1 + $0xdc4] sm:$0xf]  ;;  %v12155_v47 = vld [vmem:[%s24663_s1 + $0xdc8] sm:$0xf0]  ;;  %v11966_v10 = vor.u32 %v16249_v5, %v11963_v9  ;;  %v12030_v44 = vor.u32 %v16265_v41, %v12027_v42  ;;  %v16263_v15 = vld [vmem:[%s24663_s1 + $0xcb4] sm:$0xf] }
 0x1c2   : > { %4241 = vmatpush.bf16.msrb.mxu0 %v12202_v24  ;;  %v16269_v24 = vld [vmem:[%s24663_s1 + $0xce4] sm:$0xf]  ;;  %v20061_v35 = vrot.slane %v11922_v53, 2  ;;  %v12158_v53 = vor.u32 %v16297_v45, %v12155_v47  ;;  %v16291_v5 = vld [vmem:[%s24663_s1 + $0xd94] sm:$0xf] }
 0x1c3   : > { %4254 = vmatpush.bf16.msrb.mxu1 %v12266_v37  ;;  %v16285_v37 = vld [vmem:[%s24663_s1 + $0xd64] sm:$0xf]  ;;  %v20071_v48 = vrot.slane %v11926_v18, 2  ;;  %v12046_v31 = vor.u32 %v16269_v24, %v12043_v25  ;;  %v12147_v18 = vld [vmem:[%s24663_s1 + $0xdb8] sm:$0xf0] }
 0x1c4   : > { %4267 = vmatpush.bf16.msrb.mxu2 %v12330_v30  ;;  %v12107_v30 = vld [vmem:[%s24663_s1 + $0xd68] sm:$0xf0]  ;;  %v12150_v24 = vor.u32 %v16295_v17, %v12147_v18  ;;  %v16241_v41 = vld [vmem:[%s24663_s1 + $0xc04] sm:$0xf]  ;;  %v16367_v18 = vld [vmem:[%s24663_s1 + $0xff4] sm:$0xf] }
 0x1c5   : > { %4280 = vmatpush.bf16.msrb.mxu3 %v12394_v59  ;;  %v11982_v59 = vor.u32 %v16253_v20, %v11979_v23  ;;  %v12110_v46 = vor.u32 %v16285_v37, %v12107_v30  ;;  %v16261_v23 = vld [vmem:[%s24663_s1 + $0xca4] sm:$0xf]  ;;  %v12011_v37 = vld [vmem:[%s24663_s1 + $0xca8] sm:$0xf0] }
 0x1c6   : > { %4242 = vmatpush.bf16.msrb.mxu0 %v12194_v3  ;;  %v12174_v3 = vor.u32 %v16301_v55, %v12171_v58  ;;  %v16277_v30 = vld [vmem:[%s24663_s1 + $0xd24] sm:$0xf]  ;;  %v12075_v55 = vld [vmem:[%s24663_s1 + $0xd28] sm:$0xf0]  ;;  %v12014_v57 = vor.u32 %v16261_v23, %v12011_v37 }
 0x1c7   : > { %4255 = vmatpush.bf16.msrb.mxu1 %v12258_v38  ;;  %v16299_v38 = vld [vmem:[%s24663_s1 + $0xdd4] sm:$0xf]  ;;  %v16293_v58 = vld [vmem:[%s24663_s1 + $0xda4] sm:$0xf]  ;;  %v12078_v2 = vor.u32 %v16277_v30, %v12075_v55  ;;  %v11995_v45 = vld [vmem:[%s24663_s1 + $0xc88] sm:$0xf0] }
 0x1c8   : > { %4268 = vmatpush.bf16.msrb.mxu2 %v12322_v61  ;;  %v12163_v61 = vld [vmem:[%s24663_s1 + $0xdd8] sm:$0xf0]  ;;  %v16273_v47 = vld [vmem:[%s24663_s1 + $0xd04] sm:$0xf]  ;;  %v12235_v23 = vld [vmem:[%s24663_s1 + $0xe68] sm:$0xf0] }
 0x1c9   : > { %4281 = vmatpush.bf16.msrb.mxu3 %v12386_v6  ;;  %v12166_v40 = vor.u32 %v16299_v38, %v12163_v61  ;;  %v16281_v6 = vld [vmem:[%s24663_s1 + $0xd44] sm:$0xf]  ;;  %v12363_v30 = vld [vmem:[%s24663_s1 + $0xf68] sm:$0xf0] }
 0x1ca   : > { %4243 = vmatpush.bf16.msrb.mxu0 %v12186_v12  ;;  %v3206_v11 = vpop.f32.mrf.mxu0  ;;  %v12094_v49 = vor.u32 %v16281_v6, %v12091_v43  ;;  %v16257_v43 = vld [vmem:[%s24663_s1 + $0xc84] sm:$0xf] }
 0x1cb   : > { %4256 = vmatpush.bf16.msrb.mxu1 %v12250_v13  ;;  %v3207_v12 = vadd.f32 %v3206_v11, %v19973_v28  ;;  %v3219_v13 = vpop.f32.mrf.mxu1  ;;  %v16279_v28 = vld [vmem:[%s24663_s1 + $0xd34] sm:$0xf]  ;;  %v16349_v37 = vld [vmem:[%s24663_s1 + $0xf64] sm:$0xf] }
 0x1cc   : > { %4269 = vmatpush.bf16.msrb.mxu2 %v12314_v54  ;;  %v12019_v54 = vld [vmem:[%s24663_s1 + $0xcb8] sm:$0xf0]  ;;  %v12086_v20 = vor.u32 %v16279_v28, %v12083_v56  ;;  %v16351_v28 = vld [vmem:[%s24663_s1 + $0xf74] sm:$0xf]  ;;  %v16365_v55 = vld [vmem:[%s24663_s1 + $0xfe4] sm:$0xf] }
 0x1cd   : > { %4282 = vmatpush.bf16.msrb.mxu3 %v12378_v19  ;;  %4244 = vmatmul.bf16.vlgmr.msrb.gmra.mxu0 %v20069_v39  ;;  %v3220_v16 = vadd.f32 %v3219_v13, %v3207_v12  ;;  %v11958_v19 = vor.u32 %v16247_v50, %v11955_v14  ;;  %v12123_v12 = vld [vmem:[%s24663_s1 + $0xd88] sm:$0xf0]  ;;  %v16319_v50 = vld [vmem:[%s24663_s1 + $0xe74] sm:$0xf]  ;;  %v12243_v14 = vld [vmem:[%s24663_s1 + $0xe78] sm:$0xf0] }
 0x1ce   : > { %4288 = vmatpush.bf16.msra.mxu0 %v11990_v60  ;;  %4257 = vmatmul.bf16.vlgmr.msrb.gmra.mxu1 %v20079_v62  ;;  %v12022_v60 = vor.u32 %v16263_v15, %v12019_v54  ;;  %v16335_v15 = vld [vmem:[%s24663_s1 + $0xef4] sm:$0xf]  ;;  %v12307_v54 = vld [vmem:[%s24663_s1 + $0xef8] sm:$0xf0] }
 0x1cf   : > { %4301 = vmatpush.bf16.msra.mxu1 %v12054_v22  ;;  %4270 = vmatmul.bf16.vlgmr.msrb.gmra.mxu2 %v20061_v35  ;;  %v16245_v22 = vld [vmem:[%s24663_s1 + $0xc24] sm:$0xf]  ;;  %v12371_v56 = vld [vmem:[%s24663_s1 + $0xf78] sm:$0xf0] }
 0x1d0   : > { %4314 = vmatpush.bf16.msra.mxu2 %v12118_v34  ;;  %4283 = vmatmul.bf16.vlgmr.msrb.gmra.mxu3 %v20071_v48  ;;  %v11947_v34 = vld [vmem:[%s24663_s1 + $0xc28] sm:$0xf0] }
 0x1d1   : > { %4327 = vmatpush.bf16.msra.mxu3 %v12182_v27 }
 0x1d2   : > { %4289 = vmatpush.bf16.msra.mxu0 %v11982_v59  ;;  %v3232_v21 = vpop.f32.mrf.mxu2  ;;  %v12139_v59 = vld [vmem:[%s24663_s1 + $0xda8] sm:$0xf0]  ;;  %v3208_v1 = vpop.f32.mrf.mxu0 }
 0x1d3   : > { %4302 = vmatpush.bf16.msra.mxu1 %v12046_v31  ;;  %v3233_v25 = vadd.f32 %v3232_v21, %v3220_v16  ;;  %v3245_v27 = vpop.f32.mrf.mxu3  ;;  %v3221_v4 = vpop.f32.mrf.mxu1  ;;  %v12142_v61 = vor.u32 %v16293_v58, %v12139_v59  ;;  %v11998_v16 = vor.u32 %v16257_v43, %v11995_v45  ;;  %v12310_v21 = vor.u32 %v16335_v15, %v12307_v54  ;;  %v12427_v58 = vld [vmem:[%s24663_s1 + $0xfe8] sm:$0xf0]  ;;  %v16315_v1 = vld [vmem:[%s24663_s1 + $0xe54] sm:$0xf]  ;;  %v12403_v54 = vld [vmem:[%s24663_s1 + $0xfb8] sm:$0xf0] }
 0x1d4   : > { %4315 = vmatpush.bf16.msra.mxu2 %v12110_v46  ;;  %v11950_v46 = vor.u32 %v16245_v22, %v11947_v34  ;;  %v12374_v22 = vor.u32 %v16351_v28, %v12371_v56  ;;  %v16317_v34 = vld [vmem:[%s24663_s1 + $0xe64] sm:$0xf]  ;;  %v12355_v4 = vld [vmem:[%s24663_s1 + $0xf58] sm:$0xf0] }
 0x1d5   : > { %4328 = vmatpush.bf16.msra.mxu3 %v12174_v3  ;;  %v3246_v31 = vadd.f32 %v3245_v27, %v3233_v25  ;;  %v16243_v3 = vld [vmem:[%s24663_s1 + $0xc14] sm:$0xf]  ;;  %v12299_v27 = vld [vmem:[%s24663_s1 + $0xee8] sm:$0xf0]  ;;  %v12238_v59 = vor.u32 %v16317_v34, %v12235_v23 }
 0x1d6   : > { %4290 = vmatpush.bf16.msra.mxu0 %v11974_v63  ;;  %v12003_v63 = vld [vmem:[%s24663_s1 + $0xc98] sm:$0xf0]  ;;  %v11942_v9 = vor.u32 %v16243_v3, %v11939_v51  ;;  %v12430_v3 = vor.u32 %v16365_v55, %v12427_v58  ;;  %v12331_v34 = vld [vmem:[%s24663_s1 + $0xf28] sm:$0xf0] }
 0x1d7   : > { %4303 = vmatpush.bf16.msra.mxu1 %v12038_v0  ;;  %v20192_v38 = vadd.f32 %v3246_v31, %v19364_v7  ;;  %v16275_v0 = vld [vmem:[%s24663_s1 + $0xd14] sm:$0xf]  ;;  %v12131_v7 = vld [vmem:[%s24663_s1 + $0xd98] sm:$0xf0]  ;;  %v12006_v42 = vor.u32 %v16259_v52, %v12003_v63 }
 0x1d8   : > { %4316 = vmatpush.bf16.msra.mxu2 %v12102_v8  ;;  %v12067_v8 = vld [vmem:[%s24663_s1 + $0xd18] sm:$0xf0]  ;;  %v12134_v11 = vor.u32 %v16291_v5, %v12131_v7  ;;  %v16347_v52 = vld [vmem:[%s24663_s1 + $0xf54] sm:$0xf]  ;;  %v16313_v5 = vld [vmem:[%s24663_s1 + $0xe44] sm:$0xf] }
 0x1d9   : > { %4329 = vmatpush.bf16.msra.mxu3 %v12166_v40  ;;  %v11931_v40 = vld [vmem:[%s24663_s1 + $0xc08] sm:$0xf0]  ;;  %v12070_v6 = vor.u32 %v16275_v0, %v12067_v8  ;;  %v12291_v51 = vld [vmem:[%s24663_s1 + $0xed8] sm:$0xf0] }
 0x1da   : > { %4291 = vmatpush.bf16.msra.mxu0 %v11966_v10  ;;  %v3234_v10 = vpop.f32.mrf.mxu2  ;;  %v12419_v63 = vld [vmem:[%s24663_s1 + $0xfd8] sm:$0xf0]  ;;  %v12219_v7 = vld [vmem:[%s24663_s1 + $0xe48] sm:$0xf0] }
 0x1db   : > { %4304 = vmatpush.bf16.msra.mxu1 %v12030_v44  ;;  %v12059_v44 = vld [vmem:[%s24663_s1 + $0xd08] sm:$0xf0]  ;;  %v3247_v13 = vpop.f32.mrf.mxu3  ;;  %v16311_v10 = vld [vmem:[%s24663_s1 + $0xe34] sm:$0xf] }
 0x1dc   : > { %4317 = vmatpush.bf16.msra.mxu2 %v12094_v49  ;;  %v16289_v49 = vld [vmem:[%s24663_s1 + $0xd84] sm:$0xf]  ;;  %v12062_v17 = vor.u32 %v16273_v47, %v12059_v44  ;;  %v16327_v44 = vld [vmem:[%s24663_s1 + $0xeb4] sm:$0xf]  ;;  %v12275_v13 = vld [vmem:[%s24663_s1 + $0xeb8] sm:$0xf0] }
 0x1dd   : > { %4330 = vmatpush.bf16.msra.mxu3 %v12158_v53  ;;  %v11934_v53 = vor.u32 %v16241_v41, %v11931_v40  ;;  %v12347_v41 = vld [vmem:[%s24663_s1 + $0xf48] sm:$0xf0]  ;;  %v16361_v40 = vld [vmem:[%s24663_s1 + $0xfc4] sm:$0xf]  ;;  %v12278_v56 = vor.u32 %v16327_v44, %v12275_v13  ;;  %v12785_v44 = vld [vmem:[%s24663_s1 + $0x1170] sm:$0xf] }
 0x1de   : > { %4292 = vmatpush.bf16.msra.mxu0 %v11958_v19  ;;  %v12435_v19 = vld [vmem:[%s24663_s1 + $0xff8] sm:$0xf0] }
 0x1df   : > { %4305 = vmatpush.bf16.msra.mxu1 %v12022_v60  ;;  %v12126_v60 = vor.u32 %v16289_v49, %v12123_v12  ;;  %v12438_v25 = vor.u32 %v16367_v18, %v12435_v19  ;;  %v12203_v18 = vld [vmem:[%s24663_s1 + $0xe28] sm:$0xf0]  ;;  %v16325_v19 = vld [vmem:[%s24663_s1 + $0xea4] sm:$0xf] }
 0x1e0   : > { %4318 = vmatpush.bf16.msra.mxu2 %v12086_v20  ;;  %v12246_v20 = vor.u32 %v16319_v50, %v12243_v14  ;;  %v16343_v50 = vld [vmem:[%s24663_s1 + $0xf34] sm:$0xf]  ;;  %v12339_v14 = vld [vmem:[%s24663_s1 + $0xf38] sm:$0xf0] }
 0x1e1   : > { %4331 = vmatpush.bf16.msra.mxu3 %v12150_v24  ;;  %v16333_v24 = vld [vmem:[%s24663_s1 + $0xee4] sm:$0xf] }
 0x1e2   : > { %4293 = vmatpush.bf16.msra.mxu0 %v11950_v46  ;;  %v12302_v31 = vor.u32 %v16333_v24, %v12299_v27  ;;  %v12366_v46 = vor.u32 %v16349_v37, %v12363_v30  ;;  %v12395_v27 = vld [vmem:[%s24663_s1 + $0xfa8] sm:$0xf0] }
 0x1e3   : > { %4306 = vmatpush.bf16.msra.mxu1 %v12014_v57  ;;  %v12227_v57 = vld [vmem:[%s24663_s1 + $0xe58] sm:$0xf0] }
 0x1e4   : > { %4319 = vmatpush.bf16.msra.mxu2 %v12078_v2  ;;  %v16331_v2 = vld [vmem:[%s24663_s1 + $0xed4] sm:$0xf]  ;;  %v12230_v0 = vor.u32 %v16315_v1, %v12227_v57 }
 0x1e5   : > { %4332 = vmatpush.bf16.msra.mxu3 %v12142_v61  ;;  %v16363_v61 = vld [vmem:[%s24663_s1 + $0xfd4] sm:$0xf]  ;;  %v12294_v8 = vor.u32 %v16331_v2, %v12291_v51 }
 0x1e6   : > { %4294 = vmatpush.bf16.msra.mxu0 %v11942_v9  ;;  %v16345_v9 = vld [vmem:[%s24663_s1 + $0xf44] sm:$0xf]  ;;  %v16323_v1 = vld [vmem:[%s24663_s1 + $0xe94] sm:$0xf] }
 0x1e7   : > { %4307 = vmatpush.bf16.msra.mxu1 %v12006_v42  ;;  %v12411_v42 = vld [vmem:[%s24663_s1 + $0xfc8] sm:$0xf0]  ;;  %v12350_v47 = vor.u32 %v16345_v9, %v12347_v41  ;;  %v16339_v51 = vld [vmem:[%s24663_s1 + $0xf14] sm:$0xf] }
 0x1e8   : > { %4320 = vmatpush.bf16.msra.mxu2 %v12070_v6  ;;  %v12222_v6 = vor.u32 %v16313_v5, %v12219_v7  ;;  %v12414_v12 = vor.u32 %v16361_v40, %v12411_v42  ;;  %v16321_v7 = vld [vmem:[%s24663_s1 + $0xe84] sm:$0xf]  ;;  %v12315_v41 = vld [vmem:[%s24663_s1 + $0xf08] sm:$0xf0] }
 0x1e9   : > { %4333 = vmatpush.bf16.msra.mxu3 %v12134_v11  ;;  %v12211_v11 = vld [vmem:[%s24663_s1 + $0xe38] sm:$0xf0]  ;;  %v16353_v40 = vld [vmem:[%s24663_s1 + $0xf84] sm:$0xf]  ;;  %v12379_v42 = vld [vmem:[%s24663_s1 + $0xf88] sm:$0xf0] }
 0x1ea   : > { %4295 = vmatpush.bf16.msra.mxu0 %v11934_v53  ;;  %v3258_v43 = vpop.f32.mrf.mxu0  ;;  %v16359_v53 = vld [vmem:[%s24663_s1 + $0xfb4] sm:$0xf]  ;;  %v12214_v28 = vor.u32 %v16311_v10, %v12211_v11  ;;  %v16408_v11 = vld [vmem:[%s24663_s1 + $0x10f4] sm:$0xf0] }
 0x1eb   : > { %4308 = vmatpush.bf16.msra.mxu1 %v11998_v16  ;;  %v3271_v49 = vpop.f32.mrf.mxu1  ;;  %v12342_v16 = vor.u32 %v16343_v50, %v12339_v14  ;;  %v12849_v50 = vld [vmem:[%s24663_s1 + $0x11f0] sm:$0xf]  ;;  %v16440_v14 = vld [vmem:[%s24663_s1 + $0x11f4] sm:$0xf0] }
 0x1ec   : > { %4321 = vmatpush.bf16.msra.mxu2 %v12062_v17  ;;  %v3272_v15 = vadd.f32 %v3271_v49, %v3258_v43  ;;  %v16309_v17 = vld [vmem:[%s24663_s1 + $0xe24] sm:$0xf]  ;;  %v12657_v43 = vld [vmem:[%s24663_s1 + $0x1070] sm:$0xf]  ;;  %v16424_v49 = vld [vmem:[%s24663_s1 + $0x1174] sm:$0xf0] }
 0x1ed   : > { %4334 = vmatpush.bf16.msra.mxu3 %v12126_v60  ;;  %4296 = vmatmul.bf16.vlgmr.msra.gmra.mxu0 %v19861_v29  ;;  %v16329_v29 = vld [vmem:[%s24663_s1 + $0xec4] sm:$0xf]  ;;  %v12206_v37 = vor.u32 %v16309_v17, %v12203_v18  ;;  %v12713_v17 = vld [vmem:[%s24663_s1 + $0x10e0] sm:$0xf]  ;;  %v12850_v18 = vor.u32 %v16440_v14, %v12849_v50 }
 0x1ee   : > { %4340 = vmatpush.bf16.msrb.mxu0 %v12246_v20  ;;  %4309 = vmatmul.bf16.vlgmr.msra.gmra.mxu1 %v19865_v36  ;;  %v12283_v36 = vld [vmem:[%s24663_s1 + $0xec8] sm:$0xf0]  ;;  %v12406_v20 = vor.u32 %v16359_v53, %v12403_v54 }
 0x1ef   : > { %4353 = vmatpush.bf16.msrb.mxu1 %v12310_v21  ;;  %4322 = vmatmul.bf16.vlgmr.msra.gmra.mxu2 %v19853_v26  ;;  %v12358_v26 = vor.u32 %v16347_v52, %v12355_v4  ;;  %v12286_v45 = vor.u32 %v16329_v29, %v12283_v36  ;;  %v12267_v21 = vld [vmem:[%s24663_s1 + $0xea8] sm:$0xf0]  ;;  %v12323_v52 = vld [vmem:[%s24663_s1 + $0xf18] sm:$0xf0]  ;;  %v16355_v4 = vld [vmem:[%s24663_s1 + $0xf94] sm:$0xf] }
 0x1f0   : > { %4366 = vmatpush.bf16.msrb.mxu2 %v12374_v22  ;;  %4335 = vmatmul.bf16.vlgmr.msra.gmra.mxu3 %v19863_v33  ;;  %v12422_v33 = vor.u32 %v16363_v61, %v12419_v63  ;;  %v16341_v22 = vld [vmem:[%s24663_s1 + $0xf24] sm:$0xf]  ;;  %v12270_v58 = vor.u32 %v16325_v19, %v12267_v21  ;;  %v12387_v61 = vld [vmem:[%s24663_s1 + $0xf98] sm:$0xf0]  ;;  %v12326_v5 = vor.u32 %v16339_v51, %v12323_v52  ;;  %v12251_v29 = vld [vmem:[%s24663_s1 + $0xe88] sm:$0xf0] }
 0x1f1   : > { %4379 = vmatpush.bf16.msrb.mxu3 %v12438_v25  ;;  %v16357_v25 = vld [vmem:[%s24663_s1 + $0xfa4] sm:$0xf]  ;;  %v12390_v9 = vor.u32 %v16355_v4, %v12387_v61  ;;  %v16406_v19 = vld [vmem:[%s24663_s1 + $0x10e4] sm:$0xf0]  ;;  %v12841_v21 = vld [vmem:[%s24663_s1 + $0x11e0] sm:$0xf] }
 0x1f2   : > { %4341 = vmatpush.bf16.msrb.mxu0 %v12238_v59  ;;  %v3284_v60 = vpop.f32.mrf.mxu2  ;;  %v3260_v55 = vpop.f32.mrf.mxu0  ;;  %v12334_v59 = vor.u32 %v16341_v22, %v12331_v34  ;;  %v12398_v2 = vor.u32 %v16357_v25, %v12395_v27  ;;  %v16438_v22 = vld [vmem:[%s24663_s1 + $0x11e4] sm:$0xf0]  ;;  %v12641_v25 = vld [vmem:[%s24663_s1 + $0x1050] sm:$0xf]  ;;  %v16388_v27 = vld [vmem:[%s24663_s1 + $0x1054] sm:$0xf0] }
 0x1f3   : > { %4354 = vmatpush.bf16.msrb.mxu1 %v12302_v31  ;;  %v3285_v23 = vadd.f32 %v3284_v60, %v3272_v15  ;;  %v3297_v24 = vpop.f32.mrf.mxu3  ;;  %v16307_v31 = vld [vmem:[%s24663_s1 + $0xe14] sm:$0xf]  ;;  %v3273_v57 = vpop.f32.mrf.mxu1  ;;  %v12382_v15 = vor.u32 %v16353_v40, %v12379_v42  ;;  %v12777_v60 = vld [vmem:[%s24663_s1 + $0x1160] sm:$0xf]  ;;  %v12842_v55 = vor.u32 %v16438_v22, %v12841_v21  ;;  %v16418_v4 = vld [vmem:[%s24663_s1 + $0x1144] sm:$0xf0] }
 0x1f4   : > { %4367 = vmatpush.bf16.msrb.mxu2 %v12366_v46  ;;  %v12195_v46 = vld [vmem:[%s24663_s1 + $0xe18] sm:$0xf0]  ;;  %v12761_v52 = vld [vmem:[%s24663_s1 + $0x1140] sm:$0xf]  ;;  %v12753_v40 = vld [vmem:[%s24663_s1 + $0x1130] sm:$0xf] }
 0x1f5   : > { %4380 = vmatpush.bf16.msrb.mxu3 %v12430_v3  ;;  %v20381_v30 = vadd.f32 %v3297_v24, %v3285_v23  ;;  %v12259_v3 = vld [vmem:[%s24663_s1 + $0xe98] sm:$0xf0]  ;;  %v12198_v63 = vor.u32 %v16307_v31, %v12195_v46  ;;  %v12714_v23 = vor.u32 %v16406_v19, %v12713_v17  ;;  %v16420_v31 = vld [vmem:[%s24663_s1 + $0x1154] sm:$0xf0]  ;;  %v12825_v61 = vld [vmem:[%s24663_s1 + $0x11c0] sm:$0xf] }
 0x1f6   : > { %4342 = vmatpush.bf16.msrb.mxu0 %v12230_v0  ;;  %v16305_v0 = vld [vmem:[%s24663_s1 + $0xe04] sm:$0xf]  ;;  %v16436_v46 = vld [vmem:[%s24663_s1 + $0x11d4] sm:$0xf0]  ;;  %v12569_v19 = vld [vmem:[%s17410_s6] sm:$0xc] }
 0x1f7   : > { %4355 = vmatpush.bf16.msrb.mxu1 %v12294_v8  ;;  %v12187_v8 = vld [vmem:[%s24663_s1 + $0xe08] sm:$0xf0]  ;;  %v12609_v21 = vld [vmem:[%s24663_s1 + $0x1010] sm:$0xf]  ;;  %v16380_v22 = vld [vmem:[%s24663_s1 + $0x1014] sm:$0xf0] }
 0x1f8   : > { %4368 = vmatpush.bf16.msrb.mxu2 %v12358_v26  ;;  %v12262_v26 = vor.u32 %v16323_v1, %v12259_v3  ;;  %v12190_v10 = vor.u32 %v16305_v0, %v12187_v8  ;;  %v12642_v1 = vor.u32 %v16388_v27, %v12641_v25  ;;  %v12697_v3 = vld [vmem:[%s24663_s1 + $0x10c0] sm:$0xf]  ;;  %v16396_v27 = vld [vmem:[%s24663_s1 + $0x1094] sm:$0xf0] }
 0x1f9   : > { %4381 = vmatpush.bf16.msrb.mxu3 %v12422_v33  ;;  %v16337_v33 = vld [vmem:[%s24663_s1 + $0xf04] sm:$0xf] }
 0x1fa   : > { %4343 = vmatpush.bf16.msrb.mxu0 %v12222_v6  ;;  %v3286_v36 = vpop.f32.mrf.mxu2  ;;  %v12318_v13 = vor.u32 %v16337_v33, %v12315_v41  ;;  %v16400_v41 = vld [vmem:[%s24663_s1 + $0x10b4] sm:$0xf0] }
 0x1fb   : > { %4356 = vmatpush.bf16.msrb.mxu1 %v12286_v45  ;;  %v3299_v6 = vpop.f32.mrf.mxu3  ;;  %v16392_v45 = vld [vmem:[%s24663_s1 + $0x1074] sm:$0xf0] }
 0x1fc   : > { %4369 = vmatpush.bf16.msrb.mxu2 %v12350_v47  ;;  %v12721_v47 = vld [vmem:[%s24663_s1 + $0x10f0] sm:$0xf]  ;;  %v12658_v53 = vor.u32 %v16392_v45, %v12657_v43  ;;  %v16416_v6 = vld [vmem:[%s24663_s1 + $0x1134] sm:$0xf0] }
 0x1fd   : > { %4382 = vmatpush.bf16.msrb.mxu3 %v12414_v12  ;;  %v12254_v12 = vor.u32 %v16321_v7, %v12251_v29  ;;  %v12722_v54 = vor.u32 %v16408_v11, %v12721_v47  ;;  %v12762_v29 = vor.u32 %v16418_v4, %v12761_v52  ;;  %v16432_v43 = vld [vmem:[%s24663_s1 + $0x11b4] sm:$0xf0]  ;;  %v12617_v47 = vld [vmem:[%s24663_s1 + $0x1020] sm:$0xf]  ;;  %v12754_v14 = vor.u32 %v16416_v6, %v12753_v40 }
 0x1fe   : > { %4344 = vmatpush.bf16.msrb.mxu0 %v12214_v28  ;;  %v12786_v28 = vor.u32 %v16424_v49, %v12785_v44  ;;  %v12681_v11 = vld [vmem:[%s24663_s1 + $0x10a0] sm:$0xf]  ;;  %v16398_v49 = vld [vmem:[%s24663_s1 + $0x10a4] sm:$0xf0] }
 0x1ff   : > { %4357 = vmatpush.bf16.msrb.mxu1 %v12278_v56  ;;  %v12649_v56 = vld [vmem:[%s24663_s1 + $0x1060] sm:$0xf]  ;;  %v12682_v25 = vor.u32 %v16398_v49, %v12681_v11 }
 0x200   : > { %4370 = vmatpush.bf16.msrb.mxu2 %v12342_v16  ;;  %v16390_v16 = vld [vmem:[%s24663_s1 + $0x1064] sm:$0xf0]  ;;  %v12601_v52 = vld [vmem:[%s24663_s1 + $0x1000] sm:$0xf] }
 0x201   : > { %4383 = vmatpush.bf16.msrb.mxu3 %v12406_v20  ;;  %v16422_v20 = vld [vmem:[%s24663_s1 + $0x1164] sm:$0xf0]  ;;  %v12650_v34 = vor.u32 %v16390_v16, %v12649_v56 }
 0x202   : > { %4345 = vmatpush.bf16.msrb.mxu0 %v12206_v37  ;;  %v12778_v24 = vor.u32 %v16422_v20, %v12777_v60  ;;  %v12705_v37 = vld [vmem:[%s24663_s1 + $0x10d0] sm:$0xf]  ;;  %v16374_v56 = vld [vmem:[%s17410_s6 + $0x24] sm:$0x70]  ;;  %v16373_v60 = vld [vmem:[%s17410_s6 + $0x1c] sm:$0x70] }
 0x203   : > { %4358 = vmatpush.bf16.msrb.mxu1 %v12270_v58  ;;  %v16404_v58 = vld [vmem:[%s24663_s1 + $0x10d4] sm:$0xf0]  ;;  %v16370_v20 = vld [vmem:[%s17410_s6 + $0xc] sm:$0xc] }
 0x204   : > { %4371 = vmatpush.bf16.msrb.mxu2 %v12334_v59  ;;  %v12769_v59 = vld [vmem:[%s24663_s1 + $0x1150] sm:$0xf]  ;;  %v12706_v57 = vor.u32 %v16404_v58, %v12705_v37  ;;  %v12579_v58 = vld [vmem:[%s17410_s6 + $0x28] sm:$0x70] }
 0x205   : > { %4384 = vmatpush.bf16.msrb.mxu3 %v12398_v2  ;;  %v12770_v2 = vor.u32 %v16420_v31, %v12769_v59  ;;  %v16369_v59 = vld [vmem:[%s17410_s6 + $0x4] sm:$0xc] }
 0x206   : > { %4346 = vmatpush.bf16.msrb.mxu0 %v12198_v63  ;;  %v16434_v63 = vld [vmem:[%s24663_s1 + $0x11c4] sm:$0xf0] }
 0x207   : > { %4359 = vmatpush.bf16.msrb.mxu1 %v12262_v26  ;;  %v12625_v26 = vld [vmem:[%s24663_s1 + $0x1030] sm:$0xf]  ;;  %v12826_v42 = vor.u32 %v16434_v63, %v12825_v61  ;;  %v12610_v61 = vor.u32 %v16380_v22, %v12609_v21  ;;  %v12665_v63 = vld [vmem:[%s24663_s1 + $0x1080] sm:$0xf] }
 0x208   : > { %4372 = vmatpush.bf16.msrb.mxu2 %v12326_v5  ;;  %v16384_v5 = vld [vmem:[%s24663_s1 + $0x1034] sm:$0xf0] }
 0x209   : > { %4385 = vmatpush.bf16.msrb.mxu3 %v12390_v9  ;;  %v12689_v9 = vld [vmem:[%s24663_s1 + $0x10b0] sm:$0xf]  ;;  %v12626_v44 = vor.u32 %v16384_v5, %v12625_v26  ;;  %v12729_v5 = vld [vmem:[%s24663_s1 + $0x1100] sm:$0xf] }
 0x20a   : > { %4347 = vmatpush.bf16.msrb.mxu0 %v12190_v10  ;;  %v3310_v8 = vpop.f32.mrf.mxu0  ;;  %v16382_v10 = vld [vmem:[%s24663_s1 + $0x1024] sm:$0xf0]  ;;  %v12690_v50 = vor.u32 %v16400_v41, %v12689_v9 }
 0x20b   : > { %4360 = vmatpush.bf16.msrb.mxu1 %v12254_v12  ;;  %v3311_v33 = vadd.f32 %v3310_v8, %v20381_v30  ;;  %v3323_v36 = vpop.f32.mrf.mxu1  ;;  %v12817_v30 = vld [vmem:[%s24663_s1 + $0x11b0] sm:$0xf]  ;;  %v12745_v12 = vld [vmem:[%s24663_s1 + $0x1120] sm:$0xf]  ;;  %v16426_v9 = vld [vmem:[%s24663_s1 + $0x1184] sm:$0xf0] }
 0x20c   : > { %4373 = vmatpush.bf16.msrb.mxu2 %v12318_v13  ;;  %v16414_v13 = vld [vmem:[%s24663_s1 + $0x1124] sm:$0xf0]  ;;  %v12818_v16 = vor.u32 %v16432_v43, %v12817_v30 }
 0x20d   : > { %4386 = vmatpush.bf16.msrb.mxu3 %v12382_v15  ;;  %4348 = vmatmul.bf16.vlgmr.msrb.gmra.mxu0 %v20069_v39  ;;  %v12633_v39 = vld [vmem:[%s24663_s1 + $0x1040] sm:$0xf]  ;;  %v3324_v45 = vadd.f32 %v3323_v36, %v3311_v33  ;;  %v12746_v31 = vor.u32 %v16414_v13, %v12745_v12  ;;  %v12977_v12 = vld [vmem:[%s24663_s1 + $0x12f0] sm:$0xf]  ;;  %v16472_v13 = vld [vmem:[%s24663_s1 + $0x12f4] sm:$0xf0] }
 0x20e   : > { %5279 = vmatpush.bf16.msra.mxu0 %v12658_v53  ;;  %4361 = vmatmul.bf16.vlgmr.msrb.gmra.mxu1 %v20079_v62  ;;  %v16402_v62 = vld [vmem:[%s24663_s1 + $0x10c4] sm:$0xf0]  ;;  %v12809_v53 = vld [vmem:[%s24663_s1 + $0x11a0] sm:$0xf] }
 0x20f   : > { %5292 = vmatpush.bf16.msra.mxu1 %v12722_v54  ;;  %4374 = vmatmul.bf16.vlgmr.msrb.gmra.mxu2 %v20061_v35  ;;  %v12833_v35 = vld [vmem:[%s24663_s1 + $0x11d0] sm:$0xf]  ;;  %v12698_v7 = vor.u32 %v16402_v62, %v12697_v3  ;;  %v16430_v54 = vld [vmem:[%s24663_s1 + $0x11a4] sm:$0xf0]  ;;  %v16428_v62 = vld [vmem:[%s24663_s1 + $0x1194] sm:$0xf0] }
 0x210   : > { %5305 = vmatpush.bf16.msra.mxu2 %v12786_v28  ;;  %4387 = vmatmul.bf16.vlgmr.msrb.gmra.mxu3 %v20071_v48  ;;  %v16386_v48 = vld [vmem:[%s24663_s1 + $0x1044] sm:$0xf0]  ;;  %v12834_v51 = vor.u32 %v16436_v46, %v12833_v35  ;;  %v12737_v35 = vld [vmem:[%s24663_s1 + $0x1110] sm:$0xf]  ;;  %v16412_v46 = vld [vmem:[%s24663_s1 + $0x1114] sm:$0xf0]  ;;  %v12810_v3 = vor.u32 %v16430_v54, %v12809_v53 }
 0x211   : > { %5318 = vmatpush.bf16.msra.mxu3 %v12850_v18  ;;  %v12634_v0 = vor.u32 %v16386_v48, %v12633_v39  ;;  %v12577_v28 = vld [vmem:[%s17410_s6 + $0x8] sm:$0xc]  ;;  %v12571_v39 = vld [vmem:[%s17410_s6 + $0x20] sm:$0x70]  ;;  %v12738_v26 = vor.u32 %v16412_v46, %v12737_v35  ;;  %v12793_v36 = vld [vmem:[%s24663_s1 + $0x1180] sm:$0xf] }
 0x212   : > { %5280 = vmatpush.bf16.msra.mxu0 %v12650_v34  ;;  %v3336_v15 = vpop.f32.mrf.mxu2  ;;  %v20594_v34 = vld [vmem:[%s24663_s1 + $0x1090] sm:$0xf]  ;;  %v3312_v37 = vpop.f32.mrf.mxu0  ;;  %v12574_v4 = vor.u32 %v16369_v59, %v12571_v39  ;;  %v16488_v53 = vld [vmem:[%s24663_s1 + $0x1374] sm:$0xf0]  ;;  %v13033_v59 = vld [vmem:[%s24663_s1 + $0x1360] sm:$0xf] }
 0x213   : > { %5293 = vmatpush.bf16.msra.mxu1 %v12714_v23  ;;  %v3337_v17 = vadd.f32 %v3336_v15, %v3324_v45  ;;  %v3349_v18 = vpop.f32.mrf.mxu3  ;;  %v12674_v8 = vor.u32 %v16396_v27, %v20594_v34  ;;  %v12913_v45 = vld [vmem:[%s24663_s1 + $0x1270] sm:$0xf]  ;;  %v16454_v27 = vld [vmem:[%s24663_s1 + $0x1264] sm:$0xf0]  ;;  %v12969_v37 = vld [vmem:[%s24663_s1 + $0x12e0] sm:$0xf] }
 0x214   : > { %5306 = vmatpush.bf16.msra.mxu2 %v12778_v24  ;;  %v12618_v24 = vor.u32 %v16382_v10, %v12617_v47  ;;  %v16456_v47 = vld [vmem:[%s24663_s1 + $0x1274] sm:$0xf0]  ;;  %v4576_v11 = vshrl.u32 %v12574_v4, 16  ;;  %v13105_v54 = vld [vmem:[%s24663_s1 + $0x13f0] sm:$0xf] }
 0x215   : > { %5319 = vmatpush.bf16.msra.mxu3 %v12842_v55  ;;  %v3350_v23 = vadd.f32 %v3349_v18, %v3337_v17  ;;  %v12578_v55 = vor.u32 %v16374_v56, %v12577_v28  ;;  %v12914_v21 = vor.u32 %v16456_v47, %v12913_v45  ;;  %v13097_v46 = vld [vmem:[%s24663_s1 + $0x13e0] sm:$0xf]  ;;  %v16498_v45 = vld [vmem:[%s24663_s1 + $0x13c4] sm:$0xf0] }
 0x216   : > { %5281 = vmatpush.bf16.msra.mxu0 %v12642_v1  ;;  %v3325_v1 = vpop.f32.mrf.mxu1  ;;  %v4578_v22 = vrot.slane %v4576_v11, 2  ;;  %v16448_v11 = vld [vmem:[%s24663_s1 + $0x1234] sm:$0xf0] }
 0x217   : > { %5294 = vmatpush.bf16.msra.mxu1 %v12706_v57  ;;  %v12570_v57 = vor.u32 %v16373_v60, %v12569_v19  ;;  %v20609_v48 = vadd.f32 %v3350_v23, %v19768_v32  ;;  %v16378_v32 = vld [vmem:[%s24663_s1 + $0x1004] sm:$0xf0]  ;;  %v4587_v33 = vshll.u32 %v12578_v55, 16  ;;  %v12978_v23 = vor.u32 %v16472_v13, %v12977_v12  ;;  %v12945_v13 = vld [vmem:[%s24663_s1 + $0x12b0] sm:$0xf] }
 0x218   : > { %5307 = vmatpush.bf16.msra.mxu2 %v12770_v2  ;;  %v12582_v2 = vor.u32 %v16370_v20, %v12579_v58  ;;  %v12602_v49 = vor.u32 %v16378_v32, %v12601_v52  ;;  %v12794_v20 = vor.u32 %v16426_v9, %v12793_v36  ;;  %v16470_v58 = vld [vmem:[%s24663_s1 + $0x12e4] sm:$0xf0]  ;;  %v12897_v52 = vld [vmem:[%s24663_s1 + $0x1250] sm:$0xf]  ;;  %v12889_v36 = vld [vmem:[%s24663_s1 + $0x1240] sm:$0xf] }
 0x219   : > { %5320 = vmatpush.bf16.msra.mxu3 %v12834_v51  ;;  %v12801_v51 = vld [vmem:[%s24663_s1 + $0x1190] sm:$0xf]  ;;  %v4568_v40 = vshrl.u32 %v12570_v57, 16  ;;  %v4589_v56 = vrot.slane %v4587_v33, 3  ;;  %v16502_v1 = vld [vmem:[%s24663_s1 + $0x13e4] sm:$0xf0] }
 0x21a   : > { %5282 = vmatpush.bf16.msra.mxu0 %v12634_v0  ;;  %v16394_v0 = vld [vmem:[%s24663_s1 + $0x1084] sm:$0xf0]  ;;  %v3338_v41 = vpop.f32.mrf.mxu2  ;;  %v4592_v6 = vshrl.u32 %v12582_v2, 16  ;;  %v4595_v30 = vshll.u32 %v12582_v2, 16  ;;  %v12802_v43 = vor.u32 %v16428_v62, %v12801_v51  ;;  %v12970_v51 = vor.u32 %v16470_v58, %v12969_v37  ;;  %v16376_v37 = vld [vmem:[%s17410_s6 + $0x34] sm:$0x70] }
 0x21b   : > { %5295 = vmatpush.bf16.msra.mxu1 %v12698_v7  ;;  %v16410_v7 = vld [vmem:[%s24663_s1 + $0x1104] sm:$0xf0]  ;;  %v3351_v10 = vpop.f32.mrf.mxu3  ;;  %v4570_v17 = vrot.slane %v4568_v40, 2  ;;  %v13098_v32 = vor.u32 %v16502_v1, %v13097_v46  ;;  %v12953_v41 = vld [vmem:[%s24663_s1 + $0x12c0] sm:$0xf] }
 0x21c   : > { %5308 = vmatpush.bf16.msra.mxu2 %v12762_v29  ;;  %v4584_v29 = vshrl.u32 %v12578_v55, 16  ;;  %v12730_v15 = vor.u32 %v16410_v7, %v12729_v5  ;;  %v4594_v19 = vrot.slane %v4592_v6, 2  ;;  %v4597_v60 = vrot.slane %v4595_v30, 3  ;;  %v16500_v5 = vld [vmem:[%s24663_s1 + $0x13d4] sm:$0xf0] }
 0x21d   : > { %5321 = vmatpush.bf16.msra.mxu3 %v12826_v42  ;;  %v4571_v42 = vshll.u32 %v12570_v57, 16  ;;  %v16450_v9 = vld [vmem:[%s24663_s1 + $0x1244] sm:$0xf0]  ;;  %v13017_v6 = vld [vmem:[%s24663_s1 + $0x1340] sm:$0xf] }
 0x21e   : > { %5283 = vmatpush.bf16.msra.mxu0 %v12626_v44  ;;  %v4579_v44 = vshll.u32 %v12574_v4, 16  ;;  %v4586_v28 = vrot.slane %v4584_v29, 2  ;;  %v20694_v2 = vor.u32 %v4597_v60, %v4594_v19  ;;  %v16452_v4 = vld [vmem:[%s24663_s1 + $0x1254] sm:$0xf0]  ;;  %v16482_v30 = vld [vmem:[%s24663_s1 + $0x1344] sm:$0xf0]  ;;  %v12890_v47 = vor.u32 %v16450_v9, %v12889_v36 }
 0x21f   : > { %5296 = vmatpush.bf16.msra.mxu1 %v12690_v50  ;;  %v13041_v50 = vld [vmem:[%s24663_s1 + $0x1370] sm:$0xf]  ;;  %v4573_v18 = vrot.slane %v4571_v42, 3  ;;  %v12898_v7 = vor.u32 %v16452_v4, %v12897_v52  ;;  %v16466_v42 = vld [vmem:[%s24663_s1 + $0x12c4] sm:$0xf0]  ;;  %v13018_v12 = vor.u32 %v16482_v30, %v13017_v6 }
 0x220   : > { %5309 = vmatpush.bf16.msra.mxu2 %v12754_v14  ;;  %v12666_v14 = vor.u32 %v16394_v0, %v12665_v63  ;;  %v4581_v34 = vrot.slane %v4579_v44, 3  ;;  %v20684_v35 = vor.u32 %v4589_v56, %v4586_v28  ;;  %v16468_v63 = vld [vmem:[%s24663_s1 + $0x12d4] sm:$0xf0]  ;;  %v13025_v0 = vld [vmem:[%s24663_s1 + $0x1350] sm:$0xf] }
 0x221   : > { %5322 = vmatpush.bf16.msra.mxu3 %v12818_v16  ;;  %v16504_v16 = vld [vmem:[%s24663_s1 + $0x13f4] sm:$0xf0]  ;;  %v20692_v57 = vor.u32 %v4573_v18, %v4570_v17  ;;  %v12881_v10 = vld [vmem:[%s24663_s1 + $0x1230] sm:$0xf]  ;;  %v12873_v17 = vld [vmem:[%s24663_s1 + $0x1220] sm:$0xf] }
 0x222   : > { %5284 = vmatpush.bf16.msra.mxu0 %v12618_v24  ;;  %v13042_v24 = vor.u32 %v16488_v53, %v13041_v50  ;;  %v13106_v55 = vor.u32 %v16504_v16, %v13105_v54  ;;  %v16464_v50 = vld [vmem:[%s24663_s1 + $0x12b4] sm:$0xf0]  ;;  %v13073_v28 = vld [vmem:[%s24663_s1 + $0x13b0] sm:$0xf]  ;;  %v16446_v18 = vld [vmem:[%s24663_s1 + $0x1224] sm:$0xf0]  ;;  %v12882_v60 = vor.u32 %v16448_v11, %v12881_v10 }
 0x223   : > { %5297 = vmatpush.bf16.msra.mxu1 %v12682_v25  ;;  %v12905_v25 = vld [vmem:[%s24663_s1 + $0x1260] sm:$0xf]  ;;  %v16480_v54 = vld [vmem:[%s24663_s1 + $0x1334] sm:$0xf0]  ;;  %v16375_v46 = vld [vmem:[%s17410_s6 + $0x2c] sm:$0x70]  ;;  %v12874_v4 = vor.u32 %v16446_v18, %v12873_v17 }
 0x224   : > { %5310 = vmatpush.bf16.msra.mxu2 %v12746_v31  ;;  %v16486_v31 = vld [vmem:[%s24663_s1 + $0x1364] sm:$0xf0]  ;;  %v12906_v39 = vor.u32 %v16454_v27, %v12905_v25  ;;  %v16496_v56 = vld [vmem:[%s24663_s1 + $0x13b4] sm:$0xf0]  ;;  %v12937_v19 = vld [vmem:[%s24663_s1 + $0x12a0] sm:$0xf] }
 0x225   : > { %5323 = vmatpush.bf16.msra.mxu3 %v12810_v3  ;;  %v20696_v3 = vor.u32 %v4581_v34, %v4578_v22  ;;  %v13034_v62 = vor.u32 %v16486_v31, %v13033_v59  ;;  %v16478_v22 = vld [vmem:[%s24663_s1 + $0x1324] sm:$0xf0]  ;;  %v12946_v34 = vor.u32 %v16464_v50, %v12945_v13  ;;  %v12593_v27 = vld [vmem:[%s17410_s6 + $0x18] sm:$0xc]  ;;  %v13074_v58 = vor.u32 %v16496_v56, %v13073_v28  ;;  %v16372_v1 = vld [vmem:[%s17410_s6 + $0x1c] sm:$0xc] }
 0x226   : > { %5285 = vmatpush.bf16.msra.mxu0 %v12610_v61  ;;  %v12961_v61 = vld [vmem:[%s24663_s1 + $0x12d0] sm:$0xf]  ;;  %v12587_v52 = vld [vmem:[%s17410_s6 + $0x30] sm:$0x70]  ;;  %v16476_v36 = vld [vmem:[%s24663_s1 + $0x1314] sm:$0xf0] }
 0x227   : > { %5298 = vmatpush.bf16.msra.mxu1 %v12674_v8  ;;  %v16484_v8 = vld [vmem:[%s24663_s1 + $0x1354] sm:$0xf0]  ;;  %v12962_v29 = vor.u32 %v16468_v63, %v12961_v61  ;;  %v13057_v6 = vld [vmem:[%s24663_s1 + $0x1390] sm:$0xf]  ;;  %v16442_v10 = vld [vmem:[%s24663_s1 + $0x1204] sm:$0xf0] }
 0x228   : > { %5311 = vmatpush.bf16.msra.mxu2 %v12738_v26  ;;  %v13089_v26 = vld [vmem:[%s24663_s1 + $0x13d0] sm:$0xf]  ;;  %v13026_v33 = vor.u32 %v16484_v8, %v13025_v0  ;;  %v16444_v63 = vld [vmem:[%s24663_s1 + $0x1214] sm:$0xf0]  ;;  %v12594_v8 = vor.u32 %v16376_v37, %v12593_v27  ;;  %v12921_v11 = vld [vmem:[%s24663_s1 + $0x1280] sm:$0xf] }
 0x229   : > { %5324 = vmatpush.bf16.msra.mxu3 %v12802_v43  ;;  %v13090_v40 = vor.u32 %v16500_v5, %v13089_v26  ;;  %v13081_v43 = vld [vmem:[%s24663_s1 + $0x13c0] sm:$0xf]  ;;  %v12929_v0 = vld [vmem:[%s24663_s1 + $0x1290] sm:$0xf]  ;;  %v16492_v30 = vld [vmem:[%s24663_s1 + $0x1394] sm:$0xf0] }
 0x22a   : > { %5286 = vmatpush.bf16.msra.mxu0 %v12602_v49  ;;  %v4193_v44 = vpop.f32.mrf.mxu0  ;;  %v12954_v49 = vor.u32 %v16466_v42, %v12953_v41  ;;  %v13082_v53 = vor.u32 %v16498_v45, %v13081_v43  ;;  %v12857_v43 = vld [vmem:[%s24663_s1 + $0x1200] sm:$0xf]  ;;  %v16474_v50 = vld [vmem:[%s24663_s1 + $0x1304] sm:$0xf0]  ;;  %v16423_v27 = vld [vmem:[%s24663_s1 + $0x1174] sm:$0xf] }
 0x22b   : > { %5299 = vmatpush.bf16.msra.mxu1 %v12666_v14  ;;  %v13009_v14 = vld [vmem:[%s24663_s1 + $0x1330] sm:$0xf]  ;;  %v12985_v13 = vld [vmem:[%s24663_s1 + $0x1300] sm:$0xf] }
 0x22c   : > { %5312 = vmatpush.bf16.msra.mxu2 %v12730_v15  ;;  %v4206_v15 = vpop.f32.mrf.mxu1 }
 0x22d   : > { %5325 = vmatpush.bf16.msra.mxu3 %v12794_v20  ;;  %5287 = vmatmul.bf16.vlgmr.msra.gmra.mxu0 %v20692_v57  ;;  %v4207_v16 = vadd.f32 %v4206_v15, %v4193_v44  ;;  %v16462_v20 = vld [vmem:[%s24663_s1 + $0x12a4] sm:$0xf0]  ;;  %v4619_v15 = vshll.u32 %v12594_v8, 16 }
 0x22e   : > { %5331 = vmatpush.bf16.msrb.mxu0 %v12914_v21  ;;  %5300 = vmatmul.bf16.vlgmr.msra.gmra.mxu1 %v20696_v3  ;;  %v13001_v21 = vld [vmem:[%s24663_s1 + $0x1320] sm:$0xf]  ;;  %v12938_v61 = vor.u32 %v16462_v20, %v12937_v19  ;;  %v16458_v44 = vld [vmem:[%s24663_s1 + $0x1284] sm:$0xf0]  ;;  %v13058_v19 = vor.u32 %v16492_v30, %v13057_v6  ;;  %v12659_v20 = vld [vmem:[%s24663_s1 + $0x1078] sm:$0xf0] }
 0x22f   : > { %5344 = vmatpush.bf16.msrb.mxu1 %v12978_v23  ;;  %5313 = vmatmul.bf16.vlgmr.msra.gmra.mxu2 %v20684_v35  ;;  %v13010_v23 = vor.u32 %v16480_v54, %v13009_v14  ;;  %v4616_v14 = vshrl.u32 %v12594_v8, 16  ;;  %v16490_v54 = vld [vmem:[%s24663_s1 + $0x1384] sm:$0xf0]  ;;  %v12922_v37 = vor.u32 %v16458_v44, %v12921_v11  ;;  %v16437_v30 = vld [vmem:[%s24663_s1 + $0x11e4] sm:$0xf] }
 0x230   : > { %5357 = vmatpush.bf16.msrb.mxu2 %v13042_v24  ;;  %5326 = vmatmul.bf16.vlgmr.msra.gmra.mxu3 %v20694_v2  ;;  %v13065_v24 = vld [vmem:[%s24663_s1 + $0x13a0] sm:$0xf]  ;;  %v16387_v44 = vld [vmem:[%s24663_s1 + $0x1054] sm:$0xf] }
 0x231   : > { %5370 = vmatpush.bf16.msrb.mxu3 %v13106_v55  ;;  %v12585_v55 = vld [vmem:[%s17410_s6 + $0x10] sm:$0xc] }
 0x232   : > { %5332 = vmatpush.bf16.msrb.mxu0 %v12906_v39  ;;  %v4219_v25 = vpop.f32.mrf.mxu2  ;;  %v12595_v39 = vld [vmem:[%s17410_s6 + $0x38] sm:$0x70]  ;;  %v4195_v5 = vpop.f32.mrf.mxu0  ;;  %v12586_v9 = vor.u32 %v16375_v46, %v12585_v55  ;;  %v12986_v55 = vor.u32 %v16474_v50, %v12985_v13  ;;  %v4621_v46 = vrot.slane %v4619_v15, 3 }
 0x233   : > { %5345 = vmatpush.bf16.msrb.mxu1 %v12970_v51  ;;  %v4220_v59 = vadd.f32 %v4219_v25, %v4207_v16  ;;  %v4232_v31 = vpop.f32.mrf.mxu3  ;;  %v16494_v51 = vld [vmem:[%s24663_s1 + $0x13a4] sm:$0xf0]  ;;  %v12598_v41 = vor.u32 %v16372_v1, %v12595_v39  ;;  %v12723_v25 = vld [vmem:[%s24663_s1 + $0x10f8] sm:$0xf0]  ;;  %v16389_v5 = vld [vmem:[%s24663_s1 + $0x1064] sm:$0xf] }
 0x234   : > { %5358 = vmatpush.bf16.msrb.mxu2 %v13034_v62  ;;  %v16371_v62 = vld [vmem:[%s17410_s6 + $0x14] sm:$0xc]  ;;  %v13066_v42 = vor.u32 %v16494_v51, %v13065_v24  ;;  %v4600_v28 = vshrl.u32 %v12586_v9, 16  ;;  %v4603_v56 = vshll.u32 %v12586_v9, 16  ;;  %v12851_v1 = vld [vmem:[%s24663_s1 + $0x11f8] sm:$0xf0] }
 0x235   : > { %5371 = vmatpush.bf16.msrb.mxu3 %v13098_v32  ;;  %v12865_v32 = vld [vmem:[%s24663_s1 + $0x1210] sm:$0xf]  ;;  %v20815_v26 = vadd.f32 %v4232_v31, %v4220_v59  ;;  %v12590_v45 = vor.u32 %v16371_v62, %v12587_v52  ;;  %v4624_v16 = vshrl.u32 %v12598_v41, 16  ;;  %v4627_v17 = vshll.u32 %v12598_v41, 16  ;;  %v16407_v24 = vld [vmem:[%s24663_s1 + $0x10f4] sm:$0xf] }
 0x236   : > { %5333 = vmatpush.bf16.msrb.mxu0 %v12898_v7  ;;  %v13002_v7 = vor.u32 %v16478_v22, %v13001_v21  ;;  %v16439_v59 = vld [vmem:[%s24663_s1 + $0x11f4] sm:$0xf]  ;;  %v4618_v31 = vrot.slane %v4616_v14, 2  ;;  %v4602_v39 = vrot.slane %v4600_v28, 2  ;;  %v4605_v51 = vrot.slane %v4603_v56, 3 }
 0x237   : > { %5346 = vmatpush.bf16.msrb.mxu1 %v12962_v29  ;;  %v16460_v29 = vld [vmem:[%s24663_s1 + $0x1294] sm:$0xf0]  ;;  %v4608_v21 = vshrl.u32 %v12590_v45, 16  ;;  %v4611_v22 = vshll.u32 %v12590_v45, 16  ;;  %v4626_v62 = vrot.slane %v4624_v16, 2  ;;  %v4629_v52 = vrot.slane %v4627_v17, 3 }
 0x238   : > { %5359 = vmatpush.bf16.msrb.mxu2 %v13026_v33  ;;  %v12993_v33 = vld [vmem:[%s24663_s1 + $0x1310] sm:$0xf]  ;;  %v12715_v9 = vld [vmem:[%s24663_s1 + $0x10e8] sm:$0xf0]  ;;  %v16421_v41 = vld [vmem:[%s24663_s1 + $0x1164] sm:$0xf] }
 0x239   : > { %5372 = vmatpush.bf16.msrb.mxu3 %v13090_v40  ;;  %v4208_v40 = vpop.f32.mrf.mxu1  ;;  %v20902_v6 = vor.u32 %v4629_v52, %v4626_v62  ;;  %v12707_v50 = vld [vmem:[%s24663_s1 + $0x10d8] sm:$0xf0]  ;;  %v16419_v14 = vld [vmem:[%s24663_s1 + $0x1154] sm:$0xf]  ;;  %v16385_v17 = vld [vmem:[%s24663_s1 + $0x1044] sm:$0xf] }
 0x23a   : > { %5334 = vmatpush.bf16.msrb.mxu0 %v12890_v47  ;;  %v12866_v47 = vor.u32 %v16444_v63, %v12865_v32  ;;  %v4221_v18 = vpop.f32.mrf.mxu2  ;;  %v4610_v32 = vrot.slane %v4608_v21, 2  ;;  %v4613_v63 = vrot.slane %v4611_v22, 3  ;;  %v12779_v40 = vld [vmem:[%s24663_s1 + $0x1168] sm:$0xf0]  ;;  %v12771_v15 = vld [vmem:[%s24663_s1 + $0x1158] sm:$0xf0] }
 0x23b   : > { %5347 = vmatpush.bf16.msrb.mxu1 %v12954_v49  ;;  %v12930_v49 = vor.u32 %v16460_v29, %v12929_v0  ;;  %v12726_v0 = vor.u32 %v16407_v24, %v12723_v25  ;;  %v16405_v29 = vld [vmem:[%s24663_s1 + $0x10e4] sm:$0xf]  ;;  %v12782_v11 = vor.u32 %v16421_v41, %v12779_v40  ;;  %v12774_v16 = vor.u32 %v16419_v14, %v12771_v15  ;;  %v12635_v18 = vld [vmem:[%s24663_s1 + $0x1048] sm:$0xf0]  ;;  %v16431_v52 = vld [vmem:[%s24663_s1 + $0x11b4] sm:$0xf] }
 0x23c   : > { %5360 = vmatpush.bf16.msrb.mxu2 %v13018_v12  ;;  %v12994_v12 = vor.u32 %v16476_v36, %v12993_v33  ;;  %v12854_v33 = vor.u32 %v16439_v59, %v12851_v1  ;;  %v20889_v36 = vor.u32 %v4621_v46, %v4618_v31  ;;  %v16417_v21 = vld [vmem:[%s24663_s1 + $0x1144] sm:$0xf]  ;;  %v12763_v22 = vld [vmem:[%s24663_s1 + $0x1148] sm:$0xf0]  ;;  %v12638_v24 = vor.u32 %v16385_v17, %v12635_v18  ;;  %v16383_v59 = vld [vmem:[%s24663_s1 + $0x1034] sm:$0xf] }
 0x23d   : > { %5373 = vmatpush.bf16.msrb.mxu3 %v13082_v53  ;;  %v13049_v53 = vld [vmem:[%s24663_s1 + $0x1380] sm:$0xf]  ;;  %v12627_v31 = vld [vmem:[%s24663_s1 + $0x1038] sm:$0xf0]  ;;  %v16399_v46 = vld [vmem:[%s24663_s1 + $0x10b4] sm:$0xf] }
 0x23e   : > { %5335 = vmatpush.bf16.msrb.mxu0 %v12882_v60  ;;  %v16391_v60 = vld [vmem:[%s24663_s1 + $0x1074] sm:$0xf]  ;;  %v12683_v41 = vld [vmem:[%s24663_s1 + $0x10a8] sm:$0xf0]  ;;  %v16413_v40 = vld [vmem:[%s24663_s1 + $0x1124] sm:$0xf] }
 0x23f   : > { %5348 = vmatpush.bf16.msrb.mxu1 %v12946_v34  ;;  %v4234_v34 = vpop.f32.mrf.mxu3  ;;  %v16395_v14 = vld [vmem:[%s24663_s1 + $0x1094] sm:$0xf] }
 0x240   : > { %5361 = vmatpush.bf16.msrb.mxu2 %v13010_v23  ;;  %v12858_v23 = vor.u32 %v16442_v10, %v12857_v43  ;;  %v12843_v43 = vld [vmem:[%s24663_s1 + $0x11e8] sm:$0xf0]  ;;  %v12718_v10 = vor.u32 %v16405_v29, %v12715_v9  ;;  %v16433_v34 = vld [vmem:[%s24663_s1 + $0x11c4] sm:$0xf]  ;;  %v16427_v17 = vld [vmem:[%s24663_s1 + $0x1194] sm:$0xf] }
 0x241   : > { %5374 = vmatpush.bf16.msrb.mxu3 %v13074_v58  ;;  %v12787_v58 = vld [vmem:[%s24663_s1 + $0x1178] sm:$0xf0]  ;;  %v12846_v13 = vor.u32 %v16437_v30, %v12843_v43  ;;  %v12747_v30 = vld [vmem:[%s24663_s1 + $0x1128] sm:$0xf0]  ;;  %v16429_v43 = vld [vmem:[%s24663_s1 + $0x11a4] sm:$0xf] }
 0x242   : > { %5336 = vmatpush.bf16.msrb.mxu0 %v12874_v4  ;;  %v13050_v4 = vor.u32 %v16490_v54, %v13049_v53  ;;  %v12790_v8 = vor.u32 %v16423_v27, %v12787_v58  ;;  %v16435_v53 = vld [vmem:[%s24663_s1 + $0x11d4] sm:$0xf]  ;;  %v12835_v54 = vld [vmem:[%s24663_s1 + $0x11d8] sm:$0xf0] }
 0x243   : > { %5349 = vmatpush.bf16.msrb.mxu1 %v12938_v61  ;;  %v12662_v61 = vor.u32 %v16391_v60, %v12659_v20  ;;  %v12838_v60 = vor.u32 %v16435_v53, %v12835_v54  ;;  %v12699_v20 = vld [vmem:[%s24663_s1 + $0x10c8] sm:$0xf0] }
 0x244   : > { %5362 = vmatpush.bf16.msrb.mxu2 %v13002_v7  ;;  %v12651_v7 = vld [vmem:[%s24663_s1 + $0x1068] sm:$0xf0] }
 0x245   : > { %5375 = vmatpush.bf16.msrb.mxu3 %v13066_v42  ;;  %v20900_v42 = vor.u32 %v4605_v51, %v4602_v39  ;;  %v12654_v45 = vor.u32 %v16389_v5, %v12651_v7  ;;  %v12691_v39 = vld [vmem:[%s24663_s1 + $0x10b8] sm:$0xf0]  ;;  %v12619_v5 = vld [vmem:[%s24663_s1 + $0x1028] sm:$0xf0]  ;;  %v16397_v7 = vld [vmem:[%s24663_s1 + $0x10a4] sm:$0xf] }
 0x246   : > { %5337 = vmatpush.bf16.msrb.mxu0 %v12866_v47  ;;  %v20910_v47 = vor.u32 %v4613_v63, %v4610_v32  ;;  %v12755_v51 = vld [vmem:[%s24663_s1 + $0x1138] sm:$0xf0]  ;;  %v12694_v32 = vor.u32 %v16399_v46, %v12691_v39  ;;  %v16471_v46 = vld [vmem:[%s24663_s1 + $0x12f4] sm:$0xf] }
 0x247   : > { %5350 = vmatpush.bf16.msrb.mxu1 %v12930_v49  ;;  %v12643_v49 = vld [vmem:[%s24663_s1 + $0x1058] sm:$0xf0] }
 0x248   : > { %5363 = vmatpush.bf16.msrb.mxu2 %v12994_v12  ;;  %v16403_v12 = vld [vmem:[%s24663_s1 + $0x10d4] sm:$0xf]  ;;  %v12646_v28 = vor.u32 %v16387_v44, %v12643_v49  ;;  %v12686_v49 = vor.u32 %v16397_v7, %v12683_v41  ;;  %v12979_v39 = vld [vmem:[%s24663_s1 + $0x12f8] sm:$0xf0]  ;;  %v12907_v7 = vld [vmem:[%s24663_s1 + $0x1268] sm:$0xf0] }
 0x249   : > { %5376 = vmatpush.bf16.msrb.mxu3 %v13058_v19  ;;  %v12710_v56 = vor.u32 %v16403_v12, %v12707_v50  ;;  %v16401_v19 = vld [vmem:[%s24663_s1 + $0x10c4] sm:$0xf]  ;;  %v12750_v12 = vor.u32 %v16413_v40, %v12747_v30  ;;  %v12611_v50 = vld [vmem:[%s24663_s1 + $0x1018] sm:$0xf0]  ;;  %v13035_v40 = vld [vmem:[%s24663_s1 + $0x1368] sm:$0xf0] }
 0x24a   : > { %5338 = vmatpush.bf16.msrb.mxu0 %v12858_v23  ;;  %v12827_v23 = vld [vmem:[%s24663_s1 + $0x11c8] sm:$0xf0]  ;;  %v4245_v25 = vpop.f32.mrf.mxu0  ;;  %v12702_v27 = vor.u32 %v16401_v19, %v12699_v20  ;;  %v16377_v19 = vld [vmem:[%s24663_s1 + $0x1004] sm:$0xf] }
 0x24b   : > { %5351 = vmatpush.bf16.msrb.mxu1 %v12922_v37  ;;  %v12766_v37 = vor.u32 %v16417_v21, %v12763_v22  ;;  %v4258_v58 = vpop.f32.mrf.mxu1  ;;  %v12830_v1 = vor.u32 %v16433_v34, %v12827_v23  ;;  %v16393_v22 = vld [vmem:[%s24663_s1 + $0x1084] sm:$0xf]  ;;  %v12667_v34 = vld [vmem:[%s24663_s1 + $0x1088] sm:$0xf0] }
 0x24c   : > { %5364 = vmatpush.bf16.msrb.mxu2 %v12986_v55  ;;  %v4246_v55 = vadd.f32 %v4245_v25, %v20815_v26  ;;  %v16415_v26 = vld [vmem:[%s24663_s1 + $0x1134] sm:$0xf]  ;;  %v16409_v23 = vld [vmem:[%s24663_s1 + $0x1104] sm:$0xf] }
 0x24d   : > { %5377 = vmatpush.bf16.msrb.mxu3 %v13050_v4  ;;  %5339 = vmatmul.bf16.vlgmr.msrb.gmra.mxu0 %v20900_v42  ;;  %v12819_v4 = vld [vmem:[%s24663_s1 + $0x11b8] sm:$0xf0]  ;;  %v12758_v63 = vor.u32 %v16415_v26, %v12755_v51  ;;  %v16487_v26 = vld [vmem:[%s24663_s1 + $0x1374] sm:$0xf]  ;;  %v16485_v41 = vld [vmem:[%s24663_s1 + $0x1364] sm:$0xf] }
 0x24e   : > { %5383 = vmatpush.bf16.msra.mxu0 %v12662_v61  ;;  %5352 = vmatmul.bf16.vlgmr.msrb.gmra.mxu1 %v20910_v47  ;;  %v4259_v62 = vadd.f32 %v4258_v58, %v4246_v55  ;;  %v12630_v61 = vor.u32 %v16383_v59, %v12627_v31  ;;  %v12822_v29 = vor.u32 %v16431_v52, %v12819_v4  ;;  %v12795_v55 = vld [vmem:[%s24663_s1 + $0x1188] sm:$0xf0]  ;;  %v16455_v59 = vld [vmem:[%s24663_s1 + $0x1274] sm:$0xf]  ;;  %v12915_v31 = vld [vmem:[%s24663_s1 + $0x1278] sm:$0xf0] }
 0x24f   : > { %5396 = vmatpush.bf16.msra.mxu1 %v12726_v0  ;;  %5365 = vmatmul.bf16.vlgmr.msrb.gmra.mxu2 %v20889_v36  ;;  %v13043_v51 = vld [vmem:[%s24663_s1 + $0x1378] sm:$0xf0]  ;;  %v16503_v4 = vld [vmem:[%s24663_s1 + $0x13f4] sm:$0xf]  ;;  %v16501_v30 = vld [vmem:[%s24663_s1 + $0x13e4] sm:$0xf] }
 0x250   : > { %5409 = vmatpush.bf16.msra.mxu2 %v12790_v8  ;;  %5378 = vmatmul.bf16.vlgmr.msrb.gmra.mxu3 %v20902_v6  ;;  %v16381_v8 = vld [vmem:[%s24663_s1 + $0x1024] sm:$0xf] }
 0x251   : > { %5422 = vmatpush.bf16.msra.mxu3 %v12854_v33 }
 0x252   : > { %5384 = vmatpush.bf16.msra.mxu0 %v12654_v45  ;;  %v4271_v0 = vpop.f32.mrf.mxu2  ;;  %v12811_v45 = vld [vmem:[%s24663_s1 + $0x11a8] sm:$0xf0]  ;;  %v4247_v44 = vpop.f32.mrf.mxu0 }
 0x253   : > { %5397 = vmatpush.bf16.msra.mxu1 %v12718_v10  ;;  %v4272_v33 = vadd.f32 %v4271_v0, %v4259_v62  ;;  %v4284_v9 = vpop.f32.mrf.mxu3  ;;  %v4260_v15 = vpop.f32.mrf.mxu1  ;;  %v12814_v54 = vor.u32 %v16429_v43, %v12811_v45  ;;  %v12670_v62 = vor.u32 %v16393_v22, %v12667_v34  ;;  %v12982_v0 = vor.u32 %v16471_v46, %v12979_v39  ;;  %v13099_v43 = vld [vmem:[%s24663_s1 + $0x13e8] sm:$0xf0]  ;;  %v16451_v44 = vld [vmem:[%s24663_s1 + $0x1254] sm:$0xf]  ;;  %v13075_v39 = vld [vmem:[%s24663_s1 + $0x13b8] sm:$0xf0] }
 0x254   : > { %5410 = vmatpush.bf16.msra.mxu2 %v12782_v11  ;;  %v12622_v11 = vor.u32 %v16381_v8, %v12619_v5  ;;  %v13046_v8 = vor.u32 %v16487_v26, %v13043_v51  ;;  %v16453_v5 = vld [vmem:[%s24663_s1 + $0x1264] sm:$0xf]  ;;  %v13027_v15 = vld [vmem:[%s24663_s1 + $0x1358] sm:$0xf0] }
 0x255   : > { %5423 = vmatpush.bf16.msra.mxu3 %v12846_v13  ;;  %v4285_v10 = vadd.f32 %v4284_v9, %v4272_v33  ;;  %v16379_v13 = vld [vmem:[%s24663_s1 + $0x1014] sm:$0xf]  ;;  %v12971_v9 = vld [vmem:[%s24663_s1 + $0x12e8] sm:$0xf0]  ;;  %v12910_v45 = vor.u32 %v16453_v5, %v12907_v7 }
 0x256   : > { %5385 = vmatpush.bf16.msra.mxu0 %v12646_v28  ;;  %v12675_v28 = vld [vmem:[%s24663_s1 + $0x1098] sm:$0xf0]  ;;  %v12614_v18 = vor.u32 %v16379_v13, %v12611_v50  ;;  %v13102_v13 = vor.u32 %v16501_v30, %v13099_v43  ;;  %v13003_v5 = vld [vmem:[%s24663_s1 + $0x1328] sm:$0xf0] }
 0x257   : > { %5398 = vmatpush.bf16.msra.mxu1 %v12710_v56  ;;  %v21023_v53 = vadd.f32 %v4285_v10, %v20192_v38  ;;  %v16411_v56 = vld [vmem:[%s24663_s1 + $0x1114] sm:$0xf]  ;;  %v12803_v38 = vld [vmem:[%s24663_s1 + $0x1198] sm:$0xf0]  ;;  %v12678_v20 = vor.u32 %v16395_v14, %v12675_v28 }
 0x258   : > { %5411 = vmatpush.bf16.msra.mxu2 %v12774_v16  ;;  %v12739_v16 = vld [vmem:[%s24663_s1 + $0x1118] sm:$0xf0]  ;;  %v12806_v25 = vor.u32 %v16427_v17, %v12803_v38  ;;  %v16483_v14 = vld [vmem:[%s24663_s1 + $0x1354] sm:$0xf]  ;;  %v16449_v17 = vld [vmem:[%s24663_s1 + $0x1244] sm:$0xf] }
 0x259   : > { %5424 = vmatpush.bf16.msra.mxu3 %v12838_v60  ;;  %v12603_v60 = vld [vmem:[%s24663_s1 + $0x1008] sm:$0xf0]  ;;  %v12742_v21 = vor.u32 %v16411_v56, %v12739_v16  ;;  %v12963_v50 = vld [vmem:[%s24663_s1 + $0x12d8] sm:$0xf0] }
 0x25a   : > { %5386 = vmatpush.bf16.msra.mxu0 %v12638_v24  ;;  %v4273_v24 = vpop.f32.mrf.mxu2  ;;  %v13091_v28 = vld [vmem:[%s24663_s1 + $0x13d8] sm:$0xf0]  ;;  %v12891_v38 = vld [vmem:[%s24663_s1 + $0x1248] sm:$0xf0] }
 0x25b   : > { %5399 = vmatpush.bf16.msra.mxu1 %v12702_v27  ;;  %v12731_v27 = vld [vmem:[%s24663_s1 + $0x1108] sm:$0xf0]  ;;  %v4286_v58 = vpop.f32.mrf.mxu3  ;;  %v16447_v24 = vld [vmem:[%s24663_s1 + $0x1234] sm:$0xf] }
 0x25c   : > { %5412 = vmatpush.bf16.msra.mxu2 %v12766_v37  ;;  %v16425_v37 = vld [vmem:[%s24663_s1 + $0x1184] sm:$0xf]  ;;  %v12734_v52 = vor.u32 %v16409_v23, %v12731_v27  ;;  %v16463_v27 = vld [vmem:[%s24663_s1 + $0x12b4] sm:$0xf]  ;;  %v12947_v58 = vld [vmem:[%s24663_s1 + $0x12b8] sm:$0xf0] }
 0x25d   : > { %5425 = vmatpush.bf16.msra.mxu3 %v12830_v1  ;;  %v12606_v1 = vor.u32 %v16377_v19, %v12603_v60  ;;  %v13019_v19 = vld [vmem:[%s24663_s1 + $0x1348] sm:$0xf0]  ;;  %v16497_v60 = vld [vmem:[%s24663_s1 + $0x13c4] sm:$0xf]  ;;  %v12950_v51 = vor.u32 %v16463_v27, %v12947_v58  ;;  %v13457_v27 = vld [vmem:[%s24663_s1 + $0x1570] sm:$0xf] }
 0x25e   : > { %5387 = vmatpush.bf16.msra.mxu0 %v12630_v61  ;;  %v13107_v61 = vld [vmem:[%s24663_s1 + $0x13f8] sm:$0xf0] }
 0x25f   : > { %5400 = vmatpush.bf16.msra.mxu1 %v12694_v32  ;;  %v12798_v32 = vor.u32 %v16425_v37, %v12795_v55  ;;  %v13110_v33 = vor.u32 %v16503_v4, %v13107_v61  ;;  %v12875_v4 = vld [vmem:[%s24663_s1 + $0x1228] sm:$0xf0]  ;;  %v16461_v61 = vld [vmem:[%s24663_s1 + $0x12a4] sm:$0xf] }
 0x260   : > { %5413 = vmatpush.bf16.msra.mxu2 %v12758_v63  ;;  %v12918_v63 = vor.u32 %v16455_v59, %v12915_v31  ;;  %v16479_v59 = vld [vmem:[%s24663_s1 + $0x1334] sm:$0xf]  ;;  %v13011_v31 = vld [vmem:[%s24663_s1 + $0x1338] sm:$0xf0] }
 0x261   : > { %5426 = vmatpush.bf16.msra.mxu3 %v12822_v29  ;;  %v16469_v29 = vld [vmem:[%s24663_s1 + $0x12e4] sm:$0xf] }
 0x262   : > { %5388 = vmatpush.bf16.msra.mxu0 %v12622_v11  ;;  %v12974_v10 = vor.u32 %v16469_v29, %v12971_v9  ;;  %v13038_v11 = vor.u32 %v16485_v41, %v13035_v40  ;;  %v13067_v9 = vld [vmem:[%s24663_s1 + $0x13a8] sm:$0xf0] }
 0x263   : > { %5401 = vmatpush.bf16.msra.mxu1 %v12686_v49  ;;  %v12899_v49 = vld [vmem:[%s24663_s1 + $0x1258] sm:$0xf0] }
 0x264   : > { %5414 = vmatpush.bf16.msra.mxu2 %v12750_v12  ;;  %v16467_v12 = vld [vmem:[%s24663_s1 + $0x12d4] sm:$0xf]  ;;  %v12902_v56 = vor.u32 %v16451_v44, %v12899_v49 }
 0x265   : > { %5427 = vmatpush.bf16.msra.mxu3 %v12814_v54  ;;  %v16499_v54 = vld [vmem:[%s24663_s1 + $0x13d4] sm:$0xf]  ;;  %v12966_v16 = vor.u32 %v16467_v12, %v12963_v50 }
 0x266   : > { %5389 = vmatpush.bf16.msra.mxu0 %v12614_v18  ;;  %v16481_v18 = vld [vmem:[%s24663_s1 + $0x1344] sm:$0xf]  ;;  %v16459_v44 = vld [vmem:[%s24663_s1 + $0x1294] sm:$0xf] }
 0x267   : > { %5402 = vmatpush.bf16.msra.mxu1 %v12678_v20  ;;  %v13083_v20 = vld [vmem:[%s24663_s1 + $0x13c8] sm:$0xf0]  ;;  %v13022_v23 = vor.u32 %v16481_v18, %v13019_v19  ;;  %v16475_v50 = vld [vmem:[%s24663_s1 + $0x1314] sm:$0xf] }
 0x268   : > { %5415 = vmatpush.bf16.msra.mxu2 %v12742_v21  ;;  %v12894_v21 = vor.u32 %v16449_v17, %v12891_v38  ;;  %v13086_v55 = vor.u32 %v16497_v60, %v13083_v20  ;;  %v16457_v38 = vld [vmem:[%s24663_s1 + $0x1284] sm:$0xf]  ;;  %v12987_v19 = vld [vmem:[%s24663_s1 + $0x1308] sm:$0xf0] }
 0x269   : > { %5428 = vmatpush.bf16.msra.mxu3 %v12806_v25  ;;  %v12883_v25 = vld [vmem:[%s24663_s1 + $0x1238] sm:$0xf0]  ;;  %v16489_v60 = vld [vmem:[%s24663_s1 + $0x1384] sm:$0xf]  ;;  %v13051_v20 = vld [vmem:[%s24663_s1 + $0x1388] sm:$0xf0] }
 0x26a   : > { %5390 = vmatpush.bf16.msra.mxu0 %v12606_v1  ;;  %v4297_v22 = vpop.f32.mrf.mxu0  ;;  %v16495_v1 = vld [vmem:[%s24663_s1 + $0x13b4] sm:$0xf]  ;;  %v12886_v26 = vor.u32 %v16447_v24, %v12883_v25  ;;  %v16544_v25 = vld [vmem:[%s24663_s1 + $0x14f4] sm:$0xf0] }
 0x26b   : > { %5403 = vmatpush.bf16.msra.mxu1 %v12670_v62  ;;  %v4310_v37 = vpop.f32.mrf.mxu1  ;;  %v13014_v62 = vor.u32 %v16479_v59, %v13011_v31  ;;  %v13521_v59 = vld [vmem:[%s24663_s1 + $0x15f0] sm:$0xf]  ;;  %v16576_v31 = vld [vmem:[%s24663_s1 + $0x15f4] sm:$0xf0] }
 0x26c   : > { %5416 = vmatpush.bf16.msra.mxu2 %v12734_v52  ;;  %v4311_v46 = vadd.f32 %v4310_v37, %v4297_v22  ;;  %v16445_v52 = vld [vmem:[%s24663_s1 + $0x1224] sm:$0xf]  ;;  %v13329_v22 = vld [vmem:[%s24663_s1 + $0x1470] sm:$0xf]  ;;  %v16560_v37 = vld [vmem:[%s24663_s1 + $0x1574] sm:$0xf0] }
 0x26d   : > { %5429 = vmatpush.bf16.msra.mxu3 %v12798_v32  ;;  %5391 = vmatmul.bf16.vlgmr.msra.gmra.mxu0 %v20692_v57  ;;  %v16465_v57 = vld [vmem:[%s24663_s1 + $0x12c4] sm:$0xf]  ;;  %v12878_v41 = vor.u32 %v16445_v52, %v12875_v4  ;;  %v13385_v52 = vld [vmem:[%s24663_s1 + $0x14e0] sm:$0xf]  ;;  %v13522_v4 = vor.u32 %v16576_v31, %v13521_v59 }
 0x26e   : > { %5435 = vmatpush.bf16.msrb.mxu0 %v12918_v63  ;;  %5404 = vmatmul.bf16.vlgmr.msra.gmra.mxu1 %v20696_v3  ;;  %v12955_v3 = vld [vmem:[%s24663_s1 + $0x12c8] sm:$0xf0]  ;;  %v13078_v63 = vor.u32 %v16495_v1, %v13075_v39 }
 0x26f   : > { %5448 = vmatpush.bf16.msrb.mxu1 %v12982_v0  ;;  %5417 = vmatmul.bf16.vlgmr.msra.gmra.mxu2 %v20684_v35  ;;  %v13030_v35 = vor.u32 %v16483_v14, %v13027_v15  ;;  %v12958_v34 = vor.u32 %v16465_v57, %v12955_v3  ;;  %v12939_v0 = vld [vmem:[%s24663_s1 + $0x12a8] sm:$0xf0]  ;;  %v12995_v14 = vld [vmem:[%s24663_s1 + $0x1318] sm:$0xf0]  ;;  %v16491_v15 = vld [vmem:[%s24663_s1 + $0x1394] sm:$0xf] }
 0x270   : > { %5461 = vmatpush.bf16.msrb.mxu2 %v13046_v8  ;;  %5430 = vmatmul.bf16.vlgmr.msra.gmra.mxu3 %v20694_v2  ;;  %v13094_v2 = vor.u32 %v16499_v54, %v13091_v28  ;;  %v16477_v8 = vld [vmem:[%s24663_s1 + $0x1324] sm:$0xf]  ;;  %v12942_v43 = vor.u32 %v16461_v61, %v12939_v0  ;;  %v13059_v54 = vld [vmem:[%s24663_s1 + $0x1398] sm:$0xf0]  ;;  %v12998_v17 = vor.u32 %v16475_v50, %v12995_v14  ;;  %v12923_v57 = vld [vmem:[%s24663_s1 + $0x1288] sm:$0xf0] }
 0x271   : > { %5474 = vmatpush.bf16.msrb.mxu3 %v13110_v33  ;;  %v16493_v33 = vld [vmem:[%s24663_s1 + $0x13a4] sm:$0xf]  ;;  %v13062_v18 = vor.u32 %v16491_v15, %v13059_v54  ;;  %v16542_v61 = vld [vmem:[%s24663_s1 + $0x14e4] sm:$0xf0]  ;;  %v13513_v0 = vld [vmem:[%s24663_s1 + $0x15e0] sm:$0xf] }
 0x272   : > { %5436 = vmatpush.bf16.msrb.mxu0 %v12910_v45  ;;  %v4323_v32 = vpop.f32.mrf.mxu2  ;;  %v4299_v30 = vpop.f32.mrf.mxu0  ;;  %v13006_v45 = vor.u32 %v16477_v8, %v13003_v5  ;;  %v13070_v12 = vor.u32 %v16493_v33, %v13067_v9  ;;  %v16574_v8 = vld [vmem:[%s24663_s1 + $0x15e4] sm:$0xf0]  ;;  %v13313_v33 = vld [vmem:[%s24663_s1 + $0x1450] sm:$0xf]  ;;  %v16524_v9 = vld [vmem:[%s24663_s1 + $0x1454] sm:$0xf0] }
 0x273   : > { %5449 = vmatpush.bf16.msrb.mxu1 %v12974_v10  ;;  %v4324_v7 = vadd.f32 %v4323_v32, %v4311_v46  ;;  %v4336_v29 = vpop.f32.mrf.mxu3  ;;  %v16443_v10 = vld [vmem:[%s24663_s1 + $0x1214] sm:$0xf]  ;;  %v4312_v49 = vpop.f32.mrf.mxu1  ;;  %v13054_v46 = vor.u32 %v16489_v60, %v13051_v20  ;;  %v13449_v32 = vld [vmem:[%s24663_s1 + $0x1560] sm:$0xf]  ;;  %v13514_v30 = vor.u32 %v16574_v8, %v13513_v0  ;;  %v16554_v15 = vld [vmem:[%s24663_s1 + $0x1544] sm:$0xf0] }
 0x274   : > { %5462 = vmatpush.bf16.msrb.mxu2 %v13038_v11  ;;  %v12867_v11 = vld [vmem:[%s24663_s1 + $0x1218] sm:$0xf0]  ;;  %v13433_v14 = vld [vmem:[%s24663_s1 + $0x1540] sm:$0xf]  ;;  %v16536_v60 = vld [vmem:[%s24663_s1 + $0x14b4] sm:$0xf0] }
 0x275   : > { %5475 = vmatpush.bf16.msrb.mxu3 %v13102_v13  ;;  %v21212_v40 = vadd.f32 %v4336_v29, %v4324_v7  ;;  %v12931_v13 = vld [vmem:[%s24663_s1 + $0x1298] sm:$0xf0]  ;;  %v12870_v28 = vor.u32 %v16443_v10, %v12867_v11  ;;  %v13386_v7 = vor.u32 %v16542_v61, %v13385_v52  ;;  %v16556_v10 = vld [vmem:[%s24663_s1 + $0x1554] sm:$0xf0]  ;;  %v13497_v54 = vld [vmem:[%s24663_s1 + $0x15c0] sm:$0xf] }
 0x276   : > { %5437 = vmatpush.bf16.msrb.mxu0 %v12902_v56  ;;  %v16441_v56 = vld [vmem:[%s24663_s1 + $0x1204] sm:$0xf]  ;;  %v16572_v11 = vld [vmem:[%s24663_s1 + $0x15d4] sm:$0xf0]  ;;  %v13281_v61 = vld [vmem:[%s24663_s1 + $0x1410] sm:$0xf] }
 0x277   : > { %5450 = vmatpush.bf16.msrb.mxu1 %v12966_v16  ;;  %v12859_v16 = vld [vmem:[%s24663_s1 + $0x1208] sm:$0xf0]  ;;  %v16552_v20 = vld [vmem:[%s24663_s1 + $0x1534] sm:$0xf0] }
 0x278   : > { %5463 = vmatpush.bf16.msrb.mxu2 %v13030_v35  ;;  %v12934_v35 = vor.u32 %v16459_v44, %v12931_v13  ;;  %v12862_v24 = vor.u32 %v16441_v56, %v12859_v16  ;;  %v13314_v44 = vor.u32 %v16524_v9, %v13313_v33  ;;  %v13369_v13 = vld [vmem:[%s24663_s1 + $0x14c0] sm:$0xf] }
 0x279   : > { %5476 = vmatpush.bf16.msrb.mxu3 %v13094_v2  ;;  %v16473_v2 = vld [vmem:[%s24663_s1 + $0x1304] sm:$0xf] }
 0x27a   : > { %5438 = vmatpush.bf16.msrb.mxu0 %v12894_v21  ;;  %v4325_v3 = vpop.f32.mrf.mxu2  ;;  %v12990_v58 = vor.u32 %v16473_v2, %v12987_v19  ;;  %v13297_v2 = vld [vmem:[%s24663_s1 + $0x1430] sm:$0xf] }
 0x27b   : > { %5451 = vmatpush.bf16.msrb.mxu1 %v12958_v34  ;;  %v4338_v21 = vpop.f32.mrf.mxu3  ;;  %v16528_v34 = vld [vmem:[%s24663_s1 + $0x1474] sm:$0xf0] }
 0x27c   : > { %5464 = vmatpush.bf16.msrb.mxu2 %v13022_v23  ;;  %v13393_v23 = vld [vmem:[%s24663_s1 + $0x14f0] sm:$0xf]  ;;  %v13330_v1 = vor.u32 %v16528_v34, %v13329_v22  ;;  %v16520_v3 = vld [vmem:[%s24663_s1 + $0x1434] sm:$0xf0] }
 0x27d   : > { %5477 = vmatpush.bf16.msrb.mxu3 %v13086_v55  ;;  %v12926_v55 = vor.u32 %v16457_v38, %v12923_v57  ;;  %v13394_v39 = vor.u32 %v16544_v25, %v13393_v23  ;;  %v13489_v22 = vld [vmem:[%s24663_s1 + $0x15b0] sm:$0xf]  ;;  %v16568_v34 = vld [vmem:[%s24663_s1 + $0x15b4] sm:$0xf0]  ;;  %v13298_v23 = vor.u32 %v16520_v3, %v13297_v2  ;;  %v16505_v3 = vld [vmem:[%s17410_s6 + $0x4] sm:$0x8] }
 0x27e   : > { %5439 = vmatpush.bf16.msrb.mxu0 %v12886_v26  ;;  %v13458_v26 = vor.u32 %v16560_v37, %v13457_v27  ;;  %v13289_v37 = vld [vmem:[%s24663_s1 + $0x1420] sm:$0xf]  ;;  %v13490_v59 = vor.u32 %v16568_v34, %v13489_v22  ;;  %v13649_v2 = vld [vmem:[%s24663_s1 + $0x16f0] sm:$0xf] }
 0x27f   : > { %5452 = vmatpush.bf16.msrb.mxu1 %v12950_v51  ;;  %v13321_v51 = vld [vmem:[%s24663_s1 + $0x1460] sm:$0xf] }
 0x280   : > { %5465 = vmatpush.bf16.msrb.mxu2 %v13014_v62  ;;  %v16526_v62 = vld [vmem:[%s24663_s1 + $0x1464] sm:$0xf0] }
 0x281   : > { %5478 = vmatpush.bf16.msrb.mxu3 %v13078_v63  ;;  %v16558_v63 = vld [vmem:[%s24663_s1 + $0x1564] sm:$0xf0]  ;;  %v13322_v5 = vor.u32 %v16526_v62, %v13321_v51  ;;  %v13481_v51 = vld [vmem:[%s24663_s1 + $0x15a0] sm:$0xf] }
 0x282   : > { %5440 = vmatpush.bf16.msrb.mxu0 %v12878_v41  ;;  %v13450_v29 = vor.u32 %v16558_v63, %v13449_v32  ;;  %v13377_v41 = vld [vmem:[%s24663_s1 + $0x14d0] sm:$0xf]  ;;  %v16566_v62 = vld [vmem:[%s24663_s1 + $0x15a4] sm:$0xf0]  ;;  %v16516_v32 = vld [vmem:[%s24663_s1 + $0x1414] sm:$0xf0] }
 0x283   : > { %5453 = vmatpush.bf16.msrb.mxu1 %v12942_v43  ;;  %v16540_v43 = vld [vmem:[%s24663_s1 + $0x14d4] sm:$0xf0] }
 0x284   : > { %5466 = vmatpush.bf16.msrb.mxu2 %v13006_v45  ;;  %v13441_v45 = vld [vmem:[%s24663_s1 + $0x1550] sm:$0xf]  ;;  %v13378_v49 = vor.u32 %v16540_v43, %v13377_v41  ;;  %v13482_v41 = vor.u32 %v16566_v62, %v13481_v51  ;;  %v13705_v62 = vld [vmem:[%s24663_s1 + $0x1760] sm:$0xf] }
 0x285   : > { %5479 = vmatpush.bf16.msrb.mxu3 %v13070_v12  ;;  %v13442_v12 = vor.u32 %v16556_v10, %v13441_v45  ;;  %v13473_v43 = vld [vmem:[%s24663_s1 + $0x1590] sm:$0xf]  ;;  %v16564_v45 = vld [vmem:[%s24663_s1 + $0x1594] sm:$0xf0]  ;;  %v13273_v10 = vld [vmem:[%s24663_s1 + $0x1400] sm:$0xf] }
 0x286   : > { %5441 = vmatpush.bf16.msrb.mxu0 %v12870_v28  ;;  %v16570_v28 = vld [vmem:[%s24663_s1 + $0x15c4] sm:$0xf0] }
 0x287   : > { %5454 = vmatpush.bf16.msrb.mxu1 %v12934_v35  ;;  %v13498_v19 = vor.u32 %v16570_v28, %v13497_v54  ;;  %v13249_v54 = vld [vmem:[%s17410_s6 + $0x8] sm:$0x8]  ;;  %v16510_v28 = vld [vmem:[%s17410_s6 + $0x24] sm:$0x70] }
 0x288   : > { %5467 = vmatpush.bf16.msrb.mxu2 %v12998_v17  ;;  %v13434_v17 = vor.u32 %v16554_v15, %v13433_v14  ;;  %v16592_v14 = vld [vmem:[%s24663_s1 + $0x1674] sm:$0xf0]  ;;  %v13250_v22 = vor.u32 %v16510_v28, %v13249_v54  ;;  %v13753_v54 = vld [vmem:[%s24663_s1 + $0x17c0] sm:$0xf]  ;;  %v16634_v28 = vld [vmem:[%s24663_s1 + $0x17c4] sm:$0xf0] }
 0x289   : > { %5480 = vmatpush.bf16.msrb.mxu3 %v13062_v18  ;;  %v13361_v18 = vld [vmem:[%s24663_s1 + $0x14b0] sm:$0xf] }
 0x28a   : > { %5442 = vmatpush.bf16.msrb.mxu0 %v12862_v24  ;;  %v4349_v16 = vpop.f32.mrf.mxu0  ;;  %v13362_v24 = vor.u32 %v16536_v60, %v13361_v18  ;;  %v13243_v18 = vld [vmem:[%s17410_s6 + $0x20] sm:$0x70] }
 0x28b   : > { %5455 = vmatpush.bf16.msrb.mxu1 %v12926_v55  ;;  %v4350_v38 = vadd.f32 %v4349_v16, %v21212_v40  ;;  %v4362_v57 = vpop.f32.mrf.mxu1  ;;  %v13425_v40 = vld [vmem:[%s24663_s1 + $0x1530] sm:$0xf]  ;;  %v16518_v55 = vld [vmem:[%s24663_s1 + $0x1424] sm:$0xf0]  ;;  %v13474_v16 = vor.u32 %v16564_v45, %v13473_v43  ;;  %v16604_v45 = vld [vmem:[%s24663_s1 + $0x16d4] sm:$0xf0] }
 0x28c   : > { %5468 = vmatpush.bf16.msrb.mxu2 %v12990_v58  ;;  %v13426_v25 = vor.u32 %v16552_v20, %v13425_v40  ;;  %v13353_v58 = vld [vmem:[%s24663_s1 + $0x14a0] sm:$0xf]  ;;  %v16608_v40 = vld [vmem:[%s24663_s1 + $0x16f4] sm:$0xf0]  ;;  %v13713_v20 = vld [vmem:[%s24663_s1 + $0x1770] sm:$0xf] }
 0x28d   : > { %5481 = vmatpush.bf16.msrb.mxu3 %v13054_v46  ;;  %5443 = vmatmul.bf16.vlgmr.msrb.gmra.mxu0 %v20900_v42  ;;  %v13305_v42 = vld [vmem:[%s24663_s1 + $0x1440] sm:$0xf]  ;;  %v4363_v21 = vadd.f32 %v4362_v57, %v4350_v38  ;;  %v16506_v38 = vld [vmem:[%s17410_s6 + $0xc] sm:$0x8]  ;;  %v13251_v57 = vld [vmem:[%s17410_s6 + $0x28] sm:$0x70] }
 0x28e   : > { %6318 = vmatpush.bf16.msra.mxu0 %v13330_v1  ;;  %5456 = vmatmul.bf16.vlgmr.msrb.gmra.mxu1 %v20910_v47  ;;  %v16538_v47 = vld [vmem:[%s24663_s1 + $0x14c4] sm:$0xf0] }
 0x28f   : > { %6331 = vmatpush.bf16.msra.mxu1 %v13394_v39  ;;  %5469 = vmatmul.bf16.vlgmr.msrb.gmra.mxu2 %v20889_v36  ;;  %v13505_v36 = vld [vmem:[%s24663_s1 + $0x15d0] sm:$0xf]  ;;  %v13370_v35 = vor.u32 %v16538_v47, %v13369_v13  ;;  %v16534_v1 = vld [vmem:[%s24663_s1 + $0x14a4] sm:$0xf0]  ;;  %v13417_v39 = vld [vmem:[%s24663_s1 + $0x1520] sm:$0xf] }
 0x290   : > { %6344 = vmatpush.bf16.msra.mxu2 %v13458_v26  ;;  %5482 = vmatmul.bf16.vlgmr.msrb.gmra.mxu3 %v20902_v6  ;;  %v16522_v6 = vld [vmem:[%s24663_s1 + $0x1444] sm:$0xf0]  ;;  %v13506_v50 = vor.u32 %v16572_v11, %v13505_v36  ;;  %v13354_v0 = vor.u32 %v16534_v1, %v13353_v58  ;;  %v13337_v36 = vld [vmem:[%s24663_s1 + $0x1480] sm:$0xf]  ;;  %v13282_v11 = vor.u32 %v16516_v32, %v13281_v61  ;;  %v13585_v47 = vld [vmem:[%s24663_s1 + $0x1670] sm:$0xf] }
 0x291   : > { %6357 = vmatpush.bf16.msra.mxu3 %v13522_v4  ;;  %v13306_v56 = vor.u32 %v16522_v6, %v13305_v42  ;;  %v16550_v26 = vld [vmem:[%s24663_s1 + $0x1524] sm:$0xf0]  ;;  %v13290_v4 = vor.u32 %v16518_v55, %v13289_v37  ;;  %v13465_v13 = vld [vmem:[%s24663_s1 + $0x1580] sm:$0xf]  ;;  %v13586_v55 = vor.u32 %v16592_v14, %v13585_v47 }
 0x292   : > { %6319 = vmatpush.bf16.msra.mxu0 %v13322_v5  ;;  %v4375_v27 = vpop.f32.mrf.mxu2  ;;  %v4351_v63 = vpop.f32.mrf.mxu0  ;;  %v13418_v8 = vor.u32 %v16550_v26, %v13417_v39  ;;  %v13345_v5 = vld [vmem:[%s24663_s1 + $0x1490] sm:$0xf]  ;;  %v13577_v58 = vld [vmem:[%s24663_s1 + $0x1660] sm:$0xf]  ;;  %v16590_v1 = vld [vmem:[%s24663_s1 + $0x1664] sm:$0xf0] }
 0x293   : > { %6332 = vmatpush.bf16.msra.mxu1 %v13386_v7  ;;  %v4376_v31 = vadd.f32 %v4375_v27, %v4363_v21  ;;  %v4388_v46 = vpop.f32.mrf.mxu3  ;;  %v16532_v7 = vld [vmem:[%s24663_s1 + $0x1494] sm:$0xf0]  ;;  %v4364_v33 = vpop.f32.mrf.mxu1  ;;  %v13254_v27 = vor.u32 %v16506_v38, %v13251_v57  ;;  %v13641_v39 = vld [vmem:[%s24663_s1 + $0x16e0] sm:$0xf]  ;;  %v16606_v26 = vld [vmem:[%s24663_s1 + $0x16e4] sm:$0xf0] }
 0x294   : > { %6345 = vmatpush.bf16.msra.mxu2 %v13450_v29  ;;  %v13409_v29 = vld [vmem:[%s24663_s1 + $0x1510] sm:$0xf]  ;;  %v13346_v42 = vor.u32 %v16532_v7, %v13345_v5  ;;  %v16624_v21 = vld [vmem:[%s24663_s1 + $0x1774] sm:$0xf0]  ;;  %v13769_v61 = vld [vmem:[%s24663_s1 + $0x17e0] sm:$0xf]  ;;  %v13642_v7 = vor.u32 %v16606_v26, %v13641_v39 }
 0x295   : > { %6358 = vmatpush.bf16.msra.mxu3 %v13514_v30  ;;  %v4389_v52 = vadd.f32 %v4388_v46, %v4376_v31  ;;  %v16548_v30 = vld [vmem:[%s24663_s1 + $0x1514] sm:$0xf0]  ;;  %v13650_v31 = vor.u32 %v16608_v40, %v13649_v2  ;;  %v13714_v46 = vor.u32 %v16624_v21, %v13713_v20  ;;  %v16638_v32 = vld [vmem:[%s24663_s1 + $0x17e4] sm:$0xf0]  ;;  %v13569_v33 = vld [vmem:[%s24663_s1 + $0x1650] sm:$0xf] }
 0x296   : > { %6320 = vmatpush.bf16.msra.mxu0 %v13314_v44  ;;  %v16530_v44 = vld [vmem:[%s24663_s1 + $0x1484] sm:$0xf0]  ;;  %v13410_v6 = vor.u32 %v16548_v30, %v13409_v29  ;;  %v13633_v30 = vld [vmem:[%s24663_s1 + $0x16d0] sm:$0xf]  ;;  %v13770_v43 = vor.u32 %v16638_v32, %v13769_v61  ;;  %v13689_v14 = vld [vmem:[%s24663_s1 + $0x1740] sm:$0xf] }
 0x297   : > { %6333 = vmatpush.bf16.msra.mxu1 %v13378_v49  ;;  %v21427_v9 = vadd.f32 %v4389_v52, %v20609_v48  ;;  %v16514_v48 = vld [vmem:[%s24663_s1 + $0x1404] sm:$0xf0]  ;;  %v13401_v49 = vld [vmem:[%s24663_s1 + $0x1500] sm:$0xf]  ;;  %v13338_v60 = vor.u32 %v16530_v44, %v13337_v36  ;;  %v13761_v36 = vld [vmem:[%s24663_s1 + $0x17d0] sm:$0xf] }
 0x298   : > { %6346 = vmatpush.bf16.msra.mxu2 %v13442_v12  ;;  %v16546_v12 = vld [vmem:[%s24663_s1 + $0x1504] sm:$0xf0]  ;;  %v13553_v38 = vld [vmem:[%s24663_s1 + $0x1630] sm:$0xf]  ;;  %v16584_v57 = vld [vmem:[%s24663_s1 + $0x1634] sm:$0xf0] }
 0x299   : > { %6359 = vmatpush.bf16.msra.mxu3 %v13506_v50  ;;  %v16562_v50 = vld [vmem:[%s24663_s1 + $0x1584] sm:$0xf0]  ;;  %v13402_v34 = vor.u32 %v16546_v12, %v13401_v49  ;;  %v13634_v49 = vor.u32 %v16604_v45, %v13633_v30  ;;  %v13617_v2 = vld [vmem:[%s24663_s1 + $0x16b0] sm:$0xf]  ;;  %v16616_v40 = vld [vmem:[%s24663_s1 + $0x1734] sm:$0xf0] }
 0x29a   : > { %6321 = vmatpush.bf16.msra.mxu0 %v13306_v56  ;;  %v4377_v15 = vpop.f32.mrf.mxu2  ;;  %v13241_v56 = vld [vmem:[%s17410_s6] sm:$0x8]  ;;  %v13466_v37 = vor.u32 %v16562_v50, %v13465_v13  ;;  %v16622_v52 = vld [vmem:[%s24663_s1 + $0x1764] sm:$0xf0]  ;;  %v13745_v21 = vld [vmem:[%s24663_s1 + $0x17b0] sm:$0xf] }
 0x29b   : > { %6334 = vmatpush.bf16.msra.mxu1 %v13370_v35  ;;  %v4390_v35 = vpop.f32.mrf.mxu3  ;;  %v13706_v29 = vor.u32 %v16622_v52, %v13705_v62  ;;  %v13625_v13 = vld [vmem:[%s24663_s1 + $0x16c0] sm:$0xf]  ;;  %v16602_v47 = vld [vmem:[%s24663_s1 + $0x16c4] sm:$0xf0]  ;;  %v13537_v52 = vld [vmem:[%s24663_s1 + $0x1610] sm:$0xf] }
 0x29c   : > { %6347 = vmatpush.bf16.msra.mxu2 %v13434_v17  ;;  %v16509_v17 = vld [vmem:[%s17410_s6 + $0x1c] sm:$0x70]  ;;  %v16618_v15 = vld [vmem:[%s24663_s1 + $0x1744] sm:$0xf0]  ;;  %v13626_v35 = vor.u32 %v16602_v47, %v13625_v13  ;;  %v16580_v61 = vld [vmem:[%s24663_s1 + $0x1614] sm:$0xf0] }
 0x29d   : > { %6360 = vmatpush.bf16.msra.mxu3 %v13498_v19  ;;  %v13274_v19 = vor.u32 %v16514_v48, %v13273_v10  ;;  %v13697_v10 = vld [vmem:[%s24663_s1 + $0x1750] sm:$0xf]  ;;  %v16620_v48 = vld [vmem:[%s24663_s1 + $0x1754] sm:$0xf0]  ;;  %v13737_v26 = vld [vmem:[%s24663_s1 + $0x17a0] sm:$0xf] }
 0x29e   : > { %6322 = vmatpush.bf16.msra.mxu0 %v13298_v23  ;;  %v13777_v23 = vld [vmem:[%s24663_s1 + $0x17f0] sm:$0xf]  ;;  %v13698_v12 = vor.u32 %v16620_v48, %v13697_v10  ;;  %v16612_v10 = vld [vmem:[%s24663_s1 + $0x1714] sm:$0xf0]  ;;  %v16610_v13 = vld [vmem:[%s24663_s1 + $0x1704] sm:$0xf0] }
 0x29f   : > { %6335 = vmatpush.bf16.msra.mxu1 %v13362_v24  ;;  %v16640_v24 = vld [vmem:[%s24663_s1 + $0x17f4] sm:$0xf0]  ;;  %v13665_v30 = vld [vmem:[%s24663_s1 + $0x1710] sm:$0xf] }
 0x2a0   : > { %6348 = vmatpush.bf16.msra.mxu2 %v13426_v25  ;;  %v13242_v25 = vor.u32 %v16509_v17, %v13241_v56  ;;  %v13778_v51 = vor.u32 %v16640_v24, %v13777_v23  ;;  %v13690_v17 = vor.u32 %v16618_v15, %v13689_v14  ;;  %v13729_v48 = vld [vmem:[%s24663_s1 + $0x1790] sm:$0xf]  ;;  %v13666_v47 = vor.u32 %v16612_v10, %v13665_v30  ;;  %v13721_v14 = vld [vmem:[%s24663_s1 + $0x1780] sm:$0xf]  ;;  %v16626_v15 = vld [vmem:[%s24663_s1 + $0x1784] sm:$0xf0] }
 0x2a1   : > { %6361 = vmatpush.bf16.msra.mxu3 %v13490_v59  ;;  %v13246_v59 = vor.u32 %v16505_v3, %v13243_v18  ;;  %v13754_v18 = vor.u32 %v16634_v28, %v13753_v54  ;;  %v16527_v54 = vld [vmem:[%s24663_s1 + $0x1474] sm:$0xf]  ;;  %v13331_v28 = vld [vmem:[%s24663_s1 + $0x1478] sm:$0xf0]  ;;  %v16573_v30 = vld [vmem:[%s24663_s1 + $0x15e4] sm:$0xf] }
 0x2a2   : > { %6323 = vmatpush.bf16.msra.mxu0 %v13290_v4  ;;  %v21512_v4 = vrot.slane %v13250_v22, 3  ;;  %v21520_v63 = vrot.slane %v13242_v25, 3  ;;  %v16632_v22 = vld [vmem:[%s24663_s1 + $0x17b4] sm:$0xf0]  ;;  %v13545_v25 = vld [vmem:[%s24663_s1 + $0x1620] sm:$0xf] }
 0x2a3   : > { %6336 = vmatpush.bf16.msra.mxu1 %v13354_v0  ;;  %v21522_v0 = vrot.slane %v13254_v27, 3  ;;  %v21524_v5 = vrot.slane %v13246_v59, 3  ;;  %v16582_v27 = vld [vmem:[%s24663_s1 + $0x1624] sm:$0xf0] }
 0x2a4   : > { %6349 = vmatpush.bf16.msra.mxu2 %v13418_v8  ;;  %v13578_v8 = vor.u32 %v16590_v1, %v13577_v58  ;;  %v13746_v58 = vor.u32 %v16632_v22, %v13745_v21  ;;  %v16598_v59 = vld [vmem:[%s24663_s1 + $0x16a4] sm:$0xf0]  ;;  %v13546_v62 = vor.u32 %v16582_v27, %v13545_v25  ;;  %v13395_v22 = vld [vmem:[%s24663_s1 + $0x14f8] sm:$0xf0]  ;;  %v16575_v27 = vld [vmem:[%s24663_s1 + $0x15f4] sm:$0xf] }
 0x2a5   : > { %6362 = vmatpush.bf16.msra.mxu3 %v13482_v41  ;;  %v16588_v41 = vld [vmem:[%s24663_s1 + $0x1654] sm:$0xf0] }
 0x2a6   : > { %6324 = vmatpush.bf16.msra.mxu0 %v13282_v11  ;;  %v16636_v11 = vld [vmem:[%s24663_s1 + $0x17d4] sm:$0xf0]  ;;  %v13570_v44 = vor.u32 %v16588_v41, %v13569_v33  ;;  %v13601_v33 = vld [vmem:[%s24663_s1 + $0x1690] sm:$0xf] }
 0x2a7   : > { %6337 = vmatpush.bf16.msra.mxu1 %v13346_v42  ;;  %v13561_v42 = vld [vmem:[%s24663_s1 + $0x1640] sm:$0xf]  ;;  %v13762_v50 = vor.u32 %v16636_v11, %v13761_v36  ;;  %v16596_v41 = vld [vmem:[%s24663_s1 + $0x1694] sm:$0xf0] }
 0x2a8   : > { %6350 = vmatpush.bf16.msra.mxu2 %v13410_v6  ;;  %v16586_v6 = vld [vmem:[%s24663_s1 + $0x1644] sm:$0xf0]  ;;  %v16628_v36 = vld [vmem:[%s24663_s1 + $0x1794] sm:$0xf0]  ;;  %v13529_v11 = vld [vmem:[%s24663_s1 + $0x1600] sm:$0xf] }
 0x2a9   : > { %6363 = vmatpush.bf16.msra.mxu3 %v13474_v16  ;;  %v13562_v56 = vor.u32 %v16586_v6, %v13561_v42  ;;  %v16594_v42 = vld [vmem:[%s24663_s1 + $0x1684] sm:$0xf0]  ;;  %v13657_v6 = vld [vmem:[%s24663_s1 + $0x1700] sm:$0xf] }
 0x2aa   : > { %6325 = vmatpush.bf16.msra.mxu0 %v13274_v19  ;;  %v5288_v16 = vpop.f32.mrf.mxu0  ;;  %v16600_v19 = vld [vmem:[%s24663_s1 + $0x16b4] sm:$0xf0]  ;;  %v13658_v25 = vor.u32 %v16610_v13, %v13657_v6  ;;  %v16555_v6 = vld [vmem:[%s24663_s1 + $0x1554] sm:$0xf]  ;;  %v13443_v13 = vld [vmem:[%s24663_s1 + $0x1558] sm:$0xf0] }
 0x2ab   : > { %6338 = vmatpush.bf16.msra.mxu1 %v13338_v60  ;;  %v5301_v3 = vpop.f32.mrf.mxu1  ;;  %v13681_v60 = vld [vmem:[%s24663_s1 + $0x1730] sm:$0xf]  ;;  %v13618_v23 = vor.u32 %v16600_v19, %v13617_v2  ;;  %v16508_v2 = vld [vmem:[%s17410_s6 + $0x1c] sm:$0x8]  ;;  %v16543_v19 = vld [vmem:[%s24663_s1 + $0x14f4] sm:$0xf] }
 0x2ac   : > { %6351 = vmatpush.bf16.msra.mxu2 %v13402_v34  ;;  %v5302_v20 = vadd.f32 %v5301_v3, %v5288_v16  ;;  %v13554_v34 = vor.u32 %v16584_v57, %v13553_v38  ;;  %v13682_v24 = vor.u32 %v16616_v40, %v13681_v60  ;;  %v16512_v16 = vld [vmem:[%s17410_s6 + $0x34] sm:$0x70]  ;;  %v13730_v38 = vor.u32 %v16628_v36, %v13729_v48  ;;  %v16511_v57 = vld [vmem:[%s17410_s6 + $0x2c] sm:$0x70]  ;;  %v13267_v3 = vld [vmem:[%s17410_s6 + $0x38] sm:$0x70] }
 0x2ad   : > { %6364 = vmatpush.bf16.msra.mxu3 %v13466_v37  ;;  %6326 = vmatmul.bf16.vlgmr.msra.gmra.mxu0 %v21520_v63  ;;  %v13609_v37 = vld [vmem:[%s24663_s1 + $0x16a0] sm:$0xf]  ;;  %v16507_v60 = vld [vmem:[%s17410_s6 + $0x14] sm:$0x8]  ;;  %v13259_v40 = vld [vmem:[%s17410_s6 + $0x30] sm:$0x70] }
 0x2ae   : > { %6370 = vmatpush.bf16.msrb.mxu0 %v13586_v55  ;;  %6339 = vmatmul.bf16.vlgmr.msra.gmra.mxu1 %v21524_v5 }
 0x2af   : > { %6383 = vmatpush.bf16.msrb.mxu1 %v13650_v31  ;;  %6352 = vmatmul.bf16.vlgmr.msra.gmra.mxu2 %v21512_v4  ;;  %v13673_v31 = vld [vmem:[%s24663_s1 + $0x1720] sm:$0xf] }
 0x2b0   : > { %6396 = vmatpush.bf16.msrb.mxu2 %v13714_v46  ;;  %6365 = vmatmul.bf16.vlgmr.msra.gmra.mxu3 %v21522_v0  ;;  %v16614_v46 = vld [vmem:[%s24663_s1 + $0x1724] sm:$0xf0] }
 0x2b1   : > { %6409 = vmatpush.bf16.msrb.mxu3 %v13778_v51  ;;  %v16630_v51 = vld [vmem:[%s24663_s1 + $0x17a4] sm:$0xf0] }
 0x2b2   : > { %6371 = vmatpush.bf16.msrb.mxu0 %v13578_v8  ;;  %v5314_v55 = vpop.f32.mrf.mxu2  ;;  %v5290_v8 = vpop.f32.mrf.mxu0  ;;  %v13738_v45 = vor.u32 %v16630_v51, %v13737_v26  ;;  %v13323_v51 = vld [vmem:[%s24663_s1 + $0x1468] sm:$0xf0] }
 0x2b3   : > { %6384 = vmatpush.bf16.msrb.mxu1 %v13642_v7  ;;  %v5315_v1 = vadd.f32 %v5314_v55, %v5302_v20  ;;  %v5327_v39 = vpop.f32.mrf.mxu3  ;;  %v13610_v7 = vor.u32 %v16598_v59, %v13609_v37  ;;  %v13523_v37 = vld [vmem:[%s24663_s1 + $0x15f8] sm:$0xf0]  ;;  %v13722_v59 = vor.u32 %v16626_v15, %v13721_v14 }
 0x2b4   : > { %6397 = vmatpush.bf16.msrb.mxu2 %v13706_v29  ;;  %v13674_v29 = vor.u32 %v16614_v46, %v13673_v31  ;;  %v13334_v31 = vor.u32 %v16527_v54, %v13331_v28  ;;  %v16525_v46 = vld [vmem:[%s24663_s1 + $0x1464] sm:$0xf]  ;;  %v13446_v54 = vor.u32 %v16555_v6, %v13443_v13  ;;  %v16531_v6 = vld [vmem:[%s24663_s1 + $0x1494] sm:$0xf] }
 0x2b5   : > { %6410 = vmatpush.bf16.msrb.mxu3 %v13770_v43  ;;  %v21632_v32 = vadd.f32 %v5327_v39, %v5315_v1  ;;  %v5303_v43 = vpop.f32.mrf.mxu1  ;;  %v13262_v1 = vor.u32 %v16507_v60, %v13259_v40  ;;  %v13398_v39 = vor.u32 %v16543_v19, %v13395_v22  ;;  %v16521_v28 = vld [vmem:[%s24663_s1 + $0x1444] sm:$0xf]  ;;  %v16519_v22 = vld [vmem:[%s24663_s1 + $0x1434] sm:$0xf] }
 0x2b6   : > { %6372 = vmatpush.bf16.msrb.mxu0 %v13570_v44  ;;  %v16578_v44 = vld [vmem:[%s24663_s1 + $0x1604] sm:$0xf0]  ;;  %v13515_v43 = vld [vmem:[%s24663_s1 + $0x15e8] sm:$0xf0] }
 0x2b7   : > { %6385 = vmatpush.bf16.msrb.mxu1 %v13634_v49  ;;  %v13593_v49 = vld [vmem:[%s24663_s1 + $0x1680] sm:$0xf]  ;;  %v13530_v20 = vor.u32 %v16578_v44, %v13529_v11  ;;  %v21738_v10 = vrot.slane %v13262_v1, 3  ;;  %v16523_v11 = vld [vmem:[%s24663_s1 + $0x1454] sm:$0xf] }
 0x2b8   : > { %6398 = vmatpush.bf16.msrb.mxu2 %v13698_v12  ;;  %v13538_v12 = vor.u32 %v16580_v61, %v13537_v52  ;;  %v13594_v21 = vor.u32 %v16594_v42, %v13593_v49  ;;  %v13387_v52 = vld [vmem:[%s24663_s1 + $0x14e8] sm:$0xf0]  ;;  %v13526_v61 = vor.u32 %v16575_v27, %v13523_v37  ;;  %v13315_v44 = vld [vmem:[%s24663_s1 + $0x1458] sm:$0xf0]  ;;  %v16539_v49 = vld [vmem:[%s24663_s1 + $0x14d4] sm:$0xf] }
 0x2b9   : > { %6411 = vmatpush.bf16.msrb.mxu3 %v13762_v50  ;;  %v13602_v50 = vor.u32 %v16596_v41, %v13601_v33  ;;  %v13379_v42 = vld [vmem:[%s24663_s1 + $0x14d8] sm:$0xf0]  ;;  %v13318_v14 = vor.u32 %v16523_v11, %v13315_v44 }
 0x2ba   : > { %6373 = vmatpush.bf16.msrb.mxu0 %v13562_v56  ;;  %v13265_v56 = vld [vmem:[%s17410_s6 + $0x18] sm:$0x8]  ;;  %v13382_v15 = vor.u32 %v16539_v49, %v13379_v42  ;;  %v13427_v27 = vld [vmem:[%s24663_s1 + $0x1538] sm:$0xf0] }
 0x2bb   : > { %6386 = vmatpush.bf16.msrb.mxu1 %v13626_v35  ;;  %v13257_v35 = vld [vmem:[%s17410_s6 + $0x10] sm:$0x8]  ;;  %v13283_v42 = vld [vmem:[%s24663_s1 + $0x1418] sm:$0xf0] }
 0x2bc   : > { %6399 = vmatpush.bf16.msrb.mxu2 %v13690_v17  ;;  %v5316_v17 = vpop.f32.mrf.mxu2  ;;  %v13258_v55 = vor.u32 %v16511_v57, %v13257_v35  ;;  %v13435_v57 = vld [vmem:[%s24663_s1 + $0x1548] sm:$0xf0] }
 0x2bd   : > { %6412 = vmatpush.bf16.msrb.mxu3 %v13754_v18  ;;  %v5329_v18 = vpop.f32.mrf.mxu3  ;;  %v13371_v17 = vld [vmem:[%s24663_s1 + $0x14c8] sm:$0xf0] }
 0x2be   : > { %6374 = vmatpush.bf16.msrb.mxu0 %v13554_v34  ;;  %v16559_v34 = vld [vmem:[%s24663_s1 + $0x1574] sm:$0xf]  ;;  %v21728_v33 = vrot.slane %v13258_v55, 3 }
 0x2bf   : > { %6387 = vmatpush.bf16.msrb.mxu1 %v13618_v23  ;;  %v13459_v23 = vld [vmem:[%s24663_s1 + $0x1578] sm:$0xf0]  ;;  %v16567_v55 = vld [vmem:[%s24663_s1 + $0x15b4] sm:$0xf] }
 0x2c0   : > { %6400 = vmatpush.bf16.msrb.mxu2 %v13682_v24  ;;  %v13266_v24 = vor.u32 %v16512_v16, %v13265_v56  ;;  %v13462_v26 = vor.u32 %v16559_v34, %v13459_v23  ;;  %v13307_v56 = vld [vmem:[%s24663_s1 + $0x1448] sm:$0xf0]  ;;  %v16537_v16 = vld [vmem:[%s24663_s1 + $0x14c4] sm:$0xf]  ;;  %v13299_v34 = vld [vmem:[%s24663_s1 + $0x1438] sm:$0xf0] }
 0x2c1   : > { %6413 = vmatpush.bf16.msrb.mxu3 %v13746_v58  ;;  %v13270_v58 = vor.u32 %v16508_v2, %v13267_v3  ;;  %v16569_v2 = vld [vmem:[%s24663_s1 + $0x15c4] sm:$0xf]  ;;  %v13499_v3 = vld [vmem:[%s24663_s1 + $0x15c8] sm:$0xf0]  ;;  %v13310_v18 = vor.u32 %v16521_v28, %v13307_v56  ;;  %v13374_v60 = vor.u32 %v16537_v16, %v13371_v17  ;;  %v16535_v23 = vld [vmem:[%s24663_s1 + $0x14b4] sm:$0xf] }
 0x2c2   : > { %6375 = vmatpush.bf16.msrb.mxu0 %v13546_v62  ;;  %v16541_v62 = vld [vmem:[%s24663_s1 + $0x14e4] sm:$0xf]  ;;  %v21720_v8 = vrot.slane %v13266_v24, 3  ;;  %v13502_v24 = vor.u32 %v16569_v2, %v13499_v3  ;;  %v16563_v28 = vld [vmem:[%s24663_s1 + $0x1594] sm:$0xf] }
 0x2c3   : > { %6388 = vmatpush.bf16.msrb.mxu1 %v13610_v7  ;;  %v16557_v7 = vld [vmem:[%s24663_s1 + $0x1564] sm:$0xf]  ;;  %v21730_v41 = vrot.slane %v13270_v58, 3  ;;  %v13390_v48 = vor.u32 %v16541_v62, %v13387_v52  ;;  %v13491_v58 = vld [vmem:[%s24663_s1 + $0x15b8] sm:$0xf0] }
 0x2c4   : > { %6401 = vmatpush.bf16.msrb.mxu2 %v13674_v29  ;;  %v13451_v29 = vld [vmem:[%s24663_s1 + $0x1568] sm:$0xf0]  ;;  %v13494_v62 = vor.u32 %v16567_v55, %v13491_v58  ;;  %v16513_v16 = vld [vmem:[%s24663_s1 + $0x1404] sm:$0xf]  ;;  %v16639_v58 = vld [vmem:[%s24663_s1 + $0x17f4] sm:$0xf] }
 0x2c5   : > { %6414 = vmatpush.bf16.msrb.mxu3 %v13738_v45  ;;  %v13326_v45 = vor.u32 %v16525_v46, %v13323_v51  ;;  %v13454_v36 = vor.u32 %v16557_v7, %v13451_v29  ;;  %v16533_v51 = vld [vmem:[%s24663_s1 + $0x14a4] sm:$0xf]  ;;  %v13355_v7 = vld [vmem:[%s24663_s1 + $0x14a8] sm:$0xf0] }
 0x2c6   : > { %6376 = vmatpush.bf16.msrb.mxu0 %v13538_v12  ;;  %v13518_v12 = vor.u32 %v16573_v30, %v13515_v43  ;;  %v16549_v29 = vld [vmem:[%s24663_s1 + $0x1524] sm:$0xf]  ;;  %v13419_v30 = vld [vmem:[%s24663_s1 + $0x1528] sm:$0xf0]  ;;  %v13358_v44 = vor.u32 %v16533_v51, %v13355_v7 }
 0x2c7   : > { %6389 = vmatpush.bf16.msrb.mxu1 %v13602_v50  ;;  %v16571_v50 = vld [vmem:[%s24663_s1 + $0x15d4] sm:$0xf]  ;;  %v16565_v43 = vld [vmem:[%s24663_s1 + $0x15a4] sm:$0xf]  ;;  %v13422_v49 = vor.u32 %v16549_v29, %v13419_v30  ;;  %v13339_v2 = vld [vmem:[%s24663_s1 + $0x1488] sm:$0xf0] }
 0x2c8   : > { %6402 = vmatpush.bf16.msrb.mxu2 %v13666_v47  ;;  %v13507_v47 = vld [vmem:[%s24663_s1 + $0x15d8] sm:$0xf0]  ;;  %v16545_v3 = vld [vmem:[%s24663_s1 + $0x1504] sm:$0xf]  ;;  %v13579_v51 = vld [vmem:[%s24663_s1 + $0x1668] sm:$0xf0] }
 0x2c9   : > { %6415 = vmatpush.bf16.msrb.mxu3 %v13730_v38  ;;  %v13510_v35 = vor.u32 %v16571_v50, %v13507_v47  ;;  %v16553_v38 = vld [vmem:[%s24663_s1 + $0x1544] sm:$0xf]  ;;  %v13707_v29 = vld [vmem:[%s24663_s1 + $0x1768] sm:$0xf0] }
 0x2ca   : > { %6377 = vmatpush.bf16.msrb.mxu0 %v13530_v20  ;;  %v5340_v19 = vpop.f32.mrf.mxu0  ;;  %v13438_v40 = vor.u32 %v16553_v38, %v13435_v57  ;;  %v16529_v57 = vld [vmem:[%s24663_s1 + $0x1484] sm:$0xf] }
 0x2cb   : > { %6390 = vmatpush.bf16.msrb.mxu1 %v13594_v21  ;;  %v5341_v20 = vadd.f32 %v5340_v19, %v21632_v32  ;;  %v5353_v21 = vpop.f32.mrf.mxu1  ;;  %v16551_v32 = vld [vmem:[%s24663_s1 + $0x1534] sm:$0xf]  ;;  %v16621_v7 = vld [vmem:[%s24663_s1 + $0x1764] sm:$0xf] }
 0x2cc   : > { %6403 = vmatpush.bf16.msrb.mxu2 %v13658_v25  ;;  %v13363_v25 = vld [vmem:[%s24663_s1 + $0x14b8] sm:$0xf0]  ;;  %v13430_v46 = vor.u32 %v16551_v32, %v13427_v27  ;;  %v16623_v32 = vld [vmem:[%s24663_s1 + $0x1774] sm:$0xf]  ;;  %v16637_v30 = vld [vmem:[%s24663_s1 + $0x17e4] sm:$0xf] }
 0x2cd   : > { %6416 = vmatpush.bf16.msrb.mxu3 %v13722_v59  ;;  %6378 = vmatmul.bf16.vlgmr.msrb.gmra.mxu0 %v21728_v33  ;;  %v5354_v37 = vadd.f32 %v5353_v21, %v5341_v20  ;;  %v13302_v59 = vor.u32 %v16519_v22, %v13299_v34  ;;  %v13467_v20 = vld [vmem:[%s24663_s1 + $0x1588] sm:$0xf0]  ;;  %v16591_v22 = vld [vmem:[%s24663_s1 + $0x1674] sm:$0xf]  ;;  %v13587_v34 = vld [vmem:[%s24663_s1 + $0x1678] sm:$0xf0] }
 0x2ce   : > { %6422 = vmatpush.bf16.msra.mxu0 %v13334_v31  ;;  %6391 = vmatmul.bf16.vlgmr.msrb.gmra.mxu1 %v21738_v10  ;;  %v13366_v31 = vor.u32 %v16535_v23, %v13363_v25  ;;  %v16607_v23 = vld [vmem:[%s24663_s1 + $0x16f4] sm:$0xf]  ;;  %v13651_v25 = vld [vmem:[%s24663_s1 + $0x16f8] sm:$0xf0] }
 0x2cf   : > { %6435 = vmatpush.bf16.msra.mxu1 %v13398_v39  ;;  %6404 = vmatmul.bf16.vlgmr.msrb.gmra.mxu2 %v21720_v8  ;;  %v16517_v39 = vld [vmem:[%s24663_s1 + $0x1424] sm:$0xf]  ;;  %v13715_v27 = vld [vmem:[%s24663_s1 + $0x1778] sm:$0xf0] }
 0x2d0   : > { %6448 = vmatpush.bf16.msra.mxu2 %v13462_v26  ;;  %6417 = vmatmul.bf16.vlgmr.msrb.gmra.mxu3 %v21730_v41  ;;  %v13291_v26 = vld [vmem:[%s24663_s1 + $0x1428] sm:$0xf0] }
 0x2d1   : > { %6461 = vmatpush.bf16.msra.mxu3 %v13526_v61 }
 0x2d2   : > { %6423 = vmatpush.bf16.msra.mxu0 %v13326_v45  ;;  %v5366_v1 = vpop.f32.mrf.mxu2  ;;  %v13483_v45 = vld [vmem:[%s24663_s1 + $0x15a8] sm:$0xf0]  ;;  %v5342_v11 = vpop.f32.mrf.mxu0 }
 0x2d3   : > { %6436 = vmatpush.bf16.msra.mxu1 %v13390_v48  ;;  %v5367_v52 = vadd.f32 %v5366_v1, %v5354_v37  ;;  %v5379_v61 = vpop.f32.mrf.mxu3  ;;  %v5355_v13 = vpop.f32.mrf.mxu1  ;;  %v13486_v47 = vor.u32 %v16565_v43, %v13483_v45  ;;  %v13342_v37 = vor.u32 %v16529_v57, %v13339_v2  ;;  %v13654_v1 = vor.u32 %v16607_v23, %v13651_v25  ;;  %v13771_v43 = vld [vmem:[%s24663_s1 + $0x17e8] sm:$0xf0]  ;;  %v16587_v11 = vld [vmem:[%s24663_s1 + $0x1654] sm:$0xf]  ;;  %v13747_v25 = vld [vmem:[%s24663_s1 + $0x17b8] sm:$0xf0] }
 0x2d4   : > { %6449 = vmatpush.bf16.msra.mxu2 %v13454_v36  ;;  %v13294_v36 = vor.u32 %v16517_v39, %v13291_v26  ;;  %v13718_v39 = vor.u32 %v16623_v32, %v13715_v27  ;;  %v16589_v26 = vld [vmem:[%s24663_s1 + $0x1664] sm:$0xf]  ;;  %v13699_v13 = vld [vmem:[%s24663_s1 + $0x1758] sm:$0xf0] }
 0x2d5   : > { %6462 = vmatpush.bf16.msra.mxu3 %v13518_v12  ;;  %v5380_v48 = vadd.f32 %v5379_v61, %v5367_v52  ;;  %v16515_v12 = vld [vmem:[%s24663_s1 + $0x1414] sm:$0xf]  ;;  %v13643_v61 = vld [vmem:[%s24663_s1 + $0x16e8] sm:$0xf0]  ;;  %v13582_v45 = vor.u32 %v16589_v26, %v13579_v51 }
 0x2d6   : > { %6424 = vmatpush.bf16.msra.mxu0 %v13318_v14  ;;  %v13347_v14 = vld [vmem:[%s24663_s1 + $0x1498] sm:$0xf0]  ;;  %v13286_v56 = vor.u32 %v16515_v12, %v13283_v42  ;;  %v13774_v12 = vor.u32 %v16637_v30, %v13771_v43  ;;  %v13675_v26 = vld [vmem:[%s24663_s1 + $0x1728] sm:$0xf0] }
 0x2d7   : > { %6437 = vmatpush.bf16.msra.mxu1 %v13382_v15  ;;  %v21851_v50 = vadd.f32 %v5380_v48, %v21023_v53  ;;  %v16547_v15 = vld [vmem:[%s24663_s1 + $0x1514] sm:$0xf]  ;;  %v13475_v53 = vld [vmem:[%s24663_s1 + $0x1598] sm:$0xf0]  ;;  %v13350_v17 = vor.u32 %v16531_v6, %v13347_v14 }
 0x2d8   : > { %6450 = vmatpush.bf16.msra.mxu2 %v13446_v54  ;;  %v13411_v54 = vld [vmem:[%s24663_s1 + $0x1518] sm:$0xf0]  ;;  %v13478_v19 = vor.u32 %v16563_v28, %v13475_v53  ;;  %v16619_v6 = vld [vmem:[%s24663_s1 + $0x1754] sm:$0xf]  ;;  %v16585_v28 = vld [vmem:[%s24663_s1 + $0x1644] sm:$0xf] }
 0x2d9   : > { %6463 = vmatpush.bf16.msra.mxu3 %v13510_v35  ;;  %v13275_v35 = vld [vmem:[%s24663_s1 + $0x1408] sm:$0xf0]  ;;  %v13414_v38 = vor.u32 %v16547_v15, %v13411_v54  ;;  %v13635_v42 = vld [vmem:[%s24663_s1 + $0x16d8] sm:$0xf0] }
 0x2da   : > { %6425 = vmatpush.bf16.msra.mxu0 %v13310_v18  ;;  %v5368_v18 = vpop.f32.mrf.mxu2  ;;  %v13763_v14 = vld [vmem:[%s24663_s1 + $0x17d8] sm:$0xf0]  ;;  %v13563_v53 = vld [vmem:[%s24663_s1 + $0x1648] sm:$0xf0] }
 0x2db   : > { %6438 = vmatpush.bf16.msra.mxu1 %v13374_v60  ;;  %v13403_v60 = vld [vmem:[%s24663_s1 + $0x1508] sm:$0xf0]  ;;  %v5381_v21 = vpop.f32.mrf.mxu3  ;;  %v16583_v18 = vld [vmem:[%s24663_s1 + $0x1634] sm:$0xf] }
 0x2dc   : > { %6451 = vmatpush.bf16.msra.mxu2 %v13438_v40  ;;  %v16561_v40 = vld [vmem:[%s24663_s1 + $0x1584] sm:$0xf]  ;;  %v13406_v55 = vor.u32 %v16545_v3, %v13403_v60  ;;  %v16599_v60 = vld [vmem:[%s24663_s1 + $0x16b4] sm:$0xf]  ;;  %v13619_v21 = vld [vmem:[%s24663_s1 + $0x16b8] sm:$0xf0] }
 0x2dd   : > { %6464 = vmatpush.bf16.msra.mxu3 %v13502_v24  ;;  %v13278_v24 = vor.u32 %v16513_v16, %v13275_v35  ;;  %v13691_v16 = vld [vmem:[%s24663_s1 + $0x1748] sm:$0xf0]  ;;  %v16633_v35 = vld [vmem:[%s24663_s1 + $0x17c4] sm:$0xf]  ;;  %v13622_v27 = vor.u32 %v16599_v60, %v13619_v21  ;;  %v14097_v60 = vld [vmem:[%s24663_s1 + $0x1970] sm:$0xf] }
 0x2de   : > { %6426 = vmatpush.bf16.msra.mxu0 %v13302_v59  ;;  %v13779_v59 = vld [vmem:[%s24663_s1 + $0x17f8] sm:$0xf0] }
 0x2df   : > { %6439 = vmatpush.bf16.msra.mxu1 %v13366_v31  ;;  %v13470_v31 = vor.u32 %v16561_v40, %v13467_v20  ;;  %v13782_v52 = vor.u32 %v16639_v58, %v13779_v59  ;;  %v13547_v58 = vld [vmem:[%s24663_s1 + $0x1628] sm:$0xf0]  ;;  %v16597_v59 = vld [vmem:[%s24663_s1 + $0x16a4] sm:$0xf] }
 0x2e0   : > { %6452 = vmatpush.bf16.msra.mxu2 %v13430_v46  ;;  %v13590_v46 = vor.u32 %v16591_v22, %v13587_v34  ;;  %v16615_v22 = vld [vmem:[%s24663_s1 + $0x1734] sm:$0xf]  ;;  %v13683_v34 = vld [vmem:[%s24663_s1 + $0x1738] sm:$0xf0] }
 0x2e1   : > { %6465 = vmatpush.bf16.msra.mxu3 %v13494_v62  ;;  %v16605_v62 = vld [vmem:[%s24663_s1 + $0x16e4] sm:$0xf] }
 0x2e2   : > { %6427 = vmatpush.bf16.msra.mxu0 %v13294_v36  ;;  %v13646_v48 = vor.u32 %v16605_v62, %v13643_v61  ;;  %v13710_v36 = vor.u32 %v16621_v7, %v13707_v29  ;;  %v13739_v61 = vld [vmem:[%s24663_s1 + $0x17a8] sm:$0xf0] }
 0x2e3   : > { %6440 = vmatpush.bf16.msra.mxu1 %v13358_v44  ;;  %v13571_v44 = vld [vmem:[%s24663_s1 + $0x1658] sm:$0xf0] }
 0x2e4   : > { %6453 = vmatpush.bf16.msra.mxu2 %v13422_v49  ;;  %v16603_v49 = vld [vmem:[%s24663_s1 + $0x16d4] sm:$0xf]  ;;  %v13574_v15 = vor.u32 %v16587_v11, %v13571_v44 }
 0x2e5   : > { %6466 = vmatpush.bf16.msra.mxu3 %v13486_v47  ;;  %v16635_v47 = vld [vmem:[%s24663_s1 + $0x17d4] sm:$0xf]  ;;  %v13638_v54 = vor.u32 %v16603_v49, %v13635_v42 }
 0x2e6   : > { %6428 = vmatpush.bf16.msra.mxu0 %v13286_v56  ;;  %v16617_v56 = vld [vmem:[%s24663_s1 + $0x1744] sm:$0xf]  ;;  %v16595_v11 = vld [vmem:[%s24663_s1 + $0x1694] sm:$0xf] }
 0x2e7   : > { %6441 = vmatpush.bf16.msra.mxu1 %v13350_v17  ;;  %v13755_v17 = vld [vmem:[%s24663_s1 + $0x17c8] sm:$0xf0]  ;;  %v13694_v3 = vor.u32 %v16617_v56, %v13691_v16  ;;  %v16611_v42 = vld [vmem:[%s24663_s1 + $0x1714] sm:$0xf] }
 0x2e8   : > { %6454 = vmatpush.bf16.msra.mxu2 %v13414_v38  ;;  %v13566_v38 = vor.u32 %v16585_v28, %v13563_v53  ;;  %v13758_v20 = vor.u32 %v16633_v35, %v13755_v17  ;;  %v16593_v53 = vld [vmem:[%s24663_s1 + $0x1684] sm:$0xf]  ;;  %v13659_v16 = vld [vmem:[%s24663_s1 + $0x1708] sm:$0xf0] }
 0x2e9   : > { %6467 = vmatpush.bf16.msra.mxu3 %v13478_v19  ;;  %v13555_v19 = vld [vmem:[%s24663_s1 + $0x1638] sm:$0xf0]  ;;  %v16625_v35 = vld [vmem:[%s24663_s1 + $0x1784] sm:$0xf]  ;;  %v13723_v17 = vld [vmem:[%s24663_s1 + $0x1788] sm:$0xf0] }
 0x2ea   : > { %6429 = vmatpush.bf16.msra.mxu0 %v13278_v24  ;;  %v5392_v57 = vpop.f32.mrf.mxu0  ;;  %v16631_v24 = vld [vmem:[%s24663_s1 + $0x17b4] sm:$0xf]  ;;  %v13558_v32 = vor.u32 %v16583_v18, %v13555_v19  ;;  %v16672_v19 = vld [vmem:[%s24663_s1 + $0x18f4] sm:$0xf0] }
 0x2eb   : > { %6442 = vmatpush.bf16.msra.mxu1 %v13342_v37  ;;  %v5405_v40 = vpop.f32.mrf.mxu1  ;;  %v13686_v37 = vor.u32 %v16615_v22, %v13683_v34  ;;  %v14161_v22 = vld [vmem:[%s24663_s1 + $0x19f0] sm:$0xf]  ;;  %v16704_v34 = vld [vmem:[%s24663_s1 + $0x19f4] sm:$0xf0] }
 0x2ec   : > { %6455 = vmatpush.bf16.msra.mxu2 %v13406_v55  ;;  %v5406_v23 = vadd.f32 %v5405_v40, %v5392_v57  ;;  %v16581_v55 = vld [vmem:[%s24663_s1 + $0x1624] sm:$0xf]  ;;  %v13969_v57 = vld [vmem:[%s24663_s1 + $0x1870] sm:$0xf]  ;;  %v16688_v40 = vld [vmem:[%s24663_s1 + $0x1974] sm:$0xf0] }
 0x2ed   : > { %6468 = vmatpush.bf16.msra.mxu3 %v13470_v31  ;;  %6430 = vmatmul.bf16.vlgmr.msra.gmra.mxu0 %v21520_v63  ;;  %v16601_v63 = vld [vmem:[%s24663_s1 + $0x16c4] sm:$0xf]  ;;  %v13550_v7 = vor.u32 %v16581_v55, %v13547_v58  ;;  %v14025_v55 = vld [vmem:[%s24663_s1 + $0x18e0] sm:$0xf]  ;;  %v14162_v58 = vor.u32 %v16704_v34, %v14161_v22 }
 0x2ee   : > { %6474 = vmatpush.bf16.msrb.mxu0 %v13590_v46  ;;  %6443 = vmatmul.bf16.vlgmr.msra.gmra.mxu1 %v21524_v5  ;;  %v13627_v5 = vld [vmem:[%s24663_s1 + $0x16c8] sm:$0xf0]  ;;  %v13750_v46 = vor.u32 %v16631_v24, %v13747_v25 }
 0x2ef   : > { %6487 = vmatpush.bf16.msrb.mxu1 %v13654_v1  ;;  %6456 = vmatmul.bf16.vlgmr.msra.gmra.mxu2 %v21512_v4  ;;  %v13702_v4 = vor.u32 %v16619_v6, %v13699_v13  ;;  %v13630_v2 = vor.u32 %v16601_v63, %v13627_v5  ;;  %v13611_v1 = vld [vmem:[%s24663_s1 + $0x16a8] sm:$0xf0]  ;;  %v13667_v6 = vld [vmem:[%s24663_s1 + $0x1718] sm:$0xf0]  ;;  %v16627_v13 = vld [vmem:[%s24663_s1 + $0x1794] sm:$0xf] }
 0x2f0   : > { %6500 = vmatpush.bf16.msrb.mxu2 %v13718_v39  ;;  %6469 = vmatmul.bf16.vlgmr.msra.gmra.mxu3 %v21522_v0  ;;  %v13766_v0 = vor.u32 %v16635_v47, %v13763_v14  ;;  %v16613_v39 = vld [vmem:[%s24663_s1 + $0x1724] sm:$0xf]  ;;  %v13614_v43 = vor.u32 %v16597_v59, %v13611_v1  ;;  %v13731_v47 = vld [vmem:[%s24663_s1 + $0x1798] sm:$0xf0]  ;;  %v13670_v28 = vor.u32 %v16611_v42, %v13667_v6  ;;  %v13595_v63 = vld [vmem:[%s24663_s1 + $0x1688] sm:$0xf0] }
 0x2f1   : > { %6513 = vmatpush.bf16.msrb.mxu3 %v13782_v52  ;;  %v16629_v52 = vld [vmem:[%s24663_s1 + $0x17a4] sm:$0xf]  ;;  %v13734_v56 = vor.u32 %v16627_v13, %v13731_v47  ;;  %v16670_v59 = vld [vmem:[%s24663_s1 + $0x18e4] sm:$0xf0]  ;;  %v14153_v1 = vld [vmem:[%s24663_s1 + $0x19e0] sm:$0xf] }
 0x2f2   : > { %6475 = vmatpush.bf16.msrb.mxu0 %v13582_v45  ;;  %v5418_v31 = vpop.f32.mrf.mxu2  ;;  %v5394_v30 = vpop.f32.mrf.mxu0  ;;  %v13678_v45 = vor.u32 %v16613_v39, %v13675_v26  ;;  %v13742_v49 = vor.u32 %v16629_v52, %v13739_v61  ;;  %v16702_v39 = vld [vmem:[%s24663_s1 + $0x19e4] sm:$0xf0]  ;;  %v13953_v52 = vld [vmem:[%s24663_s1 + $0x1850] sm:$0xf]  ;;  %v16652_v61 = vld [vmem:[%s24663_s1 + $0x1854] sm:$0xf0] }
 0x2f3   : > { %6488 = vmatpush.bf16.msrb.mxu1 %v13646_v48  ;;  %v5419_v51 = vadd.f32 %v5418_v31, %v5406_v23  ;;  %v5431_v62 = vpop.f32.mrf.mxu3  ;;  %v16579_v48 = vld [vmem:[%s24663_s1 + $0x1614] sm:$0xf]  ;;  %v5407_v44 = vpop.f32.mrf.mxu1  ;;  %v13726_v23 = vor.u32 %v16625_v35, %v13723_v17  ;;  %v14089_v31 = vld [vmem:[%s24663_s1 + $0x1960] sm:$0xf]  ;;  %v14154_v30 = vor.u32 %v16702_v39, %v14153_v1  ;;  %v16682_v13 = vld [vmem:[%s24663_s1 + $0x1944] sm:$0xf0] }
 0x2f4   : > { %6501 = vmatpush.bf16.msrb.mxu2 %v13710_v36  ;;  %v13539_v36 = vld [vmem:[%s24663_s1 + $0x1618] sm:$0xf0]  ;;  %v14073_v6 = vld [vmem:[%s24663_s1 + $0x1940] sm:$0xf]  ;;  %v16664_v35 = vld [vmem:[%s24663_s1 + $0x18b4] sm:$0xf0] }
 0x2f5   : > { %6514 = vmatpush.bf16.msrb.mxu3 %v13774_v12  ;;  %v22040_v29 = vadd.f32 %v5431_v62, %v5419_v51  ;;  %v13603_v12 = vld [vmem:[%s24663_s1 + $0x1698] sm:$0xf0]  ;;  %v13542_v14 = vor.u32 %v16579_v48, %v13539_v36  ;;  %v14026_v51 = vor.u32 %v16670_v59, %v14025_v55  ;;  %v16684_v48 = vld [vmem:[%s24663_s1 + $0x1954] sm:$0xf0]  ;;  %v14137_v47 = vld [vmem:[%s24663_s1 + $0x19c0] sm:$0xf] }
 0x2f6   : > { %6476 = vmatpush.bf16.msrb.mxu0 %v13574_v15  ;;  %v16577_v15 = vld [vmem:[%s24663_s1 + $0x1604] sm:$0xf]  ;;  %v16700_v36 = vld [vmem:[%s24663_s1 + $0x19d4] sm:$0xf0]  ;;  %v13921_v1 = vld [vmem:[%s24663_s1 + $0x1810] sm:$0xf] }
 0x2f7   : > { %6489 = vmatpush.bf16.msrb.mxu1 %v13638_v54  ;;  %v13531_v54 = vld [vmem:[%s24663_s1 + $0x1608] sm:$0xf0]  ;;  %v16680_v17 = vld [vmem:[%s24663_s1 + $0x1934] sm:$0xf0] }
 0x2f8   : > { %6502 = vmatpush.bf16.msrb.mxu2 %v13702_v4  ;;  %v13606_v4 = vor.u32 %v16595_v11, %v13603_v12  ;;  %v13534_v18 = vor.u32 %v16577_v15, %v13531_v54  ;;  %v13954_v11 = vor.u32 %v16652_v61, %v13953_v52  ;;  %v14009_v12 = vld [vmem:[%s24663_s1 + $0x18c0] sm:$0xf]  ;;  %v16644_v39 = vld [vmem:[%s24663_s1 + $0x1814] sm:$0xf0] }
 0x2f9   : > { %6515 = vmatpush.bf16.msrb.mxu3 %v13766_v0  ;;  %v16609_v0 = vld [vmem:[%s24663_s1 + $0x1704] sm:$0xf]  ;;  %v16660_v61 = vld [vmem:[%s24663_s1 + $0x1894] sm:$0xf0] }
 0x2fa   : > { %6477 = vmatpush.bf16.msrb.mxu0 %v13566_v38  ;;  %v5420_v5 = vpop.f32.mrf.mxu2  ;;  %v13662_v21 = vor.u32 %v16609_v0, %v13659_v16  ;;  %v13937_v0 = vld [vmem:[%s24663_s1 + $0x1830] sm:$0xf] }
 0x2fb   : > { %6490 = vmatpush.bf16.msrb.mxu1 %v13630_v2  ;;  %v5433_v38 = vpop.f32.mrf.mxu3  ;;  %v16656_v2 = vld [vmem:[%s24663_s1 + $0x1874] sm:$0xf0] }
 0x2fc   : > { %6503 = vmatpush.bf16.msrb.mxu2 %v13694_v3  ;;  %v14033_v3 = vld [vmem:[%s24663_s1 + $0x18f0] sm:$0xf]  ;;  %v13970_v24 = vor.u32 %v16656_v2, %v13969_v57  ;;  %v16648_v5 = vld [vmem:[%s24663_s1 + $0x1834] sm:$0xf0] }
 0x2fd   : > { %6516 = vmatpush.bf16.msrb.mxu3 %v13758_v20  ;;  %v13598_v20 = vor.u32 %v16593_v53, %v13595_v63  ;;  %v14034_v25 = vor.u32 %v16672_v19, %v14033_v3  ;;  %v14129_v57 = vld [vmem:[%s24663_s1 + $0x19b0] sm:$0xf]  ;;  %v16696_v2 = vld [vmem:[%s24663_s1 + $0x19b4] sm:$0xf0]  ;;  %v13938_v3 = vor.u32 %v16648_v5, %v13937_v0 }
 0x2fe   : > { %6478 = vmatpush.bf16.msrb.mxu0 %v13558_v32  ;;  %v14098_v32 = vor.u32 %v16688_v40, %v14097_v60  ;;  %v13929_v40 = vld [vmem:[%s24663_s1 + $0x1820] sm:$0xf]  ;;  %v14130_v22 = vor.u32 %v16696_v2, %v14129_v57  ;;  %v16752_v0 = vld [vmem:[%s24663_s1 + $0x1b74] sm:$0xf0] }
 0x2ff   : > { %6491 = vmatpush.bf16.msrb.mxu1 %v13622_v27  ;;  %v13961_v27 = vld [vmem:[%s24663_s1 + $0x1860] sm:$0xf] }
 0x300   : > { %6504 = vmatpush.bf16.msrb.mxu2 %v13686_v37  ;;  %v16654_v37 = vld [vmem:[%s24663_s1 + $0x1864] sm:$0xf0] }
 0x301   : > { %6517 = vmatpush.bf16.msrb.mxu3 %v13750_v46  ;;  %v16686_v46 = vld [vmem:[%s24663_s1 + $0x1964] sm:$0xf0]  ;;  %v13962_v26 = vor.u32 %v16654_v37, %v13961_v27  ;;  %v14121_v27 = vld [vmem:[%s24663_s1 + $0x19a0] sm:$0xf] }
 0x302   : > { %6479 = vmatpush.bf16.msrb.mxu0 %v13550_v7  ;;  %v14090_v62 = vor.u32 %v16686_v46, %v14089_v31  ;;  %v14017_v7 = vld [vmem:[%s24663_s1 + $0x18d0] sm:$0xf]  ;;  %v16694_v37 = vld [vmem:[%s24663_s1 + $0x19a4] sm:$0xf0] }
 0x303   : > { %6492 = vmatpush.bf16.msrb.mxu1 %v13614_v43  ;;  %v16668_v43 = vld [vmem:[%s24663_s1 + $0x18d4] sm:$0xf0]  ;;  %v14122_v52 = vor.u32 %v16694_v37, %v14121_v27 }
 0x304   : > { %6505 = vmatpush.bf16.msrb.mxu2 %v13678_v45  ;;  %v14081_v45 = vld [vmem:[%s24663_s1 + $0x1950] sm:$0xf]  ;;  %v14018_v44 = vor.u32 %v16668_v43, %v14017_v7 }
 0x305   : > { %6518 = vmatpush.bf16.msrb.mxu3 %v13742_v49  ;;  %v14082_v49 = vor.u32 %v16684_v48, %v14081_v45  ;;  %v14049_v7 = vld [vmem:[%s24663_s1 + $0x1910] sm:$0xf]  ;;  %v13913_v45 = vld [vmem:[%s24663_s1 + $0x1800] sm:$0xf]  ;;  %v13922_v48 = vor.u32 %v16644_v39, %v13921_v1  ;;  %v16716_v1 = vld [vmem:[%s24663_s1 + $0x1a54] sm:$0xf0] }
 0x306   : > { %6480 = vmatpush.bf16.msrb.mxu0 %v13542_v14  ;;  %v16698_v14 = vld [vmem:[%s24663_s1 + $0x19c4] sm:$0xf0]  ;;  %v14113_v43 = vld [vmem:[%s24663_s1 + $0x1990] sm:$0xf] }
 0x307   : > { %6493 = vmatpush.bf16.msrb.mxu1 %v13606_v4  ;;  %v14138_v16 = vor.u32 %v16698_v14, %v14137_v47  ;;  %v6532_v14 = vld [vmem:[%s17410_s6 + $0x20] sm:$0xff]  ;;  %v14273_v39 = vld [vmem:[%s24663_s1 + $0x1ad0] sm:$0xf] }
 0x308   : > { %6506 = vmatpush.bf16.msrb.mxu2 %v13670_v28  ;;  %v14074_v28 = vor.u32 %v16682_v13, %v14073_v6  ;;  %v14105_v6 = vld [vmem:[%s24663_s1 + $0x1980] sm:$0xf]  ;;  %v16690_v13 = vld [vmem:[%s24663_s1 + $0x1984] sm:$0xf0] }
 0x309   : > { %6519 = vmatpush.bf16.msrb.mxu3 %v13734_v56  ;;  %v14001_v56 = vld [vmem:[%s24663_s1 + $0x18b0] sm:$0xf]  ;;  %v14106_v57 = vor.u32 %v16690_v13, %v14105_v6 }
 0x30a   : > { %6481 = vmatpush.bf16.msrb.mxu0 %v13534_v18  ;;  %v5444_v54 = vpop.f32.mrf.mxu0  ;;  %v14002_v18 = vor.u32 %v16664_v35, %v14001_v56  ;;  %v14417_v35 = vld [vmem:[%s24663_s1 + $0x1bf0] sm:$0xf] }
 0x30b   : > { %6494 = vmatpush.bf16.msrb.mxu1 %v13598_v20  ;;  %v5445_v53 = vadd.f32 %v5444_v54, %v22040_v29  ;;  %v5457_v63 = vpop.f32.mrf.mxu1  ;;  %v14065_v29 = vld [vmem:[%s24663_s1 + $0x1930] sm:$0xf]  ;;  %v16646_v20 = vld [vmem:[%s24663_s1 + $0x1824] sm:$0xf0]  ;;  %v16720_v54 = vld [vmem:[%s24663_s1 + $0x1a74] sm:$0xf0] }
 0x30c   : > { %6507 = vmatpush.bf16.msrb.mxu2 %v13662_v21  ;;  %v14066_v19 = vor.u32 %v16680_v17, %v14065_v29  ;;  %v13993_v21 = vld [vmem:[%s24663_s1 + $0x18a0] sm:$0xf]  ;;  %v16768_v29 = vld [vmem:[%s24663_s1 + $0x1bf4] sm:$0xf0]  ;;  %v6669_v17 = vunpack.c.l.b16 %v6532_v14 }
 0x30d   : > { %6520 = vmatpush.bf16.msrb.mxu3 %v13726_v23  ;;  %6482 = vmatmul.bf16.vlgmr.msrb.gmra.mxu0 %v21728_v33  ;;  %v13945_v33 = vld [vmem:[%s24663_s1 + $0x1840] sm:$0xf]  ;;  %v5458_v38 = vadd.f32 %v5457_v63, %v5445_v53  ;;  %v16736_v53 = vld [vmem:[%s24663_s1 + $0x1af4] sm:$0xf0]  ;;  %v14353_v63 = vld [vmem:[%s24663_s1 + $0x1b70] sm:$0xf] }
 0x30e   : > { %7333 = vmatpush.bf16.msra.mxu0 %v13970_v24  ;;  %6495 = vmatmul.bf16.vlgmr.msrb.gmra.mxu1 %v21738_v10  ;;  %v16666_v10 = vld [vmem:[%s24663_s1 + $0x18c4] sm:$0xf0]  ;;  %v22342_v27 = vpack.c.b16 %v6669_v17, %v6669_v17  ;;  %v14185_v17 = vld [vmem:[%s24663_s1 + $0x1a20] sm:$0xf] }
 0x30f   : > { %7346 = vmatpush.bf16.msra.mxu1 %v14034_v25  ;;  %6508 = vmatmul.bf16.vlgmr.msrb.gmra.mxu2 %v21720_v8  ;;  %v14145_v8 = vld [vmem:[%s24663_s1 + $0x19d0] sm:$0xf]  ;;  %v14010_v4 = vor.u32 %v16666_v10, %v14009_v12  ;;  %v16662_v24 = vld [vmem:[%s24663_s1 + $0x18a4] sm:$0xf0]  ;;  %v14057_v25 = vld [vmem:[%s24663_s1 + $0x1920] sm:$0xf] }
 0x310   : > { %7359 = vmatpush.bf16.msra.mxu2 %v14098_v32  ;;  %6521 = vmatmul.bf16.vlgmr.msrb.gmra.mxu3 %v21730_v41  ;;  %v16650_v41 = vld [vmem:[%s24663_s1 + $0x1844] sm:$0xf0]  ;;  %v14146_v42 = vor.u32 %v16700_v36, %v14145_v8  ;;  %v13994_v31 = vor.u32 %v16662_v24, %v13993_v21  ;;  %v13977_v36 = vld [vmem:[%s24663_s1 + $0x1880] sm:$0xf]  ;;  %v14418_v21 = vor.u32 %v16768_v29, %v14417_v35 }
 0x311   : > { %7372 = vmatpush.bf16.msra.mxu3 %v14162_v58  ;;  %v13946_v15 = vor.u32 %v16650_v41, %v13945_v33  ;;  %v16678_v32 = vld [vmem:[%s24663_s1 + $0x1924] sm:$0xf0]  ;;  %v13930_v58 = vor.u32 %v16646_v20, %v13929_v40  ;;  %v14041_v33 = vld [vmem:[%s24663_s1 + $0x1900] sm:$0xf] }
 0x312   : > { %7334 = vmatpush.bf16.msra.mxu0 %v13962_v26  ;;  %v5470_v60 = vpop.f32.mrf.mxu2  ;;  %v5446_v59 = vpop.f32.mrf.mxu0  ;;  %v14058_v46 = vor.u32 %v16678_v32, %v14057_v25  ;;  %v13985_v26 = vld [vmem:[%s24663_s1 + $0x1890] sm:$0xf]  ;;  %v16642_v8 = vld [vmem:[%s24663_s1 + $0x1804] sm:$0xf0]  ;;  %v14281_v20 = vld [vmem:[%s24663_s1 + $0x1ae0] sm:$0xf] }
 0x313   : > { %7347 = vmatpush.bf16.msra.mxu1 %v14026_v51  ;;  %v5471_v34 = vadd.f32 %v5470_v60, %v5458_v38  ;;  %v5483_v23 = vpop.f32.mrf.mxu3  ;;  %v5459_v51 = vpop.f32.mrf.mxu1  ;;  %v16674_v41 = vld [vmem:[%s24663_s1 + $0x1904] sm:$0xf0]  ;;  %v14217_v60 = vld [vmem:[%s24663_s1 + $0x1a60] sm:$0xf] }
 0x314   : > { %7360 = vmatpush.bf16.msra.mxu2 %v14090_v62  ;;  %v16718_v40 = vld [vmem:[%s24663_s1 + $0x1a64] sm:$0xf0]  ;;  %v14409_v25 = vld [vmem:[%s24663_s1 + $0x1be0] sm:$0xf]  ;;  %v16732_v51 = vld [vmem:[%s24663_s1 + $0x1ad4] sm:$0xf0] }
 0x315   : > { %7373 = vmatpush.bf16.msra.mxu3 %v14154_v30  ;;  %v5484_v55 = vadd.f32 %v5483_v23, %v5471_v34  ;;  %v16676_v30 = vld [vmem:[%s24663_s1 + $0x1914] sm:$0xf0]  ;;  %v14345_v34 = vld [vmem:[%s24663_s1 + $0x1b60] sm:$0xf]  ;;  %v16750_v23 = vld [vmem:[%s24663_s1 + $0x1b64] sm:$0xf0] }
 0x316   : > { %7335 = vmatpush.bf16.msra.mxu0 %v13954_v11  ;;  %v16658_v11 = vld [vmem:[%s24663_s1 + $0x1884] sm:$0xf0] }
 0x317   : > { %7348 = vmatpush.bf16.msra.mxu1 %v14018_v44  ;;  %v22249_v62 = vadd.f32 %v5484_v55, %v21427_v9  ;;  %v16692_v9 = vld [vmem:[%s24663_s1 + $0x1994] sm:$0xf0]  ;;  %v13986_v44 = vor.u32 %v16660_v61, %v13985_v26  ;;  %v13978_v56 = vor.u32 %v16658_v11, %v13977_v36  ;;  %v16766_v32 = vld [vmem:[%s24663_s1 + $0x1be4] sm:$0xf0]  ;;  %v14218_v55 = vor.u32 %v16718_v40, %v14217_v60  ;;  %v14265_v36 = vld [vmem:[%s24663_s1 + $0x1ac0] sm:$0xf] }
 0x318   : > { %7361 = vmatpush.bf16.msra.mxu2 %v14082_v49  ;;  %v14050_v49 = vor.u32 %v16676_v30, %v14049_v7  ;;  %v14114_v10 = vor.u32 %v16692_v9, %v14113_v43  ;;  %v14410_v26 = vor.u32 %v16766_v32, %v14409_v25  ;;  %v16748_v61 = vld [vmem:[%s24663_s1 + $0x1b54] sm:$0xf0]  ;;  %v14401_v7 = vld [vmem:[%s24663_s1 + $0x1bd0] sm:$0xf]  ;;  %v14274_v9 = vor.u32 %v16732_v51, %v14273_v39  ;;  %v16742_v60 = vld [vmem:[%s24663_s1 + $0x1b24] sm:$0xf0] }
 0x319   : > { %7374 = vmatpush.bf16.msra.mxu3 %v14146_v42  ;;  %v6533_v42 = vld [vmem:[%s17410_s6 + $0x28] sm:$0xff]  ;;  %v16764_v30 = vld [vmem:[%s24663_s1 + $0x1bd4] sm:$0xf0]  ;;  %v14305_v51 = vld [vmem:[%s24663_s1 + $0x1b10] sm:$0xf] }
 0x31a   : > { %7336 = vmatpush.bf16.msra.mxu0 %v13946_v15  ;;  %v5472_v12 = vpop.f32.mrf.mxu2  ;;  %v14225_v15 = vld [vmem:[%s24663_s1 + $0x1a70] sm:$0xf]  ;;  %v6671_v5 = vunpack.c.l.b16 %v6533_v42  ;;  %v6672_v38 = vunpack.c.h.b16 %v6533_v42  ;;  %v14402_v11 = vor.u32 %v16764_v30, %v14401_v7  ;;  %v16756_v7 = vld [vmem:[%s24663_s1 + $0x1b94] sm:$0xf0]  ;;  %v14169_v30 = vld [vmem:[%s24663_s1 + $0x1a00] sm:$0xf] }
 0x31b   : > { %7349 = vmatpush.bf16.msra.mxu1 %v14010_v4  ;;  %v5485_v47 = vpop.f32.mrf.mxu3  ;;  %v14289_v4 = vld [vmem:[%s24663_s1 + $0x1af0] sm:$0xf]  ;;  %v14226_v2 = vor.u32 %v16720_v54, %v14225_v15  ;;  %v16762_v12 = vld [vmem:[%s24663_s1 + $0x1bc4] sm:$0xf0] }
 0x31c   : > { %7362 = vmatpush.bf16.msra.mxu2 %v14074_v28  ;;  %v13914_v28 = vor.u32 %v16642_v8, %v13913_v45  ;;  %v22334_v24 = vpack.c.b16 %v6671_v5, %v6671_v5  ;;  %v22344_v37 = vpack.c.b16 %v6672_v38, %v6672_v38  ;;  %v16714_v8 = vld [vmem:[%s24663_s1 + $0x1a44] sm:$0xf0]  ;;  %v14193_v47 = vld [vmem:[%s24663_s1 + $0x1a30] sm:$0xf] }
 0x31d   : > { %7375 = vmatpush.bf16.msra.mxu3 %v14138_v16  ;;  %v14042_v16 = vor.u32 %v16674_v41, %v14041_v33  ;;  %v16746_v33 = vld [vmem:[%s24663_s1 + $0x1b44] sm:$0xf0]  ;;  %v14393_v41 = vld [vmem:[%s24663_s1 + $0x1bc0] sm:$0xf]  ;;  %v14257_v15 = vld [vmem:[%s24663_s1 + $0x1ab0] sm:$0xf] }
 0x31e   : > { %7337 = vmatpush.bf16.msra.mxu0 %v13938_v3  ;;  %v6670_v3 = vunpack.c.h.b16 %v6532_v14  ;;  %v16712_v14 = vld [vmem:[%s24663_s1 + $0x1a34] sm:$0xf0]  ;;  %v14385_v5 = vld [vmem:[%s24663_s1 + $0x1bb0] sm:$0xf]  ;;  %v16710_v38 = vld [vmem:[%s24663_s1 + $0x1a24] sm:$0xf0] }
 0x31f   : > { %7350 = vmatpush.bf16.msra.mxu1 %v14002_v18  ;;  %v14290_v18 = vor.u32 %v16736_v53, %v14289_v4  ;;  %v14394_v4 = vor.u32 %v16762_v12, %v14393_v41  ;;  %v14321_v53 = vld [vmem:[%s24663_s1 + $0x1b30] sm:$0xf]  ;;  %v14361_v12 = vld [vmem:[%s24663_s1 + $0x1b80] sm:$0xf] }
 0x320   : > { %7363 = vmatpush.bf16.msra.mxu2 %v14066_v19  ;;  %v14354_v19 = vor.u32 %v16752_v0, %v14353_v63  ;;  %v16744_v63 = vld [vmem:[%s24663_s1 + $0x1b34] sm:$0xf0] }
 0x321   : > { %7376 = vmatpush.bf16.msra.mxu3 %v14130_v22  ;;  %v16734_v22 = vld [vmem:[%s24663_s1 + $0x1ae4] sm:$0xf0]  ;;  %v14322_v29 = vor.u32 %v16744_v63, %v14321_v53 }
 0x322   : > { %7338 = vmatpush.bf16.msra.mxu0 %v13930_v58  ;;  %v22346_v58 = vpack.c.b16 %v6670_v3, %v6670_v3  ;;  %v14282_v59 = vor.u32 %v16734_v22, %v14281_v20  ;;  %v16758_v22 = vld [vmem:[%s24663_s1 + $0x1ba4] sm:$0xf0] }
 0x323   : > { %7351 = vmatpush.bf16.msra.mxu1 %v13994_v31  ;;  %v14346_v31 = vor.u32 %v16750_v23, %v14345_v34  ;;  %v14186_v34 = vor.u32 %v16710_v38, %v14185_v17 }
 0x324   : > { %7364 = vmatpush.bf16.msra.mxu2 %v14058_v46  ;;  %v14209_v46 = vld [vmem:[%s24663_s1 + $0x1a50] sm:$0xf] }
 0x325   : > { %7377 = vmatpush.bf16.msra.mxu3 %v14122_v52  ;;  %v14337_v52 = vld [vmem:[%s24663_s1 + $0x1b50] sm:$0xf]  ;;  %v14210_v43 = vor.u32 %v16716_v1, %v14209_v46 }
 0x326   : > { %7339 = vmatpush.bf16.msra.mxu0 %v13922_v48  ;;  %v14338_v45 = vor.u32 %v16748_v61, %v14337_v52  ;;  %v14201_v48 = vld [vmem:[%s24663_s1 + $0x1a40] sm:$0xf]  ;;  %v14241_v46 = vld [vmem:[%s24663_s1 + $0x1a90] sm:$0xf]  ;;  %v16740_v52 = vld [vmem:[%s24663_s1 + $0x1b14] sm:$0xf0] }
 0x327   : > { %7352 = vmatpush.bf16.msra.mxu1 %v13986_v44  ;;  %v16730_v44 = vld [vmem:[%s24663_s1 + $0x1ac4] sm:$0xf0]  ;;  %v14202_v42 = vor.u32 %v16714_v8, %v14201_v48  ;;  %v14369_v61 = vld [vmem:[%s24663_s1 + $0x1b90] sm:$0xf] }
 0x328   : > { %7365 = vmatpush.bf16.msra.mxu2 %v14050_v49  ;;  %v14329_v49 = vld [vmem:[%s24663_s1 + $0x1b40] sm:$0xf]  ;;  %v14266_v6 = vor.u32 %v16730_v44, %v14265_v36  ;;  %v16722_v48 = vld [vmem:[%s24663_s1 + $0x1a84] sm:$0xf0]  ;;  %v14306_v36 = vor.u32 %v16740_v52, %v14305_v51  ;;  %v14370_v41 = vor.u32 %v16756_v7, %v14369_v61  ;;  %v16667_v51 = vld [vmem:[%s24663_s1 + $0x18d4] sm:$0xf] }
 0x329   : > { %7378 = vmatpush.bf16.msra.mxu3 %v14114_v10  ;;  %v14330_v13 = vor.u32 %v16746_v33, %v14329_v49  ;;  %v16738_v44 = vld [vmem:[%s24663_s1 + $0x1b04] sm:$0xf0]  ;;  %v6535_v49 = vld [vmem:[%s17410_s6 + $0x38] sm:$0xff]  ;;  %v16683_v7 = vld [vmem:[%s24663_s1 + $0x1954] sm:$0xf] }
 0x32a   : > { %7340 = vmatpush.bf16.msra.mxu0 %v13914_v28  ;;  %v6327_v10 = vpop.f32.mrf.mxu0  ;;  %v16728_v28 = vld [vmem:[%s24663_s1 + $0x1ab4] sm:$0xf0]  ;;  %v6675_v53 = vunpack.c.l.b16 %v6535_v49  ;;  %v14019_v61 = vld [vmem:[%s24663_s1 + $0x18d8] sm:$0xf0] }
 0x32b   : > { %7353 = vmatpush.bf16.msra.mxu1 %v13978_v56  ;;  %v6340_v54 = vpop.f32.mrf.mxu1  ;;  %v16760_v56 = vld [vmem:[%s24663_s1 + $0x1bb4] sm:$0xf0]  ;;  %v14258_v35 = vor.u32 %v16728_v28, %v14257_v15  ;;  %v14099_v28 = vld [vmem:[%s24663_s1 + $0x1978] sm:$0xf0] }
 0x32c   : > { %7366 = vmatpush.bf16.msra.mxu2 %v14042_v16  ;;  %v6341_v0 = vadd.f32 %v6340_v54, %v6327_v10  ;;  %v14194_v16 = vor.u32 %v16712_v14, %v14193_v47  ;;  %v14386_v3 = vor.u32 %v16760_v56, %v14385_v5  ;;  %v6534_v10 = vld [vmem:[%s17410_s6 + $0x30] sm:$0xff]  ;;  %v13971_v47 = vld [vmem:[%s24663_s1 + $0x1878] sm:$0xf0] }
 0x32d   : > { %7379 = vmatpush.bf16.msra.mxu3 %v14106_v57  ;;  %7341 = vmatmul.bf16.vlgmr.msra.gmra.mxu0 %v22342_v27  ;;  %v14249_v57 = vld [vmem:[%s24663_s1 + $0x1aa0] sm:$0xf]  ;;  %v16671_v14 = vld [vmem:[%s24663_s1 + $0x18f4] sm:$0xf]  ;;  %v14035_v54 = vld [vmem:[%s24663_s1 + $0x18f8] sm:$0xf0]  ;;  %v6674_v38 = vunpack.c.h.b16 %v6534_v10 }
 0x32e   : > { %7385 = vmatpush.bf16.msrb.mxu0 %v14226_v2  ;;  %7354 = vmatmul.bf16.vlgmr.msra.gmra.mxu1 %v22346_v58  ;;  %v16703_v5 = vld [vmem:[%s24663_s1 + $0x19f4] sm:$0xf]  ;;  %v14163_v56 = vld [vmem:[%s24663_s1 + $0x19f8] sm:$0xf0] }
 0x32f   : > { %7398 = vmatpush.bf16.msrb.mxu1 %v14290_v18  ;;  %7367 = vmatmul.bf16.vlgmr.msra.gmra.mxu2 %v22334_v24  ;;  %v16726_v18 = vld [vmem:[%s24663_s1 + $0x1aa4] sm:$0xf0] }
 0x330   : > { %7411 = vmatpush.bf16.msrb.mxu2 %v14354_v19  ;;  %7380 = vmatmul.bf16.vlgmr.msra.gmra.mxu3 %v22344_v37  ;;  %v14313_v19 = vld [vmem:[%s24663_s1 + $0x1b20] sm:$0xf]  ;;  %v14250_v32 = vor.u32 %v16726_v18, %v14249_v57  ;;  %v14038_v57 = vor.u32 %v16671_v14, %v14035_v54  ;;  %v13963_v18 = vld [vmem:[%s24663_s1 + $0x1868] sm:$0xf0] }
 0x331   : > { %7424 = vmatpush.bf16.msrb.mxu3 %v14418_v21  ;;  %v14377_v21 = vld [vmem:[%s24663_s1 + $0x1ba0] sm:$0xf] }
 0x332   : > { %7386 = vmatpush.bf16.msrb.mxu0 %v14218_v55  ;;  %v6353_v2 = vpop.f32.mrf.mxu2  ;;  %v6329_v25 = vpop.f32.mrf.mxu0  ;;  %v14314_v55 = vor.u32 %v16742_v60, %v14313_v19  ;;  %v14378_v39 = vor.u32 %v16758_v22, %v14377_v21  ;;  %v16669_v19 = vld [vmem:[%s24663_s1 + $0x18e4] sm:$0xf]  ;;  %v14166_v60 = vor.u32 %v16703_v5, %v14163_v56  ;;  %v14091_v22 = vld [vmem:[%s24663_s1 + $0x1968] sm:$0xf0]  ;;  %v14067_v5 = vld [vmem:[%s24663_s1 + $0x1938] sm:$0xf0] }
 0x333   : > { %7399 = vmatpush.bf16.msrb.mxu1 %v14282_v59  ;;  %v6354_v40 = vadd.f32 %v6353_v2, %v6341_v0  ;;  %v6366_v20 = vpop.f32.mrf.mxu3  ;;  %v14177_v59 = vld [vmem:[%s24663_s1 + $0x1a10] sm:$0xf]  ;;  %v6342_v1 = vpop.f32.mrf.mxu1  ;;  %v16685_v21 = vld [vmem:[%s24663_s1 + $0x1964] sm:$0xf] }
 0x334   : > { %7412 = vmatpush.bf16.msrb.mxu2 %v14346_v31  ;;  %v16708_v31 = vld [vmem:[%s24663_s1 + $0x1a14] sm:$0xf0]  ;;  %v14094_v1 = vor.u32 %v16685_v21, %v14091_v22  ;;  %v13995_v21 = vld [vmem:[%s24663_s1 + $0x18a8] sm:$0xf0]  ;;  %v16677_v22 = vld [vmem:[%s24663_s1 + $0x1924] sm:$0xf] }
 0x335   : > { %7425 = vmatpush.bf16.msrb.mxu3 %v14410_v26  ;;  %v22448_v23 = vadd.f32 %v6366_v20, %v6354_v40  ;;  %v16724_v26 = vld [vmem:[%s24663_s1 + $0x1a94] sm:$0xf0]  ;;  %v22533_v40 = vpack.c.b16 %v6675_v53, %v6675_v53  ;;  %v14027_v20 = vld [vmem:[%s24663_s1 + $0x18e8] sm:$0xf0]  ;;  %v16663_v53 = vld [vmem:[%s24663_s1 + $0x18b4] sm:$0xf] }
 0x336   : > { %7387 = vmatpush.bf16.msrb.mxu0 %v14210_v43  ;;  %v14178_v43 = vor.u32 %v16708_v31, %v14177_v59  ;;  %v14242_v8 = vor.u32 %v16724_v26, %v14241_v46  ;;  %v22554_v31 = vpack.c.b16 %v6674_v38, %v6674_v38  ;;  %v14030_v46 = vor.u32 %v16669_v19, %v14027_v20  ;;  %v13955_v26 = vld [vmem:[%s24663_s1 + $0x1858] sm:$0xf0] }
 0x337   : > { %7400 = vmatpush.bf16.msrb.mxu1 %v14274_v9  ;;  %v16706_v9 = vld [vmem:[%s24663_s1 + $0x1a04] sm:$0xf0] }
 0x338   : > { %7413 = vmatpush.bf16.msrb.mxu2 %v14338_v45  ;;  %v14233_v45 = vld [vmem:[%s24663_s1 + $0x1a80] sm:$0xf]  ;;  %v14170_v15 = vor.u32 %v16706_v9, %v14169_v30  ;;  %v14083_v30 = vld [vmem:[%s24663_s1 + $0x1958] sm:$0xf0] }
 0x339   : > { %7426 = vmatpush.bf16.msrb.mxu3 %v14402_v11  ;;  %v14297_v11 = vld [vmem:[%s24663_s1 + $0x1b00] sm:$0xf]  ;;  %v14234_v63 = vor.u32 %v16722_v48, %v14233_v45  ;;  %v14147_v9 = vld [vmem:[%s24663_s1 + $0x19d8] sm:$0xf0]  ;;  %v14022_v48 = vor.u32 %v16667_v51, %v14019_v61 }
 0x33a   : > { %7388 = vmatpush.bf16.msrb.mxu0 %v14202_v42  ;;  %v6355_v33 = vpop.f32.mrf.mxu2  ;;  %v16754_v42 = vld [vmem:[%s24663_s1 + $0x1b84] sm:$0xf0]  ;;  %v14298_v0 = vor.u32 %v16738_v44, %v14297_v11  ;;  %v13947_v11 = vld [vmem:[%s24663_s1 + $0x1848] sm:$0xf0]  ;;  %v16665_v44 = vld [vmem:[%s24663_s1 + $0x18c4] sm:$0xf] }
 0x33b   : > { %7401 = vmatpush.bf16.msrb.mxu1 %v14266_v6  ;;  %v6368_v6 = vpop.f32.mrf.mxu3  ;;  %v14011_v33 = vld [vmem:[%s24663_s1 + $0x18c8] sm:$0xf0]  ;;  %v13923_v61 = vld [vmem:[%s24663_s1 + $0x1818] sm:$0xf0] }
 0x33c   : > { %7414 = vmatpush.bf16.msrb.mxu2 %v14330_v13  ;;  %v16655_v13 = vld [vmem:[%s24663_s1 + $0x1874] sm:$0xf] }
 0x33d   : > { %7427 = vmatpush.bf16.msrb.mxu3 %v14394_v4  ;;  %v16687_v4 = vld [vmem:[%s24663_s1 + $0x1974] sm:$0xf]  ;;  %v13974_v17 = vor.u32 %v16655_v13, %v13971_v47  ;;  %v14014_v47 = vor.u32 %v16665_v44, %v14011_v33  ;;  %v16641_v44 = vld [vmem:[%s24663_s1 + $0x1804] sm:$0xf] }
 0x33e   : > { %7389 = vmatpush.bf16.msrb.mxu0 %v14194_v16  ;;  %v6673_v16 = vunpack.c.l.b16 %v6534_v10  ;;  %v14102_v2 = vor.u32 %v16687_v4, %v14099_v28  ;;  %v14139_v10 = vld [vmem:[%s24663_s1 + $0x19c8] sm:$0xf0]  ;;  %v16647_v4 = vld [vmem:[%s24663_s1 + $0x1834] sm:$0xf]  ;;  %v13939_v28 = vld [vmem:[%s24663_s1 + $0x1838] sm:$0xf0] }
 0x33f   : > { %7402 = vmatpush.bf16.msrb.mxu1 %v14258_v35  ;;  %v6676_v35 = vunpack.c.h.b16 %v6535_v49 }
 0x340   : > { %7415 = vmatpush.bf16.msrb.mxu2 %v14322_v29  ;;  %v14362_v29 = vor.u32 %v16754_v42, %v14361_v12  ;;  %v14075_v12 = vld [vmem:[%s24663_s1 + $0x1948] sm:$0xf0]  ;;  %v16697_v42 = vld [vmem:[%s24663_s1 + $0x19c4] sm:$0xf] }
 0x341   : > { %7428 = vmatpush.bf16.msrb.mxu3 %v14386_v3  ;;  %v16653_v3 = vld [vmem:[%s24663_s1 + $0x1864] sm:$0xf]  ;;  %v22546_v25 = vpack.c.b16 %v6676_v35, %v6676_v35  ;;  %v14131_v35 = vld [vmem:[%s24663_s1 + $0x19b8] sm:$0xf0] }
 0x342   : > { %7390 = vmatpush.bf16.msrb.mxu0 %v14186_v34  ;;  %v22544_v34 = vpack.c.b16 %v6673_v16, %v6673_v16  ;;  %v13966_v59 = vor.u32 %v16653_v3, %v13963_v18  ;;  %v16695_v16 = vld [vmem:[%s24663_s1 + $0x19b4] sm:$0xf]  ;;  %v13931_v3 = vld [vmem:[%s24663_s1 + $0x1828] sm:$0xf0]  ;;  %v16661_v18 = vld [vmem:[%s24663_s1 + $0x18a4] sm:$0xf] }
 0x343   : > { %7403 = vmatpush.bf16.msrb.mxu1 %v14250_v32  ;;  %v16701_v32 = vld [vmem:[%s24663_s1 + $0x19e4] sm:$0xf]  ;;  %v14134_v19 = vor.u32 %v16695_v16, %v14131_v35  ;;  %v16767_v35 = vld [vmem:[%s24663_s1 + $0x1bf4] sm:$0xf] }
 0x344   : > { %7416 = vmatpush.bf16.msrb.mxu2 %v14314_v55  ;;  %v14155_v55 = vld [vmem:[%s24663_s1 + $0x19e8] sm:$0xf0] }
 0x345   : > { %7429 = vmatpush.bf16.msrb.mxu3 %v14378_v39  ;;  %v16651_v39 = vld [vmem:[%s24663_s1 + $0x1854] sm:$0xf]  ;;  %v14158_v52 = vor.u32 %v16701_v32, %v14155_v55  ;;  %v14059_v32 = vld [vmem:[%s24663_s1 + $0x1928] sm:$0xf0]  ;;  %v16693_v55 = vld [vmem:[%s24663_s1 + $0x19a4] sm:$0xf] }
 0x346   : > { %7391 = vmatpush.bf16.msrb.mxu0 %v14178_v43  ;;  %v16699_v43 = vld [vmem:[%s24663_s1 + $0x19d4] sm:$0xf]  ;;  %v13958_v45 = vor.u32 %v16651_v39, %v13955_v26  ;;  %v13998_v26 = vor.u32 %v16661_v18, %v13995_v21  ;;  %v14062_v51 = vor.u32 %v16677_v22, %v14059_v32  ;;  %v14219_v18 = vld [vmem:[%s24663_s1 + $0x1a68] sm:$0xf0]  ;;  %v16749_v21 = vld [vmem:[%s24663_s1 + $0x1b64] sm:$0xf] }
 0x347   : > { %7404 = vmatpush.bf16.msrb.mxu1 %v14242_v8  ;;  %v14086_v8 = vor.u32 %v16683_v7, %v14083_v30  ;;  %v14150_v49 = vor.u32 %v16699_v43, %v14147_v9  ;;  %v16659_v7 = vld [vmem:[%s24663_s1 + $0x1894] sm:$0xf]  ;;  %v14347_v22 = vld [vmem:[%s24663_s1 + $0x1b68] sm:$0xf0]  ;;  %v16765_v32 = vld [vmem:[%s24663_s1 + $0x1be4] sm:$0xf] }
 0x348   : > { %7417 = vmatpush.bf16.msrb.mxu2 %v14306_v36  ;;  %v16649_v36 = vld [vmem:[%s24663_s1 + $0x1844] sm:$0xf] }
 0x349   : > { %7430 = vmatpush.bf16.msrb.mxu3 %v14370_v41  ;;  %v16681_v41 = vld [vmem:[%s24663_s1 + $0x1944] sm:$0xf]  ;;  %v13950_v6 = vor.u32 %v16649_v36, %v13947_v11  ;;  %v16691_v36 = vld [vmem:[%s24663_s1 + $0x1994] sm:$0xf] }
 0x34a   : > { %7392 = vmatpush.bf16.msrb.mxu0 %v14170_v15  ;;  %v6379_v13 = vpop.f32.mrf.mxu0  ;;  %v14078_v14 = vor.u32 %v16681_v41, %v14075_v12  ;;  %v16657_v12 = vld [vmem:[%s24663_s1 + $0x1884] sm:$0xf] }
 0x34b   : > { %7405 = vmatpush.bf16.msrb.mxu1 %v14234_v63  ;;  %v6380_v15 = vadd.f32 %v6379_v13, %v22448_v23  ;;  %v6392_v54 = vpop.f32.mrf.mxu1  ;;  %v14142_v63 = vor.u32 %v16697_v42, %v14139_v10  ;;  %v16679_v23 = vld [vmem:[%s24663_s1 + $0x1934] sm:$0xf]  ;;  %v13979_v42 = vld [vmem:[%s24663_s1 + $0x1888] sm:$0xf0]  ;;  %v16673_v10 = vld [vmem:[%s24663_s1 + $0x1904] sm:$0xf] }
 0x34c   : > { %7418 = vmatpush.bf16.msrb.mxu2 %v14298_v0  ;;  %v14003_v0 = vld [vmem:[%s24663_s1 + $0x18b8] sm:$0xf0]  ;;  %v14070_v38 = vor.u32 %v16679_v23, %v14067_v5  ;;  %v16751_v23 = vld [vmem:[%s24663_s1 + $0x1b74] sm:$0xf] }
 0x34d   : > { %7431 = vmatpush.bf16.msrb.mxu3 %v14362_v29  ;;  %7393 = vmatmul.bf16.vlgmr.msrb.gmra.mxu0 %v22544_v34  ;;  %v6393_v56 = vadd.f32 %v6392_v54, %v6380_v15  ;;  %v13942_v29 = vor.u32 %v16647_v4, %v13939_v28  ;;  %v14107_v15 = vld [vmem:[%s24663_s1 + $0x1988] sm:$0xf0]  ;;  %v16719_v4 = vld [vmem:[%s24663_s1 + $0x1a74] sm:$0xf]  ;;  %v14227_v28 = vld [vmem:[%s24663_s1 + $0x1a78] sm:$0xf0] }
 0x34e   : > { %7437 = vmatpush.bf16.msra.mxu0 %v13974_v17  ;;  %7406 = vmatmul.bf16.vlgmr.msrb.gmra.mxu1 %v22554_v31  ;;  %v14006_v17 = vor.u32 %v16663_v53, %v14003_v0  ;;  %v16735_v53 = vld [vmem:[%s24663_s1 + $0x1af4] sm:$0xf]  ;;  %v14291_v0 = vld [vmem:[%s24663_s1 + $0x1af8] sm:$0xf0] }
 0x34f   : > { %7450 = vmatpush.bf16.msra.mxu1 %v14038_v57  ;;  %7419 = vmatmul.bf16.vlgmr.msrb.gmra.mxu2 %v22533_v40  ;;  %v14355_v5 = vld [vmem:[%s24663_s1 + $0x1b78] sm:$0xf0] }
 0x350   : > { %7463 = vmatpush.bf16.msra.mxu2 %v14102_v2  ;;  %7432 = vmatmul.bf16.vlgmr.msrb.gmra.mxu3 %v22546_v25  ;;  %v16645_v2 = vld [vmem:[%s24663_s1 + $0x1824] sm:$0xf] }
 0x351   : > { %7476 = vmatpush.bf16.msra.mxu3 %v14166_v60 }
 0x352   : > { %7438 = vmatpush.bf16.msra.mxu0 %v13966_v59  ;;  %v6405_v57 = vpop.f32.mrf.mxu2  ;;  %v14123_v59 = vld [vmem:[%s24663_s1 + $0x19a8] sm:$0xf0]  ;;  %v6381_v39 = vpop.f32.mrf.mxu0 }
 0x353   : > { %7451 = vmatpush.bf16.msra.mxu1 %v14030_v46  ;;  %v6406_v60 = vadd.f32 %v6405_v57, %v6393_v56  ;;  %v6418_v20 = vpop.f32.mrf.mxu3  ;;  %v6394_v30 = vpop.f32.mrf.mxu1  ;;  %v14126_v9 = vor.u32 %v16693_v55, %v14123_v59  ;;  %v13982_v56 = vor.u32 %v16657_v12, %v13979_v42  ;;  %v14294_v57 = vor.u32 %v16735_v53, %v14291_v0  ;;  %v14411_v55 = vld [vmem:[%s24663_s1 + $0x1be8] sm:$0xf0]  ;;  %v16715_v39 = vld [vmem:[%s24663_s1 + $0x1a54] sm:$0xf]  ;;  %v14387_v0 = vld [vmem:[%s24663_s1 + $0x1bb8] sm:$0xf0] }
 0x354   : > { %7464 = vmatpush.bf16.msra.mxu2 %v14094_v1  ;;  %v13934_v1 = vor.u32 %v16645_v2, %v13931_v3  ;;  %v14358_v2 = vor.u32 %v16751_v23, %v14355_v5  ;;  %v16717_v3 = vld [vmem:[%s24663_s1 + $0x1a64] sm:$0xf]  ;;  %v14339_v30 = vld [vmem:[%s24663_s1 + $0x1b58] sm:$0xf0] }
 0x355   : > { %7477 = vmatpush.bf16.msra.mxu3 %v14158_v52  ;;  %v6419_v46 = vadd.f32 %v6418_v20, %v6406_v60  ;;  %v16643_v52 = vld [vmem:[%s24663_s1 + $0x1814] sm:$0xf]  ;;  %v14283_v20 = vld [vmem:[%s24663_s1 + $0x1ae8] sm:$0xf0]  ;;  %v14222_v59 = vor.u32 %v16717_v3, %v14219_v18 }
 0x356   : > { %7439 = vmatpush.bf16.msra.mxu0 %v13958_v45  ;;  %v13987_v45 = vld [vmem:[%s24663_s1 + $0x1898] sm:$0xf0]  ;;  %v13926_v11 = vor.u32 %v16643_v52, %v13923_v61  ;;  %v14414_v52 = vor.u32 %v16765_v32, %v14411_v55  ;;  %v14315_v3 = vld [vmem:[%s24663_s1 + $0x1b28] sm:$0xf0] }
 0x357   : > { %7452 = vmatpush.bf16.msra.mxu1 %v14022_v48  ;;  %v22667_v43 = vadd.f32 %v6419_v46, %v21851_v50  ;;  %v16675_v48 = vld [vmem:[%s24663_s1 + $0x1914] sm:$0xf]  ;;  %v14115_v50 = vld [vmem:[%s24663_s1 + $0x1998] sm:$0xf0]  ;;  %v13990_v33 = vor.u32 %v16659_v7, %v13987_v45 }
 0x358   : > { %7465 = vmatpush.bf16.msra.mxu2 %v14086_v8  ;;  %v14051_v8 = vld [vmem:[%s24663_s1 + $0x1918] sm:$0xf0]  ;;  %v14118_v13 = vor.u32 %v16691_v36, %v14115_v50  ;;  %v16747_v7 = vld [vmem:[%s24663_s1 + $0x1b54] sm:$0xf]  ;;  %v16713_v36 = vld [vmem:[%s24663_s1 + $0x1a44] sm:$0xf] }
 0x359   : > { %7478 = vmatpush.bf16.msra.mxu3 %v14150_v49  ;;  %v13915_v49 = vld [vmem:[%s24663_s1 + $0x1808] sm:$0xf0]  ;;  %v14054_v41 = vor.u32 %v16675_v48, %v14051_v8  ;;  %v14275_v61 = vld [vmem:[%s24663_s1 + $0x1ad8] sm:$0xf0] }
 0x35a   : > { %7440 = vmatpush.bf16.msra.mxu0 %v13950_v6  ;;  %v6407_v6 = vpop.f32.mrf.mxu2  ;;  %v14403_v45 = vld [vmem:[%s24663_s1 + $0x1bd8] sm:$0xf0]  ;;  %v14203_v50 = vld [vmem:[%s24663_s1 + $0x1a48] sm:$0xf0] }
 0x35b   : > { %7453 = vmatpush.bf16.msra.mxu1 %v14014_v47  ;;  %v14043_v47 = vld [vmem:[%s24663_s1 + $0x1908] sm:$0xf0]  ;;  %v6420_v54 = vpop.f32.mrf.mxu3  ;;  %v16711_v6 = vld [vmem:[%s24663_s1 + $0x1a34] sm:$0xf] }
 0x35c   : > { %7466 = vmatpush.bf16.msra.mxu2 %v14078_v14  ;;  %v16689_v14 = vld [vmem:[%s24663_s1 + $0x1984] sm:$0xf]  ;;  %v14046_v16 = vor.u32 %v16673_v10, %v14043_v47  ;;  %v16727_v47 = vld [vmem:[%s24663_s1 + $0x1ab4] sm:$0xf]  ;;  %v14259_v54 = vld [vmem:[%s24663_s1 + $0x1ab8] sm:$0xf0] }
 0x35d   : > { %7479 = vmatpush.bf16.msra.mxu3 %v14142_v63  ;;  %v13918_v63 = vor.u32 %v16641_v44, %v13915_v49  ;;  %v14331_v44 = vld [vmem:[%s24663_s1 + $0x1b48] sm:$0xf0]  ;;  %v16761_v49 = vld [vmem:[%s24663_s1 + $0x1bc4] sm:$0xf]  ;;  %v14262_v5 = vor.u32 %v16727_v47, %v14259_v54  ;;  %v14769_v47 = vld [vmem:[%s24663_s1 + $0x1d70] sm:$0xf] }
 0x35e   : > { %7441 = vmatpush.bf16.msra.mxu0 %v13942_v29  ;;  %v14419_v29 = vld [vmem:[%s24663_s1 + $0x1bf8] sm:$0xf0] }
 0x35f   : > { %7454 = vmatpush.bf16.msra.mxu1 %v14006_v17  ;;  %v14110_v17 = vor.u32 %v16689_v14, %v14107_v15  ;;  %v14422_v60 = vor.u32 %v16767_v35, %v14419_v29  ;;  %v14187_v35 = vld [vmem:[%s24663_s1 + $0x1a28] sm:$0xf0]  ;;  %v16725_v29 = vld [vmem:[%s24663_s1 + $0x1aa4] sm:$0xf] }
 0x360   : > { %7467 = vmatpush.bf16.msra.mxu2 %v14070_v38  ;;  %v14230_v38 = vor.u32 %v16719_v4, %v14227_v28  ;;  %v16743_v4 = vld [vmem:[%s24663_s1 + $0x1b34] sm:$0xf]  ;;  %v14323_v28 = vld [vmem:[%s24663_s1 + $0x1b38] sm:$0xf0] }
 0x361   : > { %7480 = vmatpush.bf16.msra.mxu3 %v14134_v19  ;;  %v16733_v19 = vld [vmem:[%s24663_s1 + $0x1ae4] sm:$0xf] }
 0x362   : > { %7442 = vmatpush.bf16.msra.mxu0 %v13934_v1  ;;  %v14286_v46 = vor.u32 %v16733_v19, %v14283_v20  ;;  %v14350_v1 = vor.u32 %v16749_v21, %v14347_v22  ;;  %v14379_v20 = vld [vmem:[%s24663_s1 + $0x1ba8] sm:$0xf0] }
 0x363   : > { %7455 = vmatpush.bf16.msra.mxu1 %v13998_v26  ;;  %v14211_v26 = vld [vmem:[%s24663_s1 + $0x1a58] sm:$0xf0] }
 0x364   : > { %7468 = vmatpush.bf16.msra.mxu2 %v14062_v51  ;;  %v16731_v51 = vld [vmem:[%s24663_s1 + $0x1ad4] sm:$0xf]  ;;  %v14214_v48 = vor.u32 %v16715_v39, %v14211_v26 }
 0x365   : > { %7481 = vmatpush.bf16.msra.mxu3 %v14126_v9  ;;  %v16763_v9 = vld [vmem:[%s24663_s1 + $0x1bd4] sm:$0xf]  ;;  %v14278_v8 = vor.u32 %v16731_v51, %v14275_v61 }
 0x366   : > { %7443 = vmatpush.bf16.msra.mxu0 %v13926_v11  ;;  %v16745_v11 = vld [vmem:[%s24663_s1 + $0x1b44] sm:$0xf]  ;;  %v16723_v39 = vld [vmem:[%s24663_s1 + $0x1a94] sm:$0xf] }
 0x367   : > { %7456 = vmatpush.bf16.msra.mxu1 %v13990_v33  ;;  %v14395_v33 = vld [vmem:[%s24663_s1 + $0x1bc8] sm:$0xf0]  ;;  %v14334_v10 = vor.u32 %v16745_v11, %v14331_v44  ;;  %v16739_v61 = vld [vmem:[%s24663_s1 + $0x1b14] sm:$0xf] }
 0x368   : > { %7469 = vmatpush.bf16.msra.mxu2 %v14054_v41  ;;  %v14206_v41 = vor.u32 %v16713_v36, %v14203_v50  ;;  %v14398_v15 = vor.u32 %v16761_v49, %v14395_v33  ;;  %v16721_v50 = vld [vmem:[%s24663_s1 + $0x1a84] sm:$0xf]  ;;  %v14299_v44 = vld [vmem:[%s24663_s1 + $0x1b08] sm:$0xf0] }
 0x369   : > { %7482 = vmatpush.bf16.msra.mxu3 %v14118_v13  ;;  %v14195_v13 = vld [vmem:[%s24663_s1 + $0x1a38] sm:$0xf0]  ;;  %v16753_v49 = vld [vmem:[%s24663_s1 + $0x1b84] sm:$0xf]  ;;  %v14363_v33 = vld [vmem:[%s24663_s1 + $0x1b88] sm:$0xf0] }
 0x36a   : > { %7444 = vmatpush.bf16.msra.mxu0 %v13918_v63  ;;  %v6431_v12 = vpop.f32.mrf.mxu0  ;;  %v16759_v63 = vld [vmem:[%s24663_s1 + $0x1bb4] sm:$0xf]  ;;  %v14198_v23 = vor.u32 %v16711_v6, %v14195_v13  ;;  %v16808_v13 = vld [vmem:[%s24663_s1 + $0x1cf4] sm:$0xf0] }
 0x36b   : > { %7457 = vmatpush.bf16.msra.mxu1 %v13982_v56  ;;  %v6444_v14 = vpop.f32.mrf.mxu1  ;;  %v14326_v56 = vor.u32 %v16743_v4, %v14323_v28  ;;  %v14833_v4 = vld [vmem:[%s24663_s1 + $0x1df0] sm:$0xf]  ;;  %v16840_v28 = vld [vmem:[%s24663_s1 + $0x1df4] sm:$0xf0] }
 0x36c   : > { %7470 = vmatpush.bf16.msra.mxu2 %v14046_v16  ;;  %v6445_v53 = vadd.f32 %v6444_v14, %v6431_v12  ;;  %v16709_v16 = vld [vmem:[%s24663_s1 + $0x1a24] sm:$0xf]  ;;  %v14641_v12 = vld [vmem:[%s24663_s1 + $0x1c70] sm:$0xf]  ;;  %v16824_v14 = vld [vmem:[%s24663_s1 + $0x1d74] sm:$0xf0] }
 0x36d   : > { %7483 = vmatpush.bf16.msra.mxu3 %v14110_v17  ;;  %7445 = vmatmul.bf16.vlgmr.msra.gmra.mxu0 %v22342_v27  ;;  %v16729_v27 = vld [vmem:[%s24663_s1 + $0x1ac4] sm:$0xf]  ;;  %v14190_v21 = vor.u32 %v16709_v16, %v14187_v35  ;;  %v14697_v16 = vld [vmem:[%s24663_s1 + $0x1ce0] sm:$0xf]  ;;  %v14834_v35 = vor.u32 %v16840_v28, %v14833_v4 }
 0x36e   : > { %7489 = vmatpush.bf16.msrb.mxu0 %v14230_v38  ;;  %7458 = vmatmul.bf16.vlgmr.msra.gmra.mxu1 %v22346_v58  ;;  %v14267_v58 = vld [vmem:[%s24663_s1 + $0x1ac8] sm:$0xf0]  ;;  %v14390_v38 = vor.u32 %v16759_v63, %v14387_v0 }
 0x36f   : > { %7502 = vmatpush.bf16.msrb.mxu1 %v14294_v57  ;;  %7471 = vmatmul.bf16.vlgmr.msra.gmra.mxu2 %v22334_v24  ;;  %v14342_v24 = vor.u32 %v16747_v7, %v14339_v30  ;;  %v14270_v42 = vor.u32 %v16729_v27, %v14267_v58  ;;  %v14251_v57 = vld [vmem:[%s24663_s1 + $0x1aa8] sm:$0xf0]  ;;  %v14307_v7 = vld [vmem:[%s24663_s1 + $0x1b18] sm:$0xf0]  ;;  %v16755_v30 = vld [vmem:[%s24663_s1 + $0x1b94] sm:$0xf] }
 0x370   : > { %7515 = vmatpush.bf16.msrb.mxu2 %v14358_v2  ;;  %7484 = vmatmul.bf16.vlgmr.msra.gmra.mxu3 %v22344_v37  ;;  %v14406_v37 = vor.u32 %v16763_v9, %v14403_v45  ;;  %v16741_v2 = vld [vmem:[%s24663_s1 + $0x1b24] sm:$0xf]  ;;  %v14254_v55 = vor.u32 %v16725_v29, %v14251_v57  ;;  %v14371_v9 = vld [vmem:[%s24663_s1 + $0x1b98] sm:$0xf0]  ;;  %v14310_v36 = vor.u32 %v16739_v61, %v14307_v7  ;;  %v14235_v27 = vld [vmem:[%s24663_s1 + $0x1a88] sm:$0xf0] }
 0x371   : > { %7528 = vmatpush.bf16.msrb.mxu3 %v14422_v60  ;;  %v16757_v60 = vld [vmem:[%s24663_s1 + $0x1ba4] sm:$0xf]  ;;  %v14374_v11 = vor.u32 %v16755_v30, %v14371_v9  ;;  %v16806_v29 = vld [vmem:[%s24663_s1 + $0x1ce4] sm:$0xf0]  ;;  %v14825_v57 = vld [vmem:[%s24663_s1 + $0x1de0] sm:$0xf] }
 0x372   : > { %7490 = vmatpush.bf16.msrb.mxu0 %v14222_v59  ;;  %v6457_v17 = vpop.f32.mrf.mxu2  ;;  %v6433_v32 = vpop.f32.mrf.mxu0  ;;  %v14318_v59 = vor.u32 %v16741_v2, %v14315_v3  ;;  %v14382_v51 = vor.u32 %v16757_v60, %v14379_v20  ;;  %v16838_v2 = vld [vmem:[%s24663_s1 + $0x1de4] sm:$0xf0]  ;;  %v14625_v60 = vld [vmem:[%s24663_s1 + $0x1c50] sm:$0xf]  ;;  %v16788_v20 = vld [vmem:[%s24663_s1 + $0x1c54] sm:$0xf0] }
 0x373   : > { %7503 = vmatpush.bf16.msrb.mxu1 %v14286_v46  ;;  %v6458_v18 = vadd.f32 %v6457_v17, %v6445_v53  ;;  %v6470_v19 = vpop.f32.mrf.mxu3  ;;  %v16707_v46 = vld [vmem:[%s24663_s1 + $0x1a14] sm:$0xf]  ;;  %v6446_v26 = vpop.f32.mrf.mxu1  ;;  %v14366_v53 = vor.u32 %v16753_v49, %v14363_v33  ;;  %v14761_v17 = vld [vmem:[%s24663_s1 + $0x1d60] sm:$0xf]  ;;  %v14826_v32 = vor.u32 %v16838_v2, %v14825_v57  ;;  %v16818_v30 = vld [vmem:[%s24663_s1 + $0x1d44] sm:$0xf0] }
 0x374   : > { %7516 = vmatpush.bf16.msrb.mxu2 %v14350_v1  ;;  %v14179_v1 = vld [vmem:[%s24663_s1 + $0x1a18] sm:$0xf0]  ;;  %v14745_v7 = vld [vmem:[%s24663_s1 + $0x1d40] sm:$0xf]  ;;  %v14737_v49 = vld [vmem:[%s24663_s1 + $0x1d30] sm:$0xf] }
 0x375   : > { %7529 = vmatpush.bf16.msrb.mxu3 %v14414_v52  ;;  %v22856_v22 = vadd.f32 %v6470_v19, %v6458_v18  ;;  %v14243_v52 = vld [vmem:[%s24663_s1 + $0x1a98] sm:$0xf0]  ;;  %v14182_v45 = vor.u32 %v16707_v46, %v14179_v1  ;;  %v14698_v18 = vor.u32 %v16806_v29, %v14697_v16  ;;  %v16820_v46 = vld [vmem:[%s24663_s1 + $0x1d54] sm:$0xf0]  ;;  %v14809_v9 = vld [vmem:[%s24663_s1 + $0x1dc0] sm:$0xf] }
 0x376   : > { %7491 = vmatpush.bf16.msrb.mxu0 %v14214_v48  ;;  %v16705_v48 = vld [vmem:[%s24663_s1 + $0x1a04] sm:$0xf]  ;;  %v16836_v1 = vld [vmem:[%s24663_s1 + $0x1dd4] sm:$0xf0]  ;;  %v14553_v29 = vld [vmem:[%s17410_s6 + $0x20] sm:$0xf] }
 0x377   : > { %7504 = vmatpush.bf16.msrb.mxu1 %v14278_v8  ;;  %v14171_v8 = vld [vmem:[%s24663_s1 + $0x1a08] sm:$0xf0]  ;;  %v14593_v57 = vld [vmem:[%s24663_s1 + $0x1c10] sm:$0xf]  ;;  %v16780_v2 = vld [vmem:[%s24663_s1 + $0x1c14] sm:$0xf0] }
 0x378   : > { %7517 = vmatpush.bf16.msrb.mxu2 %v14342_v24  ;;  %v14246_v24 = vor.u32 %v16723_v39, %v14243_v52  ;;  %v14174_v6 = vor.u32 %v16705_v48, %v14171_v8  ;;  %v14626_v39 = vor.u32 %v16788_v20, %v14625_v60  ;;  %v14681_v52 = vld [vmem:[%s24663_s1 + $0x1cc0] sm:$0xf]  ;;  %v14657_v20 = vld [vmem:[%s24663_s1 + $0x1c90] sm:$0xf] }
 0x379   : > { %7530 = vmatpush.bf16.msrb.mxu3 %v14406_v37  ;;  %v16737_v37 = vld [vmem:[%s24663_s1 + $0x1b04] sm:$0xf] }
 0x37a   : > { %7492 = vmatpush.bf16.msrb.mxu0 %v14206_v41  ;;  %v6459_v58 = vpop.f32.mrf.mxu2  ;;  %v14302_v54 = vor.u32 %v16737_v37, %v14299_v44  ;;  %v16800_v44 = vld [vmem:[%s24663_s1 + $0x1cb4] sm:$0xf0] }
 0x37b   : > { %7505 = vmatpush.bf16.msrb.mxu1 %v14270_v42  ;;  %v6472_v41 = vpop.f32.mrf.mxu3  ;;  %v16792_v42 = vld [vmem:[%s24663_s1 + $0x1c74] sm:$0xf0] }
 0x37c   : > { %7518 = vmatpush.bf16.msrb.mxu2 %v14334_v10  ;;  %v14705_v10 = vld [vmem:[%s24663_s1 + $0x1cf0] sm:$0xf]  ;;  %v14642_v63 = vor.u32 %v16792_v42, %v14641_v12  ;;  %v16816_v41 = vld [vmem:[%s24663_s1 + $0x1d34] sm:$0xf0] }
 0x37d   : > { %7531 = vmatpush.bf16.msrb.mxu3 %v14398_v15  ;;  %v14238_v15 = vor.u32 %v16721_v50, %v14235_v27  ;;  %v14706_v0 = vor.u32 %v16808_v13, %v14705_v10  ;;  %v14746_v27 = vor.u32 %v16818_v30, %v14745_v7  ;;  %v16832_v12 = vld [vmem:[%s24663_s1 + $0x1db4] sm:$0xf0]  ;;  %v14601_v10 = vld [vmem:[%s24663_s1 + $0x1c20] sm:$0xf]  ;;  %v14738_v28 = vor.u32 %v16816_v41, %v14737_v49  ;;  %v14897_v41 = vld [vmem:[%s24663_s1 + $0x1e70] sm:$0xf] }
 0x37e   : > { %7493 = vmatpush.bf16.msrb.mxu0 %v14198_v23  ;;  %v14770_v23 = vor.u32 %v16824_v14, %v14769_v47  ;;  %v14665_v13 = vld [vmem:[%s24663_s1 + $0x1ca0] sm:$0xf]  ;;  %v16798_v14 = vld [vmem:[%s24663_s1 + $0x1ca4] sm:$0xf0] }
 0x37f   : > { %7506 = vmatpush.bf16.msrb.mxu1 %v14262_v5  ;;  %v14633_v5 = vld [vmem:[%s24663_s1 + $0x1c60] sm:$0xf]  ;;  %v14666_v60 = vor.u32 %v16798_v14, %v14665_v13  ;;  %v16872_v13 = vld [vmem:[%s24663_s1 + $0x1ef4] sm:$0xf0] }
 0x380   : > { %7519 = vmatpush.bf16.msrb.mxu2 %v14326_v56  ;;  %v16790_v56 = vld [vmem:[%s24663_s1 + $0x1c64] sm:$0xf0]  ;;  %v14585_v7 = vld [vmem:[%s24663_s1 + $0x1c00] sm:$0xf] }
 0x381   : > { %7532 = vmatpush.bf16.msrb.mxu3 %v14390_v38  ;;  %v16822_v38 = vld [vmem:[%s24663_s1 + $0x1d64] sm:$0xf0]  ;;  %v14634_v3 = vor.u32 %v16790_v56, %v14633_v5 }
 0x382   : > { %7494 = vmatpush.bf16.msrb.mxu0 %v14190_v21  ;;  %v14762_v19 = vor.u32 %v16822_v38, %v14761_v17  ;;  %v14689_v21 = vld [vmem:[%s24663_s1 + $0x1cd0] sm:$0xf]  ;;  %v16774_v5 = vld [vmem:[%s17410_s6 + $0x44] sm:$0x10]  ;;  %v16773_v17 = vld [vmem:[%s17410_s6 + $0x3c] sm:$0x10] }
 0x383   : > { %7507 = vmatpush.bf16.msrb.mxu1 %v14254_v55  ;;  %v16804_v55 = vld [vmem:[%s24663_s1 + $0x1cd4] sm:$0xf0]  ;;  %v16770_v38 = vld [vmem:[%s17410_s6 + $0x2c] sm:$0xf] }
 0x384   : > { %7520 = vmatpush.bf16.msrb.mxu2 %v14318_v59  ;;  %v14753_v59 = vld [vmem:[%s24663_s1 + $0x1d50] sm:$0xf]  ;;  %v14690_v26 = vor.u32 %v16804_v55, %v14689_v21  ;;  %v16769_v55 = vld [vmem:[%s17410_s6 + $0x24] sm:$0xf] }
 0x385   : > { %7533 = vmatpush.bf16.msrb.mxu3 %v14382_v51  ;;  %v14754_v51 = vor.u32 %v16820_v46, %v14753_v59  ;;  %v14555_v59 = vld [vmem:[%s17410_s6 + $0x40] sm:$0x10] }
 0x386   : > { %7495 = vmatpush.bf16.msrb.mxu0 %v14182_v45  ;;  %v16834_v45 = vld [vmem:[%s24663_s1 + $0x1dc4] sm:$0xf0]  ;;  %v23099_v30 = vor.u32 %v16769_v55, %v14555_v59  ;;  %v15081_v55 = vld [vmem:[%s24663_s1 + $0x1fe0] sm:$0xf] }
 0x387   : > { %7508 = vmatpush.bf16.msrb.mxu1 %v14246_v24  ;;  %v14609_v24 = vld [vmem:[%s24663_s1 + $0x1c30] sm:$0xf]  ;;  %v14810_v33 = vor.u32 %v16834_v45, %v14809_v9  ;;  %v14649_v9 = vld [vmem:[%s24663_s1 + $0x1c80] sm:$0xf]  ;;  %v16794_v45 = vld [vmem:[%s24663_s1 + $0x1c84] sm:$0xf0] }
 0x388   : > { %7521 = vmatpush.bf16.msrb.mxu2 %v14310_v36  ;;  %v16784_v36 = vld [vmem:[%s24663_s1 + $0x1c34] sm:$0xf0]  ;;  %v14650_v14 = vor.u32 %v16794_v45, %v14649_v9  ;;  %v16902_v59 = vld [vmem:[%s24663_s1 + $0x1fe4] sm:$0xf0]  ;;  %v15073_v9 = vld [vmem:[%s24663_s1 + $0x1fd0] sm:$0xf] }
 0x389   : > { %7534 = vmatpush.bf16.msrb.mxu3 %v14374_v11  ;;  %v14673_v11 = vld [vmem:[%s24663_s1 + $0x1cb0] sm:$0xf]  ;;  %v14610_v47 = vor.u32 %v16784_v36, %v14609_v24  ;;  %v16810_v24 = vld [vmem:[%s24663_s1 + $0x1d04] sm:$0xf0]  ;;  %v16900_v45 = vld [vmem:[%s24663_s1 + $0x1fd4] sm:$0xf0] }
 0x38a   : > { %7496 = vmatpush.bf16.msrb.mxu0 %v14174_v6  ;;  %v6483_v8 = vpop.f32.mrf.mxu0  ;;  %v16782_v6 = vld [vmem:[%s24663_s1 + $0x1c24] sm:$0xf0]  ;;  %v14674_v4 = vor.u32 %v16800_v44, %v14673_v11 }
 0x38b   : > { %7509 = vmatpush.bf16.msrb.mxu1 %v14238_v15  ;;  %v6484_v37 = vadd.f32 %v6483_v8, %v22856_v22  ;;  %v6496_v58 = vpop.f32.mrf.mxu1  ;;  %v14801_v22 = vld [vmem:[%s24663_s1 + $0x1db0] sm:$0xf]  ;;  %v14729_v15 = vld [vmem:[%s24663_s1 + $0x1d20] sm:$0xf] }
 0x38c   : > { %7522 = vmatpush.bf16.msrb.mxu2 %v14302_v54  ;;  %v16814_v54 = vld [vmem:[%s24663_s1 + $0x1d24] sm:$0xf0]  ;;  %v14802_v56 = vor.u32 %v16832_v12, %v14801_v22  ;;  %v14713_v8 = vld [vmem:[%s24663_s1 + $0x1d00] sm:$0xf]  ;;  %v16856_v22 = vld [vmem:[%s24663_s1 + $0x1e74] sm:$0xf0] }
 0x38d   : > { %7535 = vmatpush.bf16.msrb.mxu3 %v14366_v53  ;;  %7497 = vmatmul.bf16.vlgmr.msrb.gmra.mxu0 %v22544_v34  ;;  %v14617_v34 = vld [vmem:[%s24663_s1 + $0x1c40] sm:$0xf]  ;;  %v6497_v42 = vadd.f32 %v6496_v58, %v6484_v37  ;;  %v14730_v46 = vor.u32 %v16814_v54, %v14729_v15  ;;  %v16826_v58 = vld [vmem:[%s24663_s1 + $0x1d84] sm:$0xf0]  ;;  %v14714_v15 = vor.u32 %v16810_v24, %v14713_v8  ;;  %v16888_v54 = vld [vmem:[%s24663_s1 + $0x1f74] sm:$0xf0] }
 0x38e   : > { %8420 = vmatpush.bf16.msra.mxu0 %v14642_v63  ;;  %7510 = vmatmul.bf16.vlgmr.msrb.gmra.mxu1 %v22554_v31  ;;  %v16802_v31 = vld [vmem:[%s24663_s1 + $0x1cc4] sm:$0xf0]  ;;  %v14793_v63 = vld [vmem:[%s24663_s1 + $0x1da0] sm:$0xf] }
 0x38f   : > { %8433 = vmatpush.bf16.msra.mxu1 %v14706_v0  ;;  %7523 = vmatmul.bf16.vlgmr.msrb.gmra.mxu2 %v22533_v40  ;;  %v14817_v40 = vld [vmem:[%s24663_s1 + $0x1dd0] sm:$0xf]  ;;  %v14682_v50 = vor.u32 %v16802_v31, %v14681_v52  ;;  %v16830_v0 = vld [vmem:[%s24663_s1 + $0x1da4] sm:$0xf0]  ;;  %v16828_v31 = vld [vmem:[%s24663_s1 + $0x1d94] sm:$0xf0] }
 0x390   : > { %8446 = vmatpush.bf16.msra.mxu2 %v14770_v23  ;;  %7536 = vmatmul.bf16.vlgmr.msrb.gmra.mxu3 %v22546_v25  ;;  %v16786_v25 = vld [vmem:[%s24663_s1 + $0x1c44] sm:$0xf0]  ;;  %v14818_v61 = vor.u32 %v16836_v1, %v14817_v40  ;;  %v16796_v40 = vld [vmem:[%s24663_s1 + $0x1c94] sm:$0xf0]  ;;  %v14721_v1 = vld [vmem:[%s24663_s1 + $0x1d10] sm:$0xf]  ;;  %v14794_v52 = vor.u32 %v16830_v0, %v14793_v63 }
 0x391   : > { %8459 = vmatpush.bf16.msra.mxu3 %v14834_v35  ;;  %v14618_v48 = vor.u32 %v16786_v25, %v14617_v34  ;;  %v14561_v23 = vld [vmem:[%s17410_s6 + $0x28] sm:$0xf]  ;;  %v14777_v37 = vld [vmem:[%s24663_s1 + $0x1d80] sm:$0xf]  ;;  %v16904_v63 = vld [vmem:[%s24663_s1 + $0x1ff4] sm:$0xf0] }
 0x392   : > { %8421 = vmatpush.bf16.msra.mxu0 %v14634_v3  ;;  %v6509_v53 = vpop.f32.mrf.mxu2  ;;  %v14563_v3 = vld [vmem:[%s17410_s6 + $0x48] sm:$0x10]  ;;  %v6485_v21 = vpop.f32.mrf.mxu0 }
 0x393   : > { %8434 = vmatpush.bf16.msra.mxu1 %v14698_v18  ;;  %v6510_v16 = vadd.f32 %v6509_v53, %v6497_v42  ;;  %v6522_v35 = vpop.f32.mrf.mxu3  ;;  %v23085_v34 = vor.u32 %v16770_v38, %v14563_v3  ;;  %v7726_v42 = vshll.u32 %v23099_v30, 16  ;;  %v16854_v3 = vld [vmem:[%s24663_s1 + $0x1e64] sm:$0xf0] }
 0x394   : > { %8447 = vmatpush.bf16.msra.mxu2 %v14762_v19  ;;  %v14602_v19 = vor.u32 %v16782_v6, %v14601_v10  ;;  %v14961_v6 = vld [vmem:[%s24663_s1 + $0x1ef0] sm:$0xf]  ;;  %v16886_v21 = vld [vmem:[%s24663_s1 + $0x1f64] sm:$0xf0] }
 0x395   : > { %8460 = vmatpush.bf16.msra.mxu3 %v14826_v32  ;;  %v6523_v18 = vadd.f32 %v6522_v35, %v6510_v16  ;;  %v23070_v32 = vor.u32 %v16774_v5, %v14561_v23  ;;  %v7740_v49 = vshll.u32 %v23085_v34, 16  ;;  %v7738_v5 = vshrl.u32 %v23085_v34, 16  ;;  %v14881_v34 = vld [vmem:[%s24663_s1 + $0x1e50] sm:$0xf] }
 0x396   : > { %8422 = vmatpush.bf16.msra.mxu0 %v14626_v39  ;;  %v16812_v39 = vld [vmem:[%s24663_s1 + $0x1d14] sm:$0xf0]  ;;  %v14778_v16 = vor.u32 %v16826_v58, %v14777_v37  ;;  %v14898_v35 = vor.u32 %v16856_v22, %v14897_v41  ;;  %v14962_v38 = vor.u32 %v16872_v13, %v14961_v6  ;;  %v15074_v37 = vor.u32 %v16900_v45, %v15073_v9  ;;  %v16866_v58 = vld [vmem:[%s24663_s1 + $0x1ec4] sm:$0xf0]  ;;  %v14865_v22 = vld [vmem:[%s24663_s1 + $0x1e30] sm:$0xf] }
 0x397   : > { %8435 = vmatpush.bf16.msra.mxu1 %v14690_v26  ;;  %v6498_v26 = vpop.f32.mrf.mxu1  ;;  %v23088_v25 = vadd.f32 %v6523_v18, %v22249_v62  ;;  %v16778_v62 = vld [vmem:[%s24663_s1 + $0x1c04] sm:$0xf0]  ;;  %v7733_v36 = vshll.u32 %v23070_v32, 16  ;;  %v14953_v18 = vld [vmem:[%s24663_s1 + $0x1ee0] sm:$0xf] }
 0x398   : > { %8448 = vmatpush.bf16.msra.mxu2 %v14754_v51  ;;  %v23083_v51 = vor.u32 %v16773_v17, %v14553_v29  ;;  %v14586_v10 = vor.u32 %v16778_v62, %v14585_v7  ;;  %v7724_v29 = vshrl.u32 %v23099_v30, 16  ;;  %v7728_v17 = vrot.slane %v7726_v42, 1  ;;  %v16868_v7 = vld [vmem:[%s24663_s1 + $0x1ed4] sm:$0xf0]  ;;  %v15009_v30 = vld [vmem:[%s24663_s1 + $0x1f50] sm:$0xf] }
 0x399   : > { %8461 = vmatpush.bf16.msra.mxu3 %v14818_v61  ;;  %v14785_v61 = vld [vmem:[%s24663_s1 + $0x1d90] sm:$0xf]  ;;  %v7735_v53 = vrot.slane %v7733_v36, 1  ;;  %v16884_v62 = vld [vmem:[%s24663_s1 + $0x1f54] sm:$0xf0] }
 0x39a   : > { %8423 = vmatpush.bf16.msra.mxu0 %v14618_v48  ;;  %v14594_v48 = vor.u32 %v16780_v2, %v14593_v57  ;;  %v6511_v11 = vpop.f32.mrf.mxu2  ;;  %v7719_v44 = vshll.u32 %v23083_v51, 16  ;;  %v7717_v0 = vshrl.u32 %v23083_v51, 16  ;;  %v14889_v2 = vld [vmem:[%s24663_s1 + $0x1e60] sm:$0xf]  ;;  %v15010_v24 = vor.u32 %v16884_v62, %v15009_v30  ;;  %v14929_v13 = vld [vmem:[%s24663_s1 + $0x1eb0] sm:$0xf] }
 0x39b   : > { %8436 = vmatpush.bf16.msra.mxu1 %v14682_v50  ;;  %v14658_v50 = vor.u32 %v16796_v40, %v14657_v20  ;;  %v6524_v12 = vpop.f32.mrf.mxu3  ;;  %v15017_v20 = vld [vmem:[%s24663_s1 + $0x1f60] sm:$0xf]  ;;  %v14913_v30 = vld [vmem:[%s24663_s1 + $0x1e90] sm:$0xf] }
 0x39c   : > { %8449 = vmatpush.bf16.msra.mxu2 %v14746_v27  ;;  %v14722_v27 = vor.u32 %v16812_v39, %v14721_v1  ;;  %v7721_v23 = vrot.slane %v7719_v44, 1  ;;  %v14890_v1 = vor.u32 %v16854_v3, %v14889_v2  ;;  %v23184_v39 = vor.u32 %v7728_v17, %v7724_v29  ;;  %v14873_v36 = vld [vmem:[%s24663_s1 + $0x1e40] sm:$0xf]  ;;  %v16882_v44 = vld [vmem:[%s24663_s1 + $0x1f44] sm:$0xf0] }
 0x39d   : > { %8462 = vmatpush.bf16.msra.mxu3 %v14810_v33  ;;  %v14786_v33 = vor.u32 %v16828_v31, %v14785_v61  ;;  %v15018_v51 = vor.u32 %v16886_v21, %v15017_v20  ;;  %v14945_v61 = vld [vmem:[%s24663_s1 + $0x1ed0] sm:$0xf]  ;;  %v15082_v31 = vor.u32 %v16902_v59, %v15081_v55  ;;  %v15001_v11 = vld [vmem:[%s24663_s1 + $0x1f40] sm:$0xf]  ;;  %v16848_v12 = vld [vmem:[%s24663_s1 + $0x1e34] sm:$0xf0] }
 0x39e   : > { %8424 = vmatpush.bf16.msra.mxu0 %v14610_v47  ;;  %v15025_v47 = vld [vmem:[%s24663_s1 + $0x1f70] sm:$0xf]  ;;  %v14946_v8 = vor.u32 %v16868_v7, %v14945_v61  ;;  %v15002_v6 = vor.u32 %v16882_v44, %v15001_v11  ;;  %v16878_v29 = vld [vmem:[%s24663_s1 + $0x1f24] sm:$0xf0]  ;;  %v14577_v3 = vld [vmem:[%s17410_s6 + $0x38] sm:$0xf] }
 0x39f   : > { %8437 = vmatpush.bf16.msra.mxu1 %v14674_v4  ;;  %v15089_v4 = vld [vmem:[%s24663_s1 + $0x1ff0] sm:$0xf]  ;;  %v15026_v57 = vor.u32 %v16888_v54, %v15025_v47  ;;  %v16864_v47 = vld [vmem:[%s24663_s1 + $0x1eb4] sm:$0xf0]  ;;  %v16772_v59 = vld [vmem:[%s17410_s6 + $0x3c] sm:$0xf] }
 0x3a0   : > { %8450 = vmatpush.bf16.msra.mxu2 %v14738_v28  ;;  %v7731_v28 = vshrl.u32 %v23070_v32, 16  ;;  %v14930_v17 = vor.u32 %v16864_v47, %v14929_v13  ;;  %v16775_v55 = vld [vmem:[%s17410_s6 + $0x4c] sm:$0x10]  ;;  %v16844_v7 = vld [vmem:[%s24663_s1 + $0x1e14] sm:$0xf0] }
 0x3a1   : > { %8463 = vmatpush.bf16.msra.mxu3 %v14802_v56  ;;  %v7742_v56 = vrot.slane %v7740_v49, 1  ;;  %v15065_v49 = vld [vmem:[%s24663_s1 + $0x1fc0] sm:$0xf]  ;;  %v15041_v11 = vld [vmem:[%s24663_s1 + $0x1f90] sm:$0xf] }
 0x3a2   : > { %8425 = vmatpush.bf16.msra.mxu0 %v14602_v19  ;;  %v15090_v19 = vor.u32 %v16904_v63, %v15089_v4  ;;  %v23172_v32 = vor.u32 %v7735_v53, %v7731_v28  ;;  %v16880_v4 = vld [vmem:[%s24663_s1 + $0x1f34] sm:$0xf0]  ;;  %v15057_v28 = vld [vmem:[%s24663_s1 + $0x1fb0] sm:$0xf] }
 0x3a3   : > { %8438 = vmatpush.bf16.msra.mxu1 %v14666_v60  ;;  %v16870_v60 = vld [vmem:[%s24663_s1 + $0x1ee4] sm:$0xf0]  ;;  %v23182_v40 = vor.u32 %v7742_v56, %v7738_v5  ;;  %v16896_v53 = vld [vmem:[%s24663_s1 + $0x1fb4] sm:$0xf0]  ;;  %v14921_v5 = vld [vmem:[%s24663_s1 + $0x1ea0] sm:$0xf]  ;;  %v14866_v56 = vor.u32 %v16848_v12, %v14865_v22 }
 0x3a4   : > { %8451 = vmatpush.bf16.msra.mxu2 %v14730_v46  ;;  %v23180_v46 = vor.u32 %v7721_v23, %v7717_v0  ;;  %v14954_v26 = vor.u32 %v16870_v60, %v14953_v18  ;;  %v14857_v0 = vld [vmem:[%s24663_s1 + $0x1e20] sm:$0xf]  ;;  %v16846_v23 = vld [vmem:[%s24663_s1 + $0x1e24] sm:$0xf0]  ;;  %v16776_v18 = vld [vmem:[%s17410_s6 + $0x54] sm:$0x10]  ;;  %v15058_v60 = vor.u32 %v16896_v53, %v15057_v28 }
 0x3a5   : > { %8464 = vmatpush.bf16.msra.mxu3 %v14794_v52  ;;  %v16852_v52 = vld [vmem:[%s24663_s1 + $0x1e54] sm:$0xf0]  ;;  %v23303_v62 = vor.u32 %v16776_v18, %v14577_v3  ;;  %v14905_v22 = vld [vmem:[%s24663_s1 + $0x1e80] sm:$0xf]  ;;  %v16858_v12 = vld [vmem:[%s24663_s1 + $0x1e84] sm:$0xf0] }
 0x3a6   : > { %8426 = vmatpush.bf16.msra.mxu0 %v14594_v48  ;;  %v14882_v48 = vor.u32 %v16852_v52, %v14881_v34  ;;  %v14571_v34 = vld [vmem:[%s17410_s6 + $0x50] sm:$0x10]  ;;  %v14858_v52 = vor.u32 %v16846_v23, %v14857_v0  ;;  %v16892_v44 = vld [vmem:[%s24663_s1 + $0x1f94] sm:$0xf0]  ;;  %v14643_v23 = vld [vmem:[%s24663_s1 + $0x1c78] sm:$0xf0] }
 0x3a7   : > { %8439 = vmatpush.bf16.msra.mxu1 %v14658_v50  ;;  %v16850_v50 = vld [vmem:[%s24663_s1 + $0x1e44] sm:$0xf0]  ;;  %v7761_v13 = vshll.u32 %v23303_v62, 16  ;;  %v16791_v0 = vld [vmem:[%s24663_s1 + $0x1c74] sm:$0xf]  ;;  %v7759_v18 = vshrl.u32 %v23303_v62, 16 }
 0x3a8   : > { %8452 = vmatpush.bf16.msra.mxu2 %v14722_v27  ;;  %v14937_v27 = vld [vmem:[%s24663_s1 + $0x1ec0] sm:$0xf]  ;;  %v14874_v41 = vor.u32 %v16850_v50, %v14873_v36  ;;  %v16876_v36 = vld [vmem:[%s24663_s1 + $0x1f14] sm:$0xf0]  ;;  %v16839_v3 = vld [vmem:[%s24663_s1 + $0x1df4] sm:$0xf] }
 0x3a9   : > { %8465 = vmatpush.bf16.msra.mxu3 %v14786_v33  ;;  %v16898_v33 = vld [vmem:[%s24663_s1 + $0x1fc4] sm:$0xf0] }
 0x3aa   : > { %8427 = vmatpush.bf16.msra.mxu0 %v14586_v10  ;;  %v7342_v42 = vpop.f32.mrf.mxu0  ;;  %v14938_v10 = vor.u32 %v16866_v58, %v14937_v27  ;;  %v15066_v54 = vor.u32 %v16898_v33, %v15065_v49  ;;  %v14841_v49 = vld [vmem:[%s24663_s1 + $0x1e00] sm:$0xf] }
 0x3ab   : > { %8440 = vmatpush.bf16.msra.mxu1 %v14650_v14  ;;  %v14993_v14 = vld [vmem:[%s24663_s1 + $0x1f30] sm:$0xf] }
 0x3ac   : > { %8453 = vmatpush.bf16.msra.mxu2 %v14714_v15  ;;  %v7355_v15 = vpop.f32.mrf.mxu1 }
 0x3ad   : > { %8466 = vmatpush.bf16.msra.mxu3 %v14778_v16  ;;  %8428 = vmatmul.bf16.vlgmr.msra.gmra.mxu0 %v23180_v46  ;;  %v7356_v63 = vadd.f32 %v7355_v15, %v7342_v42  ;;  %v16862_v16 = vld [vmem:[%s24663_s1 + $0x1ea4] sm:$0xf0]  ;;  %v15033_v15 = vld [vmem:[%s24663_s1 + $0x1f80] sm:$0xf] }
 0x3ae   : > { %8472 = vmatpush.bf16.msrb.mxu0 %v14898_v35  ;;  %8441 = vmatmul.bf16.vlgmr.msra.gmra.mxu1 %v23184_v39  ;;  %v14985_v35 = vld [vmem:[%s24663_s1 + $0x1f20] sm:$0xf]  ;;  %v14922_v61 = vor.u32 %v16862_v16, %v14921_v5 }
 0x3af   : > { %8485 = vmatpush.bf16.msrb.mxu1 %v14962_v38  ;;  %8454 = vmatmul.bf16.vlgmr.msra.gmra.mxu2 %v23172_v32  ;;  %v14994_v38 = vor.u32 %v16880_v4, %v14993_v14 }
 0x3b0   : > { %8498 = vmatpush.bf16.msrb.mxu2 %v15026_v57  ;;  %8467 = vmatmul.bf16.vlgmr.msra.gmra.mxu3 %v23182_v40  ;;  %v15049_v57 = vld [vmem:[%s24663_s1 + $0x1fa0] sm:$0xf] }
 0x3b1   : > { %8511 = vmatpush.bf16.msrb.mxu3 %v15090_v19  ;;  %v14569_v19 = vld [vmem:[%s17410_s6 + $0x30] sm:$0xf] }
 0x3b2   : > { %8473 = vmatpush.bf16.msrb.mxu0 %v14890_v1  ;;  %v7368_v2 = vpop.f32.mrf.mxu2  ;;  %v14579_v1 = vld [vmem:[%s17410_s6 + $0x58] sm:$0x10]  ;;  %v7344_v45 = vpop.f32.mrf.mxu0  ;;  %v23316_v50 = vor.u32 %v16775_v55, %v14569_v19  ;;  %v7763_v19 = vrot.slane %v7761_v13, 1  ;;  %v16835_v13 = vld [vmem:[%s24663_s1 + $0x1dd4] sm:$0xf] }
 0x3b3   : > { %8486 = vmatpush.bf16.msrb.mxu1 %v14954_v26  ;;  %v7369_v20 = vadd.f32 %v7368_v2, %v7356_v63  ;;  %v7381_v21 = vpop.f32.mrf.mxu3  ;;  %v16894_v26 = vld [vmem:[%s24663_s1 + $0x1fa4] sm:$0xf0]  ;;  %v23318_v27 = vor.u32 %v16772_v59, %v14579_v1  ;;  %v15042_v63 = vor.u32 %v16892_v44, %v15041_v11  ;;  %v14771_v2 = vld [vmem:[%s24663_s1 + $0x1d78] sm:$0xf0] }
 0x3b4   : > { %8499 = vmatpush.bf16.msrb.mxu2 %v15018_v51  ;;  %v16771_v51 = vld [vmem:[%s17410_s6 + $0x34] sm:$0xf]  ;;  %v15050_v58 = vor.u32 %v16894_v26, %v15049_v57  ;;  %v7747_v4 = vshll.u32 %v23316_v50, 16  ;;  %v14646_v26 = vor.u32 %v16791_v0, %v14643_v23  ;;  %v23393_v45 = vor.u32 %v7763_v19, %v7759_v18  ;;  %v14683_v0 = vld [vmem:[%s24663_s1 + $0x1cc8] sm:$0xf0] }
 0x3b5   : > { %8512 = vmatpush.bf16.msrb.mxu3 %v15082_v31  ;;  %v14849_v31 = vld [vmem:[%s24663_s1 + $0x1e10] sm:$0xf]  ;;  %v23305_v9 = vadd.f32 %v7381_v21, %v7369_v20  ;;  %v23329_v33 = vor.u32 %v16771_v51, %v14571_v34  ;;  %v7768_v28 = vshll.u32 %v23318_v27, 16  ;;  %v7745_v20 = vshrl.u32 %v23316_v50, 16  ;;  %v16817_v23 = vld [vmem:[%s24663_s1 + $0x1d44] sm:$0xf] }
 0x3b6   : > { %8474 = vmatpush.bf16.msrb.mxu0 %v14882_v48  ;;  %v14986_v48 = vor.u32 %v16878_v29, %v14985_v35  ;;  %v14850_v42 = vor.u32 %v16844_v7, %v14849_v31  ;;  %v16807_v35 = vld [vmem:[%s24663_s1 + $0x1cf4] sm:$0xf]  ;;  %v14707_v29 = vld [vmem:[%s24663_s1 + $0x1cf8] sm:$0xf0]  ;;  %v7749_v21 = vrot.slane %v7747_v4, 1  ;;  %v7766_v55 = vshrl.u32 %v23318_v27, 16 }
 0x3b7   : > { %8487 = vmatpush.bf16.msrb.mxu1 %v14946_v8  ;;  %v16860_v8 = vld [vmem:[%s24663_s1 + $0x1e94] sm:$0xf0]  ;;  %v7754_v5 = vshll.u32 %v23329_v33, 16  ;;  %v7770_v59 = vrot.slane %v7768_v28, 1  ;;  %v7752_v51 = vshrl.u32 %v23329_v33, 16 }
 0x3b8   : > { %8500 = vmatpush.bf16.msrb.mxu2 %v15010_v24  ;;  %v14977_v24 = vld [vmem:[%s24663_s1 + $0x1f10] sm:$0xf]  ;;  %v14914_v47 = vor.u32 %v16860_v8, %v14913_v30  ;;  %v16789_v31 = vld [vmem:[%s24663_s1 + $0x1c64] sm:$0xf]  ;;  %v14635_v7 = vld [vmem:[%s24663_s1 + $0x1c68] sm:$0xf0] }
 0x3b9   : > { %8513 = vmatpush.bf16.msrb.mxu3 %v15074_v37  ;;  %v7357_v37 = vpop.f32.mrf.mxu1  ;;  %v14978_v14 = vor.u32 %v16876_v36, %v14977_v24  ;;  %v7756_v34 = vrot.slane %v7754_v5, 1  ;;  %v16805_v30 = vld [vmem:[%s24663_s1 + $0x1ce4] sm:$0xf]  ;;  %v14763_v24 = vld [vmem:[%s24663_s1 + $0x1d68] sm:$0xf0]  ;;  %v23404_v36 = vor.u32 %v7749_v21, %v7745_v20  ;;  %v23406_v50 = vor.u32 %v7770_v59, %v7766_v55 }
 0x3ba   : > { %8475 = vmatpush.bf16.msrb.mxu0 %v14874_v41  ;;  %v16842_v41 = vld [vmem:[%s24663_s1 + $0x1e04] sm:$0xf0]  ;;  %v7370_v53 = vpop.f32.mrf.mxu2  ;;  %v16821_v8 = vld [vmem:[%s24663_s1 + $0x1d64] sm:$0xf]  ;;  %v14827_v37 = vld [vmem:[%s24663_s1 + $0x1de8] sm:$0xf0] }
 0x3bb   : > { %8488 = vmatpush.bf16.msrb.mxu1 %v14938_v10  ;;  %v14969_v10 = vld [vmem:[%s24663_s1 + $0x1f00] sm:$0xf]  ;;  %v14842_v16 = vor.u32 %v16842_v41, %v14841_v49  ;;  %v16837_v27 = vld [vmem:[%s24663_s1 + $0x1de4] sm:$0xf]  ;;  %v23414_v11 = vor.u32 %v7756_v34, %v7752_v51  ;;  %v14766_v49 = vor.u32 %v16821_v8, %v14763_v24  ;;  %v16787_v33 = vld [vmem:[%s24663_s1 + $0x1c54] sm:$0xf] }
 0x3bc   : > { %8501 = vmatpush.bf16.msrb.mxu2 %v15002_v6  ;;  %v16874_v6 = vld [vmem:[%s24663_s1 + $0x1f04] sm:$0xf0]  ;;  %v14627_v41 = vld [vmem:[%s24663_s1 + $0x1c58] sm:$0xf0]  ;;  %v16785_v4 = vld [vmem:[%s24663_s1 + $0x1c44] sm:$0xf] }
 0x3bd   : > { %8514 = vmatpush.bf16.msrb.mxu3 %v15066_v54  ;;  %v16890_v54 = vld [vmem:[%s24663_s1 + $0x1f84] sm:$0xf0]  ;;  %v14970_v57 = vor.u32 %v16874_v6, %v14969_v10  ;;  %v16819_v10 = vld [vmem:[%s24663_s1 + $0x1d54] sm:$0xf]  ;;  %v14755_v6 = vld [vmem:[%s24663_s1 + $0x1d58] sm:$0xf0] }
 0x3be   : > { %8476 = vmatpush.bf16.msrb.mxu0 %v14866_v56  ;;  %v7383_v56 = vpop.f32.mrf.mxu3  ;;  %v15034_v1 = vor.u32 %v16890_v54, %v15033_v15  ;;  %v14758_v54 = vor.u32 %v16819_v10, %v14755_v6  ;;  %v14619_v28 = vld [vmem:[%s24663_s1 + $0x1c48] sm:$0xf0]  ;;  %v16801_v53 = vld [vmem:[%s24663_s1 + $0x1cc4] sm:$0xf]  ;;  %v14611_v18 = vld [vmem:[%s24663_s1 + $0x1c38] sm:$0xf0] }
 0x3bf   : > { %8489 = vmatpush.bf16.msrb.mxu1 %v14930_v17  ;;  %v16823_v17 = vld [vmem:[%s24663_s1 + $0x1d74] sm:$0xf]  ;;  %v14747_v5 = vld [vmem:[%s24663_s1 + $0x1d48] sm:$0xf0]  ;;  %v16833_v56 = vld [vmem:[%s24663_s1 + $0x1dc4] sm:$0xf] }
 0x3c0   : > { %8502 = vmatpush.bf16.msrb.mxu2 %v14994_v38  ;;  %v14906_v38 = vor.u32 %v16858_v12, %v14905_v22  ;;  %v16803_v22 = vld [vmem:[%s24663_s1 + $0x1cd4] sm:$0xf]  ;;  %v14830_v12 = vor.u32 %v16837_v27, %v14827_v37  ;;  %v14675_v20 = vld [vmem:[%s24663_s1 + $0x1cb8] sm:$0xf0]  ;;  %v14667_v8 = vld [vmem:[%s24663_s1 + $0x1ca8] sm:$0xf0] }
 0x3c1   : > { %8515 = vmatpush.bf16.msrb.mxu3 %v15058_v60  ;;  %v14835_v60 = vld [vmem:[%s24663_s1 + $0x1df8] sm:$0xf0]  ;;  %v16799_v19 = vld [vmem:[%s24663_s1 + $0x1cb4] sm:$0xf]  ;;  %v16813_v24 = vld [vmem:[%s24663_s1 + $0x1d24] sm:$0xf] }
 0x3c2   : > { %8477 = vmatpush.bf16.msrb.mxu0 %v14858_v52  ;;  %v14710_v52 = vor.u32 %v16807_v35, %v14707_v29  ;;  %v14838_v62 = vor.u32 %v16839_v3, %v14835_v60  ;;  %v14622_v35 = vor.u32 %v16785_v4, %v14619_v28  ;;  %v16783_v3 = vld [vmem:[%s24663_s1 + $0x1c34] sm:$0xf]  ;;  %v14739_v21 = vld [vmem:[%s24663_s1 + $0x1d38] sm:$0xf0]  ;;  %v14678_v51 = vor.u32 %v16799_v19, %v14675_v20  ;;  %v14731_v27 = vld [vmem:[%s24663_s1 + $0x1d28] sm:$0xf0] }
 0x3c3   : > { %8490 = vmatpush.bf16.msrb.mxu1 %v14922_v61  ;;  %v14774_v61 = vor.u32 %v16823_v17, %v14771_v2  ;;  %v14686_v17 = vor.u32 %v16801_v53, %v14683_v0  ;;  %v16831_v59 = vld [vmem:[%s24663_s1 + $0x1db4] sm:$0xf]  ;;  %v16829_v37 = vld [vmem:[%s24663_s1 + $0x1da4] sm:$0xf]  ;;  %v14963_v20 = vld [vmem:[%s24663_s1 + $0x1ef8] sm:$0xf0] }
 0x3c4   : > { %8503 = vmatpush.bf16.msrb.mxu2 %v14986_v48  ;;  %v14699_v48 = vld [vmem:[%s24663_s1 + $0x1ce8] sm:$0xf0]  ;;  %v16795_v10 = vld [vmem:[%s24663_s1 + $0x1c94] sm:$0xf]  ;;  %v16777_v53 = vld [vmem:[%s24663_s1 + $0x1c04] sm:$0xf] }
 0x3c5   : > { %8516 = vmatpush.bf16.msrb.mxu3 %v15050_v58  ;;  %v14638_v58 = vor.u32 %v16789_v31, %v14635_v7  ;;  %v14702_v44 = vor.u32 %v16805_v30, %v14699_v48  ;;  %v14603_v31 = vld [vmem:[%s24663_s1 + $0x1c28] sm:$0xf0]  ;;  %v16797_v7 = vld [vmem:[%s24663_s1 + $0x1ca4] sm:$0xf]  ;;  %v16827_v4 = vld [vmem:[%s24663_s1 + $0x1d94] sm:$0xf] }
 0x3c6   : > { %8478 = vmatpush.bf16.msrb.mxu0 %v14850_v42  ;;  %v14691_v42 = vld [vmem:[%s24663_s1 + $0x1cd8] sm:$0xf0]  ;;  %v16871_v19 = vld [vmem:[%s24663_s1 + $0x1ef4] sm:$0xf] }
 0x3c7   : > { %8491 = vmatpush.bf16.msrb.mxu1 %v14914_v47  ;;  %v14819_v47 = vld [vmem:[%s24663_s1 + $0x1dd8] sm:$0xf0]  ;;  %v14694_v15 = vor.u32 %v16803_v22, %v14691_v42  ;;  %v14734_v22 = vor.u32 %v16813_v24, %v14731_v27  ;;  %v15019_v24 = vld [vmem:[%s24663_s1 + $0x1f68] sm:$0xf0]  ;;  %v16901_v27 = vld [vmem:[%s24663_s1 + $0x1fe4] sm:$0xf] }
 0x3c8   : > { %8504 = vmatpush.bf16.msrb.mxu2 %v14978_v14  ;;  %v14630_v14 = vor.u32 %v16787_v33, %v14627_v41  ;;  %v14670_v41 = vor.u32 %v16797_v7, %v14667_v8  ;;  %v14595_v42 = vld [vmem:[%s24663_s1 + $0x1c18] sm:$0xf0]  ;;  %v14891_v7 = vld [vmem:[%s24663_s1 + $0x1e68] sm:$0xf0]  ;;  %v16885_v8 = vld [vmem:[%s24663_s1 + $0x1f64] sm:$0xf] }
 0x3c9   : > { %8517 = vmatpush.bf16.msrb.mxu3 %v15042_v63  ;;  %v14822_v63 = vor.u32 %v16835_v13, %v14819_v47 }
 0x3ca   : > { %8479 = vmatpush.bf16.msrb.mxu0 %v14842_v16  ;;  %v14811_v16 = vld [vmem:[%s24663_s1 + $0x1dc8] sm:$0xf0]  ;;  %v7394_v29 = vpop.f32.mrf.mxu0 }
 0x3cb   : > { %8492 = vmatpush.bf16.msrb.mxu1 %v14906_v38  ;;  %v14750_v38 = vor.u32 %v16817_v23, %v14747_v5  ;;  %v7407_v2 = vpop.f32.mrf.mxu1  ;;  %v14814_v60 = vor.u32 %v16833_v56, %v14811_v16  ;;  %v16793_v5 = vld [vmem:[%s24663_s1 + $0x1c84] sm:$0xf]  ;;  %v14651_v56 = vld [vmem:[%s24663_s1 + $0x1c88] sm:$0xf0] }
 0x3cc   : > { %8505 = vmatpush.bf16.msrb.mxu2 %v14970_v57  ;;  %v7395_v57 = vadd.f32 %v7394_v29, %v23305_v9  ;;  %v16815_v9 = vld [vmem:[%s24663_s1 + $0x1d34] sm:$0xf]  ;;  %v16809_v16 = vld [vmem:[%s24663_s1 + $0x1d04] sm:$0xf] }
 0x3cd   : > { %8518 = vmatpush.bf16.msrb.mxu3 %v15034_v1  ;;  %8480 = vmatmul.bf16.vlgmr.msrb.gmra.mxu0 %v23404_v36  ;;  %v14803_v1 = vld [vmem:[%s24663_s1 + $0x1db8] sm:$0xf0]  ;;  %v14742_v34 = vor.u32 %v16815_v9, %v14739_v21  ;;  %v16887_v9 = vld [vmem:[%s24663_s1 + $0x1f74] sm:$0xf] }
 0x3ce   : > { %8524 = vmatpush.bf16.msra.mxu0 %v14646_v26  ;;  %8493 = vmatmul.bf16.vlgmr.msrb.gmra.mxu1 %v23414_v11  ;;  %v7408_v55 = vadd.f32 %v7407_v2, %v7395_v57  ;;  %v14614_v26 = vor.u32 %v16783_v3, %v14611_v18  ;;  %v14806_v30 = vor.u32 %v16831_v59, %v14803_v1  ;;  %v14779_v57 = vld [vmem:[%s24663_s1 + $0x1d88] sm:$0xf0]  ;;  %v16855_v3 = vld [vmem:[%s24663_s1 + $0x1e74] sm:$0xf]  ;;  %v14899_v18 = vld [vmem:[%s24663_s1 + $0x1e78] sm:$0xf0] }
 0x3cf   : > { %8537 = vmatpush.bf16.msra.mxu1 %v14710_v52  ;;  %8506 = vmatmul.bf16.vlgmr.msrb.gmra.mxu2 %v23393_v45  ;;  %v15027_v21 = vld [vmem:[%s24663_s1 + $0x1f78] sm:$0xf0]  ;;  %v16903_v1 = vld [vmem:[%s24663_s1 + $0x1ff4] sm:$0xf] }
 0x3d0   : > { %8550 = vmatpush.bf16.msra.mxu2 %v14774_v61  ;;  %8519 = vmatmul.bf16.vlgmr.msrb.gmra.mxu3 %v23406_v50  ;;  %v16781_v61 = vld [vmem:[%s24663_s1 + $0x1c24] sm:$0xf] }
 0x3d1   : > { %8563 = vmatpush.bf16.msra.mxu3 %v14838_v62 }
 0x3d2   : > { %8525 = vmatpush.bf16.msra.mxu0 %v14638_v58  ;;  %v7420_v52 = vpop.f32.mrf.mxu2  ;;  %v14795_v58 = vld [vmem:[%s24663_s1 + $0x1da8] sm:$0xf0]  ;;  %v7396_v33 = vpop.f32.mrf.mxu0 }
 0x3d3   : > { %8538 = vmatpush.bf16.msra.mxu1 %v14702_v44  ;;  %v7421_v62 = vadd.f32 %v7420_v52, %v7408_v55  ;;  %v7433_v48 = vpop.f32.mrf.mxu3  ;;  %v7409_v6 = vpop.f32.mrf.mxu1  ;;  %v14798_v47 = vor.u32 %v16829_v37, %v14795_v58  ;;  %v14654_v55 = vor.u32 %v16793_v5, %v14651_v56  ;;  %v14966_v52 = vor.u32 %v16871_v19, %v14963_v20  ;;  %v15083_v37 = vld [vmem:[%s24663_s1 + $0x1fe8] sm:$0xf0]  ;;  %v16851_v33 = vld [vmem:[%s24663_s1 + $0x1e54] sm:$0xf]  ;;  %v15059_v20 = vld [vmem:[%s24663_s1 + $0x1fb8] sm:$0xf0] }
 0x3d4   : > { %8551 = vmatpush.bf16.msra.mxu2 %v14766_v49  ;;  %v14606_v49 = vor.u32 %v16781_v61, %v14603_v31  ;;  %v15030_v61 = vor.u32 %v16887_v9, %v15027_v21  ;;  %v16853_v31 = vld [vmem:[%s24663_s1 + $0x1e64] sm:$0xf]  ;;  %v15011_v6 = vld [vmem:[%s24663_s1 + $0x1f58] sm:$0xf0] }
 0x3d5   : > { %8564 = vmatpush.bf16.msra.mxu3 %v14830_v12  ;;  %v7434_v44 = vadd.f32 %v7433_v48, %v7421_v62  ;;  %v16779_v12 = vld [vmem:[%s24663_s1 + $0x1c14] sm:$0xf]  ;;  %v14955_v48 = vld [vmem:[%s24663_s1 + $0x1ee8] sm:$0xf0]  ;;  %v14894_v58 = vor.u32 %v16853_v31, %v14891_v7 }
 0x3d6   : > { %8526 = vmatpush.bf16.msra.mxu0 %v14630_v14  ;;  %v14659_v14 = vld [vmem:[%s24663_s1 + $0x1c98] sm:$0xf0]  ;;  %v14598_v28 = vor.u32 %v16779_v12, %v14595_v42  ;;  %v15086_v12 = vor.u32 %v16901_v27, %v15083_v37  ;;  %v14987_v31 = vld [vmem:[%s24663_s1 + $0x1f28] sm:$0xf0] }
 0x3d7   : > { %8539 = vmatpush.bf16.msra.mxu1 %v14694_v15  ;;  %v23527_v13 = vadd.f32 %v7434_v44, %v22667_v43  ;;  %v16811_v15 = vld [vmem:[%s24663_s1 + $0x1d14] sm:$0xf]  ;;  %v14787_v43 = vld [vmem:[%s24663_s1 + $0x1d98] sm:$0xf0]  ;;  %v14662_v0 = vor.u32 %v16795_v10, %v14659_v14 }
 0x3d8   : > { %8552 = vmatpush.bf16.msra.mxu2 %v14758_v54  ;;  %v14723_v54 = vld [vmem:[%s24663_s1 + $0x1d18] sm:$0xf0]  ;;  %v14790_v29 = vor.u32 %v16827_v4, %v14787_v43  ;;  %v16883_v10 = vld [vmem:[%s24663_s1 + $0x1f54] sm:$0xf]  ;;  %v16849_v4 = vld [vmem:[%s24663_s1 + $0x1e44] sm:$0xf] }
 0x3d9   : > { %8565 = vmatpush.bf16.msra.mxu3 %v14822_v63  ;;  %v14587_v63 = vld [vmem:[%s24663_s1 + $0x1c08] sm:$0xf0]  ;;  %v14726_v23 = vor.u32 %v16811_v15, %v14723_v54  ;;  %v14947_v42 = vld [vmem:[%s24663_s1 + $0x1ed8] sm:$0xf0] }
 0x3da   : > { %8527 = vmatpush.bf16.msra.mxu0 %v14622_v35  ;;  %v7422_v35 = vpop.f32.mrf.mxu2  ;;  %v15075_v14 = vld [vmem:[%s24663_s1 + $0x1fd8] sm:$0xf0]  ;;  %v14875_v43 = vld [vmem:[%s24663_s1 + $0x1e48] sm:$0xf0] }
 0x3db   : > { %8540 = vmatpush.bf16.msra.mxu1 %v14686_v17  ;;  %v14715_v17 = vld [vmem:[%s24663_s1 + $0x1d08] sm:$0xf0]  ;;  %v7435_v2 = vpop.f32.mrf.mxu3  ;;  %v16847_v35 = vld [vmem:[%s24663_s1 + $0x1e34] sm:$0xf] }
 0x3dc   : > { %8553 = vmatpush.bf16.msra.mxu2 %v14750_v38  ;;  %v16825_v38 = vld [vmem:[%s24663_s1 + $0x1d84] sm:$0xf]  ;;  %v14718_v59 = vor.u32 %v16809_v16, %v14715_v17  ;;  %v16863_v17 = vld [vmem:[%s24663_s1 + $0x1eb4] sm:$0xf]  ;;  %v14931_v2 = vld [vmem:[%s24663_s1 + $0x1eb8] sm:$0xf0] }
 0x3dd   : > { %8566 = vmatpush.bf16.msra.mxu3 %v14814_v60  ;;  %v14590_v60 = vor.u32 %v16777_v53, %v14587_v63  ;;  %v15003_v53 = vld [vmem:[%s24663_s1 + $0x1f48] sm:$0xf0]  ;;  %v16897_v63 = vld [vmem:[%s24663_s1 + $0x1fc4] sm:$0xf]  ;;  %v14934_v21 = vor.u32 %v16863_v17, %v14931_v2  ;;  %v15441_v17 = vld [vmem:[%s24663_s1 + $0x2170] sm:$0xf] }
 0x3de   : > { %8528 = vmatpush.bf16.msra.mxu0 %v14614_v26  ;;  %v15091_v26 = vld [vmem:[%s24663_s1 + $0x1ff8] sm:$0xf0] }
 0x3df   : > { %8541 = vmatpush.bf16.msra.mxu1 %v14678_v51  ;;  %v14782_v51 = vor.u32 %v16825_v38, %v14779_v57  ;;  %v15094_v62 = vor.u32 %v16903_v1, %v15091_v26  ;;  %v14859_v1 = vld [vmem:[%s24663_s1 + $0x1e28] sm:$0xf0]  ;;  %v16861_v26 = vld [vmem:[%s24663_s1 + $0x1ea4] sm:$0xf] }
 0x3e0   : > { %8554 = vmatpush.bf16.msra.mxu2 %v14742_v34  ;;  %v14902_v34 = vor.u32 %v16855_v3, %v14899_v18  ;;  %v16879_v3 = vld [vmem:[%s24663_s1 + $0x1f34] sm:$0xf]  ;;  %v14995_v18 = vld [vmem:[%s24663_s1 + $0x1f38] sm:$0xf0] }
 0x3e1   : > { %8567 = vmatpush.bf16.msra.mxu3 %v14806_v30  ;;  %v16869_v30 = vld [vmem:[%s24663_s1 + $0x1ee4] sm:$0xf] }
 0x3e2   : > { %8529 = vmatpush.bf16.msra.mxu0 %v14606_v49  ;;  %v14958_v44 = vor.u32 %v16869_v30, %v14955_v48  ;;  %v15022_v49 = vor.u32 %v16885_v8, %v15019_v24  ;;  %v15051_v48 = vld [vmem:[%s24663_s1 + $0x1fa8] sm:$0xf0] }
 0x3e3   : > { %8542 = vmatpush.bf16.msra.mxu1 %v14670_v41  ;;  %v14883_v41 = vld [vmem:[%s24663_s1 + $0x1e58] sm:$0xf0] }
 0x3e4   : > { %8555 = vmatpush.bf16.msra.mxu2 %v14734_v22  ;;  %v16867_v22 = vld [vmem:[%s24663_s1 + $0x1ed4] sm:$0xf]  ;;  %v14886_v15 = vor.u32 %v16851_v33, %v14883_v41 }
 0x3e5   : > { %8568 = vmatpush.bf16.msra.mxu3 %v14798_v47  ;;  %v16899_v47 = vld [vmem:[%s24663_s1 + $0x1fd4] sm:$0xf]  ;;  %v14950_v54 = vor.u32 %v16867_v22, %v14947_v42 }
 0x3e6   : > { %8530 = vmatpush.bf16.msra.mxu0 %v14598_v28  ;;  %v16881_v28 = vld [vmem:[%s24663_s1 + $0x1f44] sm:$0xf]  ;;  %v16859_v33 = vld [vmem:[%s24663_s1 + $0x1e94] sm:$0xf] }
 0x3e7   : > { %8543 = vmatpush.bf16.msra.mxu1 %v14662_v0  ;;  %v15067_v0 = vld [vmem:[%s24663_s1 + $0x1fc8] sm:$0xf0]  ;;  %v15006_v16 = vor.u32 %v16881_v28, %v15003_v53  ;;  %v16875_v42 = vld [vmem:[%s24663_s1 + $0x1f14] sm:$0xf] }
 0x3e8   : > { %8556 = vmatpush.bf16.msra.mxu2 %v14726_v23  ;;  %v14878_v23 = vor.u32 %v16849_v4, %v14875_v43  ;;  %v15070_v57 = vor.u32 %v16897_v63, %v15067_v0  ;;  %v16857_v43 = vld [vmem:[%s24663_s1 + $0x1e84] sm:$0xf]  ;;  %v14971_v53 = vld [vmem:[%s24663_s1 + $0x1f08] sm:$0xf0] }
 0x3e9   : > { %8569 = vmatpush.bf16.msra.mxu3 %v14790_v29  ;;  %v14867_v29 = vld [vmem:[%s24663_s1 + $0x1e38] sm:$0xf0]  ;;  %v16889_v63 = vld [vmem:[%s24663_s1 + $0x1f84] sm:$0xf]  ;;  %v15035_v0 = vld [vmem:[%s24663_s1 + $0x1f88] sm:$0xf0] }
 0x3ea   : > { %8531 = vmatpush.bf16.msra.mxu0 %v14590_v60  ;;  %v7446_v5 = vpop.f32.mrf.mxu0  ;;  %v16895_v60 = vld [vmem:[%s24663_s1 + $0x1fb4] sm:$0xf]  ;;  %v14870_v9 = vor.u32 %v16847_v35, %v14867_v29  ;;  %v16944_v29 = vld [vmem:[%s24663_s1 + $0x20f4] sm:$0xf0] }
 0x3eb   : > { %8544 = vmatpush.bf16.msra.mxu1 %v14654_v55  ;;  %v7459_v38 = vpop.f32.mrf.mxu1  ;;  %v14998_v55 = vor.u32 %v16879_v3, %v14995_v18  ;;  %v15505_v3 = vld [vmem:[%s24663_s1 + $0x21f0] sm:$0xf]  ;;  %v16976_v18 = vld [vmem:[%s24663_s1 + $0x21f4] sm:$0xf0] }
 0x3ec   : > { %8557 = vmatpush.bf16.msra.mxu2 %v14718_v59  ;;  %v7460_v19 = vadd.f32 %v7459_v38, %v7446_v5  ;;  %v16845_v59 = vld [vmem:[%s24663_s1 + $0x1e24] sm:$0xf]  ;;  %v15313_v5 = vld [vmem:[%s24663_s1 + $0x2070] sm:$0xf]  ;;  %v16960_v38 = vld [vmem:[%s24663_s1 + $0x2174] sm:$0xf0] }
 0x3ed   : > { %8570 = vmatpush.bf16.msra.mxu3 %v14782_v51  ;;  %8532 = vmatmul.bf16.vlgmr.msra.gmra.mxu0 %v23180_v46  ;;  %v16865_v46 = vld [vmem:[%s24663_s1 + $0x1ec4] sm:$0xf]  ;;  %v14862_v8 = vor.u32 %v16845_v59, %v14859_v1  ;;  %v15369_v59 = vld [vmem:[%s24663_s1 + $0x20e0] sm:$0xf]  ;;  %v15506_v1 = vor.u32 %v16976_v18, %v15505_v3 }
 0x3ee   : > { %8576 = vmatpush.bf16.msrb.mxu0 %v14902_v34  ;;  %8545 = vmatmul.bf16.vlgmr.msra.gmra.mxu1 %v23184_v39  ;;  %v14939_v39 = vld [vmem:[%s24663_s1 + $0x1ec8] sm:$0xf0]  ;;  %v15062_v34 = vor.u32 %v16895_v60, %v15059_v20 }
 0x3ef   : > { %8589 = vmatpush.bf16.msrb.mxu1 %v14966_v52  ;;  %8558 = vmatmul.bf16.vlgmr.msra.gmra.mxu2 %v23172_v32  ;;  %v15014_v32 = vor.u32 %v16883_v10, %v15011_v6  ;;  %v14942_v56 = vor.u32 %v16865_v46, %v14939_v39  ;;  %v14923_v52 = vld [vmem:[%s24663_s1 + $0x1ea8] sm:$0xf0]  ;;  %v14979_v10 = vld [vmem:[%s24663_s1 + $0x1f18] sm:$0xf0]  ;;  %v16891_v6 = vld [vmem:[%s24663_s1 + $0x1f94] sm:$0xf] }
 0x3f0   : > { %8602 = vmatpush.bf16.msrb.mxu2 %v15030_v61  ;;  %8571 = vmatmul.bf16.vlgmr.msra.gmra.mxu3 %v23182_v40  ;;  %v15078_v40 = vor.u32 %v16899_v47, %v15075_v14  ;;  %v16877_v61 = vld [vmem:[%s24663_s1 + $0x1f24] sm:$0xf]  ;;  %v14926_v37 = vor.u32 %v16861_v26, %v14923_v52  ;;  %v15043_v47 = vld [vmem:[%s24663_s1 + $0x1f98] sm:$0xf0]  ;;  %v14982_v4 = vor.u32 %v16875_v42, %v14979_v10  ;;  %v14907_v46 = vld [vmem:[%s24663_s1 + $0x1e88] sm:$0xf0] }
 0x3f1   : > { %8615 = vmatpush.bf16.msrb.mxu3 %v15094_v62  ;;  %v16893_v62 = vld [vmem:[%s24663_s1 + $0x1fa4] sm:$0xf]  ;;  %v15046_v28 = vor.u32 %v16891_v6, %v15043_v47  ;;  %v16942_v26 = vld [vmem:[%s24663_s1 + $0x20e4] sm:$0xf0]  ;;  %v15497_v52 = vld [vmem:[%s24663_s1 + $0x21e0] sm:$0xf] }
 0x3f2   : > { %8577 = vmatpush.bf16.msrb.mxu0 %v14894_v58  ;;  %v7472_v51 = vpop.f32.mrf.mxu2  ;;  %v7448_v27 = vpop.f32.mrf.mxu0  ;;  %v14990_v58 = vor.u32 %v16877_v61, %v14987_v31  ;;  %v15054_v22 = vor.u32 %v16893_v62, %v15051_v48  ;;  %v16974_v61 = vld [vmem:[%s24663_s1 + $0x21e4] sm:$0xf0]  ;;  %v15297_v62 = vld [vmem:[%s24663_s1 + $0x2050] sm:$0xf]  ;;  %v16924_v48 = vld [vmem:[%s24663_s1 + $0x2054] sm:$0xf0] }
 0x3f3   : > { %8590 = vmatpush.bf16.msrb.mxu1 %v14958_v44  ;;  %v7473_v7 = vadd.f32 %v7472_v51, %v7460_v19  ;;  %v7485_v30 = vpop.f32.mrf.mxu3  ;;  %v16843_v44 = vld [vmem:[%s24663_s1 + $0x1e14] sm:$0xf]  ;;  %v7461_v41 = vpop.f32.mrf.mxu1  ;;  %v15038_v19 = vor.u32 %v16889_v63, %v15035_v0  ;;  %v15433_v51 = vld [vmem:[%s24663_s1 + $0x2160] sm:$0xf]  ;;  %v15498_v27 = vor.u32 %v16974_v61, %v15497_v52  ;;  %v16954_v6 = vld [vmem:[%s24663_s1 + $0x2144] sm:$0xf0] }
 0x3f4   : > { %8603 = vmatpush.bf16.msrb.mxu2 %v15022_v49  ;;  %v14851_v49 = vld [vmem:[%s24663_s1 + $0x1e18] sm:$0xf0]  ;;  %v15417_v10 = vld [vmem:[%s24663_s1 + $0x2140] sm:$0xf]  ;;  %v16936_v63 = vld [vmem:[%s24663_s1 + $0x20b4] sm:$0xf0] }
 0x3f5   : > { %8616 = vmatpush.bf16.msrb.mxu3 %v15086_v12  ;;  %v23716_v24 = vadd.f32 %v7485_v30, %v7473_v7  ;;  %v14915_v12 = vld [vmem:[%s24663_s1 + $0x1e98] sm:$0xf0]  ;;  %v14854_v14 = vor.u32 %v16843_v44, %v14851_v49  ;;  %v15370_v7 = vor.u32 %v16942_v26, %v15369_v59  ;;  %v16956_v44 = vld [vmem:[%s24663_s1 + $0x2154] sm:$0xf0]  ;;  %v15481_v47 = vld [vmem:[%s24663_s1 + $0x21c0] sm:$0xf] }
 0x3f6   : > { %8578 = vmatpush.bf16.msrb.mxu0 %v14886_v15  ;;  %v16841_v15 = vld [vmem:[%s24663_s1 + $0x1e04] sm:$0xf]  ;;  %v16972_v49 = vld [vmem:[%s24663_s1 + $0x21d4] sm:$0xf0]  ;;  %v15265_v26 = vld [vmem:[%s24663_s1 + $0x2010] sm:$0xf] }
 0x3f7   : > { %8591 = vmatpush.bf16.msrb.mxu1 %v14950_v54  ;;  %v14843_v54 = vld [vmem:[%s24663_s1 + $0x1e08] sm:$0xf0]  ;;  %v16952_v0 = vld [vmem:[%s24663_s1 + $0x2134] sm:$0xf0] }
 0x3f8   : > { %8604 = vmatpush.bf16.msrb.mxu2 %v15014_v32  ;;  %v14918_v32 = vor.u32 %v16859_v33, %v14915_v12  ;;  %v14846_v35 = vor.u32 %v16841_v15, %v14843_v54  ;;  %v15298_v33 = vor.u32 %v16924_v48, %v15297_v62  ;;  %v15353_v12 = vld [vmem:[%s24663_s1 + $0x20c0] sm:$0xf] }
 0x3f9   : > { %8617 = vmatpush.bf16.msrb.mxu3 %v15078_v40  ;;  %v16873_v40 = vld [vmem:[%s24663_s1 + $0x1f04] sm:$0xf] }
 0x3fa   : > { %8579 = vmatpush.bf16.msrb.mxu0 %v14878_v23  ;;  %v7474_v39 = vpop.f32.mrf.mxu2  ;;  %v14974_v2 = vor.u32 %v16873_v40, %v14971_v53  ;;  %v15281_v40 = vld [vmem:[%s24663_s1 + $0x2030] sm:$0xf] }
 0x3fb   : > { %8592 = vmatpush.bf16.msrb.mxu1 %v14942_v56  ;;  %v7487_v23 = vpop.f32.mrf.mxu3  ;;  %v16928_v56 = vld [vmem:[%s24663_s1 + $0x2074] sm:$0xf0] }
 0x3fc   : > { %8605 = vmatpush.bf16.msrb.mxu2 %v15006_v16  ;;  %v15377_v16 = vld [vmem:[%s24663_s1 + $0x20f0] sm:$0xf]  ;;  %v15314_v60 = vor.u32 %v16928_v56, %v15313_v5  ;;  %v16920_v39 = vld [vmem:[%s24663_s1 + $0x2034] sm:$0xf0] }
 0x3fd   : > { %8618 = vmatpush.bf16.msrb.mxu3 %v15070_v57  ;;  %v14910_v57 = vor.u32 %v16857_v43, %v14907_v46  ;;  %v15378_v20 = vor.u32 %v16944_v29, %v15377_v16  ;;  %v15473_v5 = vld [vmem:[%s24663_s1 + $0x21b0] sm:$0xf]  ;;  %v16968_v56 = vld [vmem:[%s24663_s1 + $0x21b4] sm:$0xf0]  ;;  %v15282_v16 = vor.u32 %v16920_v39, %v15281_v40  ;;  %v16905_v39 = vld [vmem:[%s17410_s6 + $0x24] sm:$0xe] }
 0x3fe   : > { %8580 = vmatpush.bf16.msrb.mxu0 %v14870_v9  ;;  %v15442_v9 = vor.u32 %v16960_v38, %v15441_v17  ;;  %v15273_v38 = vld [vmem:[%s24663_s1 + $0x2020] sm:$0xf]  ;;  %v15474_v3 = vor.u32 %v16968_v56, %v15473_v5  ;;  %v15633_v40 = vld [vmem:[%s24663_s1 + $0x22f0] sm:$0xf] }
 0x3ff   : > { %8593 = vmatpush.bf16.msrb.mxu1 %v14934_v21  ;;  %v15305_v21 = vld [vmem:[%s24663_s1 + $0x2060] sm:$0xf] }
 0x400   : > { %8606 = vmatpush.bf16.msrb.mxu2 %v14998_v55  ;;  %v16926_v55 = vld [vmem:[%s24663_s1 + $0x2064] sm:$0xf0] }
 0x401   : > { %8619 = vmatpush.bf16.msrb.mxu3 %v15062_v34  ;;  %v16958_v34 = vld [vmem:[%s24663_s1 + $0x2164] sm:$0xf0]  ;;  %v15306_v31 = vor.u32 %v16926_v55, %v15305_v21  ;;  %v15465_v21 = vld [vmem:[%s24663_s1 + $0x21a0] sm:$0xf] }
 0x402   : > { %8581 = vmatpush.bf16.msrb.mxu0 %v14862_v8  ;;  %v15434_v30 = vor.u32 %v16958_v34, %v15433_v51  ;;  %v15361_v8 = vld [vmem:[%s24663_s1 + $0x20d0] sm:$0xf]  ;;  %v16966_v55 = vld [vmem:[%s24663_s1 + $0x21a4] sm:$0xf0]  ;;  %v16916_v51 = vld [vmem:[%s24663_s1 + $0x2014] sm:$0xf0] }
 0x403   : > { %8594 = vmatpush.bf16.msrb.mxu1 %v14926_v37  ;;  %v16940_v37 = vld [vmem:[%s24663_s1 + $0x20d4] sm:$0xf0] }
 0x404   : > { %8607 = vmatpush.bf16.msrb.mxu2 %v14990_v58  ;;  %v15425_v58 = vld [vmem:[%s24663_s1 + $0x2150] sm:$0xf]  ;;  %v15362_v41 = vor.u32 %v16940_v37, %v15361_v8  ;;  %v15466_v8 = vor.u32 %v16966_v55, %v15465_v21  ;;  %v15689_v55 = vld [vmem:[%s24663_s1 + $0x2360] sm:$0xf] }
 0x405   : > { %8620 = vmatpush.bf16.msrb.mxu3 %v15054_v22  ;;  %v15426_v22 = vor.u32 %v16956_v44, %v15425_v58  ;;  %v15457_v37 = vld [vmem:[%s24663_s1 + $0x2190] sm:$0xf]  ;;  %v16964_v58 = vld [vmem:[%s24663_s1 + $0x2194] sm:$0xf0]  ;;  %v15257_v44 = vld [vmem:[%s24663_s1 + $0x2000] sm:$0xf] }
 0x406   : > { %8582 = vmatpush.bf16.msrb.mxu0 %v14854_v14  ;;  %v16970_v14 = vld [vmem:[%s24663_s1 + $0x21c4] sm:$0xf0] }
 0x407   : > { %8595 = vmatpush.bf16.msrb.mxu1 %v14918_v32  ;;  %v15482_v53 = vor.u32 %v16970_v14, %v15481_v47  ;;  %v15233_v47 = vld [vmem:[%s17410_s6 + $0x28] sm:$0xe]  ;;  %v16910_v14 = vld [vmem:[%s17410_s6 + $0x44] sm:$0x10] }
 0x408   : > { %8608 = vmatpush.bf16.msrb.mxu2 %v14982_v4  ;;  %v15418_v4 = vor.u32 %v16954_v6, %v15417_v10  ;;  %v16992_v10 = vld [vmem:[%s24663_s1 + $0x2274] sm:$0xf0]  ;;  %v15234_v5 = vor.u32 %v16910_v14, %v15233_v47  ;;  %v15737_v47 = vld [vmem:[%s24663_s1 + $0x23c0] sm:$0xf]  ;;  %v17034_v14 = vld [vmem:[%s24663_s1 + $0x23c4] sm:$0xf0] }
 0x409   : > { %8621 = vmatpush.bf16.msrb.mxu3 %v15046_v28  ;;  %v15345_v28 = vld [vmem:[%s24663_s1 + $0x20b0] sm:$0xf] }
 0x40a   : > { %8583 = vmatpush.bf16.msrb.mxu0 %v14846_v35  ;;  %v7498_v54 = vpop.f32.mrf.mxu0  ;;  %v15346_v35 = vor.u32 %v16936_v63, %v15345_v28  ;;  %v15227_v28 = vld [vmem:[%s17410_s6 + $0x40] sm:$0x10] }
 0x40b   : > { %8596 = vmatpush.bf16.msrb.mxu1 %v14910_v57  ;;  %v7499_v43 = vadd.f32 %v7498_v54, %v23716_v24  ;;  %v7511_v46 = vpop.f32.mrf.mxu1  ;;  %v15409_v24 = vld [vmem:[%s24663_s1 + $0x2130] sm:$0xf]  ;;  %v16918_v57 = vld [vmem:[%s24663_s1 + $0x2024] sm:$0xf0]  ;;  %v15458_v54 = vor.u32 %v16964_v58, %v15457_v37  ;;  %v17004_v58 = vld [vmem:[%s24663_s1 + $0x22d4] sm:$0xf0] }
 0x40c   : > { %8609 = vmatpush.bf16.msrb.mxu2 %v14974_v2  ;;  %v15410_v29 = vor.u32 %v16952_v0, %v15409_v24  ;;  %v15337_v2 = vld [vmem:[%s24663_s1 + $0x20a0] sm:$0xf]  ;;  %v17008_v24 = vld [vmem:[%s24663_s1 + $0x22f4] sm:$0xf0]  ;;  %v15697_v0 = vld [vmem:[%s24663_s1 + $0x2370] sm:$0xf] }
 0x40d   : > { %8622 = vmatpush.bf16.msrb.mxu3 %v15038_v19  ;;  %8584 = vmatmul.bf16.vlgmr.msrb.gmra.mxu0 %v23404_v36  ;;  %v15289_v36 = vld [vmem:[%s24663_s1 + $0x2040] sm:$0xf]  ;;  %v7512_v23 = vadd.f32 %v7511_v46, %v7499_v43  ;;  %v16906_v43 = vld [vmem:[%s17410_s6 + $0x2c] sm:$0xe]  ;;  %v15235_v46 = vld [vmem:[%s17410_s6 + $0x48] sm:$0x10] }
 0x40e   : > { %9459 = vmatpush.bf16.msra.mxu0 %v15314_v60  ;;  %8597 = vmatmul.bf16.vlgmr.msrb.gmra.mxu1 %v23414_v11  ;;  %v16938_v11 = vld [vmem:[%s24663_s1 + $0x20c4] sm:$0xf0] }
 0x40f   : > { %9472 = vmatpush.bf16.msra.mxu1 %v15378_v20  ;;  %8610 = vmatmul.bf16.vlgmr.msrb.gmra.mxu2 %v23393_v45  ;;  %v15489_v45 = vld [vmem:[%s24663_s1 + $0x21d0] sm:$0xf]  ;;  %v15354_v32 = vor.u32 %v16938_v11, %v15353_v12  ;;  %v16934_v60 = vld [vmem:[%s24663_s1 + $0x20a4] sm:$0xf0]  ;;  %v15401_v20 = vld [vmem:[%s24663_s1 + $0x2120] sm:$0xf] }
 0x410   : > { %9485 = vmatpush.bf16.msra.mxu2 %v15442_v9  ;;  %8623 = vmatmul.bf16.vlgmr.msrb.gmra.mxu3 %v23406_v50  ;;  %v16922_v50 = vld [vmem:[%s24663_s1 + $0x2044] sm:$0xf0]  ;;  %v15490_v42 = vor.u32 %v16972_v49, %v15489_v45  ;;  %v15338_v52 = vor.u32 %v16934_v60, %v15337_v2  ;;  %v15321_v45 = vld [vmem:[%s24663_s1 + $0x2080] sm:$0xf]  ;;  %v15266_v49 = vor.u32 %v16916_v51, %v15265_v26  ;;  %v15569_v11 = vld [vmem:[%s24663_s1 + $0x2270] sm:$0xf] }
 0x411   : > { %9498 = vmatpush.bf16.msra.mxu3 %v15506_v1  ;;  %v15290_v15 = vor.u32 %v16922_v50, %v15289_v36  ;;  %v16950_v9 = vld [vmem:[%s24663_s1 + $0x2124] sm:$0xf0]  ;;  %v15274_v1 = vor.u32 %v16918_v57, %v15273_v38  ;;  %v15449_v12 = vld [vmem:[%s24663_s1 + $0x2180] sm:$0xf]  ;;  %v15570_v57 = vor.u32 %v16992_v10, %v15569_v11 }
 0x412   : > { %9460 = vmatpush.bf16.msra.mxu0 %v15306_v31  ;;  %v7524_v17 = vpop.f32.mrf.mxu2  ;;  %v7500_v34 = vpop.f32.mrf.mxu0  ;;  %v15402_v61 = vor.u32 %v16950_v9, %v15401_v20  ;;  %v15329_v31 = vld [vmem:[%s24663_s1 + $0x2090] sm:$0xf]  ;;  %v15561_v2 = vld [vmem:[%s24663_s1 + $0x2260] sm:$0xf]  ;;  %v16990_v60 = vld [vmem:[%s24663_s1 + $0x2264] sm:$0xf0] }
 0x413   : > { %9473 = vmatpush.bf16.msra.mxu1 %v15370_v7  ;;  %v7525_v18 = vadd.f32 %v7524_v17, %v7512_v23  ;;  %v7537_v19 = vpop.f32.mrf.mxu3  ;;  %v16932_v7 = vld [vmem:[%s24663_s1 + $0x2094] sm:$0xf0]  ;;  %v7513_v62 = vpop.f32.mrf.mxu1  ;;  %v15238_v17 = vor.u32 %v16906_v43, %v15235_v46  ;;  %v15625_v20 = vld [vmem:[%s24663_s1 + $0x22e0] sm:$0xf]  ;;  %v17006_v9 = vld [vmem:[%s24663_s1 + $0x22e4] sm:$0xf0] }
 0x414   : > { %9486 = vmatpush.bf16.msra.mxu2 %v15434_v30  ;;  %v15393_v30 = vld [vmem:[%s24663_s1 + $0x2110] sm:$0xf]  ;;  %v15330_v36 = vor.u32 %v16932_v7, %v15329_v31  ;;  %v17024_v23 = vld [vmem:[%s24663_s1 + $0x2374] sm:$0xf0]  ;;  %v15753_v26 = vld [vmem:[%s24663_s1 + $0x23e0] sm:$0xf]  ;;  %v15626_v7 = vor.u32 %v17006_v9, %v15625_v20 }
 0x415   : > { %9499 = vmatpush.bf16.msra.mxu3 %v15498_v27  ;;  %v7538_v59 = vadd.f32 %v7537_v19, %v7525_v18  ;;  %v16948_v27 = vld [vmem:[%s24663_s1 + $0x2114] sm:$0xf0]  ;;  %v15634_v18 = vor.u32 %v17008_v24, %v15633_v40  ;;  %v15698_v19 = vor.u32 %v17024_v23, %v15697_v0  ;;  %v17038_v51 = vld [vmem:[%s24663_s1 + $0x23e4] sm:$0xf0]  ;;  %v15553_v62 = vld [vmem:[%s24663_s1 + $0x2250] sm:$0xf] }
 0x416   : > { %9461 = vmatpush.bf16.msra.mxu0 %v15298_v33  ;;  %v16930_v33 = vld [vmem:[%s24663_s1 + $0x2084] sm:$0xf0]  ;;  %v15394_v50 = vor.u32 %v16948_v27, %v15393_v30  ;;  %v15617_v27 = vld [vmem:[%s24663_s1 + $0x22d0] sm:$0xf]  ;;  %v15754_v37 = vor.u32 %v17038_v51, %v15753_v26  ;;  %v15673_v10 = vld [vmem:[%s24663_s1 + $0x2340] sm:$0xf] }
 0x417   : > { %9474 = vmatpush.bf16.msra.mxu1 %v15362_v41  ;;  %v23931_v48 = vadd.f32 %v7538_v59, %v23088_v25  ;;  %v16914_v25 = vld [vmem:[%s24663_s1 + $0x2004] sm:$0xf0]  ;;  %v15385_v41 = vld [vmem:[%s24663_s1 + $0x2100] sm:$0xf]  ;;  %v15322_v63 = vor.u32 %v16930_v33, %v15321_v45  ;;  %v15745_v45 = vld [vmem:[%s24663_s1 + $0x23d0] sm:$0xf] }
 0x418   : > { %9487 = vmatpush.bf16.msra.mxu2 %v15426_v22  ;;  %v16946_v22 = vld [vmem:[%s24663_s1 + $0x2104] sm:$0xf0]  ;;  %v15537_v43 = vld [vmem:[%s24663_s1 + $0x2230] sm:$0xf]  ;;  %v16984_v46 = vld [vmem:[%s24663_s1 + $0x2234] sm:$0xf0] }
 0x419   : > { %9500 = vmatpush.bf16.msra.mxu3 %v15490_v42  ;;  %v16962_v42 = vld [vmem:[%s24663_s1 + $0x2184] sm:$0xf0]  ;;  %v15386_v56 = vor.u32 %v16946_v22, %v15385_v41  ;;  %v15618_v41 = vor.u32 %v17004_v58, %v15617_v27  ;;  %v15601_v40 = vld [vmem:[%s24663_s1 + $0x22b0] sm:$0xf]  ;;  %v17016_v24 = vld [vmem:[%s24663_s1 + $0x2334] sm:$0xf0] }
 0x41a   : > { %9462 = vmatpush.bf16.msra.mxu0 %v15290_v15  ;;  %v7526_v6 = vpop.f32.mrf.mxu2  ;;  %v15225_v15 = vld [vmem:[%s17410_s6 + $0x20] sm:$0xe]  ;;  %v15450_v38 = vor.u32 %v16962_v42, %v15449_v12  ;;  %v17022_v59 = vld [vmem:[%s24663_s1 + $0x2364] sm:$0xf0]  ;;  %v15729_v23 = vld [vmem:[%s24663_s1 + $0x23b0] sm:$0xf] }
 0x41b   : > { %9475 = vmatpush.bf16.msra.mxu1 %v15354_v32  ;;  %v7539_v32 = vpop.f32.mrf.mxu3  ;;  %v15690_v30 = vor.u32 %v17022_v59, %v15689_v55  ;;  %v15609_v12 = vld [vmem:[%s24663_s1 + $0x22c0] sm:$0xf]  ;;  %v17002_v11 = vld [vmem:[%s24663_s1 + $0x22c4] sm:$0xf0]  ;;  %v15521_v59 = vld [vmem:[%s24663_s1 + $0x2210] sm:$0xf] }
 0x41c   : > { %9488 = vmatpush.bf16.msra.mxu2 %v15418_v4  ;;  %v16909_v4 = vld [vmem:[%s17410_s6 + $0x3c] sm:$0x10]  ;;  %v17018_v6 = vld [vmem:[%s24663_s1 + $0x2344] sm:$0xf0]  ;;  %v15610_v32 = vor.u32 %v17002_v11, %v15609_v12  ;;  %v16980_v26 = vld [vmem:[%s24663_s1 + $0x2214] sm:$0xf0] }
 0x41d   : > { %9501 = vmatpush.bf16.msra.mxu3 %v15482_v53  ;;  %v15258_v53 = vor.u32 %v16914_v25, %v15257_v44  ;;  %v15681_v44 = vld [vmem:[%s24663_s1 + $0x2350] sm:$0xf]  ;;  %v17020_v25 = vld [vmem:[%s24663_s1 + $0x2354] sm:$0xf0]  ;;  %v15721_v9 = vld [vmem:[%s24663_s1 + $0x23a0] sm:$0xf] }
 0x41e   : > { %9463 = vmatpush.bf16.msra.mxu0 %v15282_v16  ;;  %v15761_v16 = vld [vmem:[%s24663_s1 + $0x23f0] sm:$0xf]  ;;  %v15682_v22 = vor.u32 %v17020_v25, %v15681_v44  ;;  %v17012_v44 = vld [vmem:[%s24663_s1 + $0x2314] sm:$0xf0]  ;;  %v17010_v12 = vld [vmem:[%s24663_s1 + $0x2304] sm:$0xf0] }
 0x41f   : > { %9476 = vmatpush.bf16.msra.mxu1 %v15346_v35  ;;  %v17040_v35 = vld [vmem:[%s24663_s1 + $0x23f4] sm:$0xf0]  ;;  %v15649_v27 = vld [vmem:[%s24663_s1 + $0x2310] sm:$0xf] }
 0x420   : > { %9489 = vmatpush.bf16.msra.mxu2 %v15410_v29  ;;  %v15226_v29 = vor.u32 %v16909_v4, %v15225_v15  ;;  %v15762_v21 = vor.u32 %v17040_v35, %v15761_v16  ;;  %v15674_v4 = vor.u32 %v17018_v6, %v15673_v10  ;;  %v15713_v25 = vld [vmem:[%s24663_s1 + $0x2390] sm:$0xf]  ;;  %v15650_v11 = vor.u32 %v17012_v44, %v15649_v27  ;;  %v15705_v10 = vld [vmem:[%s24663_s1 + $0x2380] sm:$0xf]  ;;  %v17026_v6 = vld [vmem:[%s24663_s1 + $0x2384] sm:$0xf0] }
 0x421   : > { %9502 = vmatpush.bf16.msra.mxu3 %v15474_v3  ;;  %v15230_v3 = vor.u32 %v16905_v39, %v15227_v28  ;;  %v15738_v28 = vor.u32 %v17034_v14, %v15737_v47  ;;  %v16927_v47 = vld [vmem:[%s24663_s1 + $0x2074] sm:$0xf]  ;;  %v15315_v14 = vld [vmem:[%s24663_s1 + $0x2078] sm:$0xf0]  ;;  %v16973_v27 = vld [vmem:[%s24663_s1 + $0x21e4] sm:$0xf] }
 0x422   : > { %9464 = vmatpush.bf16.msra.mxu0 %v15274_v1  ;;  %v24016_v1 = vrot.slane %v15234_v5, 1  ;;  %v24024_v34 = vrot.slane %v15226_v29, 1  ;;  %v17032_v5 = vld [vmem:[%s24663_s1 + $0x23b4] sm:$0xf0]  ;;  %v15529_v29 = vld [vmem:[%s24663_s1 + $0x2220] sm:$0xf] }
 0x423   : > { %9477 = vmatpush.bf16.msra.mxu1 %v15338_v52  ;;  %v24026_v52 = vrot.slane %v15238_v17, 1  ;;  %v24028_v31 = vrot.slane %v15230_v3, 1  ;;  %v16982_v17 = vld [vmem:[%s24663_s1 + $0x2224] sm:$0xf0] }
 0x424   : > { %9490 = vmatpush.bf16.msra.mxu2 %v15402_v61  ;;  %v15562_v61 = vor.u32 %v16990_v60, %v15561_v2  ;;  %v15730_v2 = vor.u32 %v17032_v5, %v15729_v23  ;;  %v16998_v3 = vld [vmem:[%s24663_s1 + $0x22a4] sm:$0xf0]  ;;  %v15530_v55 = vor.u32 %v16982_v17, %v15529_v29  ;;  %v15379_v5 = vld [vmem:[%s24663_s1 + $0x20f8] sm:$0xf0]  ;;  %v16975_v17 = vld [vmem:[%s24663_s1 + $0x21f4] sm:$0xf] }
 0x425   : > { %9503 = vmatpush.bf16.msra.mxu3 %v15466_v8  ;;  %v16988_v8 = vld [vmem:[%s24663_s1 + $0x2254] sm:$0xf0] }
 0x426   : > { %9465 = vmatpush.bf16.msra.mxu0 %v15266_v49  ;;  %v17036_v49 = vld [vmem:[%s24663_s1 + $0x23d4] sm:$0xf0]  ;;  %v15554_v33 = vor.u32 %v16988_v8, %v15553_v62  ;;  %v15585_v62 = vld [vmem:[%s24663_s1 + $0x2290] sm:$0xf] }
 0x427   : > { %9478 = vmatpush.bf16.msra.mxu1 %v15330_v36  ;;  %v15545_v36 = vld [vmem:[%s24663_s1 + $0x2240] sm:$0xf]  ;;  %v15746_v42 = vor.u32 %v17036_v49, %v15745_v45  ;;  %v16996_v8 = vld [vmem:[%s24663_s1 + $0x2294] sm:$0xf0] }
 0x428   : > { %9491 = vmatpush.bf16.msra.mxu2 %v15394_v50  ;;  %v16986_v50 = vld [vmem:[%s24663_s1 + $0x2244] sm:$0xf0]  ;;  %v17028_v45 = vld [vmem:[%s24663_s1 + $0x2394] sm:$0xf0]  ;;  %v15513_v49 = vld [vmem:[%s24663_s1 + $0x2200] sm:$0xf] }
 0x429   : > { %9504 = vmatpush.bf16.msra.mxu3 %v15458_v54  ;;  %v15546_v15 = vor.u32 %v16986_v50, %v15545_v36  ;;  %v16994_v36 = vld [vmem:[%s24663_s1 + $0x2284] sm:$0xf0]  ;;  %v15641_v50 = vld [vmem:[%s24663_s1 + $0x2300] sm:$0xf] }
 0x42a   : > { %9466 = vmatpush.bf16.msra.mxu0 %v15258_v53  ;;  %v8429_v54 = vpop.f32.mrf.mxu0  ;;  %v17000_v53 = vld [vmem:[%s24663_s1 + $0x22b4] sm:$0xf0]  ;;  %v15642_v29 = vor.u32 %v17010_v12, %v15641_v50  ;;  %v16955_v50 = vld [vmem:[%s24663_s1 + $0x2154] sm:$0xf]  ;;  %v15427_v12 = vld [vmem:[%s24663_s1 + $0x2158] sm:$0xf0] }
 0x42b   : > { %9479 = vmatpush.bf16.msra.mxu1 %v15322_v63  ;;  %v8442_v39 = vpop.f32.mrf.mxu1  ;;  %v15665_v63 = vld [vmem:[%s24663_s1 + $0x2330] sm:$0xf]  ;;  %v15602_v16 = vor.u32 %v17000_v53, %v15601_v40  ;;  %v16908_v40 = vld [vmem:[%s17410_s6 + $0x3c] sm:$0xe]  ;;  %v16943_v53 = vld [vmem:[%s24663_s1 + $0x20f4] sm:$0xf] }
 0x42c   : > { %9492 = vmatpush.bf16.msra.mxu2 %v15386_v56  ;;  %v8443_v0 = vadd.f32 %v8442_v39, %v8429_v54  ;;  %v15538_v56 = vor.u32 %v16984_v46, %v15537_v43  ;;  %v15666_v35 = vor.u32 %v17016_v24, %v15665_v63  ;;  %v16912_v54 = vld [vmem:[%s17410_s6 + $0x54] sm:$0x10]  ;;  %v15714_v43 = vor.u32 %v17028_v45, %v15713_v25  ;;  %v16911_v46 = vld [vmem:[%s17410_s6 + $0x4c] sm:$0x10]  ;;  %v15251_v39 = vld [vmem:[%s17410_s6 + $0x58] sm:$0x10] }
 0x42d   : > { %9505 = vmatpush.bf16.msra.mxu3 %v15450_v38  ;;  %9467 = vmatmul.bf16.vlgmr.msra.gmra.mxu0 %v24024_v34  ;;  %v15593_v38 = vld [vmem:[%s24663_s1 + $0x22a0] sm:$0xf]  ;;  %v16907_v63 = vld [vmem:[%s17410_s6 + $0x34] sm:$0xe]  ;;  %v15243_v24 = vld [vmem:[%s17410_s6 + $0x50] sm:$0x10] }
 0x42e   : > { %9511 = vmatpush.bf16.msrb.mxu0 %v15570_v57  ;;  %9480 = vmatmul.bf16.vlgmr.msra.gmra.mxu1 %v24028_v31 }
 0x42f   : > { %9524 = vmatpush.bf16.msrb.mxu1 %v15634_v18  ;;  %9493 = vmatmul.bf16.vlgmr.msra.gmra.mxu2 %v24016_v1  ;;  %v15657_v18 = vld [vmem:[%s24663_s1 + $0x2320] sm:$0xf] }
 0x430   : > { %9537 = vmatpush.bf16.msrb.mxu2 %v15698_v19  ;;  %9506 = vmatmul.bf16.vlgmr.msra.gmra.mxu3 %v24026_v52  ;;  %v17014_v19 = vld [vmem:[%s24663_s1 + $0x2324] sm:$0xf0] }
 0x431   : > { %9550 = vmatpush.bf16.msrb.mxu3 %v15762_v21  ;;  %v17030_v21 = vld [vmem:[%s24663_s1 + $0x23a4] sm:$0xf0] }
 0x432   : > { %9512 = vmatpush.bf16.msrb.mxu0 %v15562_v61  ;;  %v8455_v57 = vpop.f32.mrf.mxu2  ;;  %v8431_v61 = vpop.f32.mrf.mxu0  ;;  %v15722_v58 = vor.u32 %v17030_v21, %v15721_v9  ;;  %v15307_v21 = vld [vmem:[%s24663_s1 + $0x2068] sm:$0xf0] }
 0x433   : > { %9525 = vmatpush.bf16.msrb.mxu1 %v15626_v7  ;;  %v8456_v60 = vadd.f32 %v8455_v57, %v8443_v0  ;;  %v8468_v20 = vpop.f32.mrf.mxu3  ;;  %v15594_v7 = vor.u32 %v16998_v3, %v15593_v38  ;;  %v15507_v38 = vld [vmem:[%s24663_s1 + $0x21f8] sm:$0xf0]  ;;  %v15706_v3 = vor.u32 %v17026_v6, %v15705_v10 }
 0x434   : > { %9538 = vmatpush.bf16.msrb.mxu2 %v15690_v30  ;;  %v15658_v30 = vor.u32 %v17014_v19, %v15657_v18  ;;  %v15318_v18 = vor.u32 %v16927_v47, %v15315_v14  ;;  %v16925_v19 = vld [vmem:[%s24663_s1 + $0x2064] sm:$0xf]  ;;  %v15430_v47 = vor.u32 %v16955_v50, %v15427_v12  ;;  %v16931_v50 = vld [vmem:[%s24663_s1 + $0x2094] sm:$0xf] }
 0x435   : > { %9551 = vmatpush.bf16.msrb.mxu3 %v15754_v37  ;;  %v24136_v51 = vadd.f32 %v8468_v20, %v8456_v60  ;;  %v8444_v37 = vpop.f32.mrf.mxu1  ;;  %v15246_v60 = vor.u32 %v16907_v63, %v15243_v24  ;;  %v15382_v20 = vor.u32 %v16943_v53, %v15379_v5  ;;  %v16921_v14 = vld [vmem:[%s24663_s1 + $0x2044] sm:$0xf]  ;;  %v16919_v5 = vld [vmem:[%s24663_s1 + $0x2034] sm:$0xf] }
 0x436   : > { %9513 = vmatpush.bf16.msrb.mxu0 %v15554_v33  ;;  %v16978_v33 = vld [vmem:[%s24663_s1 + $0x2204] sm:$0xf0]  ;;  %v15499_v37 = vld [vmem:[%s24663_s1 + $0x21e8] sm:$0xf0] }
 0x437   : > { %9526 = vmatpush.bf16.msrb.mxu1 %v15618_v41  ;;  %v15577_v41 = vld [vmem:[%s24663_s1 + $0x2280] sm:$0xf]  ;;  %v15514_v0 = vor.u32 %v16978_v33, %v15513_v49  ;;  %v24242_v44 = vrot.slane %v15246_v60, 1  ;;  %v16923_v49 = vld [vmem:[%s24663_s1 + $0x2054] sm:$0xf] }
 0x438   : > { %9539 = vmatpush.bf16.msrb.mxu2 %v15682_v22  ;;  %v15522_v22 = vor.u32 %v16980_v26, %v15521_v59  ;;  %v15578_v23 = vor.u32 %v16994_v36, %v15577_v41  ;;  %v15371_v59 = vld [vmem:[%s24663_s1 + $0x20e8] sm:$0xf0]  ;;  %v15510_v26 = vor.u32 %v16975_v17, %v15507_v38  ;;  %v15299_v33 = vld [vmem:[%s24663_s1 + $0x2058] sm:$0xf0]  ;;  %v16939_v41 = vld [vmem:[%s24663_s1 + $0x20d4] sm:$0xf] }
 0x439   : > { %9552 = vmatpush.bf16.msrb.mxu3 %v15746_v42  ;;  %v15586_v42 = vor.u32 %v16996_v8, %v15585_v62  ;;  %v15363_v36 = vld [vmem:[%s24663_s1 + $0x20d8] sm:$0xf0]  ;;  %v15302_v10 = vor.u32 %v16923_v49, %v15299_v33 }
 0x43a   : > { %9514 = vmatpush.bf16.msrb.mxu0 %v15546_v15  ;;  %v15249_v15 = vld [vmem:[%s17410_s6 + $0x38] sm:$0xe]  ;;  %v15366_v6 = vor.u32 %v16939_v41, %v15363_v36  ;;  %v15411_v17 = vld [vmem:[%s24663_s1 + $0x2138] sm:$0xf0] }
 0x43b   : > { %9527 = vmatpush.bf16.msrb.mxu1 %v15610_v32  ;;  %v15241_v32 = vld [vmem:[%s17410_s6 + $0x30] sm:$0xe]  ;;  %v15267_v36 = vld [vmem:[%s24663_s1 + $0x2018] sm:$0xf0] }
 0x43c   : > { %9540 = vmatpush.bf16.msrb.mxu2 %v15674_v4  ;;  %v8457_v4 = vpop.f32.mrf.mxu2  ;;  %v15242_v57 = vor.u32 %v16911_v46, %v15241_v32  ;;  %v15419_v46 = vld [vmem:[%s24663_s1 + $0x2148] sm:$0xf0] }
 0x43d   : > { %9553 = vmatpush.bf16.msrb.mxu3 %v15738_v28  ;;  %v8470_v28 = vpop.f32.mrf.mxu3  ;;  %v15355_v4 = vld [vmem:[%s24663_s1 + $0x20c8] sm:$0xf0] }
 0x43e   : > { %9515 = vmatpush.bf16.msrb.mxu0 %v15538_v56  ;;  %v16959_v56 = vld [vmem:[%s24663_s1 + $0x2174] sm:$0xf]  ;;  %v24232_v62 = vrot.slane %v15242_v57, 1 }
 0x43f   : > { %9528 = vmatpush.bf16.msrb.mxu1 %v15602_v16  ;;  %v15443_v16 = vld [vmem:[%s24663_s1 + $0x2178] sm:$0xf0]  ;;  %v16967_v57 = vld [vmem:[%s24663_s1 + $0x21b4] sm:$0xf] }
 0x440   : > { %9541 = vmatpush.bf16.msrb.mxu2 %v15666_v35  ;;  %v15250_v35 = vor.u32 %v16912_v54, %v15249_v15  ;;  %v15446_v9 = vor.u32 %v16959_v56, %v15443_v16  ;;  %v15291_v15 = vld [vmem:[%s24663_s1 + $0x2048] sm:$0xf0]  ;;  %v16937_v54 = vld [vmem:[%s24663_s1 + $0x20c4] sm:$0xf]  ;;  %v15283_v56 = vld [vmem:[%s24663_s1 + $0x2038] sm:$0xf0] }
 0x441   : > { %9554 = vmatpush.bf16.msrb.mxu3 %v15730_v2  ;;  %v15254_v2 = vor.u32 %v16908_v40, %v15251_v39  ;;  %v16969_v40 = vld [vmem:[%s24663_s1 + $0x21c4] sm:$0xf]  ;;  %v15483_v39 = vld [vmem:[%s24663_s1 + $0x21c8] sm:$0xf0]  ;;  %v15294_v28 = vor.u32 %v16921_v14, %v15291_v15  ;;  %v15358_v63 = vor.u32 %v16937_v54, %v15355_v4  ;;  %v16935_v16 = vld [vmem:[%s24663_s1 + $0x20b4] sm:$0xf] }
 0x442   : > { %9516 = vmatpush.bf16.msrb.mxu0 %v15530_v55  ;;  %v16941_v55 = vld [vmem:[%s24663_s1 + $0x20e4] sm:$0xf]  ;;  %v24224_v61 = vrot.slane %v15250_v35, 1  ;;  %v15486_v35 = vor.u32 %v16969_v40, %v15483_v39  ;;  %v16963_v14 = vld [vmem:[%s24663_s1 + $0x2194] sm:$0xf] }
 0x443   : > { %9529 = vmatpush.bf16.msrb.mxu1 %v15594_v7  ;;  %v16957_v7 = vld [vmem:[%s24663_s1 + $0x2164] sm:$0xf]  ;;  %v24234_v8 = vrot.slane %v15254_v2, 1  ;;  %v15374_v25 = vor.u32 %v16941_v55, %v15371_v59  ;;  %v15475_v2 = vld [vmem:[%s24663_s1 + $0x21b8] sm:$0xf0] }
 0x444   : > { %9542 = vmatpush.bf16.msrb.mxu2 %v15658_v30  ;;  %v15435_v30 = vld [vmem:[%s24663_s1 + $0x2168] sm:$0xf0]  ;;  %v15478_v55 = vor.u32 %v16967_v57, %v15475_v2  ;;  %v16913_v54 = vld [vmem:[%s24663_s1 + $0x2004] sm:$0xf]  ;;  %v17039_v2 = vld [vmem:[%s24663_s1 + $0x23f4] sm:$0xf] }
 0x445   : > { %9555 = vmatpush.bf16.msrb.mxu3 %v15722_v58  ;;  %v15310_v58 = vor.u32 %v16925_v19, %v15307_v21  ;;  %v15438_v45 = vor.u32 %v16957_v7, %v15435_v30  ;;  %v16933_v21 = vld [vmem:[%s24663_s1 + $0x20a4] sm:$0xf]  ;;  %v15339_v7 = vld [vmem:[%s24663_s1 + $0x20a8] sm:$0xf0] }
 0x446   : > { %9517 = vmatpush.bf16.msrb.mxu0 %v15522_v22  ;;  %v15502_v22 = vor.u32 %v16973_v27, %v15499_v37  ;;  %v16949_v30 = vld [vmem:[%s24663_s1 + $0x2124] sm:$0xf]  ;;  %v15403_v27 = vld [vmem:[%s24663_s1 + $0x2128] sm:$0xf0]  ;;  %v15342_v33 = vor.u32 %v16933_v21, %v15339_v7 }
 0x447   : > { %9530 = vmatpush.bf16.msrb.mxu1 %v15586_v42  ;;  %v16971_v42 = vld [vmem:[%s24663_s1 + $0x21d4] sm:$0xf]  ;;  %v16965_v37 = vld [vmem:[%s24663_s1 + $0x21a4] sm:$0xf]  ;;  %v15406_v41 = vor.u32 %v16949_v30, %v15403_v27  ;;  %v15323_v40 = vld [vmem:[%s24663_s1 + $0x2088] sm:$0xf0] }
 0x448   : > { %9543 = vmatpush.bf16.msrb.mxu2 %v15650_v11  ;;  %v15491_v11 = vld [vmem:[%s24663_s1 + $0x21d8] sm:$0xf0]  ;;  %v16945_v39 = vld [vmem:[%s24663_s1 + $0x2104] sm:$0xf]  ;;  %v15563_v21 = vld [vmem:[%s24663_s1 + $0x2268] sm:$0xf0] }
 0x449   : > { %9556 = vmatpush.bf16.msrb.mxu3 %v15714_v43  ;;  %v15494_v32 = vor.u32 %v16971_v42, %v15491_v11  ;;  %v16953_v43 = vld [vmem:[%s24663_s1 + $0x2144] sm:$0xf]  ;;  %v15691_v30 = vld [vmem:[%s24663_s1 + $0x2368] sm:$0xf0] }
 0x44a   : > { %9518 = vmatpush.bf16.msrb.mxu0 %v15514_v0  ;;  %v8481_v53 = vpop.f32.mrf.mxu0  ;;  %v15422_v24 = vor.u32 %v16953_v43, %v15419_v46  ;;  %v16929_v46 = vld [vmem:[%s24663_s1 + $0x2084] sm:$0xf] }
 0x44b   : > { %9531 = vmatpush.bf16.msrb.mxu1 %v15578_v23  ;;  %v8482_v0 = vadd.f32 %v8481_v53, %v24136_v51  ;;  %v8494_v23 = vpop.f32.mrf.mxu1  ;;  %v16951_v51 = vld [vmem:[%s24663_s1 + $0x2134] sm:$0xf]  ;;  %v17021_v7 = vld [vmem:[%s24663_s1 + $0x2364] sm:$0xf] }
 0x44c   : > { %9544 = vmatpush.bf16.msrb.mxu2 %v15642_v29  ;;  %v15347_v29 = vld [vmem:[%s24663_s1 + $0x20b8] sm:$0xf0]  ;;  %v15414_v19 = vor.u32 %v16951_v51, %v15411_v17  ;;  %v17023_v51 = vld [vmem:[%s24663_s1 + $0x2374] sm:$0xf]  ;;  %v17037_v27 = vld [vmem:[%s24663_s1 + $0x23e4] sm:$0xf] }
 0x44d   : > { %9557 = vmatpush.bf16.msrb.mxu3 %v15706_v3  ;;  %9519 = vmatmul.bf16.vlgmr.msrb.gmra.mxu0 %v24232_v62  ;;  %v8495_v38 = vadd.f32 %v8494_v23, %v8482_v0  ;;  %v15286_v3 = vor.u32 %v16919_v5, %v15283_v56  ;;  %v15451_v0 = vld [vmem:[%s24663_s1 + $0x2188] sm:$0xf0]  ;;  %v16991_v5 = vld [vmem:[%s24663_s1 + $0x2274] sm:$0xf]  ;;  %v15571_v56 = vld [vmem:[%s24663_s1 + $0x2278] sm:$0xf0] }
 0x44e   : > { %9563 = vmatpush.bf16.msra.mxu0 %v15318_v18  ;;  %9532 = vmatmul.bf16.vlgmr.msrb.gmra.mxu1 %v24242_v44  ;;  %v15350_v18 = vor.u32 %v16935_v16, %v15347_v29  ;;  %v17007_v16 = vld [vmem:[%s24663_s1 + $0x22f4] sm:$0xf]  ;;  %v15635_v29 = vld [vmem:[%s24663_s1 + $0x22f8] sm:$0xf0] }
 0x44f   : > { %9576 = vmatpush.bf16.msra.mxu1 %v15382_v20  ;;  %9545 = vmatmul.bf16.vlgmr.msrb.gmra.mxu2 %v24224_v61  ;;  %v16917_v20 = vld [vmem:[%s24663_s1 + $0x2024] sm:$0xf]  ;;  %v15699_v17 = vld [vmem:[%s24663_s1 + $0x2378] sm:$0xf0] }
 0x450   : > { %9589 = vmatpush.bf16.msra.mxu2 %v15446_v9  ;;  %9558 = vmatmul.bf16.vlgmr.msrb.gmra.mxu3 %v24234_v8  ;;  %v15275_v9 = vld [vmem:[%s24663_s1 + $0x2028] sm:$0xf0] }
 0x451   : > { %9602 = vmatpush.bf16.msra.mxu3 %v15510_v26 }
 0x452   : > { %9564 = vmatpush.bf16.msra.mxu0 %v15310_v58  ;;  %v8507_v60 = vpop.f32.mrf.mxu2  ;;  %v15467_v58 = vld [vmem:[%s24663_s1 + $0x21a8] sm:$0xf0]  ;;  %v8483_v49 = vpop.f32.mrf.mxu0 }
 0x453   : > { %9577 = vmatpush.bf16.msra.mxu1 %v15374_v25  ;;  %v8508_v59 = vadd.f32 %v8507_v60, %v8495_v38  ;;  %v8520_v26 = vpop.f32.mrf.mxu3  ;;  %v8496_v12 = vpop.f32.mrf.mxu1  ;;  %v15470_v11 = vor.u32 %v16965_v37, %v15467_v58  ;;  %v15326_v38 = vor.u32 %v16929_v46, %v15323_v40  ;;  %v15638_v60 = vor.u32 %v17007_v16, %v15635_v29  ;;  %v15755_v37 = vld [vmem:[%s24663_s1 + $0x23e8] sm:$0xf0]  ;;  %v16987_v49 = vld [vmem:[%s24663_s1 + $0x2254] sm:$0xf]  ;;  %v15731_v29 = vld [vmem:[%s24663_s1 + $0x23b8] sm:$0xf0] }
 0x454   : > { %9590 = vmatpush.bf16.msra.mxu2 %v15438_v45  ;;  %v15278_v45 = vor.u32 %v16917_v20, %v15275_v9  ;;  %v15702_v20 = vor.u32 %v17023_v51, %v15699_v17  ;;  %v16989_v9 = vld [vmem:[%s24663_s1 + $0x2264] sm:$0xf]  ;;  %v15683_v12 = vld [vmem:[%s24663_s1 + $0x2358] sm:$0xf0] }
 0x455   : > { %9603 = vmatpush.bf16.msra.mxu3 %v15502_v22  ;;  %v8521_v25 = vadd.f32 %v8520_v26, %v8508_v59  ;;  %v16915_v22 = vld [vmem:[%s24663_s1 + $0x2014] sm:$0xf]  ;;  %v15627_v26 = vld [vmem:[%s24663_s1 + $0x22e8] sm:$0xf0]  ;;  %v15566_v58 = vor.u32 %v16989_v9, %v15563_v21 }
 0x456   : > { %9565 = vmatpush.bf16.msra.mxu0 %v15302_v10  ;;  %v15331_v10 = vld [vmem:[%s24663_s1 + $0x2098] sm:$0xf0]  ;;  %v15270_v15 = vor.u32 %v16915_v22, %v15267_v36  ;;  %v15758_v22 = vor.u32 %v17037_v27, %v15755_v37  ;;  %v15659_v9 = vld [vmem:[%s24663_s1 + $0x2328] sm:$0xf0] }
 0x457   : > { %9578 = vmatpush.bf16.msra.mxu1 %v15366_v6  ;;  %v24355_v42 = vadd.f32 %v8521_v25, %v23527_v13  ;;  %v16947_v6 = vld [vmem:[%s24663_s1 + $0x2114] sm:$0xf]  ;;  %v15459_v13 = vld [vmem:[%s24663_s1 + $0x2198] sm:$0xf0]  ;;  %v15334_v4 = vor.u32 %v16931_v50, %v15331_v10 }
 0x458   : > { %9591 = vmatpush.bf16.msra.mxu2 %v15430_v47  ;;  %v15395_v47 = vld [vmem:[%s24663_s1 + $0x2118] sm:$0xf0]  ;;  %v15462_v53 = vor.u32 %v16963_v14, %v15459_v13  ;;  %v17019_v50 = vld [vmem:[%s24663_s1 + $0x2354] sm:$0xf]  ;;  %v16985_v14 = vld [vmem:[%s24663_s1 + $0x2244] sm:$0xf] }
 0x459   : > { %9604 = vmatpush.bf16.msra.mxu3 %v15494_v32  ;;  %v15259_v32 = vld [vmem:[%s24663_s1 + $0x2008] sm:$0xf0]  ;;  %v15398_v43 = vor.u32 %v16947_v6, %v15395_v47  ;;  %v15619_v36 = vld [vmem:[%s24663_s1 + $0x22d8] sm:$0xf0]  ;;  %v15686_v47 = vor.u32 %v17019_v50, %v15683_v12  ;;  %v17027_v12 = vld [vmem:[%s24663_s1 + $0x2394] sm:$0xf] }
 0x45a   : > { %9566 = vmatpush.bf16.msra.mxu0 %v15294_v28  ;;  %v8509_v28 = vpop.f32.mrf.mxu2  ;;  %v15547_v13 = vld [vmem:[%s24663_s1 + $0x2248] sm:$0xf0]  ;;  %v15651_v50 = vld [vmem:[%s24663_s1 + $0x2318] sm:$0xf0] }
 0x45b   : > { %9579 = vmatpush.bf16.msra.mxu1 %v15358_v63  ;;  %v15387_v63 = vld [vmem:[%s24663_s1 + $0x2108] sm:$0xf0]  ;;  %v8522_v23 = vpop.f32.mrf.mxu3  ;;  %v16983_v28 = vld [vmem:[%s24663_s1 + $0x2234] sm:$0xf] }
 0x45c   : > { %9592 = vmatpush.bf16.msra.mxu2 %v15422_v24  ;;  %v16961_v24 = vld [vmem:[%s24663_s1 + $0x2184] sm:$0xf]  ;;  %v15390_v57 = vor.u32 %v16945_v39, %v15387_v63  ;;  %v16999_v63 = vld [vmem:[%s24663_s1 + $0x22b4] sm:$0xf]  ;;  %v15603_v23 = vld [vmem:[%s24663_s1 + $0x22b8] sm:$0xf0] }
 0x45d   : > { %9605 = vmatpush.bf16.msra.mxu3 %v15486_v35  ;;  %v15262_v35 = vor.u32 %v16913_v54, %v15259_v32  ;;  %v15675_v54 = vld [vmem:[%s24663_s1 + $0x2348] sm:$0xf0]  ;;  %v17033_v32 = vld [vmem:[%s24663_s1 + $0x23c4] sm:$0xf]  ;;  %v15606_v17 = vor.u32 %v16999_v63, %v15603_v23  ;;  %v17048_v23 = vld [vmem:[%s24666_s4 + $0x38] sm:$0xff] }
 0x45e   : > { %9567 = vmatpush.bf16.msra.mxu0 %v15286_v3  ;;  %v15763_v3 = vld [vmem:[%s24663_s1 + $0x23f8] sm:$0xf0] }
 0x45f   : > { %9580 = vmatpush.bf16.msra.mxu1 %v15350_v18  ;;  %v15454_v18 = vor.u32 %v16961_v24, %v15451_v0  ;;  %v15766_v59 = vor.u32 %v17039_v2, %v15763_v3  ;;  %v15531_v2 = vld [vmem:[%s24663_s1 + $0x2228] sm:$0xf0]  ;;  %v16997_v3 = vld [vmem:[%s24663_s1 + $0x22a4] sm:$0xf] }
 0x460   : > { %9593 = vmatpush.bf16.msra.mxu2 %v15414_v19  ;;  %v15574_v19 = vor.u32 %v16991_v5, %v15571_v56  ;;  %v17015_v5 = vld [vmem:[%s24663_s1 + $0x2334] sm:$0xf]  ;;  %v15667_v56 = vld [vmem:[%s24663_s1 + $0x2338] sm:$0xf0] }
 0x461   : > { %9606 = vmatpush.bf16.msra.mxu3 %v15478_v55  ;;  %v17005_v55 = vld [vmem:[%s24663_s1 + $0x22e4] sm:$0xf] }
 0x462   : > { %9568 = vmatpush.bf16.msra.mxu0 %v15278_v45  ;;  %v15630_v25 = vor.u32 %v17005_v55, %v15627_v26  ;;  %v15694_v45 = vor.u32 %v17021_v7, %v15691_v30  ;;  %v15723_v26 = vld [vmem:[%s24663_s1 + $0x23a8] sm:$0xf0] }
 0x463   : > { %9581 = vmatpush.bf16.msra.mxu1 %v15342_v33  ;;  %v15555_v33 = vld [vmem:[%s24663_s1 + $0x2258] sm:$0xf0] }
 0x464   : > { %9594 = vmatpush.bf16.msra.mxu2 %v15406_v41  ;;  %v17003_v41 = vld [vmem:[%s24663_s1 + $0x22d4] sm:$0xf]  ;;  %v15558_v10 = vor.u32 %v16987_v49, %v15555_v33 }
 0x465   : > { %9607 = vmatpush.bf16.msra.mxu3 %v15470_v11  ;;  %v17035_v11 = vld [vmem:[%s24663_s1 + $0x23d4] sm:$0xf]  ;;  %v15622_v6 = vor.u32 %v17003_v41, %v15619_v36 }
 0x466   : > { %9569 = vmatpush.bf16.msra.mxu0 %v15270_v15  ;;  %v17017_v15 = vld [vmem:[%s24663_s1 + $0x2344] sm:$0xf]  ;;  %v16995_v49 = vld [vmem:[%s24663_s1 + $0x2294] sm:$0xf] }
 0x467   : > { %9582 = vmatpush.bf16.msra.mxu1 %v15334_v4  ;;  %v15739_v4 = vld [vmem:[%s24663_s1 + $0x23c8] sm:$0xf0]  ;;  %v15678_v39 = vor.u32 %v17017_v15, %v15675_v54  ;;  %v17011_v36 = vld [vmem:[%s24663_s1 + $0x2314] sm:$0xf]  ;;  %v17009_v15 = vld [vmem:[%s24663_s1 + $0x2304] sm:$0xf] }
 0x468   : > { %9595 = vmatpush.bf16.msra.mxu2 %v15398_v43  ;;  %v15550_v43 = vor.u32 %v16985_v14, %v15547_v13  ;;  %v15742_v0 = vor.u32 %v17033_v32, %v15739_v4  ;;  %v15515_v14 = vld [vmem:[%s24663_s1 + $0x2208] sm:$0xf0]  ;;  %v16993_v13 = vld [vmem:[%s24663_s1 + $0x2284] sm:$0xf] }
 0x469   : > { %9608 = vmatpush.bf16.msra.mxu3 %v15462_v53  ;;  %v15539_v53 = vld [vmem:[%s24663_s1 + $0x2238] sm:$0xf0]  ;;  %v15643_v54 = vld [vmem:[%s24663_s1 + $0x2308] sm:$0xf0]  ;;  %v17025_v4 = vld [vmem:[%s24663_s1 + $0x2384] sm:$0xf] }
 0x46a   : > { %9570 = vmatpush.bf16.msra.mxu0 %v15262_v35  ;;  %v8533_v46 = vpop.f32.mrf.mxu0  ;;  %v17031_v35 = vld [vmem:[%s24663_s1 + $0x23b4] sm:$0xf]  ;;  %v15542_v51 = vor.u32 %v16983_v28, %v15539_v53 }
 0x46b   : > { %9583 = vmatpush.bf16.msra.mxu1 %v15326_v38  ;;  %v8546_v24 = vpop.f32.mrf.mxu1  ;;  %v15670_v38 = vor.u32 %v17015_v5, %v15667_v56 }
 0x46c   : > { %9596 = vmatpush.bf16.msra.mxu2 %v15390_v57  ;;  %v8547_v16 = vadd.f32 %v8546_v24, %v8533_v46  ;;  %v16981_v57 = vld [vmem:[%s24663_s1 + $0x2224] sm:$0xf] }
 0x46d   : > { %9609 = vmatpush.bf16.msra.mxu3 %v15454_v18  ;;  %9571 = vmatmul.bf16.vlgmr.msra.gmra.mxu0 %v24024_v34  ;;  %v17001_v34 = vld [vmem:[%s24663_s1 + $0x22c4] sm:$0xf]  ;;  %v15534_v7 = vor.u32 %v16981_v57, %v15531_v2 }
 0x46e   : > { %9615 = vmatpush.bf16.msrb.mxu0 %v15574_v19  ;;  %9584 = vmatmul.bf16.vlgmr.msra.gmra.mxu1 %v24028_v31  ;;  %v15611_v31 = vld [vmem:[%s24663_s1 + $0x22c8] sm:$0xf0]  ;;  %v15734_v19 = vor.u32 %v17031_v35, %v15731_v29 }
 0x46f   : > { %9628 = vmatpush.bf16.msrb.mxu1 %v15638_v60  ;;  %9597 = vmatmul.bf16.vlgmr.msra.gmra.mxu2 %v24016_v1  ;;  %v15747_v1 = vld [vmem:[%s24663_s1 + $0x23d8] sm:$0xf0]  ;;  %v15614_v40 = vor.u32 %v17001_v34, %v15611_v31  ;;  %v15595_v60 = vld [vmem:[%s24663_s1 + $0x22a8] sm:$0xf0] }
 0x470   : > { %9641 = vmatpush.bf16.msrb.mxu2 %v15702_v20  ;;  %9610 = vmatmul.bf16.vlgmr.msra.gmra.mxu3 %v24026_v52  ;;  %v15750_v52 = vor.u32 %v17035_v11, %v15747_v1  ;;  %v17013_v20 = vld [vmem:[%s24663_s1 + $0x2324] sm:$0xf]  ;;  %v15598_v37 = vor.u32 %v16997_v3, %v15595_v60  ;;  %v15715_v11 = vld [vmem:[%s24663_s1 + $0x2398] sm:$0xf0]  ;;  %v15579_v31 = vld [vmem:[%s24663_s1 + $0x2288] sm:$0xf0] }
 0x471   : > { %9654 = vmatpush.bf16.msrb.mxu3 %v15766_v59  ;;  %v17029_v59 = vld [vmem:[%s24663_s1 + $0x23a4] sm:$0xf]  ;;  %v17046_v29 = vld [vmem:[%s24666_s4 + $0x28] sm:$0xff]  ;;  %v17043_v60 = vld [vmem:[%s24666_s4 + $0x10] sm:$0xff] }
 0x472   : > { %9616 = vmatpush.bf16.msrb.mxu0 %v15566_v58  ;;  %v8559_v18 = vpop.f32.mrf.mxu2  ;;  %v8535_v27 = vpop.f32.mrf.mxu0  ;;  %v15662_v58 = vor.u32 %v17013_v20, %v15659_v9  ;;  %v15726_v41 = vor.u32 %v17029_v59, %v15723_v26  ;;  %v17042_v9 = vld [vmem:[%s24666_s4 + $0x8] sm:$0xff]  ;;  %v17041_v59 = vld [vmem:[%s24666_s4] sm:$0xff] }
 0x473   : > { %9629 = vmatpush.bf16.msrb.mxu1 %v15630_v25  ;;  %v8560_v21 = vadd.f32 %v8559_v18, %v8547_v16  ;;  %v8572_v55 = vpop.f32.mrf.mxu3  ;;  %v16979_v25 = vld [vmem:[%s24663_s1 + $0x2214] sm:$0xf]  ;;  %v8548_v33 = vpop.f32.mrf.mxu1 }
 0x474   : > { %9642 = vmatpush.bf16.msrb.mxu2 %v15694_v45  ;;  %v15523_v45 = vld [vmem:[%s24663_s1 + $0x2218] sm:$0xf0] }
 0x475   : > { %9655 = vmatpush.bf16.msrb.mxu3 %v15758_v22  ;;  %v8573_v30 = vadd.f32 %v8572_v55, %v8560_v21  ;;  %v15587_v22 = vld [vmem:[%s24663_s1 + $0x2298] sm:$0xf0]  ;;  %v15526_v1 = vor.u32 %v16979_v25, %v15523_v45 }
 0x476   : > { %9617 = vmatpush.bf16.msrb.mxu0 %v15558_v10  ;;  %v15590_v10 = vor.u32 %v16995_v49, %v15587_v22  ;;  %v9675_v49 = vld [vmem:[%s24664_s2] sm:$0x3] }
 0x477   : > { %9630 = vmatpush.bf16.msrb.mxu1 %v15622_v6  ;;  %v15654_v6 = vor.u32 %v17011_v36, %v15651_v50  ;;  %v9683_v22 = vld [vmem:[%s24665_s3] sm:$0x3]  ;;  %v9677_v50 = vperm.slane %v9675_v49, 0 }
 0x478   : > { %9643 = vmatpush.bf16.msrb.mxu2 %v15686_v47  ;;  %v16977_v47 = vld [vmem:[%s24663_s1 + $0x2204] sm:$0xf] }
 0x479   : > { %9656 = vmatpush.bf16.msrb.mxu3 %v15750_v52  ;;  %v15718_v52 = vor.u32 %v17027_v12, %v15715_v11  ;;  %v15518_v46 = vor.u32 %v16977_v47, %v15515_v14 }
 0x47a   : > { %9618 = vmatpush.bf16.msrb.mxu0 %v15550_v43  ;;  %v8561_v34 = vpop.f32.mrf.mxu2  ;;  %v15707_v43 = vld [vmem:[%s24663_s1 + $0x2388] sm:$0xf0] }
 0x47b   : > { %9631 = vmatpush.bf16.msrb.mxu1 %v15614_v40  ;;  %v8574_v32 = vpop.f32.mrf.mxu3  ;;  %v15582_v40 = vor.u32 %v16993_v13, %v15579_v31  ;;  %v15710_v28 = vor.u32 %v17025_v4, %v15707_v43  ;;  %v17055_v13 = vld [vmem:[%s24666_s4 + $0x70] sm:$0xff]  ;;  %v17052_v43 = vld [vmem:[%s24666_s4 + $0x58] sm:$0xff] }
 0x47c   : > { %9644 = vmatpush.bf16.msrb.mxu2 %v15678_v39  ;;  %v15646_v39 = vor.u32 %v17009_v15, %v15643_v54  ;;  %v17053_v54 = vld [vmem:[%s24666_s4 + $0x60] sm:$0xff] }
 0x47d   : > { %9657 = vmatpush.bf16.msrb.mxu3 %v15742_v0 }
 0x47e   : > { %9619 = vmatpush.bf16.msrb.mxu0 %v15542_v51 }
 0x47f   : > { %9632 = vmatpush.bf16.msrb.mxu1 %v15606_v17 }
 0x480   : > { %9645 = vmatpush.bf16.msrb.mxu2 %v15670_v38  ;;  %v17045_v38 = vld [vmem:[%s24666_s4 + $0x20] sm:$0xff] }
 0x481   : > { %9658 = vmatpush.bf16.msrb.mxu3 %v15734_v19 }
 0x482   : > { %9620 = vmatpush.bf16.msrb.mxu0 %v15534_v7 }
 0x483   : > { %9633 = vmatpush.bf16.msrb.mxu1 %v15598_v37 }
 0x484   : > { %9646 = vmatpush.bf16.msrb.mxu2 %v15662_v58 }
 0x485   : > { %9659 = vmatpush.bf16.msrb.mxu3 %v15726_v41 }
 0x486   : > { %9621 = vmatpush.bf16.msrb.mxu0 %v15526_v1 }
 0x487   : > { %9634 = vmatpush.bf16.msrb.mxu1 %v15590_v10  ;;  %v9685_v10 = vperm.slane %v9683_v22, 0 }
 0x488   : > { %9647 = vmatpush.bf16.msrb.mxu2 %v15654_v6  ;;  %v17056_v6 = vld [vmem:[%s24666_s4 + $0x78] sm:$0xff] }
 0x489   : > { %9660 = vmatpush.bf16.msrb.mxu3 %v15718_v52 }
 0x48a   : > { %9622 = vmatpush.bf16.msrb.mxu0 %v15518_v46  ;;  %v8585_v53 = vpop.f32.mrf.mxu0 }
 0x48b   : > { %9635 = vmatpush.bf16.msrb.mxu1 %v15582_v40  ;;  %v8586_v63 = vadd.f32 %v8585_v53, %v8573_v30  ;;  %v8598_v24 = vpop.f32.mrf.mxu1 }
 0x48c   : > { %9648 = vmatpush.bf16.msrb.mxu2 %v15646_v39  ;;  %v17051_v39 = vld [vmem:[%s24666_s4 + $0x50] sm:$0xff] }
 0x48d   : > { %9661 = vmatpush.bf16.msrb.mxu3 %v15710_v28  ;;  %9623 = vmatmul.bf16.vlgmr.msrb.gmra.mxu0 %v24232_v62  ;;  %v8599_v0 = vadd.f32 %v8598_v24, %v8586_v63  ;;  %v17047_v62 = vld [vmem:[%s24666_s4 + $0x30] sm:$0xff]  ;;  %v17050_v63 = vld [vmem:[%s24666_s4 + $0x48] sm:$0xff] }
 0x48e   : > { %9636 = vmatmul.bf16.vlgmr.msrb.gmra.mxu1 %v24242_v44  ;;  %9823 = vmatpush.bf16.msra.mxu0 %v17048_v23  ;;  %v17049_v23 = vld [vmem:[%s24666_s4 + $0x40] sm:$0xff] }
 0x48f   : > { %9649 = vmatmul.bf16.vlgmr.msrb.gmra.mxu2 %v24224_v61  ;;  %9836 = vmatpush.bf16.msra.mxu1 %v17056_v6 }
 0x490   : > { %9662 = vmatmul.bf16.vlgmr.msrb.gmra.mxu3 %v24234_v8 }
 0x492   : > { %v8611_v5 = vpop.f32.mrf.mxu2  ;;  %v8587_v61 = vpop.f32.mrf.mxu0  ;;  %9824 = vmatpush.bf16.msra.mxu0 %v17047_v62 }
 0x493   : > { %v8612_v56 = vadd.f32 %v8611_v5, %v8599_v0  ;;  %v8624_v16 = vpop.f32.mrf.mxu3  ;;  %v8600_v35 = vpop.f32.mrf.mxu1  ;;  %9837 = vmatpush.bf16.msra.mxu1 %v17055_v13 }
 0x495   : > { %v8625_v44 = vadd.f32 %v8624_v16, %v8612_v56 }
 0x496   : > { %9825 = vmatpush.bf16.msra.mxu0 %v17046_v29 }
 0x497   : > { %v24603_v8 = vadd.f32 %v8625_v44, %v23931_v48  ;;  %v17044_v48 = vld [vmem:[%s24666_s4 + $0x18] sm:$0xff] }
 0x49a   : > { %v8613_v51 = vpop.f32.mrf.mxu2  ;;  %9826 = vmatpush.bf16.msra.mxu0 %v17045_v38 }
 0x49b   : > { %v8626_v17 = vpop.f32.mrf.mxu3 }
 0x49e   : > { %9827 = vmatpush.bf16.msra.mxu0 %v17044_v48  ;;  %v9678_v48 = vperm.slane %v9675_v49, 1 }
 0x4a2   : > { %9828 = vmatpush.bf16.msra.mxu0 %v17043_v60 }
 0x4a6   : > { %9829 = vmatpush.bf16.msra.mxu0 %v17042_v9 }
 0x4aa   : > { %v9468_v57 = vpop.f32.mrf.mxu0  ;;  %9830 = vmatpush.bf16.msra.mxu0 %v17041_v59 }
 0x4ab   : > { %v9481_v2 = vpop.f32.mrf.mxu1 }
 0x4ac   : > { %v9482_v26 = vadd.f32 %v9481_v2, %v9468_v57 }
 0x4b2   : > { %v9494_v3 = vpop.f32.mrf.mxu2  ;;  %v9470_v19 = vpop.f32.mrf.mxu0 }
 0x4b3   : > { %v9507_v18 = vpop.f32.mrf.mxu3  ;;  %v9483_v20 = vpop.f32.mrf.mxu1  ;;  %v9495_v7 = vadd.f32 %v9494_v3, %v9482_v26 }
 0x4b5   : > { %v9508_v30 = vadd.f32 %v9507_v18, %v9495_v7  ;;  %v9686_v18 = vperm.slane %v9683_v22, 1 }
 0x4ba   : > { %v9496_v21 = vpop.f32.mrf.mxu2 }
 0x4bb   : > { %v9509_v55 = vpop.f32.mrf.mxu3 }
 0x4ca   : > { %v9520_v27 = vpop.f32.mrf.mxu0 }
 0x4cb   : > { %v9521_v37 = vadd.f32 %v9520_v27, %v9508_v30  ;;  %v9533_v58 = vpop.f32.mrf.mxu1 }
 0x4cd   : > { %v9534_v25 = vadd.f32 %v9533_v58, %v9521_v37 }
 0x4d2   : > { %v9546_v45 = vpop.f32.mrf.mxu2  ;;  %v9522_v12 = vpop.f32.mrf.mxu0 }
 0x4d3   : > { %v9547_v33 = vadd.f32 %v9546_v45, %v9534_v25  ;;  %v9559_v41 = vpop.f32.mrf.mxu3  ;;  %v9535_v11 = vpop.f32.mrf.mxu1 }
 0x4d5   : > { %v9560_v36 = vadd.f32 %v9559_v41, %v9547_v33 }
 0x4d7   : > { %v9669_v1 = vadd.f32 %v9560_v36, %v24355_v42  ;;  %v17054_v42 = vld [vmem:[%s24666_s4 + $0x68] sm:$0xff] }
 0x4d8   : > { %9838 = vmatpush.bf16.msra.mxu1 %v17054_v42 }
 0x4d9   : > { %v9681_v47 = vmul.f32 %v9677_v50, %v9669_v1 }
 0x4da   : > { %v9548_v14 = vpop.f32.mrf.mxu2 }
 0x4db   : > { %v9689_v34 = vadd.f32 %v9685_v10, %v9681_v47  ;;  %v9561_v52 = vpop.f32.mrf.mxu3 }
 0x4dc   : > { %9839 = vmatpush.bf16.msra.mxu1 %v17053_v54 }
 0x4dd   : > { %v9691_v31 = vmax.f32 %v9689_v34, 0.0 }
 0x4df   : > { %v9693_v15 = vpack.c.bf16 %v9691_v31, %v9691_v31 }
 0x4e0   : > { %9840 = vmatpush.bf16.msra.mxu1 %v17052_v43 }
 0x4e1   : > { %9831 = vmatmul.bf16.vlgmr.msra.gmra.mxu0 %v9693_v15 }
 0x4e4   : > { %9841 = vmatpush.bf16.msra.mxu1 %v17051_v39 }
 0x4e8   : > { %9842 = vmatpush.bf16.msra.mxu1 %v17050_v63 }
 0x4ea   : > { %v9572_v32 = vpop.f32.mrf.mxu0 }
 0x4eb   : > { %v9585_v4 = vpop.f32.mrf.mxu1 }
 0x4ec   : > { %9843 = vmatpush.bf16.msra.mxu1 %v17049_v23  ;;  %v9586_v5 = vadd.f32 %v9585_v4, %v9572_v32 }
 0x4f2   : > { %v9598_v46 = vpop.f32.mrf.mxu2  ;;  %v9574_v28 = vpop.f32.mrf.mxu0 }
 0x4f3   : > { %v9611_v40 = vpop.f32.mrf.mxu3  ;;  %v9587_v53 = vpop.f32.mrf.mxu1  ;;  %v9599_v56 = vadd.f32 %v9598_v46, %v9586_v5 }
 0x4f5   : > { %v9612_v16 = vadd.f32 %v9611_v40, %v9599_v56 }
 0x4fa   : > { %v9600_v24 = vpop.f32.mrf.mxu2 }
 0x4fb   : > { %v9613_v0 = vpop.f32.mrf.mxu3 }
 0x50a   : > { %v9624_v62 = vpop.f32.mrf.mxu0 }
 0x50b   : > { %v9637_v44 = vpop.f32.mrf.mxu1  ;;  %v9625_v61 = vadd.f32 %v9624_v62, %v9612_v16 }
 0x50d   : > { %v9638_v35 = vadd.f32 %v9637_v44, %v9625_v61 }
 0x512   : > { %v9650_v29 = vpop.f32.mrf.mxu2  ;;  %v9626_v38 = vpop.f32.mrf.mxu0 }
 0x513   : > { %v9651_v51 = vadd.f32 %v9650_v29, %v9638_v35  ;;  %v9663_v17 = vpop.f32.mrf.mxu3  ;;  %v9639_v57 = vpop.f32.mrf.mxu1 }
 0x515   : > { %v9664_v2 = vadd.f32 %v9663_v17, %v9651_v51 }
 0x517   : > { %v9670_v3 = vadd.f32 %v9664_v2, %v24603_v8 }
 0x519   : > { %v9682_v19 = vmul.f32 %v9678_v48, %v9670_v3 }
 0x51a   : > { %v9652_v60 = vpop.f32.mrf.mxu2 }
 0x51b   : > { %v9690_v20 = vadd.f32 %v9686_v18, %v9682_v19  ;;  %v9665_v9 = vpop.f32.mrf.mxu3 }
 0x51d   : > { %v9692_v21 = vmax.f32 %v9690_v20, 0.0 }
 0x51f   : > { %v9694_v55 = vpack.c.bf16 %v9692_v21, %v9692_v21 }
 0x521   : > { %9844 = vmatmul.bf16.vlgmr.msra.gmra.mxu1 %v9694_v55 }
 0x55e   : > { %v9832_v59 = vpop.f32.mrf.mxu0 }
 0x566   : > { %v9834_v26 = vpop.f32.mrf.mxu0 }
 0x59e   : > { %v9845_v7 = vpop.f32.mrf.mxu1 }
 0x59f   : > { %v9846_v30 = vadd.f32 %v9845_v7, %v9832_v59 }
 0x5a1   : > { %v9849_v27 = vpack.c.bf16 %v9846_v30, %v9846_v30 }
 0x5a3   : > { %9850 = vst [vmem:[%s222_s29] sm:$0xf] %v9849_v27 }
 0x5a6   : > { %v9847_v8 = vpop.f32.mrf.mxu1 }
 0x5a7 PF: > { %s15_s18 = sadd.s32 1, %s17072_s18  }
 0x5a8   : > { %p12_p4 = scmp.ge.s32.totalorder %s15_s18, 4  }
 0x5aa   :  { %14 = sbr.rel (!%p12_p4) target bundleno = 1 (0x1), region = 78 }

</bundles_post_ra>
